<compile_context>
chip_gen: v7x
topology: tpu7x:2x2x1
jax: 0.10.0
libtpu: 0.0.40
codegen_flags: <defaults>
</compile_context>

<pallas_src>
import functools

import jax
import jax.numpy as jnp
import numpy as np
from jax.experimental import pallas as pl
from jax.experimental.pallas import tpu as pltpu

KSIZE = 3
PAD = 1
GROUPS = 4
BN_EPS = 1e-5


# ----------------------------------------------------------------------------
# Fused Pallas kernel: one grid step == one batch image, all 8 stages + residual
# + PReLU + channel shuffle computed with intermediates resident on-chip.
# ----------------------------------------------------------------------------
def _ssnbt_kernel(x_ref, w_ref, s_ref, a_ref, o_ref, *,
                  C, H, W, mid, K, groups, stage_meta):
    """x_ref: (1, C, H*W) VMEM   w_ref: (8*mid*mid*K,) SMEM (BN-scaled weights)
       s_ref: (8*mid,) SMEM      a_ref: (1,) SMEM (PReLU alpha)
       o_ref: (1, C, H*W) VMEM (channel-shuffled output)"""
    HW = H * W
    alpha = a_ref[0]

    # Masks for the 1xK (along-W) conv taps at row boundaries of the flat axis.
    wpos = jax.lax.broadcasted_iota(jnp.int32, (1, HW), 1) % W
    mask_wl = wpos >= 1          # tap (w-1) valid
    mask_wr = wpos <= W - 2      # tap (w+1) valid

    def shift(p, delta):
        # y[:, q] = p[:, q - delta], zero-filled at the ends of the flat axis.
        if delta == 0:
            return p
        if delta > 0:
            z = jnp.zeros((1, delta), jnp.float32)
            return jnp.concatenate([z, p[:, :HW - delta]], axis=1)
        d = -delta
        z = jnp.zeros((1, d), jnp.float32)
        return jnp.concatenate([p[:, d:], z], axis=1)

    def conv_stage(planes, stage, vertical, act):
        if vertical:
            # (K,1) conv along H: shift by +/-W inside one image; the zero fill
            # at the flat-axis ends is exactly the h==0 / h==H-1 zero padding.
            taps = [(shift(p, W), p, shift(p, -W)) for p in planes]
        else:
            # (1,K) conv along W: mask the row boundaries (w==0 / w==W-1).
            taps = [(jnp.where(mask_wl, shift(p, 1), 0.0),
                     p,
                     jnp.where(mask_wr, shift(p, -1), 0.0)) for p in planes]
        outs = []
        for co in range(mid):
            acc = jnp.zeros((1, HW), jnp.float32)
            for ci in range(mid):
                tci = taps[ci]
                for k in range(K):
                    wv = w_ref[((stage * mid + co) * mid + ci) * K + k]
                    acc = acc + wv * tci[k]         # VPU scalar-broadcast FMA
            acc = acc + s_ref[stage * mid + co]     # folded bias / BN shift
            if act:
                acc = jnp.where(acc >= 0.0, acc, alpha * acc)   # PReLU
            outs.append(acc)
        return outs

    xb = x_ref[0]                                    # (C, HW)
    main = [xb[c:c + 1, :] for c in range(C)]        # C planes of (1, HW)
    l = main[:mid]
    r = main[mid:]
    # Stage order matches the flattened weights: l1 l2 r1 r2 l3 l4 r3 r4
    # (same order as the PyTorch forward).
    l = conv_stage(l, 0, *stage_meta[0])
    l = conv_stage(l, 1, *stage_meta[1])
    r = conv_stage(r, 2, *stage_meta[2])
    r = conv_stage(r, 3, *stage_meta[3])
    l = conv_stage(l, 4, *stage_meta[4])
    l = conv_stage(l, 5, *stage_meta[5])
    r = conv_stage(r, 6, *stage_meta[6])
    r = conv_stage(r, 7, *stage_meta[7])
    ext = l + r                                      # pre-shuffle channel order

    pre = []
    for c in range(C):
        s = main[c] + ext[c]                         # residual add
        pre.append(jnp.where(s >= 0.0, s, alpha * s))

    # Channel shuffle fused into the write: out[j] = pre[(j % g)*(C//g) + j//g].
    cg = C // groups
    shuffled = [pre[(j % groups) * cg + (j // groups)] for j in range(C)]
    o_ref[0] = jnp.concatenate(shuffled, axis=0).astype(o_ref.dtype)


# ----------------------------------------------------------------------------
# Parameter init (deterministic, PyTorch-like shapes: OIHW conv weights)
# ----------------------------------------------------------------------------
def init_params(key, channels):
    mid = channels // 2
    # (orientation, has_bn, has_act); 'v' => (K,1) conv over H, 'h' => (1,K) over W
    specs = {
        "l1": ("v", False, False),
        "l2": ("h", True, True),
        "r1": ("h", False, False),
        "r2": ("v", True, True),
        "l3": ("v", False, True),
        "l4": ("h", True, True),
        "r3": ("h", False, True),
        "r4": ("v", True, True),
    }
    convs = {}
    for name, (ori, has_bn, has_act) in specs.items():
        key, k1, k2, k3, k4, k5, k6 = jax.random.split(key, 7)
        kh, kw = (KSIZE, 1) if ori == "v" else (1, KSIZE)
        bound = 1.0 / np.sqrt(mid * kh * kw)
        w = jax.random.uniform(k1, (mid, mid, kh, kw), jnp.float32, -bound, bound)
        b = jax.random.uniform(k2, (mid,), jnp.float32, -bound, bound)
        bn = None
        if has_bn:
            gamma = jax.random.uniform(k3, (mid,), jnp.float32, 0.5, 1.5)
            beta = jax.random.uniform(k4, (mid,), jnp.float32, -0.5, 0.5)
            mean = jax.random.uniform(k5, (mid,), jnp.float32, -0.5, 0.5)
            var = jax.random.uniform(k6, (mid,), jnp.float32, 0.5, 1.5)
            bn = (gamma, beta, mean, var)
        convs[name] = dict(w=w, b=b, bn=bn, act=has_act, ori=ori)
    alpha = jnp.float32(0.25)  # nn.PReLU() default init; single shared instance
    return convs, alpha


def _fold_scale_shift(p):
    """Fold conv bias + eval-mode BN into a per-channel (scale, shift)."""
    b = p["b"]
    if p["bn"] is None:
        scale = jnp.ones_like(b)
        shift = b
    else:
        gamma, beta, mean, var = p["bn"]
        scale = gamma / jnp.sqrt(var + BN_EPS)
        shift = (b - mean) * scale + beta
    return scale, shift


# ----------------------------------------------------------------------------
# SSnbt forward: one fused pallas_call, only free reshapes outside the kernel.
# ----------------------------------------------------------------------------
def ssnbt_forward(x, convs, alpha):
    N, C, H, W = x.shape
    mid = C // 2
    HW = H * W

    stage_order = ("l1", "l2", "r1", "r2", "l3", "l4", "r3", "r4")
    w_list, s_list, meta = [], [], []
    for name in stage_order:
        p = convs[name]
        scale, shift = _fold_scale_shift(p)
        kh = p["w"].shape[2]
        vertical = (kh == KSIZE)
        wk = p["w"][:, :, :, 0] if vertical else p["w"][:, :, 0, :]  # (co, ci, K)
        wk = wk * scale[:, None, None]       # fold BN scale into the weights
        w_list.append(wk.reshape(-1))
        s_list.append(shift)
        meta.append((vertical, bool(p["act"])))

    w_flat = jnp.concatenate(w_list).astype(jnp.float32)   # (8*mid*mid*K,)
    s_flat = jnp.concatenate(s_list).astype(jnp.float32)   # (8*mid,)
    a_arr = jnp.full((1,), alpha, jnp.float32)

    x_planes = x.reshape(N, C, HW)            # free view: N,C leading, spatial flat

    kern = functools.partial(_ssnbt_kernel, C=C, H=H, W=W, mid=mid, K=KSIZE,
                             groups=GROUPS, stage_meta=tuple(meta))
    out = pl.pallas_call(
        kern,
        out_shape=jax.ShapeDtypeStruct((N, C, HW), jnp.float32),
        grid=(N,),
        in_specs=[
            pl.BlockSpec((1, C, HW), lambda n: (n, 0, 0)),
            pl.BlockSpec(memory_space=pltpu.MemorySpace.SMEM),   # weights
            pl.BlockSpec(memory_space=pltpu.MemorySpace.SMEM),   # shifts
            pl.BlockSpec(memory_space=pltpu.MemorySpace.SMEM),   # alpha
        ],
        out_specs=pl.BlockSpec((1, C, HW), lambda n: (n, 0, 0)),
        compiler_params=pltpu.CompilerParams(
            dimension_semantics=("parallel",)),
    )(x_planes, w_flat, s_flat, a_arr)
    return out.reshape(N, C, H, W)


# ----------------------------------------------------------------------------
# Pure-JAX reference (lax.conv) for correctness checking
# ----------------------------------------------------------------------------
def ssnbt_reference(x, convs, alpha):
    N, C, H, W = x.shape
    mid = C // 2

    def apply(t, p):
        kh = p["w"].shape[2]
        ph, pw = (PAD, 0) if kh == KSIZE else (0, PAD)
        y = jax.lax.conv_general_dilated(
            t, p["w"], (1, 1), ((ph, ph), (pw, pw)),
            dimension_numbers=("NCHW", "OIHW", "NCHW"))
        y = y + p["b"][None, :, None, None]
        if p["bn"] is not None:
            gamma, beta, mean, var = p["bn"]
            y = (y - mean[None, :, None, None]) / jnp.sqrt(
                var[None, :, None, None] + BN_EPS)
            y = y * gamma[None, :, None, None] + beta[None, :, None, None]
        if p["act"]:
            y = jnp.where(y >= 0, y, alpha * y)
        return y

    xl, xr = x[:, :mid], x[:, mid:]
    l = apply(apply(xl, convs["l1"]), convs["l2"])
    r = apply(apply(xr, convs["r1"]), convs["r2"])
    l = apply(apply(l, convs["l3"]), convs["l4"])
    r = apply(apply(r, convs["r3"]), convs["r4"])
    ext = jnp.concatenate([l, r], axis=1)
    out = x + ext
    out = jnp.where(out >= 0, out, alpha * out)
    out = jnp.transpose(out.reshape(N, GROUPS, C // GROUPS, H, W),
                        (0, 2, 1, 3, 4)).reshape(N, C, H, W)
    return out


# ----------------------------------------------------------------------------
if __name__ == "__main__":
    key = jax.random.PRNGKey(0)
    kx, kp = jax.random.split(key)

    N, C, H, W = 2, 8, 16, 16            # channels=8 -> mid_channels=4, groups=4
    x = jax.random.normal(kx, (N, C, H, W), jnp.float32)
    convs, alpha = init_params(kp, C)

    out = jax.jit(lambda xx: ssnbt_forward(xx, convs, alpha))(x)
    out = jax.block_until_ready(out)

    ref = jax.block_until_ready(ssnbt_reference(x, convs, alpha))
    assert out.shape == (N, C, H, W)
    np.testing.assert_allclose(np.asarray(out), np.asarray(ref),
                               rtol=1e-5, atol=1e-5)
    print("KERNEL_OK")
</pallas_src>

<mosaic_0001>
module attributes {stable_mosaic.version = 11 : i64} {
  func.func @_ssnbt_kernel(%arg0: i32, %arg1: memref<1x8x256xf32, #tpu.memory_space<vmem>>, %arg2: memref<384xf32, #tpu.memory_space<smem>>, %arg3: memref<32xf32, #tpu.memory_space<smem>>, %arg4: memref<1xf32, #tpu.memory_space<smem>>, %arg5: memref<1x8x256xf32, #tpu.memory_space<vmem>>) attributes {dimension_semantics = [#tpu.dimension_semantics<parallel>], iteration_bounds = array<i64: 2>, scalar_prefetch = 0 : i64, scratch_operands = 0 : i64, tpu.core_type = #tpu.core_type<tc>, window_params = [{transform_indices = @transform_0, window_bounds = array<i64: 1, 8, 256>}, {transform_indices = @transform_1, window_bounds = array<i64: 384>}, {transform_indices = @transform_2, window_bounds = array<i64: 32>}, {transform_indices = @transform_3, window_bounds = array<i64: 1>}, {transform_indices = @transform_4, window_bounds = array<i64: 1, 8, 256>}]} {
    %c0 = arith.constant 0 : index
    %0 = memref.load %arg4[%c0] : memref<1xf32, #tpu.memory_space<smem>>
    %1 = tpu.iota {dimensions = array<i32: 1>} : vector<1x256xi32>
    %c16_i32 = arith.constant 16 : i32
    %c0_i32 = arith.constant 0 : i32
    %2 = arith.cmpi eq, %c16_i32, %c0_i32 : i32
    %c1_i32 = arith.constant 1 : i32
    %3 = arith.select %2, %c1_i32, %c16_i32 : i32
    %4 = vector.broadcast %3 : i32 to vector<1x256xi32>
    %5 = arith.remsi %1, %4 : vector<1x256xi32>
    %c0_i32_0 = arith.constant 0 : i32
    %6 = vector.broadcast %c0_i32_0 : i32 to vector<1x256xi32>
    %7 = arith.cmpi ne, %5, %6 : vector<1x256xi32>
    %c0_i32_1 = arith.constant 0 : i32
    %8 = vector.broadcast %c0_i32_1 : i32 to vector<1x256xi32>
    %9 = arith.cmpi slt, %5, %8 : vector<1x256xi32>
    %c0_i32_2 = arith.constant 0 : i32
    %10 = arith.cmpi slt, %3, %c0_i32_2 : i32
    %11 = vector.broadcast %10 : i1 to vector<1x256xi1>
    %12 = vector.broadcast %11 : vector<1x256xi1> to vector<1x256xi1>
    %13 = arith.xori %9, %12 : vector<1x256xi1>
    %14 = arith.andi %13, %7 : vector<1x256xi1>
    %15 = vector.broadcast %3 : i32 to vector<1x256xi32>
    %16 = arith.addi %5, %15 : vector<1x256xi32>
    %17 = arith.select %14, %16, %5 : vector<1x256xi1>, vector<1x256xi32>
    %c1_i32_3 = arith.constant 1 : i32
    %18 = vector.broadcast %c1_i32_3 : i32 to vector<1x256xi32>
    %19 = arith.cmpi sge, %17, %18 : vector<1x256xi32>
    %c14_i32 = arith.constant 14 : i32
    %20 = vector.broadcast %c14_i32 : i32 to vector<1x256xi32>
    %21 = arith.cmpi sle, %17, %20 : vector<1x256xi32>
    %c0_4 = arith.constant 0 : index
    %c0_5 = arith.constant 0 : index
    %c0_6 = arith.constant 0 : index
    %22 = vector.load %arg1[%c0_4, %c0_5, %c0_6] : memref<1x8x256xf32, #tpu.memory_space<vmem>>, vector<1x8x256xf32>
    %23 = vector.shape_cast %22 : vector<1x8x256xf32> to vector<8x256xf32>
    %24 = vector.extract_strided_slice %23 {offsets = [0, 0], sizes = [1, 256], strides = [1, 1]} : vector<8x256xf32> to vector<1x256xf32>
    %25 = vector.extract_strided_slice %23 {offsets = [1, 0], sizes = [1, 256], strides = [1, 1]} : vector<8x256xf32> to vector<1x256xf32>
    %26 = vector.extract_strided_slice %23 {offsets = [2, 0], sizes = [1, 256], strides = [1, 1]} : vector<8x256xf32> to vector<1x256xf32>
    %27 = vector.extract_strided_slice %23 {offsets = [3, 0], sizes = [1, 256], strides = [1, 1]} : vector<8x256xf32> to vector<1x256xf32>
    %28 = vector.extract_strided_slice %23 {offsets = [4, 0], sizes = [1, 256], strides = [1, 1]} : vector<8x256xf32> to vector<1x256xf32>
    %29 = vector.extract_strided_slice %23 {offsets = [5, 0], sizes = [1, 256], strides = [1, 1]} : vector<8x256xf32> to vector<1x256xf32>
    %30 = vector.extract_strided_slice %23 {offsets = [6, 0], sizes = [1, 256], strides = [1, 1]} : vector<8x256xf32> to vector<1x256xf32>
    %31 = vector.extract_strided_slice %23 {offsets = [7, 0], sizes = [1, 256], strides = [1, 1]} : vector<8x256xf32> to vector<1x256xf32>
    %cst = arith.constant 0.000000e+00 : f32
    %32 = vector.broadcast %cst : f32 to vector<1x16xf32>
    %33 = vector.extract_strided_slice %24 {offsets = [0, 0], sizes = [1, 240], strides = [1, 1]} : vector<1x256xf32> to vector<1x240xf32>
    %34 = tpu.concatenate %32, %33 in 1 : vector<1x16xf32>, vector<1x240xf32> -> vector<1x256xf32>
    %cst_7 = arith.constant 0.000000e+00 : f32
    %35 = vector.broadcast %cst_7 : f32 to vector<1x16xf32>
    %36 = vector.extract_strided_slice %24 {offsets = [0, 16], sizes = [1, 240], strides = [1, 1]} : vector<1x256xf32> to vector<1x240xf32>
    %37 = tpu.concatenate %36, %35 in 1 : vector<1x240xf32>, vector<1x16xf32> -> vector<1x256xf32>
    %cst_8 = arith.constant 0.000000e+00 : f32
    %38 = vector.broadcast %cst_8 : f32 to vector<1x16xf32>
    %39 = vector.extract_strided_slice %25 {offsets = [0, 0], sizes = [1, 240], strides = [1, 1]} : vector<1x256xf32> to vector<1x240xf32>
    %40 = tpu.concatenate %38, %39 in 1 : vector<1x16xf32>, vector<1x240xf32> -> vector<1x256xf32>
    %cst_9 = arith.constant 0.000000e+00 : f32
    %41 = vector.broadcast %cst_9 : f32 to vector<1x16xf32>
    %42 = vector.extract_strided_slice %25 {offsets = [0, 16], sizes = [1, 240], strides = [1, 1]} : vector<1x256xf32> to vector<1x240xf32>
    %43 = tpu.concatenate %42, %41 in 1 : vector<1x240xf32>, vector<1x16xf32> -> vector<1x256xf32>
    %cst_10 = arith.constant 0.000000e+00 : f32
    %44 = vector.broadcast %cst_10 : f32 to vector<1x16xf32>
    %45 = vector.extract_strided_slice %26 {offsets = [0, 0], sizes = [1, 240], strides = [1, 1]} : vector<1x256xf32> to vector<1x240xf32>
    %46 = tpu.concatenate %44, %45 in 1 : vector<1x16xf32>, vector<1x240xf32> -> vector<1x256xf32>
    %cst_11 = arith.constant 0.000000e+00 : f32
    %47 = vector.broadcast %cst_11 : f32 to vector<1x16xf32>
    %48 = vector.extract_strided_slice %26 {offsets = [0, 16], sizes = [1, 240], strides = [1, 1]} : vector<1x256xf32> to vector<1x240xf32>
    %49 = tpu.concatenate %48, %47 in 1 : vector<1x240xf32>, vector<1x16xf32> -> vector<1x256xf32>
    %cst_12 = arith.constant 0.000000e+00 : f32
    %50 = vector.broadcast %cst_12 : f32 to vector<1x16xf32>
    %51 = vector.extract_strided_slice %27 {offsets = [0, 0], sizes = [1, 240], strides = [1, 1]} : vector<1x256xf32> to vector<1x240xf32>
    %52 = tpu.concatenate %50, %51 in 1 : vector<1x16xf32>, vector<1x240xf32> -> vector<1x256xf32>
    %cst_13 = arith.constant 0.000000e+00 : f32
    %53 = vector.broadcast %cst_13 : f32 to vector<1x16xf32>
    %54 = vector.extract_strided_slice %27 {offsets = [0, 16], sizes = [1, 240], strides = [1, 1]} : vector<1x256xf32> to vector<1x240xf32>
    %55 = tpu.concatenate %54, %53 in 1 : vector<1x240xf32>, vector<1x16xf32> -> vector<1x256xf32>
    %cst_14 = arith.constant 0.000000e+00 : f32
    %56 = vector.broadcast %cst_14 : f32 to vector<1x256xf32>
    %c0_15 = arith.constant 0 : index
    %57 = memref.load %arg2[%c0_15] : memref<384xf32, #tpu.memory_space<smem>>
    %58 = vector.broadcast %57 : f32 to vector<1x256xf32>
    %59 = arith.mulf %58, %34 : vector<1x256xf32>
    %60 = arith.addf %56, %59 : vector<1x256xf32>
    %c1 = arith.constant 1 : index
    %61 = memref.load %arg2[%c1] : memref<384xf32, #tpu.memory_space<smem>>
    %62 = vector.broadcast %61 : f32 to vector<1x256xf32>
    %63 = arith.mulf %62, %24 : vector<1x256xf32>
    %64 = arith.addf %60, %63 : vector<1x256xf32>
    %c2 = arith.constant 2 : index
    %65 = memref.load %arg2[%c2] : memref<384xf32, #tpu.memory_space<smem>>
    %66 = vector.broadcast %65 : f32 to vector<1x256xf32>
    %67 = arith.mulf %66, %37 : vector<1x256xf32>
    %68 = arith.addf %64, %67 : vector<1x256xf32>
    %c3 = arith.constant 3 : index
    %69 = memref.load %arg2[%c3] : memref<384xf32, #tpu.memory_space<smem>>
    %70 = vector.broadcast %69 : f32 to vector<1x256xf32>
    %71 = arith.mulf %70, %40 : vector<1x256xf32>
    %72 = arith.addf %68, %71 : vector<1x256xf32>
    %c4 = arith.constant 4 : index
    %73 = memref.load %arg2[%c4] : memref<384xf32, #tpu.memory_space<smem>>
    %74 = vector.broadcast %73 : f32 to vector<1x256xf32>
    %75 = arith.mulf %74, %25 : vector<1x256xf32>
    %76 = arith.addf %72, %75 : vector<1x256xf32>
    %c5 = arith.constant 5 : index
    %77 = memref.load %arg2[%c5] : memref<384xf32, #tpu.memory_space<smem>>
    %78 = vector.broadcast %77 : f32 to vector<1x256xf32>
    %79 = arith.mulf %78, %43 : vector<1x256xf32>
    %80 = arith.addf %76, %79 : vector<1x256xf32>
    %c6 = arith.constant 6 : index
    %81 = memref.load %arg2[%c6] : memref<384xf32, #tpu.memory_space<smem>>
    %82 = vector.broadcast %81 : f32 to vector<1x256xf32>
    %83 = arith.mulf %82, %46 : vector<1x256xf32>
    %84 = arith.addf %80, %83 : vector<1x256xf32>
    %c7 = arith.constant 7 : index
    %85 = memref.load %arg2[%c7] : memref<384xf32, #tpu.memory_space<smem>>
    %86 = vector.broadcast %85 : f32 to vector<1x256xf32>
    %87 = arith.mulf %86, %26 : vector<1x256xf32>
    %88 = arith.addf %84, %87 : vector<1x256xf32>
    %c8 = arith.constant 8 : index
    %89 = memref.load %arg2[%c8] : memref<384xf32, #tpu.memory_space<smem>>
    %90 = vector.broadcast %89 : f32 to vector<1x256xf32>
    %91 = arith.mulf %90, %49 : vector<1x256xf32>
    %92 = arith.addf %88, %91 : vector<1x256xf32>
    %c9 = arith.constant 9 : index
    %93 = memref.load %arg2[%c9] : memref<384xf32, #tpu.memory_space<smem>>
    %94 = vector.broadcast %93 : f32 to vector<1x256xf32>
    %95 = arith.mulf %94, %52 : vector<1x256xf32>
    %96 = arith.addf %92, %95 : vector<1x256xf32>
    %c10 = arith.constant 10 : index
    %97 = memref.load %arg2[%c10] : memref<384xf32, #tpu.memory_space<smem>>
    %98 = vector.broadcast %97 : f32 to vector<1x256xf32>
    %99 = arith.mulf %98, %27 : vector<1x256xf32>
    %100 = arith.addf %96, %99 : vector<1x256xf32>
    %c11 = arith.constant 11 : index
    %101 = memref.load %arg2[%c11] : memref<384xf32, #tpu.memory_space<smem>>
    %102 = vector.broadcast %101 : f32 to vector<1x256xf32>
    %103 = arith.mulf %102, %55 : vector<1x256xf32>
    %104 = arith.addf %100, %103 : vector<1x256xf32>
    %c0_16 = arith.constant 0 : index
    %105 = memref.load %arg3[%c0_16] : memref<32xf32, #tpu.memory_space<smem>>
    %106 = vector.broadcast %105 : f32 to vector<1x256xf32>
    %107 = arith.addf %104, %106 : vector<1x256xf32>
    %cst_17 = arith.constant 0.000000e+00 : f32
    %108 = vector.broadcast %cst_17 : f32 to vector<1x256xf32>
    %c12 = arith.constant 12 : index
    %109 = memref.load %arg2[%c12] : memref<384xf32, #tpu.memory_space<smem>>
    %110 = vector.broadcast %109 : f32 to vector<1x256xf32>
    %111 = arith.mulf %110, %34 : vector<1x256xf32>
    %112 = arith.addf %108, %111 : vector<1x256xf32>
    %c13 = arith.constant 13 : index
    %113 = memref.load %arg2[%c13] : memref<384xf32, #tpu.memory_space<smem>>
    %114 = vector.broadcast %113 : f32 to vector<1x256xf32>
    %115 = arith.mulf %114, %24 : vector<1x256xf32>
    %116 = arith.addf %112, %115 : vector<1x256xf32>
    %c14 = arith.constant 14 : index
    %117 = memref.load %arg2[%c14] : memref<384xf32, #tpu.memory_space<smem>>
    %118 = vector.broadcast %117 : f32 to vector<1x256xf32>
    %119 = arith.mulf %118, %37 : vector<1x256xf32>
    %120 = arith.addf %116, %119 : vector<1x256xf32>
    %c15 = arith.constant 15 : index
    %121 = memref.load %arg2[%c15] : memref<384xf32, #tpu.memory_space<smem>>
    %122 = vector.broadcast %121 : f32 to vector<1x256xf32>
    %123 = arith.mulf %122, %40 : vector<1x256xf32>
    %124 = arith.addf %120, %123 : vector<1x256xf32>
    %c16 = arith.constant 16 : index
    %125 = memref.load %arg2[%c16] : memref<384xf32, #tpu.memory_space<smem>>
    %126 = vector.broadcast %125 : f32 to vector<1x256xf32>
    %127 = arith.mulf %126, %25 : vector<1x256xf32>
    %128 = arith.addf %124, %127 : vector<1x256xf32>
    %c17 = arith.constant 17 : index
    %129 = memref.load %arg2[%c17] : memref<384xf32, #tpu.memory_space<smem>>
    %130 = vector.broadcast %129 : f32 to vector<1x256xf32>
    %131 = arith.mulf %130, %43 : vector<1x256xf32>
    %132 = arith.addf %128, %131 : vector<1x256xf32>
    %c18 = arith.constant 18 : index
    %133 = memref.load %arg2[%c18] : memref<384xf32, #tpu.memory_space<smem>>
    %134 = vector.broadcast %133 : f32 to vector<1x256xf32>
    %135 = arith.mulf %134, %46 : vector<1x256xf32>
    %136 = arith.addf %132, %135 : vector<1x256xf32>
    %c19 = arith.constant 19 : index
    %137 = memref.load %arg2[%c19] : memref<384xf32, #tpu.memory_space<smem>>
    %138 = vector.broadcast %137 : f32 to vector<1x256xf32>
    %139 = arith.mulf %138, %26 : vector<1x256xf32>
    %140 = arith.addf %136, %139 : vector<1x256xf32>
    %c20 = arith.constant 20 : index
    %141 = memref.load %arg2[%c20] : memref<384xf32, #tpu.memory_space<smem>>
    %142 = vector.broadcast %141 : f32 to vector<1x256xf32>
    %143 = arith.mulf %142, %49 : vector<1x256xf32>
    %144 = arith.addf %140, %143 : vector<1x256xf32>
    %c21 = arith.constant 21 : index
    %145 = memref.load %arg2[%c21] : memref<384xf32, #tpu.memory_space<smem>>
    %146 = vector.broadcast %145 : f32 to vector<1x256xf32>
    %147 = arith.mulf %146, %52 : vector<1x256xf32>
    %148 = arith.addf %144, %147 : vector<1x256xf32>
    %c22 = arith.constant 22 : index
    %149 = memref.load %arg2[%c22] : memref<384xf32, #tpu.memory_space<smem>>
    %150 = vector.broadcast %149 : f32 to vector<1x256xf32>
    %151 = arith.mulf %150, %27 : vector<1x256xf32>
    %152 = arith.addf %148, %151 : vector<1x256xf32>
    %c23 = arith.constant 23 : index
    %153 = memref.load %arg2[%c23] : memref<384xf32, #tpu.memory_space<smem>>
    %154 = vector.broadcast %153 : f32 to vector<1x256xf32>
    %155 = arith.mulf %154, %55 : vector<1x256xf32>
    %156 = arith.addf %152, %155 : vector<1x256xf32>
    %c1_18 = arith.constant 1 : index
    %157 = memref.load %arg3[%c1_18] : memref<32xf32, #tpu.memory_space<smem>>
    %158 = vector.broadcast %157 : f32 to vector<1x256xf32>
    %159 = arith.addf %156, %158 : vector<1x256xf32>
    %cst_19 = arith.constant 0.000000e+00 : f32
    %160 = vector.broadcast %cst_19 : f32 to vector<1x256xf32>
    %c24 = arith.constant 24 : index
    %161 = memref.load %arg2[%c24] : memref<384xf32, #tpu.memory_space<smem>>
    %162 = vector.broadcast %161 : f32 to vector<1x256xf32>
    %163 = arith.mulf %162, %34 : vector<1x256xf32>
    %164 = arith.addf %160, %163 : vector<1x256xf32>
    %c25 = arith.constant 25 : index
    %165 = memref.load %arg2[%c25] : memref<384xf32, #tpu.memory_space<smem>>
    %166 = vector.broadcast %165 : f32 to vector<1x256xf32>
    %167 = arith.mulf %166, %24 : vector<1x256xf32>
    %168 = arith.addf %164, %167 : vector<1x256xf32>
    %c26 = arith.constant 26 : index
    %169 = memref.load %arg2[%c26] : memref<384xf32, #tpu.memory_space<smem>>
    %170 = vector.broadcast %169 : f32 to vector<1x256xf32>
    %171 = arith.mulf %170, %37 : vector<1x256xf32>
    %172 = arith.addf %168, %171 : vector<1x256xf32>
    %c27 = arith.constant 27 : index
    %173 = memref.load %arg2[%c27] : memref<384xf32, #tpu.memory_space<smem>>
    %174 = vector.broadcast %173 : f32 to vector<1x256xf32>
    %175 = arith.mulf %174, %40 : vector<1x256xf32>
    %176 = arith.addf %172, %175 : vector<1x256xf32>
    %c28 = arith.constant 28 : index
    %177 = memref.load %arg2[%c28] : memref<384xf32, #tpu.memory_space<smem>>
    %178 = vector.broadcast %177 : f32 to vector<1x256xf32>
    %179 = arith.mulf %178, %25 : vector<1x256xf32>
    %180 = arith.addf %176, %179 : vector<1x256xf32>
    %c29 = arith.constant 29 : index
    %181 = memref.load %arg2[%c29] : memref<384xf32, #tpu.memory_space<smem>>
    %182 = vector.broadcast %181 : f32 to vector<1x256xf32>
    %183 = arith.mulf %182, %43 : vector<1x256xf32>
    %184 = arith.addf %180, %183 : vector<1x256xf32>
    %c30 = arith.constant 30 : index
    %185 = memref.load %arg2[%c30] : memref<384xf32, #tpu.memory_space<smem>>
    %186 = vector.broadcast %185 : f32 to vector<1x256xf32>
    %187 = arith.mulf %186, %46 : vector<1x256xf32>
    %188 = arith.addf %184, %187 : vector<1x256xf32>
    %c31 = arith.constant 31 : index
    %189 = memref.load %arg2[%c31] : memref<384xf32, #tpu.memory_space<smem>>
    %190 = vector.broadcast %189 : f32 to vector<1x256xf32>
    %191 = arith.mulf %190, %26 : vector<1x256xf32>
    %192 = arith.addf %188, %191 : vector<1x256xf32>
    %c32 = arith.constant 32 : index
    %193 = memref.load %arg2[%c32] : memref<384xf32, #tpu.memory_space<smem>>
    %194 = vector.broadcast %193 : f32 to vector<1x256xf32>
    %195 = arith.mulf %194, %49 : vector<1x256xf32>
    %196 = arith.addf %192, %195 : vector<1x256xf32>
    %c33 = arith.constant 33 : index
    %197 = memref.load %arg2[%c33] : memref<384xf32, #tpu.memory_space<smem>>
    %198 = vector.broadcast %197 : f32 to vector<1x256xf32>
    %199 = arith.mulf %198, %52 : vector<1x256xf32>
    %200 = arith.addf %196, %199 : vector<1x256xf32>
    %c34 = arith.constant 34 : index
    %201 = memref.load %arg2[%c34] : memref<384xf32, #tpu.memory_space<smem>>
    %202 = vector.broadcast %201 : f32 to vector<1x256xf32>
    %203 = arith.mulf %202, %27 : vector<1x256xf32>
    %204 = arith.addf %200, %203 : vector<1x256xf32>
    %c35 = arith.constant 35 : index
    %205 = memref.load %arg2[%c35] : memref<384xf32, #tpu.memory_space<smem>>
    %206 = vector.broadcast %205 : f32 to vector<1x256xf32>
    %207 = arith.mulf %206, %55 : vector<1x256xf32>
    %208 = arith.addf %204, %207 : vector<1x256xf32>
    %c2_20 = arith.constant 2 : index
    %209 = memref.load %arg3[%c2_20] : memref<32xf32, #tpu.memory_space<smem>>
    %210 = vector.broadcast %209 : f32 to vector<1x256xf32>
    %211 = arith.addf %208, %210 : vector<1x256xf32>
    %cst_21 = arith.constant 0.000000e+00 : f32
    %212 = vector.broadcast %cst_21 : f32 to vector<1x256xf32>
    %c36 = arith.constant 36 : index
    %213 = memref.load %arg2[%c36] : memref<384xf32, #tpu.memory_space<smem>>
    %214 = vector.broadcast %213 : f32 to vector<1x256xf32>
    %215 = arith.mulf %214, %34 : vector<1x256xf32>
    %216 = arith.addf %212, %215 : vector<1x256xf32>
    %c37 = arith.constant 37 : index
    %217 = memref.load %arg2[%c37] : memref<384xf32, #tpu.memory_space<smem>>
    %218 = vector.broadcast %217 : f32 to vector<1x256xf32>
    %219 = arith.mulf %218, %24 : vector<1x256xf32>
    %220 = arith.addf %216, %219 : vector<1x256xf32>
    %c38 = arith.constant 38 : index
    %221 = memref.load %arg2[%c38] : memref<384xf32, #tpu.memory_space<smem>>
    %222 = vector.broadcast %221 : f32 to vector<1x256xf32>
    %223 = arith.mulf %222, %37 : vector<1x256xf32>
    %224 = arith.addf %220, %223 : vector<1x256xf32>
    %c39 = arith.constant 39 : index
    %225 = memref.load %arg2[%c39] : memref<384xf32, #tpu.memory_space<smem>>
    %226 = vector.broadcast %225 : f32 to vector<1x256xf32>
    %227 = arith.mulf %226, %40 : vector<1x256xf32>
    %228 = arith.addf %224, %227 : vector<1x256xf32>
    %c40 = arith.constant 40 : index
    %229 = memref.load %arg2[%c40] : memref<384xf32, #tpu.memory_space<smem>>
    %230 = vector.broadcast %229 : f32 to vector<1x256xf32>
    %231 = arith.mulf %230, %25 : vector<1x256xf32>
    %232 = arith.addf %228, %231 : vector<1x256xf32>
    %c41 = arith.constant 41 : index
    %233 = memref.load %arg2[%c41] : memref<384xf32, #tpu.memory_space<smem>>
    %234 = vector.broadcast %233 : f32 to vector<1x256xf32>
    %235 = arith.mulf %234, %43 : vector<1x256xf32>
    %236 = arith.addf %232, %235 : vector<1x256xf32>
    %c42 = arith.constant 42 : index
    %237 = memref.load %arg2[%c42] : memref<384xf32, #tpu.memory_space<smem>>
    %238 = vector.broadcast %237 : f32 to vector<1x256xf32>
    %239 = arith.mulf %238, %46 : vector<1x256xf32>
    %240 = arith.addf %236, %239 : vector<1x256xf32>
    %c43 = arith.constant 43 : index
    %241 = memref.load %arg2[%c43] : memref<384xf32, #tpu.memory_space<smem>>
    %242 = vector.broadcast %241 : f32 to vector<1x256xf32>
    %243 = arith.mulf %242, %26 : vector<1x256xf32>
    %244 = arith.addf %240, %243 : vector<1x256xf32>
    %c44 = arith.constant 44 : index
    %245 = memref.load %arg2[%c44] : memref<384xf32, #tpu.memory_space<smem>>
    %246 = vector.broadcast %245 : f32 to vector<1x256xf32>
    %247 = arith.mulf %246, %49 : vector<1x256xf32>
    %248 = arith.addf %244, %247 : vector<1x256xf32>
    %c45 = arith.constant 45 : index
    %249 = memref.load %arg2[%c45] : memref<384xf32, #tpu.memory_space<smem>>
    %250 = vector.broadcast %249 : f32 to vector<1x256xf32>
    %251 = arith.mulf %250, %52 : vector<1x256xf32>
    %252 = arith.addf %248, %251 : vector<1x256xf32>
    %c46 = arith.constant 46 : index
    %253 = memref.load %arg2[%c46] : memref<384xf32, #tpu.memory_space<smem>>
    %254 = vector.broadcast %253 : f32 to vector<1x256xf32>
    %255 = arith.mulf %254, %27 : vector<1x256xf32>
    %256 = arith.addf %252, %255 : vector<1x256xf32>
    %c47 = arith.constant 47 : index
    %257 = memref.load %arg2[%c47] : memref<384xf32, #tpu.memory_space<smem>>
    %258 = vector.broadcast %257 : f32 to vector<1x256xf32>
    %259 = arith.mulf %258, %55 : vector<1x256xf32>
    %260 = arith.addf %256, %259 : vector<1x256xf32>
    %c3_22 = arith.constant 3 : index
    %261 = memref.load %arg3[%c3_22] : memref<32xf32, #tpu.memory_space<smem>>
    %262 = vector.broadcast %261 : f32 to vector<1x256xf32>
    %263 = arith.addf %260, %262 : vector<1x256xf32>
    %cst_23 = arith.constant 0.000000e+00 : f32
    %264 = vector.broadcast %cst_23 : f32 to vector<1x1xf32>
    %265 = vector.extract_strided_slice %107 {offsets = [0, 0], sizes = [1, 255], strides = [1, 1]} : vector<1x256xf32> to vector<1x255xf32>
    %266 = tpu.concatenate %264, %265 in 1 : vector<1x1xf32>, vector<1x255xf32> -> vector<1x256xf32>
    %cst_24 = arith.constant 0.000000e+00 : f32
    %267 = vector.broadcast %cst_24 : f32 to vector<1x256xf32>
    %268 = arith.select %19, %266, %267 : vector<1x256xi1>, vector<1x256xf32>
    %cst_25 = arith.constant 0.000000e+00 : f32
    %269 = vector.broadcast %cst_25 : f32 to vector<1x1xf32>
    %270 = vector.extract_strided_slice %107 {offsets = [0, 1], sizes = [1, 255], strides = [1, 1]} : vector<1x256xf32> to vector<1x255xf32>
    %271 = tpu.concatenate %270, %269 in 1 : vector<1x255xf32>, vector<1x1xf32> -> vector<1x256xf32>
    %cst_26 = arith.constant 0.000000e+00 : f32
    %272 = vector.broadcast %cst_26 : f32 to vector<1x256xf32>
    %273 = arith.select %21, %271, %272 : vector<1x256xi1>, vector<1x256xf32>
    %cst_27 = arith.constant 0.000000e+00 : f32
    %274 = vector.broadcast %cst_27 : f32 to vector<1x1xf32>
    %275 = vector.extract_strided_slice %159 {offsets = [0, 0], sizes = [1, 255], strides = [1, 1]} : vector<1x256xf32> to vector<1x255xf32>
    %276 = tpu.concatenate %274, %275 in 1 : vector<1x1xf32>, vector<1x255xf32> -> vector<1x256xf32>
    %cst_28 = arith.constant 0.000000e+00 : f32
    %277 = vector.broadcast %cst_28 : f32 to vector<1x256xf32>
    %278 = arith.select %19, %276, %277 : vector<1x256xi1>, vector<1x256xf32>
    %cst_29 = arith.constant 0.000000e+00 : f32
    %279 = vector.broadcast %cst_29 : f32 to vector<1x1xf32>
    %280 = vector.extract_strided_slice %159 {offsets = [0, 1], sizes = [1, 255], strides = [1, 1]} : vector<1x256xf32> to vector<1x255xf32>
    %281 = tpu.concatenate %280, %279 in 1 : vector<1x255xf32>, vector<1x1xf32> -> vector<1x256xf32>
    %cst_30 = arith.constant 0.000000e+00 : f32
    %282 = vector.broadcast %cst_30 : f32 to vector<1x256xf32>
    %283 = arith.select %21, %281, %282 : vector<1x256xi1>, vector<1x256xf32>
    %cst_31 = arith.constant 0.000000e+00 : f32
    %284 = vector.broadcast %cst_31 : f32 to vector<1x1xf32>
    %285 = vector.extract_strided_slice %211 {offsets = [0, 0], sizes = [1, 255], strides = [1, 1]} : vector<1x256xf32> to vector<1x255xf32>
    %286 = tpu.concatenate %284, %285 in 1 : vector<1x1xf32>, vector<1x255xf32> -> vector<1x256xf32>
    %cst_32 = arith.constant 0.000000e+00 : f32
    %287 = vector.broadcast %cst_32 : f32 to vector<1x256xf32>
    %288 = arith.select %19, %286, %287 : vector<1x256xi1>, vector<1x256xf32>
    %cst_33 = arith.constant 0.000000e+00 : f32
    %289 = vector.broadcast %cst_33 : f32 to vector<1x1xf32>
    %290 = vector.extract_strided_slice %211 {offsets = [0, 1], sizes = [1, 255], strides = [1, 1]} : vector<1x256xf32> to vector<1x255xf32>
    %291 = tpu.concatenate %290, %289 in 1 : vector<1x255xf32>, vector<1x1xf32> -> vector<1x256xf32>
    %cst_34 = arith.constant 0.000000e+00 : f32
    %292 = vector.broadcast %cst_34 : f32 to vector<1x256xf32>
    %293 = arith.select %21, %291, %292 : vector<1x256xi1>, vector<1x256xf32>
    %cst_35 = arith.constant 0.000000e+00 : f32
    %294 = vector.broadcast %cst_35 : f32 to vector<1x1xf32>
    %295 = vector.extract_strided_slice %263 {offsets = [0, 0], sizes = [1, 255], strides = [1, 1]} : vector<1x256xf32> to vector<1x255xf32>
    %296 = tpu.concatenate %294, %295 in 1 : vector<1x1xf32>, vector<1x255xf32> -> vector<1x256xf32>
    %cst_36 = arith.constant 0.000000e+00 : f32
    %297 = vector.broadcast %cst_36 : f32 to vector<1x256xf32>
    %298 = arith.select %19, %296, %297 : vector<1x256xi1>, vector<1x256xf32>
    %cst_37 = arith.constant 0.000000e+00 : f32
    %299 = vector.broadcast %cst_37 : f32 to vector<1x1xf32>
    %300 = vector.extract_strided_slice %263 {offsets = [0, 1], sizes = [1, 255], strides = [1, 1]} : vector<1x256xf32> to vector<1x255xf32>
    %301 = tpu.concatenate %300, %299 in 1 : vector<1x255xf32>, vector<1x1xf32> -> vector<1x256xf32>
    %cst_38 = arith.constant 0.000000e+00 : f32
    %302 = vector.broadcast %cst_38 : f32 to vector<1x256xf32>
    %303 = arith.select %21, %301, %302 : vector<1x256xi1>, vector<1x256xf32>
    %cst_39 = arith.constant 0.000000e+00 : f32
    %304 = vector.broadcast %cst_39 : f32 to vector<1x256xf32>
    %c48 = arith.constant 48 : index
    %305 = memref.load %arg2[%c48] : memref<384xf32, #tpu.memory_space<smem>>
    %306 = vector.broadcast %305 : f32 to vector<1x256xf32>
    %307 = arith.mulf %306, %268 : vector<1x256xf32>
    %308 = arith.addf %304, %307 : vector<1x256xf32>
    %c49 = arith.constant 49 : index
    %309 = memref.load %arg2[%c49] : memref<384xf32, #tpu.memory_space<smem>>
    %310 = vector.broadcast %309 : f32 to vector<1x256xf32>
    %311 = arith.mulf %310, %107 : vector<1x256xf32>
    %312 = arith.addf %308, %311 : vector<1x256xf32>
    %c50 = arith.constant 50 : index
    %313 = memref.load %arg2[%c50] : memref<384xf32, #tpu.memory_space<smem>>
    %314 = vector.broadcast %313 : f32 to vector<1x256xf32>
    %315 = arith.mulf %314, %273 : vector<1x256xf32>
    %316 = arith.addf %312, %315 : vector<1x256xf32>
    %c51 = arith.constant 51 : index
    %317 = memref.load %arg2[%c51] : memref<384xf32, #tpu.memory_space<smem>>
    %318 = vector.broadcast %317 : f32 to vector<1x256xf32>
    %319 = arith.mulf %318, %278 : vector<1x256xf32>
    %320 = arith.addf %316, %319 : vector<1x256xf32>
    %c52 = arith.constant 52 : index
    %321 = memref.load %arg2[%c52] : memref<384xf32, #tpu.memory_space<smem>>
    %322 = vector.broadcast %321 : f32 to vector<1x256xf32>
    %323 = arith.mulf %322, %159 : vector<1x256xf32>
    %324 = arith.addf %320, %323 : vector<1x256xf32>
    %c53 = arith.constant 53 : index
    %325 = memref.load %arg2[%c53] : memref<384xf32, #tpu.memory_space<smem>>
    %326 = vector.broadcast %325 : f32 to vector<1x256xf32>
    %327 = arith.mulf %326, %283 : vector<1x256xf32>
    %328 = arith.addf %324, %327 : vector<1x256xf32>
    %c54 = arith.constant 54 : index
    %329 = memref.load %arg2[%c54] : memref<384xf32, #tpu.memory_space<smem>>
    %330 = vector.broadcast %329 : f32 to vector<1x256xf32>
    %331 = arith.mulf %330, %288 : vector<1x256xf32>
    %332 = arith.addf %328, %331 : vector<1x256xf32>
    %c55 = arith.constant 55 : index
    %333 = memref.load %arg2[%c55] : memref<384xf32, #tpu.memory_space<smem>>
    %334 = vector.broadcast %333 : f32 to vector<1x256xf32>
    %335 = arith.mulf %334, %211 : vector<1x256xf32>
    %336 = arith.addf %332, %335 : vector<1x256xf32>
    %c56 = arith.constant 56 : index
    %337 = memref.load %arg2[%c56] : memref<384xf32, #tpu.memory_space<smem>>
    %338 = vector.broadcast %337 : f32 to vector<1x256xf32>
    %339 = arith.mulf %338, %293 : vector<1x256xf32>
    %340 = arith.addf %336, %339 : vector<1x256xf32>
    %c57 = arith.constant 57 : index
    %341 = memref.load %arg2[%c57] : memref<384xf32, #tpu.memory_space<smem>>
    %342 = vector.broadcast %341 : f32 to vector<1x256xf32>
    %343 = arith.mulf %342, %298 : vector<1x256xf32>
    %344 = arith.addf %340, %343 : vector<1x256xf32>
    %c58 = arith.constant 58 : index
    %345 = memref.load %arg2[%c58] : memref<384xf32, #tpu.memory_space<smem>>
    %346 = vector.broadcast %345 : f32 to vector<1x256xf32>
    %347 = arith.mulf %346, %263 : vector<1x256xf32>
    %348 = arith.addf %344, %347 : vector<1x256xf32>
    %c59 = arith.constant 59 : index
    %349 = memref.load %arg2[%c59] : memref<384xf32, #tpu.memory_space<smem>>
    %350 = vector.broadcast %349 : f32 to vector<1x256xf32>
    %351 = arith.mulf %350, %303 : vector<1x256xf32>
    %352 = arith.addf %348, %351 : vector<1x256xf32>
    %c4_40 = arith.constant 4 : index
    %353 = memref.load %arg3[%c4_40] : memref<32xf32, #tpu.memory_space<smem>>
    %354 = vector.broadcast %353 : f32 to vector<1x256xf32>
    %355 = arith.addf %352, %354 : vector<1x256xf32>
    %cst_41 = arith.constant 0.000000e+00 : f32
    %356 = vector.broadcast %cst_41 : f32 to vector<1x256xf32>
    %357 = arith.cmpf oge, %355, %356 : vector<1x256xf32>
    %358 = vector.broadcast %0 : f32 to vector<1x256xf32>
    %359 = arith.mulf %358, %355 : vector<1x256xf32>
    %360 = arith.select %357, %355, %359 : vector<1x256xi1>, vector<1x256xf32>
    %cst_42 = arith.constant 0.000000e+00 : f32
    %361 = vector.broadcast %cst_42 : f32 to vector<1x256xf32>
    %c60 = arith.constant 60 : index
    %362 = memref.load %arg2[%c60] : memref<384xf32, #tpu.memory_space<smem>>
    %363 = vector.broadcast %362 : f32 to vector<1x256xf32>
    %364 = arith.mulf %363, %268 : vector<1x256xf32>
    %365 = arith.addf %361, %364 : vector<1x256xf32>
    %c61 = arith.constant 61 : index
    %366 = memref.load %arg2[%c61] : memref<384xf32, #tpu.memory_space<smem>>
    %367 = vector.broadcast %366 : f32 to vector<1x256xf32>
    %368 = arith.mulf %367, %107 : vector<1x256xf32>
    %369 = arith.addf %365, %368 : vector<1x256xf32>
    %c62 = arith.constant 62 : index
    %370 = memref.load %arg2[%c62] : memref<384xf32, #tpu.memory_space<smem>>
    %371 = vector.broadcast %370 : f32 to vector<1x256xf32>
    %372 = arith.mulf %371, %273 : vector<1x256xf32>
    %373 = arith.addf %369, %372 : vector<1x256xf32>
    %c63 = arith.constant 63 : index
    %374 = memref.load %arg2[%c63] : memref<384xf32, #tpu.memory_space<smem>>
    %375 = vector.broadcast %374 : f32 to vector<1x256xf32>
    %376 = arith.mulf %375, %278 : vector<1x256xf32>
    %377 = arith.addf %373, %376 : vector<1x256xf32>
    %c64 = arith.constant 64 : index
    %378 = memref.load %arg2[%c64] : memref<384xf32, #tpu.memory_space<smem>>
    %379 = vector.broadcast %378 : f32 to vector<1x256xf32>
    %380 = arith.mulf %379, %159 : vector<1x256xf32>
    %381 = arith.addf %377, %380 : vector<1x256xf32>
    %c65 = arith.constant 65 : index
    %382 = memref.load %arg2[%c65] : memref<384xf32, #tpu.memory_space<smem>>
    %383 = vector.broadcast %382 : f32 to vector<1x256xf32>
    %384 = arith.mulf %383, %283 : vector<1x256xf32>
    %385 = arith.addf %381, %384 : vector<1x256xf32>
    %c66 = arith.constant 66 : index
    %386 = memref.load %arg2[%c66] : memref<384xf32, #tpu.memory_space<smem>>
    %387 = vector.broadcast %386 : f32 to vector<1x256xf32>
    %388 = arith.mulf %387, %288 : vector<1x256xf32>
    %389 = arith.addf %385, %388 : vector<1x256xf32>
    %c67 = arith.constant 67 : index
    %390 = memref.load %arg2[%c67] : memref<384xf32, #tpu.memory_space<smem>>
    %391 = vector.broadcast %390 : f32 to vector<1x256xf32>
    %392 = arith.mulf %391, %211 : vector<1x256xf32>
    %393 = arith.addf %389, %392 : vector<1x256xf32>
    %c68 = arith.constant 68 : index
    %394 = memref.load %arg2[%c68] : memref<384xf32, #tpu.memory_space<smem>>
    %395 = vector.broadcast %394 : f32 to vector<1x256xf32>
    %396 = arith.mulf %395, %293 : vector<1x256xf32>
    %397 = arith.addf %393, %396 : vector<1x256xf32>
    %c69 = arith.constant 69 : index
    %398 = memref.load %arg2[%c69] : memref<384xf32, #tpu.memory_space<smem>>
    %399 = vector.broadcast %398 : f32 to vector<1x256xf32>
    %400 = arith.mulf %399, %298 : vector<1x256xf32>
    %401 = arith.addf %397, %400 : vector<1x256xf32>
    %c70 = arith.constant 70 : index
    %402 = memref.load %arg2[%c70] : memref<384xf32, #tpu.memory_space<smem>>
    %403 = vector.broadcast %402 : f32 to vector<1x256xf32>
    %404 = arith.mulf %403, %263 : vector<1x256xf32>
    %405 = arith.addf %401, %404 : vector<1x256xf32>
    %c71 = arith.constant 71 : index
    %406 = memref.load %arg2[%c71] : memref<384xf32, #tpu.memory_space<smem>>
    %407 = vector.broadcast %406 : f32 to vector<1x256xf32>
    %408 = arith.mulf %407, %303 : vector<1x256xf32>
    %409 = arith.addf %405, %408 : vector<1x256xf32>
    %c5_43 = arith.constant 5 : index
    %410 = memref.load %arg3[%c5_43] : memref<32xf32, #tpu.memory_space<smem>>
    %411 = vector.broadcast %410 : f32 to vector<1x256xf32>
    %412 = arith.addf %409, %411 : vector<1x256xf32>
    %cst_44 = arith.constant 0.000000e+00 : f32
    %413 = vector.broadcast %cst_44 : f32 to vector<1x256xf32>
    %414 = arith.cmpf oge, %412, %413 : vector<1x256xf32>
    %415 = vector.broadcast %0 : f32 to vector<1x256xf32>
    %416 = arith.mulf %415, %412 : vector<1x256xf32>
    %417 = arith.select %414, %412, %416 : vector<1x256xi1>, vector<1x256xf32>
    %cst_45 = arith.constant 0.000000e+00 : f32
    %418 = vector.broadcast %cst_45 : f32 to vector<1x256xf32>
    %c72 = arith.constant 72 : index
    %419 = memref.load %arg2[%c72] : memref<384xf32, #tpu.memory_space<smem>>
    %420 = vector.broadcast %419 : f32 to vector<1x256xf32>
    %421 = arith.mulf %420, %268 : vector<1x256xf32>
    %422 = arith.addf %418, %421 : vector<1x256xf32>
    %c73 = arith.constant 73 : index
    %423 = memref.load %arg2[%c73] : memref<384xf32, #tpu.memory_space<smem>>
    %424 = vector.broadcast %423 : f32 to vector<1x256xf32>
    %425 = arith.mulf %424, %107 : vector<1x256xf32>
    %426 = arith.addf %422, %425 : vector<1x256xf32>
    %c74 = arith.constant 74 : index
    %427 = memref.load %arg2[%c74] : memref<384xf32, #tpu.memory_space<smem>>
    %428 = vector.broadcast %427 : f32 to vector<1x256xf32>
    %429 = arith.mulf %428, %273 : vector<1x256xf32>
    %430 = arith.addf %426, %429 : vector<1x256xf32>
    %c75 = arith.constant 75 : index
    %431 = memref.load %arg2[%c75] : memref<384xf32, #tpu.memory_space<smem>>
    %432 = vector.broadcast %431 : f32 to vector<1x256xf32>
    %433 = arith.mulf %432, %278 : vector<1x256xf32>
    %434 = arith.addf %430, %433 : vector<1x256xf32>
    %c76 = arith.constant 76 : index
    %435 = memref.load %arg2[%c76] : memref<384xf32, #tpu.memory_space<smem>>
    %436 = vector.broadcast %435 : f32 to vector<1x256xf32>
    %437 = arith.mulf %436, %159 : vector<1x256xf32>
    %438 = arith.addf %434, %437 : vector<1x256xf32>
    %c77 = arith.constant 77 : index
    %439 = memref.load %arg2[%c77] : memref<384xf32, #tpu.memory_space<smem>>
    %440 = vector.broadcast %439 : f32 to vector<1x256xf32>
    %441 = arith.mulf %440, %283 : vector<1x256xf32>
    %442 = arith.addf %438, %441 : vector<1x256xf32>
    %c78 = arith.constant 78 : index
    %443 = memref.load %arg2[%c78] : memref<384xf32, #tpu.memory_space<smem>>
    %444 = vector.broadcast %443 : f32 to vector<1x256xf32>
    %445 = arith.mulf %444, %288 : vector<1x256xf32>
    %446 = arith.addf %442, %445 : vector<1x256xf32>
    %c79 = arith.constant 79 : index
    %447 = memref.load %arg2[%c79] : memref<384xf32, #tpu.memory_space<smem>>
    %448 = vector.broadcast %447 : f32 to vector<1x256xf32>
    %449 = arith.mulf %448, %211 : vector<1x256xf32>
    %450 = arith.addf %446, %449 : vector<1x256xf32>
    %c80 = arith.constant 80 : index
    %451 = memref.load %arg2[%c80] : memref<384xf32, #tpu.memory_space<smem>>
    %452 = vector.broadcast %451 : f32 to vector<1x256xf32>
    %453 = arith.mulf %452, %293 : vector<1x256xf32>
    %454 = arith.addf %450, %453 : vector<1x256xf32>
    %c81 = arith.constant 81 : index
    %455 = memref.load %arg2[%c81] : memref<384xf32, #tpu.memory_space<smem>>
    %456 = vector.broadcast %455 : f32 to vector<1x256xf32>
    %457 = arith.mulf %456, %298 : vector<1x256xf32>
    %458 = arith.addf %454, %457 : vector<1x256xf32>
    %c82 = arith.constant 82 : index
    %459 = memref.load %arg2[%c82] : memref<384xf32, #tpu.memory_space<smem>>
    %460 = vector.broadcast %459 : f32 to vector<1x256xf32>
    %461 = arith.mulf %460, %263 : vector<1x256xf32>
    %462 = arith.addf %458, %461 : vector<1x256xf32>
    %c83 = arith.constant 83 : index
    %463 = memref.load %arg2[%c83] : memref<384xf32, #tpu.memory_space<smem>>
    %464 = vector.broadcast %463 : f32 to vector<1x256xf32>
    %465 = arith.mulf %464, %303 : vector<1x256xf32>
    %466 = arith.addf %462, %465 : vector<1x256xf32>
    %c6_46 = arith.constant 6 : index
    %467 = memref.load %arg3[%c6_46] : memref<32xf32, #tpu.memory_space<smem>>
    %468 = vector.broadcast %467 : f32 to vector<1x256xf32>
    %469 = arith.addf %466, %468 : vector<1x256xf32>
    %cst_47 = arith.constant 0.000000e+00 : f32
    %470 = vector.broadcast %cst_47 : f32 to vector<1x256xf32>
    %471 = arith.cmpf oge, %469, %470 : vector<1x256xf32>
    %472 = vector.broadcast %0 : f32 to vector<1x256xf32>
    %473 = arith.mulf %472, %469 : vector<1x256xf32>
    %474 = arith.select %471, %469, %473 : vector<1x256xi1>, vector<1x256xf32>
    %cst_48 = arith.constant 0.000000e+00 : f32
    %475 = vector.broadcast %cst_48 : f32 to vector<1x256xf32>
    %c84 = arith.constant 84 : index
    %476 = memref.load %arg2[%c84] : memref<384xf32, #tpu.memory_space<smem>>
    %477 = vector.broadcast %476 : f32 to vector<1x256xf32>
    %478 = arith.mulf %477, %268 : vector<1x256xf32>
    %479 = arith.addf %475, %478 : vector<1x256xf32>
    %c85 = arith.constant 85 : index
    %480 = memref.load %arg2[%c85] : memref<384xf32, #tpu.memory_space<smem>>
    %481 = vector.broadcast %480 : f32 to vector<1x256xf32>
    %482 = arith.mulf %481, %107 : vector<1x256xf32>
    %483 = arith.addf %479, %482 : vector<1x256xf32>
    %c86 = arith.constant 86 : index
    %484 = memref.load %arg2[%c86] : memref<384xf32, #tpu.memory_space<smem>>
    %485 = vector.broadcast %484 : f32 to vector<1x256xf32>
    %486 = arith.mulf %485, %273 : vector<1x256xf32>
    %487 = arith.addf %483, %486 : vector<1x256xf32>
    %c87 = arith.constant 87 : index
    %488 = memref.load %arg2[%c87] : memref<384xf32, #tpu.memory_space<smem>>
    %489 = vector.broadcast %488 : f32 to vector<1x256xf32>
    %490 = arith.mulf %489, %278 : vector<1x256xf32>
    %491 = arith.addf %487, %490 : vector<1x256xf32>
    %c88 = arith.constant 88 : index
    %492 = memref.load %arg2[%c88] : memref<384xf32, #tpu.memory_space<smem>>
    %493 = vector.broadcast %492 : f32 to vector<1x256xf32>
    %494 = arith.mulf %493, %159 : vector<1x256xf32>
    %495 = arith.addf %491, %494 : vector<1x256xf32>
    %c89 = arith.constant 89 : index
    %496 = memref.load %arg2[%c89] : memref<384xf32, #tpu.memory_space<smem>>
    %497 = vector.broadcast %496 : f32 to vector<1x256xf32>
    %498 = arith.mulf %497, %283 : vector<1x256xf32>
    %499 = arith.addf %495, %498 : vector<1x256xf32>
    %c90 = arith.constant 90 : index
    %500 = memref.load %arg2[%c90] : memref<384xf32, #tpu.memory_space<smem>>
    %501 = vector.broadcast %500 : f32 to vector<1x256xf32>
    %502 = arith.mulf %501, %288 : vector<1x256xf32>
    %503 = arith.addf %499, %502 : vector<1x256xf32>
    %c91 = arith.constant 91 : index
    %504 = memref.load %arg2[%c91] : memref<384xf32, #tpu.memory_space<smem>>
    %505 = vector.broadcast %504 : f32 to vector<1x256xf32>
    %506 = arith.mulf %505, %211 : vector<1x256xf32>
    %507 = arith.addf %503, %506 : vector<1x256xf32>
    %c92 = arith.constant 92 : index
    %508 = memref.load %arg2[%c92] : memref<384xf32, #tpu.memory_space<smem>>
    %509 = vector.broadcast %508 : f32 to vector<1x256xf32>
    %510 = arith.mulf %509, %293 : vector<1x256xf32>
    %511 = arith.addf %507, %510 : vector<1x256xf32>
    %c93 = arith.constant 93 : index
    %512 = memref.load %arg2[%c93] : memref<384xf32, #tpu.memory_space<smem>>
    %513 = vector.broadcast %512 : f32 to vector<1x256xf32>
    %514 = arith.mulf %513, %298 : vector<1x256xf32>
    %515 = arith.addf %511, %514 : vector<1x256xf32>
    %c94 = arith.constant 94 : index
    %516 = memref.load %arg2[%c94] : memref<384xf32, #tpu.memory_space<smem>>
    %517 = vector.broadcast %516 : f32 to vector<1x256xf32>
    %518 = arith.mulf %517, %263 : vector<1x256xf32>
    %519 = arith.addf %515, %518 : vector<1x256xf32>
    %c95 = arith.constant 95 : index
    %520 = memref.load %arg2[%c95] : memref<384xf32, #tpu.memory_space<smem>>
    %521 = vector.broadcast %520 : f32 to vector<1x256xf32>
    %522 = arith.mulf %521, %303 : vector<1x256xf32>
    %523 = arith.addf %519, %522 : vector<1x256xf32>
    %c7_49 = arith.constant 7 : index
    %524 = memref.load %arg3[%c7_49] : memref<32xf32, #tpu.memory_space<smem>>
    %525 = vector.broadcast %524 : f32 to vector<1x256xf32>
    %526 = arith.addf %523, %525 : vector<1x256xf32>
    %cst_50 = arith.constant 0.000000e+00 : f32
    %527 = vector.broadcast %cst_50 : f32 to vector<1x256xf32>
    %528 = arith.cmpf oge, %526, %527 : vector<1x256xf32>
    %529 = vector.broadcast %0 : f32 to vector<1x256xf32>
    %530 = arith.mulf %529, %526 : vector<1x256xf32>
    %531 = arith.select %528, %526, %530 : vector<1x256xi1>, vector<1x256xf32>
    %cst_51 = arith.constant 0.000000e+00 : f32
    %532 = vector.broadcast %cst_51 : f32 to vector<1x1xf32>
    %533 = vector.extract_strided_slice %28 {offsets = [0, 0], sizes = [1, 255], strides = [1, 1]} : vector<1x256xf32> to vector<1x255xf32>
    %534 = tpu.concatenate %532, %533 in 1 : vector<1x1xf32>, vector<1x255xf32> -> vector<1x256xf32>
    %cst_52 = arith.constant 0.000000e+00 : f32
    %535 = vector.broadcast %cst_52 : f32 to vector<1x256xf32>
    %536 = arith.select %19, %534, %535 : vector<1x256xi1>, vector<1x256xf32>
    %cst_53 = arith.constant 0.000000e+00 : f32
    %537 = vector.broadcast %cst_53 : f32 to vector<1x1xf32>
    %538 = vector.extract_strided_slice %28 {offsets = [0, 1], sizes = [1, 255], strides = [1, 1]} : vector<1x256xf32> to vector<1x255xf32>
    %539 = tpu.concatenate %538, %537 in 1 : vector<1x255xf32>, vector<1x1xf32> -> vector<1x256xf32>
    %cst_54 = arith.constant 0.000000e+00 : f32
    %540 = vector.broadcast %cst_54 : f32 to vector<1x256xf32>
    %541 = arith.select %21, %539, %540 : vector<1x256xi1>, vector<1x256xf32>
    %cst_55 = arith.constant 0.000000e+00 : f32
    %542 = vector.broadcast %cst_55 : f32 to vector<1x1xf32>
    %543 = vector.extract_strided_slice %29 {offsets = [0, 0], sizes = [1, 255], strides = [1, 1]} : vector<1x256xf32> to vector<1x255xf32>
    %544 = tpu.concatenate %542, %543 in 1 : vector<1x1xf32>, vector<1x255xf32> -> vector<1x256xf32>
    %cst_56 = arith.constant 0.000000e+00 : f32
    %545 = vector.broadcast %cst_56 : f32 to vector<1x256xf32>
    %546 = arith.select %19, %544, %545 : vector<1x256xi1>, vector<1x256xf32>
    %cst_57 = arith.constant 0.000000e+00 : f32
    %547 = vector.broadcast %cst_57 : f32 to vector<1x1xf32>
    %548 = vector.extract_strided_slice %29 {offsets = [0, 1], sizes = [1, 255], strides = [1, 1]} : vector<1x256xf32> to vector<1x255xf32>
    %549 = tpu.concatenate %548, %547 in 1 : vector<1x255xf32>, vector<1x1xf32> -> vector<1x256xf32>
    %cst_58 = arith.constant 0.000000e+00 : f32
    %550 = vector.broadcast %cst_58 : f32 to vector<1x256xf32>
    %551 = arith.select %21, %549, %550 : vector<1x256xi1>, vector<1x256xf32>
    %cst_59 = arith.constant 0.000000e+00 : f32
    %552 = vector.broadcast %cst_59 : f32 to vector<1x1xf32>
    %553 = vector.extract_strided_slice %30 {offsets = [0, 0], sizes = [1, 255], strides = [1, 1]} : vector<1x256xf32> to vector<1x255xf32>
    %554 = tpu.concatenate %552, %553 in 1 : vector<1x1xf32>, vector<1x255xf32> -> vector<1x256xf32>
    %cst_60 = arith.constant 0.000000e+00 : f32
    %555 = vector.broadcast %cst_60 : f32 to vector<1x256xf32>
    %556 = arith.select %19, %554, %555 : vector<1x256xi1>, vector<1x256xf32>
    %cst_61 = arith.constant 0.000000e+00 : f32
    %557 = vector.broadcast %cst_61 : f32 to vector<1x1xf32>
    %558 = vector.extract_strided_slice %30 {offsets = [0, 1], sizes = [1, 255], strides = [1, 1]} : vector<1x256xf32> to vector<1x255xf32>
    %559 = tpu.concatenate %558, %557 in 1 : vector<1x255xf32>, vector<1x1xf32> -> vector<1x256xf32>
    %cst_62 = arith.constant 0.000000e+00 : f32
    %560 = vector.broadcast %cst_62 : f32 to vector<1x256xf32>
    %561 = arith.select %21, %559, %560 : vector<1x256xi1>, vector<1x256xf32>
    %cst_63 = arith.constant 0.000000e+00 : f32
    %562 = vector.broadcast %cst_63 : f32 to vector<1x1xf32>
    %563 = vector.extract_strided_slice %31 {offsets = [0, 0], sizes = [1, 255], strides = [1, 1]} : vector<1x256xf32> to vector<1x255xf32>
    %564 = tpu.concatenate %562, %563 in 1 : vector<1x1xf32>, vector<1x255xf32> -> vector<1x256xf32>
    %cst_64 = arith.constant 0.000000e+00 : f32
    %565 = vector.broadcast %cst_64 : f32 to vector<1x256xf32>
    %566 = arith.select %19, %564, %565 : vector<1x256xi1>, vector<1x256xf32>
    %cst_65 = arith.constant 0.000000e+00 : f32
    %567 = vector.broadcast %cst_65 : f32 to vector<1x1xf32>
    %568 = vector.extract_strided_slice %31 {offsets = [0, 1], sizes = [1, 255], strides = [1, 1]} : vector<1x256xf32> to vector<1x255xf32>
    %569 = tpu.concatenate %568, %567 in 1 : vector<1x255xf32>, vector<1x1xf32> -> vector<1x256xf32>
    %cst_66 = arith.constant 0.000000e+00 : f32
    %570 = vector.broadcast %cst_66 : f32 to vector<1x256xf32>
    %571 = arith.select %21, %569, %570 : vector<1x256xi1>, vector<1x256xf32>
    %cst_67 = arith.constant 0.000000e+00 : f32
    %572 = vector.broadcast %cst_67 : f32 to vector<1x256xf32>
    %c96 = arith.constant 96 : index
    %573 = memref.load %arg2[%c96] : memref<384xf32, #tpu.memory_space<smem>>
    %574 = vector.broadcast %573 : f32 to vector<1x256xf32>
    %575 = arith.mulf %574, %536 : vector<1x256xf32>
    %576 = arith.addf %572, %575 : vector<1x256xf32>
    %c97 = arith.constant 97 : index
    %577 = memref.load %arg2[%c97] : memref<384xf32, #tpu.memory_space<smem>>
    %578 = vector.broadcast %577 : f32 to vector<1x256xf32>
    %579 = arith.mulf %578, %28 : vector<1x256xf32>
    %580 = arith.addf %576, %579 : vector<1x256xf32>
    %c98 = arith.constant 98 : index
    %581 = memref.load %arg2[%c98] : memref<384xf32, #tpu.memory_space<smem>>
    %582 = vector.broadcast %581 : f32 to vector<1x256xf32>
    %583 = arith.mulf %582, %541 : vector<1x256xf32>
    %584 = arith.addf %580, %583 : vector<1x256xf32>
    %c99 = arith.constant 99 : index
    %585 = memref.load %arg2[%c99] : memref<384xf32, #tpu.memory_space<smem>>
    %586 = vector.broadcast %585 : f32 to vector<1x256xf32>
    %587 = arith.mulf %586, %546 : vector<1x256xf32>
    %588 = arith.addf %584, %587 : vector<1x256xf32>
    %c100 = arith.constant 100 : index
    %589 = memref.load %arg2[%c100] : memref<384xf32, #tpu.memory_space<smem>>
    %590 = vector.broadcast %589 : f32 to vector<1x256xf32>
    %591 = arith.mulf %590, %29 : vector<1x256xf32>
    %592 = arith.addf %588, %591 : vector<1x256xf32>
    %c101 = arith.constant 101 : index
    %593 = memref.load %arg2[%c101] : memref<384xf32, #tpu.memory_space<smem>>
    %594 = vector.broadcast %593 : f32 to vector<1x256xf32>
    %595 = arith.mulf %594, %551 : vector<1x256xf32>
    %596 = arith.addf %592, %595 : vector<1x256xf32>
    %c102 = arith.constant 102 : index
    %597 = memref.load %arg2[%c102] : memref<384xf32, #tpu.memory_space<smem>>
    %598 = vector.broadcast %597 : f32 to vector<1x256xf32>
    %599 = arith.mulf %598, %556 : vector<1x256xf32>
    %600 = arith.addf %596, %599 : vector<1x256xf32>
    %c103 = arith.constant 103 : index
    %601 = memref.load %arg2[%c103] : memref<384xf32, #tpu.memory_space<smem>>
    %602 = vector.broadcast %601 : f32 to vector<1x256xf32>
    %603 = arith.mulf %602, %30 : vector<1x256xf32>
    %604 = arith.addf %600, %603 : vector<1x256xf32>
    %c104 = arith.constant 104 : index
    %605 = memref.load %arg2[%c104] : memref<384xf32, #tpu.memory_space<smem>>
    %606 = vector.broadcast %605 : f32 to vector<1x256xf32>
    %607 = arith.mulf %606, %561 : vector<1x256xf32>
    %608 = arith.addf %604, %607 : vector<1x256xf32>
    %c105 = arith.constant 105 : index
    %609 = memref.load %arg2[%c105] : memref<384xf32, #tpu.memory_space<smem>>
    %610 = vector.broadcast %609 : f32 to vector<1x256xf32>
    %611 = arith.mulf %610, %566 : vector<1x256xf32>
    %612 = arith.addf %608, %611 : vector<1x256xf32>
    %c106 = arith.constant 106 : index
    %613 = memref.load %arg2[%c106] : memref<384xf32, #tpu.memory_space<smem>>
    %614 = vector.broadcast %613 : f32 to vector<1x256xf32>
    %615 = arith.mulf %614, %31 : vector<1x256xf32>
    %616 = arith.addf %612, %615 : vector<1x256xf32>
    %c107 = arith.constant 107 : index
    %617 = memref.load %arg2[%c107] : memref<384xf32, #tpu.memory_space<smem>>
    %618 = vector.broadcast %617 : f32 to vector<1x256xf32>
    %619 = arith.mulf %618, %571 : vector<1x256xf32>
    %620 = arith.addf %616, %619 : vector<1x256xf32>
    %c8_68 = arith.constant 8 : index
    %621 = memref.load %arg3[%c8_68] : memref<32xf32, #tpu.memory_space<smem>>
    %622 = vector.broadcast %621 : f32 to vector<1x256xf32>
    %623 = arith.addf %620, %622 : vector<1x256xf32>
    %cst_69 = arith.constant 0.000000e+00 : f32
    %624 = vector.broadcast %cst_69 : f32 to vector<1x256xf32>
    %c108 = arith.constant 108 : index
    %625 = memref.load %arg2[%c108] : memref<384xf32, #tpu.memory_space<smem>>
    %626 = vector.broadcast %625 : f32 to vector<1x256xf32>
    %627 = arith.mulf %626, %536 : vector<1x256xf32>
    %628 = arith.addf %624, %627 : vector<1x256xf32>
    %c109 = arith.constant 109 : index
    %629 = memref.load %arg2[%c109] : memref<384xf32, #tpu.memory_space<smem>>
    %630 = vector.broadcast %629 : f32 to vector<1x256xf32>
    %631 = arith.mulf %630, %28 : vector<1x256xf32>
    %632 = arith.addf %628, %631 : vector<1x256xf32>
    %c110 = arith.constant 110 : index
    %633 = memref.load %arg2[%c110] : memref<384xf32, #tpu.memory_space<smem>>
    %634 = vector.broadcast %633 : f32 to vector<1x256xf32>
    %635 = arith.mulf %634, %541 : vector<1x256xf32>
    %636 = arith.addf %632, %635 : vector<1x256xf32>
    %c111 = arith.constant 111 : index
    %637 = memref.load %arg2[%c111] : memref<384xf32, #tpu.memory_space<smem>>
    %638 = vector.broadcast %637 : f32 to vector<1x256xf32>
    %639 = arith.mulf %638, %546 : vector<1x256xf32>
    %640 = arith.addf %636, %639 : vector<1x256xf32>
    %c112 = arith.constant 112 : index
    %641 = memref.load %arg2[%c112] : memref<384xf32, #tpu.memory_space<smem>>
    %642 = vector.broadcast %641 : f32 to vector<1x256xf32>
    %643 = arith.mulf %642, %29 : vector<1x256xf32>
    %644 = arith.addf %640, %643 : vector<1x256xf32>
    %c113 = arith.constant 113 : index
    %645 = memref.load %arg2[%c113] : memref<384xf32, #tpu.memory_space<smem>>
    %646 = vector.broadcast %645 : f32 to vector<1x256xf32>
    %647 = arith.mulf %646, %551 : vector<1x256xf32>
    %648 = arith.addf %644, %647 : vector<1x256xf32>
    %c114 = arith.constant 114 : index
    %649 = memref.load %arg2[%c114] : memref<384xf32, #tpu.memory_space<smem>>
    %650 = vector.broadcast %649 : f32 to vector<1x256xf32>
    %651 = arith.mulf %650, %556 : vector<1x256xf32>
    %652 = arith.addf %648, %651 : vector<1x256xf32>
    %c115 = arith.constant 115 : index
    %653 = memref.load %arg2[%c115] : memref<384xf32, #tpu.memory_space<smem>>
    %654 = vector.broadcast %653 : f32 to vector<1x256xf32>
    %655 = arith.mulf %654, %30 : vector<1x256xf32>
    %656 = arith.addf %652, %655 : vector<1x256xf32>
    %c116 = arith.constant 116 : index
    %657 = memref.load %arg2[%c116] : memref<384xf32, #tpu.memory_space<smem>>
    %658 = vector.broadcast %657 : f32 to vector<1x256xf32>
    %659 = arith.mulf %658, %561 : vector<1x256xf32>
    %660 = arith.addf %656, %659 : vector<1x256xf32>
    %c117 = arith.constant 117 : index
    %661 = memref.load %arg2[%c117] : memref<384xf32, #tpu.memory_space<smem>>
    %662 = vector.broadcast %661 : f32 to vector<1x256xf32>
    %663 = arith.mulf %662, %566 : vector<1x256xf32>
    %664 = arith.addf %660, %663 : vector<1x256xf32>
    %c118 = arith.constant 118 : index
    %665 = memref.load %arg2[%c118] : memref<384xf32, #tpu.memory_space<smem>>
    %666 = vector.broadcast %665 : f32 to vector<1x256xf32>
    %667 = arith.mulf %666, %31 : vector<1x256xf32>
    %668 = arith.addf %664, %667 : vector<1x256xf32>
    %c119 = arith.constant 119 : index
    %669 = memref.load %arg2[%c119] : memref<384xf32, #tpu.memory_space<smem>>
    %670 = vector.broadcast %669 : f32 to vector<1x256xf32>
    %671 = arith.mulf %670, %571 : vector<1x256xf32>
    %672 = arith.addf %668, %671 : vector<1x256xf32>
    %c9_70 = arith.constant 9 : index
    %673 = memref.load %arg3[%c9_70] : memref<32xf32, #tpu.memory_space<smem>>
    %674 = vector.broadcast %673 : f32 to vector<1x256xf32>
    %675 = arith.addf %672, %674 : vector<1x256xf32>
    %cst_71 = arith.constant 0.000000e+00 : f32
    %676 = vector.broadcast %cst_71 : f32 to vector<1x256xf32>
    %c120 = arith.constant 120 : index
    %677 = memref.load %arg2[%c120] : memref<384xf32, #tpu.memory_space<smem>>
    %678 = vector.broadcast %677 : f32 to vector<1x256xf32>
    %679 = arith.mulf %678, %536 : vector<1x256xf32>
    %680 = arith.addf %676, %679 : vector<1x256xf32>
    %c121 = arith.constant 121 : index
    %681 = memref.load %arg2[%c121] : memref<384xf32, #tpu.memory_space<smem>>
    %682 = vector.broadcast %681 : f32 to vector<1x256xf32>
    %683 = arith.mulf %682, %28 : vector<1x256xf32>
    %684 = arith.addf %680, %683 : vector<1x256xf32>
    %c122 = arith.constant 122 : index
    %685 = memref.load %arg2[%c122] : memref<384xf32, #tpu.memory_space<smem>>
    %686 = vector.broadcast %685 : f32 to vector<1x256xf32>
    %687 = arith.mulf %686, %541 : vector<1x256xf32>
    %688 = arith.addf %684, %687 : vector<1x256xf32>
    %c123 = arith.constant 123 : index
    %689 = memref.load %arg2[%c123] : memref<384xf32, #tpu.memory_space<smem>>
    %690 = vector.broadcast %689 : f32 to vector<1x256xf32>
    %691 = arith.mulf %690, %546 : vector<1x256xf32>
    %692 = arith.addf %688, %691 : vector<1x256xf32>
    %c124 = arith.constant 124 : index
    %693 = memref.load %arg2[%c124] : memref<384xf32, #tpu.memory_space<smem>>
    %694 = vector.broadcast %693 : f32 to vector<1x256xf32>
    %695 = arith.mulf %694, %29 : vector<1x256xf32>
    %696 = arith.addf %692, %695 : vector<1x256xf32>
    %c125 = arith.constant 125 : index
    %697 = memref.load %arg2[%c125] : memref<384xf32, #tpu.memory_space<smem>>
    %698 = vector.broadcast %697 : f32 to vector<1x256xf32>
    %699 = arith.mulf %698, %551 : vector<1x256xf32>
    %700 = arith.addf %696, %699 : vector<1x256xf32>
    %c126 = arith.constant 126 : index
    %701 = memref.load %arg2[%c126] : memref<384xf32, #tpu.memory_space<smem>>
    %702 = vector.broadcast %701 : f32 to vector<1x256xf32>
    %703 = arith.mulf %702, %556 : vector<1x256xf32>
    %704 = arith.addf %700, %703 : vector<1x256xf32>
    %c127 = arith.constant 127 : index
    %705 = memref.load %arg2[%c127] : memref<384xf32, #tpu.memory_space<smem>>
    %706 = vector.broadcast %705 : f32 to vector<1x256xf32>
    %707 = arith.mulf %706, %30 : vector<1x256xf32>
    %708 = arith.addf %704, %707 : vector<1x256xf32>
    %c128 = arith.constant 128 : index
    %709 = memref.load %arg2[%c128] : memref<384xf32, #tpu.memory_space<smem>>
    %710 = vector.broadcast %709 : f32 to vector<1x256xf32>
    %711 = arith.mulf %710, %561 : vector<1x256xf32>
    %712 = arith.addf %708, %711 : vector<1x256xf32>
    %c129 = arith.constant 129 : index
    %713 = memref.load %arg2[%c129] : memref<384xf32, #tpu.memory_space<smem>>
    %714 = vector.broadcast %713 : f32 to vector<1x256xf32>
    %715 = arith.mulf %714, %566 : vector<1x256xf32>
    %716 = arith.addf %712, %715 : vector<1x256xf32>
    %c130 = arith.constant 130 : index
    %717 = memref.load %arg2[%c130] : memref<384xf32, #tpu.memory_space<smem>>
    %718 = vector.broadcast %717 : f32 to vector<1x256xf32>
    %719 = arith.mulf %718, %31 : vector<1x256xf32>
    %720 = arith.addf %716, %719 : vector<1x256xf32>
    %c131 = arith.constant 131 : index
    %721 = memref.load %arg2[%c131] : memref<384xf32, #tpu.memory_space<smem>>
    %722 = vector.broadcast %721 : f32 to vector<1x256xf32>
    %723 = arith.mulf %722, %571 : vector<1x256xf32>
    %724 = arith.addf %720, %723 : vector<1x256xf32>
    %c10_72 = arith.constant 10 : index
    %725 = memref.load %arg3[%c10_72] : memref<32xf32, #tpu.memory_space<smem>>
    %726 = vector.broadcast %725 : f32 to vector<1x256xf32>
    %727 = arith.addf %724, %726 : vector<1x256xf32>
    %cst_73 = arith.constant 0.000000e+00 : f32
    %728 = vector.broadcast %cst_73 : f32 to vector<1x256xf32>
    %c132 = arith.constant 132 : index
    %729 = memref.load %arg2[%c132] : memref<384xf32, #tpu.memory_space<smem>>
    %730 = vector.broadcast %729 : f32 to vector<1x256xf32>
    %731 = arith.mulf %730, %536 : vector<1x256xf32>
    %732 = arith.addf %728, %731 : vector<1x256xf32>
    %c133 = arith.constant 133 : index
    %733 = memref.load %arg2[%c133] : memref<384xf32, #tpu.memory_space<smem>>
    %734 = vector.broadcast %733 : f32 to vector<1x256xf32>
    %735 = arith.mulf %734, %28 : vector<1x256xf32>
    %736 = arith.addf %732, %735 : vector<1x256xf32>
    %c134 = arith.constant 134 : index
    %737 = memref.load %arg2[%c134] : memref<384xf32, #tpu.memory_space<smem>>
    %738 = vector.broadcast %737 : f32 to vector<1x256xf32>
    %739 = arith.mulf %738, %541 : vector<1x256xf32>
    %740 = arith.addf %736, %739 : vector<1x256xf32>
    %c135 = arith.constant 135 : index
    %741 = memref.load %arg2[%c135] : memref<384xf32, #tpu.memory_space<smem>>
    %742 = vector.broadcast %741 : f32 to vector<1x256xf32>
    %743 = arith.mulf %742, %546 : vector<1x256xf32>
    %744 = arith.addf %740, %743 : vector<1x256xf32>
    %c136 = arith.constant 136 : index
    %745 = memref.load %arg2[%c136] : memref<384xf32, #tpu.memory_space<smem>>
    %746 = vector.broadcast %745 : f32 to vector<1x256xf32>
    %747 = arith.mulf %746, %29 : vector<1x256xf32>
    %748 = arith.addf %744, %747 : vector<1x256xf32>
    %c137 = arith.constant 137 : index
    %749 = memref.load %arg2[%c137] : memref<384xf32, #tpu.memory_space<smem>>
    %750 = vector.broadcast %749 : f32 to vector<1x256xf32>
    %751 = arith.mulf %750, %551 : vector<1x256xf32>
    %752 = arith.addf %748, %751 : vector<1x256xf32>
    %c138 = arith.constant 138 : index
    %753 = memref.load %arg2[%c138] : memref<384xf32, #tpu.memory_space<smem>>
    %754 = vector.broadcast %753 : f32 to vector<1x256xf32>
    %755 = arith.mulf %754, %556 : vector<1x256xf32>
    %756 = arith.addf %752, %755 : vector<1x256xf32>
    %c139 = arith.constant 139 : index
    %757 = memref.load %arg2[%c139] : memref<384xf32, #tpu.memory_space<smem>>
    %758 = vector.broadcast %757 : f32 to vector<1x256xf32>
    %759 = arith.mulf %758, %30 : vector<1x256xf32>
    %760 = arith.addf %756, %759 : vector<1x256xf32>
    %c140 = arith.constant 140 : index
    %761 = memref.load %arg2[%c140] : memref<384xf32, #tpu.memory_space<smem>>
    %762 = vector.broadcast %761 : f32 to vector<1x256xf32>
    %763 = arith.mulf %762, %561 : vector<1x256xf32>
    %764 = arith.addf %760, %763 : vector<1x256xf32>
    %c141 = arith.constant 141 : index
    %765 = memref.load %arg2[%c141] : memref<384xf32, #tpu.memory_space<smem>>
    %766 = vector.broadcast %765 : f32 to vector<1x256xf32>
    %767 = arith.mulf %766, %566 : vector<1x256xf32>
    %768 = arith.addf %764, %767 : vector<1x256xf32>
    %c142 = arith.constant 142 : index
    %769 = memref.load %arg2[%c142] : memref<384xf32, #tpu.memory_space<smem>>
    %770 = vector.broadcast %769 : f32 to vector<1x256xf32>
    %771 = arith.mulf %770, %31 : vector<1x256xf32>
    %772 = arith.addf %768, %771 : vector<1x256xf32>
    %c143 = arith.constant 143 : index
    %773 = memref.load %arg2[%c143] : memref<384xf32, #tpu.memory_space<smem>>
    %774 = vector.broadcast %773 : f32 to vector<1x256xf32>
    %775 = arith.mulf %774, %571 : vector<1x256xf32>
    %776 = arith.addf %772, %775 : vector<1x256xf32>
    %c11_74 = arith.constant 11 : index
    %777 = memref.load %arg3[%c11_74] : memref<32xf32, #tpu.memory_space<smem>>
    %778 = vector.broadcast %777 : f32 to vector<1x256xf32>
    %779 = arith.addf %776, %778 : vector<1x256xf32>
    %cst_75 = arith.constant 0.000000e+00 : f32
    %780 = vector.broadcast %cst_75 : f32 to vector<1x16xf32>
    %781 = vector.extract_strided_slice %623 {offsets = [0, 0], sizes = [1, 240], strides = [1, 1]} : vector<1x256xf32> to vector<1x240xf32>
    %782 = tpu.concatenate %780, %781 in 1 : vector<1x16xf32>, vector<1x240xf32> -> vector<1x256xf32>
    %cst_76 = arith.constant 0.000000e+00 : f32
    %783 = vector.broadcast %cst_76 : f32 to vector<1x16xf32>
    %784 = vector.extract_strided_slice %623 {offsets = [0, 16], sizes = [1, 240], strides = [1, 1]} : vector<1x256xf32> to vector<1x240xf32>
    %785 = tpu.concatenate %784, %783 in 1 : vector<1x240xf32>, vector<1x16xf32> -> vector<1x256xf32>
    %cst_77 = arith.constant 0.000000e+00 : f32
    %786 = vector.broadcast %cst_77 : f32 to vector<1x16xf32>
    %787 = vector.extract_strided_slice %675 {offsets = [0, 0], sizes = [1, 240], strides = [1, 1]} : vector<1x256xf32> to vector<1x240xf32>
    %788 = tpu.concatenate %786, %787 in 1 : vector<1x16xf32>, vector<1x240xf32> -> vector<1x256xf32>
    %cst_78 = arith.constant 0.000000e+00 : f32
    %789 = vector.broadcast %cst_78 : f32 to vector<1x16xf32>
    %790 = vector.extract_strided_slice %675 {offsets = [0, 16], sizes = [1, 240], strides = [1, 1]} : vector<1x256xf32> to vector<1x240xf32>
    %791 = tpu.concatenate %790, %789 in 1 : vector<1x240xf32>, vector<1x16xf32> -> vector<1x256xf32>
    %cst_79 = arith.constant 0.000000e+00 : f32
    %792 = vector.broadcast %cst_79 : f32 to vector<1x16xf32>
    %793 = vector.extract_strided_slice %727 {offsets = [0, 0], sizes = [1, 240], strides = [1, 1]} : vector<1x256xf32> to vector<1x240xf32>
    %794 = tpu.concatenate %792, %793 in 1 : vector<1x16xf32>, vector<1x240xf32> -> vector<1x256xf32>
    %cst_80 = arith.constant 0.000000e+00 : f32
    %795 = vector.broadcast %cst_80 : f32 to vector<1x16xf32>
    %796 = vector.extract_strided_slice %727 {offsets = [0, 16], sizes = [1, 240], strides = [1, 1]} : vector<1x256xf32> to vector<1x240xf32>
    %797 = tpu.concatenate %796, %795 in 1 : vector<1x240xf32>, vector<1x16xf32> -> vector<1x256xf32>
    %cst_81 = arith.constant 0.000000e+00 : f32
    %798 = vector.broadcast %cst_81 : f32 to vector<1x16xf32>
    %799 = vector.extract_strided_slice %779 {offsets = [0, 0], sizes = [1, 240], strides = [1, 1]} : vector<1x256xf32> to vector<1x240xf32>
    %800 = tpu.concatenate %798, %799 in 1 : vector<1x16xf32>, vector<1x240xf32> -> vector<1x256xf32>
    %cst_82 = arith.constant 0.000000e+00 : f32
    %801 = vector.broadcast %cst_82 : f32 to vector<1x16xf32>
    %802 = vector.extract_strided_slice %779 {offsets = [0, 16], sizes = [1, 240], strides = [1, 1]} : vector<1x256xf32> to vector<1x240xf32>
    %803 = tpu.concatenate %802, %801 in 1 : vector<1x240xf32>, vector<1x16xf32> -> vector<1x256xf32>
    %cst_83 = arith.constant 0.000000e+00 : f32
    %804 = vector.broadcast %cst_83 : f32 to vector<1x256xf32>
    %c144 = arith.constant 144 : index
    %805 = memref.load %arg2[%c144] : memref<384xf32, #tpu.memory_space<smem>>
    %806 = vector.broadcast %805 : f32 to vector<1x256xf32>
    %807 = arith.mulf %806, %782 : vector<1x256xf32>
    %808 = arith.addf %804, %807 : vector<1x256xf32>
    %c145 = arith.constant 145 : index
    %809 = memref.load %arg2[%c145] : memref<384xf32, #tpu.memory_space<smem>>
    %810 = vector.broadcast %809 : f32 to vector<1x256xf32>
    %811 = arith.mulf %810, %623 : vector<1x256xf32>
    %812 = arith.addf %808, %811 : vector<1x256xf32>
    %c146 = arith.constant 146 : index
    %813 = memref.load %arg2[%c146] : memref<384xf32, #tpu.memory_space<smem>>
    %814 = vector.broadcast %813 : f32 to vector<1x256xf32>
    %815 = arith.mulf %814, %785 : vector<1x256xf32>
    %816 = arith.addf %812, %815 : vector<1x256xf32>
    %c147 = arith.constant 147 : index
    %817 = memref.load %arg2[%c147] : memref<384xf32, #tpu.memory_space<smem>>
    %818 = vector.broadcast %817 : f32 to vector<1x256xf32>
    %819 = arith.mulf %818, %788 : vector<1x256xf32>
    %820 = arith.addf %816, %819 : vector<1x256xf32>
    %c148 = arith.constant 148 : index
    %821 = memref.load %arg2[%c148] : memref<384xf32, #tpu.memory_space<smem>>
    %822 = vector.broadcast %821 : f32 to vector<1x256xf32>
    %823 = arith.mulf %822, %675 : vector<1x256xf32>
    %824 = arith.addf %820, %823 : vector<1x256xf32>
    %c149 = arith.constant 149 : index
    %825 = memref.load %arg2[%c149] : memref<384xf32, #tpu.memory_space<smem>>
    %826 = vector.broadcast %825 : f32 to vector<1x256xf32>
    %827 = arith.mulf %826, %791 : vector<1x256xf32>
    %828 = arith.addf %824, %827 : vector<1x256xf32>
    %c150 = arith.constant 150 : index
    %829 = memref.load %arg2[%c150] : memref<384xf32, #tpu.memory_space<smem>>
    %830 = vector.broadcast %829 : f32 to vector<1x256xf32>
    %831 = arith.mulf %830, %794 : vector<1x256xf32>
    %832 = arith.addf %828, %831 : vector<1x256xf32>
    %c151 = arith.constant 151 : index
    %833 = memref.load %arg2[%c151] : memref<384xf32, #tpu.memory_space<smem>>
    %834 = vector.broadcast %833 : f32 to vector<1x256xf32>
    %835 = arith.mulf %834, %727 : vector<1x256xf32>
    %836 = arith.addf %832, %835 : vector<1x256xf32>
    %c152 = arith.constant 152 : index
    %837 = memref.load %arg2[%c152] : memref<384xf32, #tpu.memory_space<smem>>
    %838 = vector.broadcast %837 : f32 to vector<1x256xf32>
    %839 = arith.mulf %838, %797 : vector<1x256xf32>
    %840 = arith.addf %836, %839 : vector<1x256xf32>
    %c153 = arith.constant 153 : index
    %841 = memref.load %arg2[%c153] : memref<384xf32, #tpu.memory_space<smem>>
    %842 = vector.broadcast %841 : f32 to vector<1x256xf32>
    %843 = arith.mulf %842, %800 : vector<1x256xf32>
    %844 = arith.addf %840, %843 : vector<1x256xf32>
    %c154 = arith.constant 154 : index
    %845 = memref.load %arg2[%c154] : memref<384xf32, #tpu.memory_space<smem>>
    %846 = vector.broadcast %845 : f32 to vector<1x256xf32>
    %847 = arith.mulf %846, %779 : vector<1x256xf32>
    %848 = arith.addf %844, %847 : vector<1x256xf32>
    %c155 = arith.constant 155 : index
    %849 = memref.load %arg2[%c155] : memref<384xf32, #tpu.memory_space<smem>>
    %850 = vector.broadcast %849 : f32 to vector<1x256xf32>
    %851 = arith.mulf %850, %803 : vector<1x256xf32>
    %852 = arith.addf %848, %851 : vector<1x256xf32>
    %c12_84 = arith.constant 12 : index
    %853 = memref.load %arg3[%c12_84] : memref<32xf32, #tpu.memory_space<smem>>
    %854 = vector.broadcast %853 : f32 to vector<1x256xf32>
    %855 = arith.addf %852, %854 : vector<1x256xf32>
    %cst_85 = arith.constant 0.000000e+00 : f32
    %856 = vector.broadcast %cst_85 : f32 to vector<1x256xf32>
    %857 = arith.cmpf oge, %855, %856 : vector<1x256xf32>
    %858 = vector.broadcast %0 : f32 to vector<1x256xf32>
    %859 = arith.mulf %858, %855 : vector<1x256xf32>
    %860 = arith.select %857, %855, %859 : vector<1x256xi1>, vector<1x256xf32>
    %cst_86 = arith.constant 0.000000e+00 : f32
    %861 = vector.broadcast %cst_86 : f32 to vector<1x256xf32>
    %c156 = arith.constant 156 : index
    %862 = memref.load %arg2[%c156] : memref<384xf32, #tpu.memory_space<smem>>
    %863 = vector.broadcast %862 : f32 to vector<1x256xf32>
    %864 = arith.mulf %863, %782 : vector<1x256xf32>
    %865 = arith.addf %861, %864 : vector<1x256xf32>
    %c157 = arith.constant 157 : index
    %866 = memref.load %arg2[%c157] : memref<384xf32, #tpu.memory_space<smem>>
    %867 = vector.broadcast %866 : f32 to vector<1x256xf32>
    %868 = arith.mulf %867, %623 : vector<1x256xf32>
    %869 = arith.addf %865, %868 : vector<1x256xf32>
    %c158 = arith.constant 158 : index
    %870 = memref.load %arg2[%c158] : memref<384xf32, #tpu.memory_space<smem>>
    %871 = vector.broadcast %870 : f32 to vector<1x256xf32>
    %872 = arith.mulf %871, %785 : vector<1x256xf32>
    %873 = arith.addf %869, %872 : vector<1x256xf32>
    %c159 = arith.constant 159 : index
    %874 = memref.load %arg2[%c159] : memref<384xf32, #tpu.memory_space<smem>>
    %875 = vector.broadcast %874 : f32 to vector<1x256xf32>
    %876 = arith.mulf %875, %788 : vector<1x256xf32>
    %877 = arith.addf %873, %876 : vector<1x256xf32>
    %c160 = arith.constant 160 : index
    %878 = memref.load %arg2[%c160] : memref<384xf32, #tpu.memory_space<smem>>
    %879 = vector.broadcast %878 : f32 to vector<1x256xf32>
    %880 = arith.mulf %879, %675 : vector<1x256xf32>
    %881 = arith.addf %877, %880 : vector<1x256xf32>
    %c161 = arith.constant 161 : index
    %882 = memref.load %arg2[%c161] : memref<384xf32, #tpu.memory_space<smem>>
    %883 = vector.broadcast %882 : f32 to vector<1x256xf32>
    %884 = arith.mulf %883, %791 : vector<1x256xf32>
    %885 = arith.addf %881, %884 : vector<1x256xf32>
    %c162 = arith.constant 162 : index
    %886 = memref.load %arg2[%c162] : memref<384xf32, #tpu.memory_space<smem>>
    %887 = vector.broadcast %886 : f32 to vector<1x256xf32>
    %888 = arith.mulf %887, %794 : vector<1x256xf32>
    %889 = arith.addf %885, %888 : vector<1x256xf32>
    %c163 = arith.constant 163 : index
    %890 = memref.load %arg2[%c163] : memref<384xf32, #tpu.memory_space<smem>>
    %891 = vector.broadcast %890 : f32 to vector<1x256xf32>
    %892 = arith.mulf %891, %727 : vector<1x256xf32>
    %893 = arith.addf %889, %892 : vector<1x256xf32>
    %c164 = arith.constant 164 : index
    %894 = memref.load %arg2[%c164] : memref<384xf32, #tpu.memory_space<smem>>
    %895 = vector.broadcast %894 : f32 to vector<1x256xf32>
    %896 = arith.mulf %895, %797 : vector<1x256xf32>
    %897 = arith.addf %893, %896 : vector<1x256xf32>
    %c165 = arith.constant 165 : index
    %898 = memref.load %arg2[%c165] : memref<384xf32, #tpu.memory_space<smem>>
    %899 = vector.broadcast %898 : f32 to vector<1x256xf32>
    %900 = arith.mulf %899, %800 : vector<1x256xf32>
    %901 = arith.addf %897, %900 : vector<1x256xf32>
    %c166 = arith.constant 166 : index
    %902 = memref.load %arg2[%c166] : memref<384xf32, #tpu.memory_space<smem>>
    %903 = vector.broadcast %902 : f32 to vector<1x256xf32>
    %904 = arith.mulf %903, %779 : vector<1x256xf32>
    %905 = arith.addf %901, %904 : vector<1x256xf32>
    %c167 = arith.constant 167 : index
    %906 = memref.load %arg2[%c167] : memref<384xf32, #tpu.memory_space<smem>>
    %907 = vector.broadcast %906 : f32 to vector<1x256xf32>
    %908 = arith.mulf %907, %803 : vector<1x256xf32>
    %909 = arith.addf %905, %908 : vector<1x256xf32>
    %c13_87 = arith.constant 13 : index
    %910 = memref.load %arg3[%c13_87] : memref<32xf32, #tpu.memory_space<smem>>
    %911 = vector.broadcast %910 : f32 to vector<1x256xf32>
    %912 = arith.addf %909, %911 : vector<1x256xf32>
    %cst_88 = arith.constant 0.000000e+00 : f32
    %913 = vector.broadcast %cst_88 : f32 to vector<1x256xf32>
    %914 = arith.cmpf oge, %912, %913 : vector<1x256xf32>
    %915 = vector.broadcast %0 : f32 to vector<1x256xf32>
    %916 = arith.mulf %915, %912 : vector<1x256xf32>
    %917 = arith.select %914, %912, %916 : vector<1x256xi1>, vector<1x256xf32>
    %cst_89 = arith.constant 0.000000e+00 : f32
    %918 = vector.broadcast %cst_89 : f32 to vector<1x256xf32>
    %c168 = arith.constant 168 : index
    %919 = memref.load %arg2[%c168] : memref<384xf32, #tpu.memory_space<smem>>
    %920 = vector.broadcast %919 : f32 to vector<1x256xf32>
    %921 = arith.mulf %920, %782 : vector<1x256xf32>
    %922 = arith.addf %918, %921 : vector<1x256xf32>
    %c169 = arith.constant 169 : index
    %923 = memref.load %arg2[%c169] : memref<384xf32, #tpu.memory_space<smem>>
    %924 = vector.broadcast %923 : f32 to vector<1x256xf32>
    %925 = arith.mulf %924, %623 : vector<1x256xf32>
    %926 = arith.addf %922, %925 : vector<1x256xf32>
    %c170 = arith.constant 170 : index
    %927 = memref.load %arg2[%c170] : memref<384xf32, #tpu.memory_space<smem>>
    %928 = vector.broadcast %927 : f32 to vector<1x256xf32>
    %929 = arith.mulf %928, %785 : vector<1x256xf32>
    %930 = arith.addf %926, %929 : vector<1x256xf32>
    %c171 = arith.constant 171 : index
    %931 = memref.load %arg2[%c171] : memref<384xf32, #tpu.memory_space<smem>>
    %932 = vector.broadcast %931 : f32 to vector<1x256xf32>
    %933 = arith.mulf %932, %788 : vector<1x256xf32>
    %934 = arith.addf %930, %933 : vector<1x256xf32>
    %c172 = arith.constant 172 : index
    %935 = memref.load %arg2[%c172] : memref<384xf32, #tpu.memory_space<smem>>
    %936 = vector.broadcast %935 : f32 to vector<1x256xf32>
    %937 = arith.mulf %936, %675 : vector<1x256xf32>
    %938 = arith.addf %934, %937 : vector<1x256xf32>
    %c173 = arith.constant 173 : index
    %939 = memref.load %arg2[%c173] : memref<384xf32, #tpu.memory_space<smem>>
    %940 = vector.broadcast %939 : f32 to vector<1x256xf32>
    %941 = arith.mulf %940, %791 : vector<1x256xf32>
    %942 = arith.addf %938, %941 : vector<1x256xf32>
    %c174 = arith.constant 174 : index
    %943 = memref.load %arg2[%c174] : memref<384xf32, #tpu.memory_space<smem>>
    %944 = vector.broadcast %943 : f32 to vector<1x256xf32>
    %945 = arith.mulf %944, %794 : vector<1x256xf32>
    %946 = arith.addf %942, %945 : vector<1x256xf32>
    %c175 = arith.constant 175 : index
    %947 = memref.load %arg2[%c175] : memref<384xf32, #tpu.memory_space<smem>>
    %948 = vector.broadcast %947 : f32 to vector<1x256xf32>
    %949 = arith.mulf %948, %727 : vector<1x256xf32>
    %950 = arith.addf %946, %949 : vector<1x256xf32>
    %c176 = arith.constant 176 : index
    %951 = memref.load %arg2[%c176] : memref<384xf32, #tpu.memory_space<smem>>
    %952 = vector.broadcast %951 : f32 to vector<1x256xf32>
    %953 = arith.mulf %952, %797 : vector<1x256xf32>
    %954 = arith.addf %950, %953 : vector<1x256xf32>
    %c177 = arith.constant 177 : index
    %955 = memref.load %arg2[%c177] : memref<384xf32, #tpu.memory_space<smem>>
    %956 = vector.broadcast %955 : f32 to vector<1x256xf32>
    %957 = arith.mulf %956, %800 : vector<1x256xf32>
    %958 = arith.addf %954, %957 : vector<1x256xf32>
    %c178 = arith.constant 178 : index
    %959 = memref.load %arg2[%c178] : memref<384xf32, #tpu.memory_space<smem>>
    %960 = vector.broadcast %959 : f32 to vector<1x256xf32>
    %961 = arith.mulf %960, %779 : vector<1x256xf32>
    %962 = arith.addf %958, %961 : vector<1x256xf32>
    %c179 = arith.constant 179 : index
    %963 = memref.load %arg2[%c179] : memref<384xf32, #tpu.memory_space<smem>>
    %964 = vector.broadcast %963 : f32 to vector<1x256xf32>
    %965 = arith.mulf %964, %803 : vector<1x256xf32>
    %966 = arith.addf %962, %965 : vector<1x256xf32>
    %c14_90 = arith.constant 14 : index
    %967 = memref.load %arg3[%c14_90] : memref<32xf32, #tpu.memory_space<smem>>
    %968 = vector.broadcast %967 : f32 to vector<1x256xf32>
    %969 = arith.addf %966, %968 : vector<1x256xf32>
    %cst_91 = arith.constant 0.000000e+00 : f32
    %970 = vector.broadcast %cst_91 : f32 to vector<1x256xf32>
    %971 = arith.cmpf oge, %969, %970 : vector<1x256xf32>
    %972 = vector.broadcast %0 : f32 to vector<1x256xf32>
    %973 = arith.mulf %972, %969 : vector<1x256xf32>
    %974 = arith.select %971, %969, %973 : vector<1x256xi1>, vector<1x256xf32>
    %cst_92 = arith.constant 0.000000e+00 : f32
    %975 = vector.broadcast %cst_92 : f32 to vector<1x256xf32>
    %c180 = arith.constant 180 : index
    %976 = memref.load %arg2[%c180] : memref<384xf32, #tpu.memory_space<smem>>
    %977 = vector.broadcast %976 : f32 to vector<1x256xf32>
    %978 = arith.mulf %977, %782 : vector<1x256xf32>
    %979 = arith.addf %975, %978 : vector<1x256xf32>
    %c181 = arith.constant 181 : index
    %980 = memref.load %arg2[%c181] : memref<384xf32, #tpu.memory_space<smem>>
    %981 = vector.broadcast %980 : f32 to vector<1x256xf32>
    %982 = arith.mulf %981, %623 : vector<1x256xf32>
    %983 = arith.addf %979, %982 : vector<1x256xf32>
    %c182 = arith.constant 182 : index
    %984 = memref.load %arg2[%c182] : memref<384xf32, #tpu.memory_space<smem>>
    %985 = vector.broadcast %984 : f32 to vector<1x256xf32>
    %986 = arith.mulf %985, %785 : vector<1x256xf32>
    %987 = arith.addf %983, %986 : vector<1x256xf32>
    %c183 = arith.constant 183 : index
    %988 = memref.load %arg2[%c183] : memref<384xf32, #tpu.memory_space<smem>>
    %989 = vector.broadcast %988 : f32 to vector<1x256xf32>
    %990 = arith.mulf %989, %788 : vector<1x256xf32>
    %991 = arith.addf %987, %990 : vector<1x256xf32>
    %c184 = arith.constant 184 : index
    %992 = memref.load %arg2[%c184] : memref<384xf32, #tpu.memory_space<smem>>
    %993 = vector.broadcast %992 : f32 to vector<1x256xf32>
    %994 = arith.mulf %993, %675 : vector<1x256xf32>
    %995 = arith.addf %991, %994 : vector<1x256xf32>
    %c185 = arith.constant 185 : index
    %996 = memref.load %arg2[%c185] : memref<384xf32, #tpu.memory_space<smem>>
    %997 = vector.broadcast %996 : f32 to vector<1x256xf32>
    %998 = arith.mulf %997, %791 : vector<1x256xf32>
    %999 = arith.addf %995, %998 : vector<1x256xf32>
    %c186 = arith.constant 186 : index
    %1000 = memref.load %arg2[%c186] : memref<384xf32, #tpu.memory_space<smem>>
    %1001 = vector.broadcast %1000 : f32 to vector<1x256xf32>
    %1002 = arith.mulf %1001, %794 : vector<1x256xf32>
    %1003 = arith.addf %999, %1002 : vector<1x256xf32>
    %c187 = arith.constant 187 : index
    %1004 = memref.load %arg2[%c187] : memref<384xf32, #tpu.memory_space<smem>>
    %1005 = vector.broadcast %1004 : f32 to vector<1x256xf32>
    %1006 = arith.mulf %1005, %727 : vector<1x256xf32>
    %1007 = arith.addf %1003, %1006 : vector<1x256xf32>
    %c188 = arith.constant 188 : index
    %1008 = memref.load %arg2[%c188] : memref<384xf32, #tpu.memory_space<smem>>
    %1009 = vector.broadcast %1008 : f32 to vector<1x256xf32>
    %1010 = arith.mulf %1009, %797 : vector<1x256xf32>
    %1011 = arith.addf %1007, %1010 : vector<1x256xf32>
    %c189 = arith.constant 189 : index
    %1012 = memref.load %arg2[%c189] : memref<384xf32, #tpu.memory_space<smem>>
    %1013 = vector.broadcast %1012 : f32 to vector<1x256xf32>
    %1014 = arith.mulf %1013, %800 : vector<1x256xf32>
    %1015 = arith.addf %1011, %1014 : vector<1x256xf32>
    %c190 = arith.constant 190 : index
    %1016 = memref.load %arg2[%c190] : memref<384xf32, #tpu.memory_space<smem>>
    %1017 = vector.broadcast %1016 : f32 to vector<1x256xf32>
    %1018 = arith.mulf %1017, %779 : vector<1x256xf32>
    %1019 = arith.addf %1015, %1018 : vector<1x256xf32>
    %c191 = arith.constant 191 : index
    %1020 = memref.load %arg2[%c191] : memref<384xf32, #tpu.memory_space<smem>>
    %1021 = vector.broadcast %1020 : f32 to vector<1x256xf32>
    %1022 = arith.mulf %1021, %803 : vector<1x256xf32>
    %1023 = arith.addf %1019, %1022 : vector<1x256xf32>
    %c15_93 = arith.constant 15 : index
    %1024 = memref.load %arg3[%c15_93] : memref<32xf32, #tpu.memory_space<smem>>
    %1025 = vector.broadcast %1024 : f32 to vector<1x256xf32>
    %1026 = arith.addf %1023, %1025 : vector<1x256xf32>
    %cst_94 = arith.constant 0.000000e+00 : f32
    %1027 = vector.broadcast %cst_94 : f32 to vector<1x256xf32>
    %1028 = arith.cmpf oge, %1026, %1027 : vector<1x256xf32>
    %1029 = vector.broadcast %0 : f32 to vector<1x256xf32>
    %1030 = arith.mulf %1029, %1026 : vector<1x256xf32>
    %1031 = arith.select %1028, %1026, %1030 : vector<1x256xi1>, vector<1x256xf32>
    %cst_95 = arith.constant 0.000000e+00 : f32
    %1032 = vector.broadcast %cst_95 : f32 to vector<1x16xf32>
    %1033 = vector.extract_strided_slice %360 {offsets = [0, 0], sizes = [1, 240], strides = [1, 1]} : vector<1x256xf32> to vector<1x240xf32>
    %1034 = tpu.concatenate %1032, %1033 in 1 : vector<1x16xf32>, vector<1x240xf32> -> vector<1x256xf32>
    %cst_96 = arith.constant 0.000000e+00 : f32
    %1035 = vector.broadcast %cst_96 : f32 to vector<1x16xf32>
    %1036 = vector.extract_strided_slice %360 {offsets = [0, 16], sizes = [1, 240], strides = [1, 1]} : vector<1x256xf32> to vector<1x240xf32>
    %1037 = tpu.concatenate %1036, %1035 in 1 : vector<1x240xf32>, vector<1x16xf32> -> vector<1x256xf32>
    %cst_97 = arith.constant 0.000000e+00 : f32
    %1038 = vector.broadcast %cst_97 : f32 to vector<1x16xf32>
    %1039 = vector.extract_strided_slice %417 {offsets = [0, 0], sizes = [1, 240], strides = [1, 1]} : vector<1x256xf32> to vector<1x240xf32>
    %1040 = tpu.concatenate %1038, %1039 in 1 : vector<1x16xf32>, vector<1x240xf32> -> vector<1x256xf32>
    %cst_98 = arith.constant 0.000000e+00 : f32
    %1041 = vector.broadcast %cst_98 : f32 to vector<1x16xf32>
    %1042 = vector.extract_strided_slice %417 {offsets = [0, 16], sizes = [1, 240], strides = [1, 1]} : vector<1x256xf32> to vector<1x240xf32>
    %1043 = tpu.concatenate %1042, %1041 in 1 : vector<1x240xf32>, vector<1x16xf32> -> vector<1x256xf32>
    %cst_99 = arith.constant 0.000000e+00 : f32
    %1044 = vector.broadcast %cst_99 : f32 to vector<1x16xf32>
    %1045 = vector.extract_strided_slice %474 {offsets = [0, 0], sizes = [1, 240], strides = [1, 1]} : vector<1x256xf32> to vector<1x240xf32>
    %1046 = tpu.concatenate %1044, %1045 in 1 : vector<1x16xf32>, vector<1x240xf32> -> vector<1x256xf32>
    %cst_100 = arith.constant 0.000000e+00 : f32
    %1047 = vector.broadcast %cst_100 : f32 to vector<1x16xf32>
    %1048 = vector.extract_strided_slice %474 {offsets = [0, 16], sizes = [1, 240], strides = [1, 1]} : vector<1x256xf32> to vector<1x240xf32>
    %1049 = tpu.concatenate %1048, %1047 in 1 : vector<1x240xf32>, vector<1x16xf32> -> vector<1x256xf32>
    %cst_101 = arith.constant 0.000000e+00 : f32
    %1050 = vector.broadcast %cst_101 : f32 to vector<1x16xf32>
    %1051 = vector.extract_strided_slice %531 {offsets = [0, 0], sizes = [1, 240], strides = [1, 1]} : vector<1x256xf32> to vector<1x240xf32>
    %1052 = tpu.concatenate %1050, %1051 in 1 : vector<1x16xf32>, vector<1x240xf32> -> vector<1x256xf32>
    %cst_102 = arith.constant 0.000000e+00 : f32
    %1053 = vector.broadcast %cst_102 : f32 to vector<1x16xf32>
    %1054 = vector.extract_strided_slice %531 {offsets = [0, 16], sizes = [1, 240], strides = [1, 1]} : vector<1x256xf32> to vector<1x240xf32>
    %1055 = tpu.concatenate %1054, %1053 in 1 : vector<1x240xf32>, vector<1x16xf32> -> vector<1x256xf32>
    %cst_103 = arith.constant 0.000000e+00 : f32
    %1056 = vector.broadcast %cst_103 : f32 to vector<1x256xf32>
    %c192 = arith.constant 192 : index
    %1057 = memref.load %arg2[%c192] : memref<384xf32, #tpu.memory_space<smem>>
    %1058 = vector.broadcast %1057 : f32 to vector<1x256xf32>
    %1059 = arith.mulf %1058, %1034 : vector<1x256xf32>
    %1060 = arith.addf %1056, %1059 : vector<1x256xf32>
    %c193 = arith.constant 193 : index
    %1061 = memref.load %arg2[%c193] : memref<384xf32, #tpu.memory_space<smem>>
    %1062 = vector.broadcast %1061 : f32 to vector<1x256xf32>
    %1063 = arith.mulf %1062, %360 : vector<1x256xf32>
    %1064 = arith.addf %1060, %1063 : vector<1x256xf32>
    %c194 = arith.constant 194 : index
    %1065 = memref.load %arg2[%c194] : memref<384xf32, #tpu.memory_space<smem>>
    %1066 = vector.broadcast %1065 : f32 to vector<1x256xf32>
    %1067 = arith.mulf %1066, %1037 : vector<1x256xf32>
    %1068 = arith.addf %1064, %1067 : vector<1x256xf32>
    %c195 = arith.constant 195 : index
    %1069 = memref.load %arg2[%c195] : memref<384xf32, #tpu.memory_space<smem>>
    %1070 = vector.broadcast %1069 : f32 to vector<1x256xf32>
    %1071 = arith.mulf %1070, %1040 : vector<1x256xf32>
    %1072 = arith.addf %1068, %1071 : vector<1x256xf32>
    %c196 = arith.constant 196 : index
    %1073 = memref.load %arg2[%c196] : memref<384xf32, #tpu.memory_space<smem>>
    %1074 = vector.broadcast %1073 : f32 to vector<1x256xf32>
    %1075 = arith.mulf %1074, %417 : vector<1x256xf32>
    %1076 = arith.addf %1072, %1075 : vector<1x256xf32>
    %c197 = arith.constant 197 : index
    %1077 = memref.load %arg2[%c197] : memref<384xf32, #tpu.memory_space<smem>>
    %1078 = vector.broadcast %1077 : f32 to vector<1x256xf32>
    %1079 = arith.mulf %1078, %1043 : vector<1x256xf32>
    %1080 = arith.addf %1076, %1079 : vector<1x256xf32>
    %c198 = arith.constant 198 : index
    %1081 = memref.load %arg2[%c198] : memref<384xf32, #tpu.memory_space<smem>>
    %1082 = vector.broadcast %1081 : f32 to vector<1x256xf32>
    %1083 = arith.mulf %1082, %1046 : vector<1x256xf32>
    %1084 = arith.addf %1080, %1083 : vector<1x256xf32>
    %c199 = arith.constant 199 : index
    %1085 = memref.load %arg2[%c199] : memref<384xf32, #tpu.memory_space<smem>>
    %1086 = vector.broadcast %1085 : f32 to vector<1x256xf32>
    %1087 = arith.mulf %1086, %474 : vector<1x256xf32>
    %1088 = arith.addf %1084, %1087 : vector<1x256xf32>
    %c200 = arith.constant 200 : index
    %1089 = memref.load %arg2[%c200] : memref<384xf32, #tpu.memory_space<smem>>
    %1090 = vector.broadcast %1089 : f32 to vector<1x256xf32>
    %1091 = arith.mulf %1090, %1049 : vector<1x256xf32>
    %1092 = arith.addf %1088, %1091 : vector<1x256xf32>
    %c201 = arith.constant 201 : index
    %1093 = memref.load %arg2[%c201] : memref<384xf32, #tpu.memory_space<smem>>
    %1094 = vector.broadcast %1093 : f32 to vector<1x256xf32>
    %1095 = arith.mulf %1094, %1052 : vector<1x256xf32>
    %1096 = arith.addf %1092, %1095 : vector<1x256xf32>
    %c202 = arith.constant 202 : index
    %1097 = memref.load %arg2[%c202] : memref<384xf32, #tpu.memory_space<smem>>
    %1098 = vector.broadcast %1097 : f32 to vector<1x256xf32>
    %1099 = arith.mulf %1098, %531 : vector<1x256xf32>
    %1100 = arith.addf %1096, %1099 : vector<1x256xf32>
    %c203 = arith.constant 203 : index
    %1101 = memref.load %arg2[%c203] : memref<384xf32, #tpu.memory_space<smem>>
    %1102 = vector.broadcast %1101 : f32 to vector<1x256xf32>
    %1103 = arith.mulf %1102, %1055 : vector<1x256xf32>
    %1104 = arith.addf %1100, %1103 : vector<1x256xf32>
    %c16_104 = arith.constant 16 : index
    %1105 = memref.load %arg3[%c16_104] : memref<32xf32, #tpu.memory_space<smem>>
    %1106 = vector.broadcast %1105 : f32 to vector<1x256xf32>
    %1107 = arith.addf %1104, %1106 : vector<1x256xf32>
    %cst_105 = arith.constant 0.000000e+00 : f32
    %1108 = vector.broadcast %cst_105 : f32 to vector<1x256xf32>
    %1109 = arith.cmpf oge, %1107, %1108 : vector<1x256xf32>
    %1110 = vector.broadcast %0 : f32 to vector<1x256xf32>
    %1111 = arith.mulf %1110, %1107 : vector<1x256xf32>
    %1112 = arith.select %1109, %1107, %1111 : vector<1x256xi1>, vector<1x256xf32>
    %cst_106 = arith.constant 0.000000e+00 : f32
    %1113 = vector.broadcast %cst_106 : f32 to vector<1x256xf32>
    %c204 = arith.constant 204 : index
    %1114 = memref.load %arg2[%c204] : memref<384xf32, #tpu.memory_space<smem>>
    %1115 = vector.broadcast %1114 : f32 to vector<1x256xf32>
    %1116 = arith.mulf %1115, %1034 : vector<1x256xf32>
    %1117 = arith.addf %1113, %1116 : vector<1x256xf32>
    %c205 = arith.constant 205 : index
    %1118 = memref.load %arg2[%c205] : memref<384xf32, #tpu.memory_space<smem>>
    %1119 = vector.broadcast %1118 : f32 to vector<1x256xf32>
    %1120 = arith.mulf %1119, %360 : vector<1x256xf32>
    %1121 = arith.addf %1117, %1120 : vector<1x256xf32>
    %c206 = arith.constant 206 : index
    %1122 = memref.load %arg2[%c206] : memref<384xf32, #tpu.memory_space<smem>>
    %1123 = vector.broadcast %1122 : f32 to vector<1x256xf32>
    %1124 = arith.mulf %1123, %1037 : vector<1x256xf32>
    %1125 = arith.addf %1121, %1124 : vector<1x256xf32>
    %c207 = arith.constant 207 : index
    %1126 = memref.load %arg2[%c207] : memref<384xf32, #tpu.memory_space<smem>>
    %1127 = vector.broadcast %1126 : f32 to vector<1x256xf32>
    %1128 = arith.mulf %1127, %1040 : vector<1x256xf32>
    %1129 = arith.addf %1125, %1128 : vector<1x256xf32>
    %c208 = arith.constant 208 : index
    %1130 = memref.load %arg2[%c208] : memref<384xf32, #tpu.memory_space<smem>>
    %1131 = vector.broadcast %1130 : f32 to vector<1x256xf32>
    %1132 = arith.mulf %1131, %417 : vector<1x256xf32>
    %1133 = arith.addf %1129, %1132 : vector<1x256xf32>
    %c209 = arith.constant 209 : index
    %1134 = memref.load %arg2[%c209] : memref<384xf32, #tpu.memory_space<smem>>
    %1135 = vector.broadcast %1134 : f32 to vector<1x256xf32>
    %1136 = arith.mulf %1135, %1043 : vector<1x256xf32>
    %1137 = arith.addf %1133, %1136 : vector<1x256xf32>
    %c210 = arith.constant 210 : index
    %1138 = memref.load %arg2[%c210] : memref<384xf32, #tpu.memory_space<smem>>
    %1139 = vector.broadcast %1138 : f32 to vector<1x256xf32>
    %1140 = arith.mulf %1139, %1046 : vector<1x256xf32>
    %1141 = arith.addf %1137, %1140 : vector<1x256xf32>
    %c211 = arith.constant 211 : index
    %1142 = memref.load %arg2[%c211] : memref<384xf32, #tpu.memory_space<smem>>
    %1143 = vector.broadcast %1142 : f32 to vector<1x256xf32>
    %1144 = arith.mulf %1143, %474 : vector<1x256xf32>
    %1145 = arith.addf %1141, %1144 : vector<1x256xf32>
    %c212 = arith.constant 212 : index
    %1146 = memref.load %arg2[%c212] : memref<384xf32, #tpu.memory_space<smem>>
    %1147 = vector.broadcast %1146 : f32 to vector<1x256xf32>
    %1148 = arith.mulf %1147, %1049 : vector<1x256xf32>
    %1149 = arith.addf %1145, %1148 : vector<1x256xf32>
    %c213 = arith.constant 213 : index
    %1150 = memref.load %arg2[%c213] : memref<384xf32, #tpu.memory_space<smem>>
    %1151 = vector.broadcast %1150 : f32 to vector<1x256xf32>
    %1152 = arith.mulf %1151, %1052 : vector<1x256xf32>
    %1153 = arith.addf %1149, %1152 : vector<1x256xf32>
    %c214 = arith.constant 214 : index
    %1154 = memref.load %arg2[%c214] : memref<384xf32, #tpu.memory_space<smem>>
    %1155 = vector.broadcast %1154 : f32 to vector<1x256xf32>
    %1156 = arith.mulf %1155, %531 : vector<1x256xf32>
    %1157 = arith.addf %1153, %1156 : vector<1x256xf32>
    %c215 = arith.constant 215 : index
    %1158 = memref.load %arg2[%c215] : memref<384xf32, #tpu.memory_space<smem>>
    %1159 = vector.broadcast %1158 : f32 to vector<1x256xf32>
    %1160 = arith.mulf %1159, %1055 : vector<1x256xf32>
    %1161 = arith.addf %1157, %1160 : vector<1x256xf32>
    %c17_107 = arith.constant 17 : index
    %1162 = memref.load %arg3[%c17_107] : memref<32xf32, #tpu.memory_space<smem>>
    %1163 = vector.broadcast %1162 : f32 to vector<1x256xf32>
    %1164 = arith.addf %1161, %1163 : vector<1x256xf32>
    %cst_108 = arith.constant 0.000000e+00 : f32
    %1165 = vector.broadcast %cst_108 : f32 to vector<1x256xf32>
    %1166 = arith.cmpf oge, %1164, %1165 : vector<1x256xf32>
    %1167 = vector.broadcast %0 : f32 to vector<1x256xf32>
    %1168 = arith.mulf %1167, %1164 : vector<1x256xf32>
    %1169 = arith.select %1166, %1164, %1168 : vector<1x256xi1>, vector<1x256xf32>
    %cst_109 = arith.constant 0.000000e+00 : f32
    %1170 = vector.broadcast %cst_109 : f32 to vector<1x256xf32>
    %c216 = arith.constant 216 : index
    %1171 = memref.load %arg2[%c216] : memref<384xf32, #tpu.memory_space<smem>>
    %1172 = vector.broadcast %1171 : f32 to vector<1x256xf32>
    %1173 = arith.mulf %1172, %1034 : vector<1x256xf32>
    %1174 = arith.addf %1170, %1173 : vector<1x256xf32>
    %c217 = arith.constant 217 : index
    %1175 = memref.load %arg2[%c217] : memref<384xf32, #tpu.memory_space<smem>>
    %1176 = vector.broadcast %1175 : f32 to vector<1x256xf32>
    %1177 = arith.mulf %1176, %360 : vector<1x256xf32>
    %1178 = arith.addf %1174, %1177 : vector<1x256xf32>
    %c218 = arith.constant 218 : index
    %1179 = memref.load %arg2[%c218] : memref<384xf32, #tpu.memory_space<smem>>
    %1180 = vector.broadcast %1179 : f32 to vector<1x256xf32>
    %1181 = arith.mulf %1180, %1037 : vector<1x256xf32>
    %1182 = arith.addf %1178, %1181 : vector<1x256xf32>
    %c219 = arith.constant 219 : index
    %1183 = memref.load %arg2[%c219] : memref<384xf32, #tpu.memory_space<smem>>
    %1184 = vector.broadcast %1183 : f32 to vector<1x256xf32>
    %1185 = arith.mulf %1184, %1040 : vector<1x256xf32>
    %1186 = arith.addf %1182, %1185 : vector<1x256xf32>
    %c220 = arith.constant 220 : index
    %1187 = memref.load %arg2[%c220] : memref<384xf32, #tpu.memory_space<smem>>
    %1188 = vector.broadcast %1187 : f32 to vector<1x256xf32>
    %1189 = arith.mulf %1188, %417 : vector<1x256xf32>
    %1190 = arith.addf %1186, %1189 : vector<1x256xf32>
    %c221 = arith.constant 221 : index
    %1191 = memref.load %arg2[%c221] : memref<384xf32, #tpu.memory_space<smem>>
    %1192 = vector.broadcast %1191 : f32 to vector<1x256xf32>
    %1193 = arith.mulf %1192, %1043 : vector<1x256xf32>
    %1194 = arith.addf %1190, %1193 : vector<1x256xf32>
    %c222 = arith.constant 222 : index
    %1195 = memref.load %arg2[%c222] : memref<384xf32, #tpu.memory_space<smem>>
    %1196 = vector.broadcast %1195 : f32 to vector<1x256xf32>
    %1197 = arith.mulf %1196, %1046 : vector<1x256xf32>
    %1198 = arith.addf %1194, %1197 : vector<1x256xf32>
    %c223 = arith.constant 223 : index
    %1199 = memref.load %arg2[%c223] : memref<384xf32, #tpu.memory_space<smem>>
    %1200 = vector.broadcast %1199 : f32 to vector<1x256xf32>
    %1201 = arith.mulf %1200, %474 : vector<1x256xf32>
    %1202 = arith.addf %1198, %1201 : vector<1x256xf32>
    %c224 = arith.constant 224 : index
    %1203 = memref.load %arg2[%c224] : memref<384xf32, #tpu.memory_space<smem>>
    %1204 = vector.broadcast %1203 : f32 to vector<1x256xf32>
    %1205 = arith.mulf %1204, %1049 : vector<1x256xf32>
    %1206 = arith.addf %1202, %1205 : vector<1x256xf32>
    %c225 = arith.constant 225 : index
    %1207 = memref.load %arg2[%c225] : memref<384xf32, #tpu.memory_space<smem>>
    %1208 = vector.broadcast %1207 : f32 to vector<1x256xf32>
    %1209 = arith.mulf %1208, %1052 : vector<1x256xf32>
    %1210 = arith.addf %1206, %1209 : vector<1x256xf32>
    %c226 = arith.constant 226 : index
    %1211 = memref.load %arg2[%c226] : memref<384xf32, #tpu.memory_space<smem>>
    %1212 = vector.broadcast %1211 : f32 to vector<1x256xf32>
    %1213 = arith.mulf %1212, %531 : vector<1x256xf32>
    %1214 = arith.addf %1210, %1213 : vector<1x256xf32>
    %c227 = arith.constant 227 : index
    %1215 = memref.load %arg2[%c227] : memref<384xf32, #tpu.memory_space<smem>>
    %1216 = vector.broadcast %1215 : f32 to vector<1x256xf32>
    %1217 = arith.mulf %1216, %1055 : vector<1x256xf32>
    %1218 = arith.addf %1214, %1217 : vector<1x256xf32>
    %c18_110 = arith.constant 18 : index
    %1219 = memref.load %arg3[%c18_110] : memref<32xf32, #tpu.memory_space<smem>>
    %1220 = vector.broadcast %1219 : f32 to vector<1x256xf32>
    %1221 = arith.addf %1218, %1220 : vector<1x256xf32>
    %cst_111 = arith.constant 0.000000e+00 : f32
    %1222 = vector.broadcast %cst_111 : f32 to vector<1x256xf32>
    %1223 = arith.cmpf oge, %1221, %1222 : vector<1x256xf32>
    %1224 = vector.broadcast %0 : f32 to vector<1x256xf32>
    %1225 = arith.mulf %1224, %1221 : vector<1x256xf32>
    %1226 = arith.select %1223, %1221, %1225 : vector<1x256xi1>, vector<1x256xf32>
    %cst_112 = arith.constant 0.000000e+00 : f32
    %1227 = vector.broadcast %cst_112 : f32 to vector<1x256xf32>
    %c228 = arith.constant 228 : index
    %1228 = memref.load %arg2[%c228] : memref<384xf32, #tpu.memory_space<smem>>
    %1229 = vector.broadcast %1228 : f32 to vector<1x256xf32>
    %1230 = arith.mulf %1229, %1034 : vector<1x256xf32>
    %1231 = arith.addf %1227, %1230 : vector<1x256xf32>
    %c229 = arith.constant 229 : index
    %1232 = memref.load %arg2[%c229] : memref<384xf32, #tpu.memory_space<smem>>
    %1233 = vector.broadcast %1232 : f32 to vector<1x256xf32>
    %1234 = arith.mulf %1233, %360 : vector<1x256xf32>
    %1235 = arith.addf %1231, %1234 : vector<1x256xf32>
    %c230 = arith.constant 230 : index
    %1236 = memref.load %arg2[%c230] : memref<384xf32, #tpu.memory_space<smem>>
    %1237 = vector.broadcast %1236 : f32 to vector<1x256xf32>
    %1238 = arith.mulf %1237, %1037 : vector<1x256xf32>
    %1239 = arith.addf %1235, %1238 : vector<1x256xf32>
    %c231 = arith.constant 231 : index
    %1240 = memref.load %arg2[%c231] : memref<384xf32, #tpu.memory_space<smem>>
    %1241 = vector.broadcast %1240 : f32 to vector<1x256xf32>
    %1242 = arith.mulf %1241, %1040 : vector<1x256xf32>
    %1243 = arith.addf %1239, %1242 : vector<1x256xf32>
    %c232 = arith.constant 232 : index
    %1244 = memref.load %arg2[%c232] : memref<384xf32, #tpu.memory_space<smem>>
    %1245 = vector.broadcast %1244 : f32 to vector<1x256xf32>
    %1246 = arith.mulf %1245, %417 : vector<1x256xf32>
    %1247 = arith.addf %1243, %1246 : vector<1x256xf32>
    %c233 = arith.constant 233 : index
    %1248 = memref.load %arg2[%c233] : memref<384xf32, #tpu.memory_space<smem>>
    %1249 = vector.broadcast %1248 : f32 to vector<1x256xf32>
    %1250 = arith.mulf %1249, %1043 : vector<1x256xf32>
    %1251 = arith.addf %1247, %1250 : vector<1x256xf32>
    %c234 = arith.constant 234 : index
    %1252 = memref.load %arg2[%c234] : memref<384xf32, #tpu.memory_space<smem>>
    %1253 = vector.broadcast %1252 : f32 to vector<1x256xf32>
    %1254 = arith.mulf %1253, %1046 : vector<1x256xf32>
    %1255 = arith.addf %1251, %1254 : vector<1x256xf32>
    %c235 = arith.constant 235 : index
    %1256 = memref.load %arg2[%c235] : memref<384xf32, #tpu.memory_space<smem>>
    %1257 = vector.broadcast %1256 : f32 to vector<1x256xf32>
    %1258 = arith.mulf %1257, %474 : vector<1x256xf32>
    %1259 = arith.addf %1255, %1258 : vector<1x256xf32>
    %c236 = arith.constant 236 : index
    %1260 = memref.load %arg2[%c236] : memref<384xf32, #tpu.memory_space<smem>>
    %1261 = vector.broadcast %1260 : f32 to vector<1x256xf32>
    %1262 = arith.mulf %1261, %1049 : vector<1x256xf32>
    %1263 = arith.addf %1259, %1262 : vector<1x256xf32>
    %c237 = arith.constant 237 : index
    %1264 = memref.load %arg2[%c237] : memref<384xf32, #tpu.memory_space<smem>>
    %1265 = vector.broadcast %1264 : f32 to vector<1x256xf32>
    %1266 = arith.mulf %1265, %1052 : vector<1x256xf32>
    %1267 = arith.addf %1263, %1266 : vector<1x256xf32>
    %c238 = arith.constant 238 : index
    %1268 = memref.load %arg2[%c238] : memref<384xf32, #tpu.memory_space<smem>>
    %1269 = vector.broadcast %1268 : f32 to vector<1x256xf32>
    %1270 = arith.mulf %1269, %531 : vector<1x256xf32>
    %1271 = arith.addf %1267, %1270 : vector<1x256xf32>
    %c239 = arith.constant 239 : index
    %1272 = memref.load %arg2[%c239] : memref<384xf32, #tpu.memory_space<smem>>
    %1273 = vector.broadcast %1272 : f32 to vector<1x256xf32>
    %1274 = arith.mulf %1273, %1055 : vector<1x256xf32>
    %1275 = arith.addf %1271, %1274 : vector<1x256xf32>
    %c19_113 = arith.constant 19 : index
    %1276 = memref.load %arg3[%c19_113] : memref<32xf32, #tpu.memory_space<smem>>
    %1277 = vector.broadcast %1276 : f32 to vector<1x256xf32>
    %1278 = arith.addf %1275, %1277 : vector<1x256xf32>
    %cst_114 = arith.constant 0.000000e+00 : f32
    %1279 = vector.broadcast %cst_114 : f32 to vector<1x256xf32>
    %1280 = arith.cmpf oge, %1278, %1279 : vector<1x256xf32>
    %1281 = vector.broadcast %0 : f32 to vector<1x256xf32>
    %1282 = arith.mulf %1281, %1278 : vector<1x256xf32>
    %1283 = arith.select %1280, %1278, %1282 : vector<1x256xi1>, vector<1x256xf32>
    %cst_115 = arith.constant 0.000000e+00 : f32
    %1284 = vector.broadcast %cst_115 : f32 to vector<1x1xf32>
    %1285 = vector.extract_strided_slice %1112 {offsets = [0, 0], sizes = [1, 255], strides = [1, 1]} : vector<1x256xf32> to vector<1x255xf32>
    %1286 = tpu.concatenate %1284, %1285 in 1 : vector<1x1xf32>, vector<1x255xf32> -> vector<1x256xf32>
    %cst_116 = arith.constant 0.000000e+00 : f32
    %1287 = vector.broadcast %cst_116 : f32 to vector<1x256xf32>
    %1288 = arith.select %19, %1286, %1287 : vector<1x256xi1>, vector<1x256xf32>
    %cst_117 = arith.constant 0.000000e+00 : f32
    %1289 = vector.broadcast %cst_117 : f32 to vector<1x1xf32>
    %1290 = vector.extract_strided_slice %1112 {offsets = [0, 1], sizes = [1, 255], strides = [1, 1]} : vector<1x256xf32> to vector<1x255xf32>
    %1291 = tpu.concatenate %1290, %1289 in 1 : vector<1x255xf32>, vector<1x1xf32> -> vector<1x256xf32>
    %cst_118 = arith.constant 0.000000e+00 : f32
    %1292 = vector.broadcast %cst_118 : f32 to vector<1x256xf32>
    %1293 = arith.select %21, %1291, %1292 : vector<1x256xi1>, vector<1x256xf32>
    %cst_119 = arith.constant 0.000000e+00 : f32
    %1294 = vector.broadcast %cst_119 : f32 to vector<1x1xf32>
    %1295 = vector.extract_strided_slice %1169 {offsets = [0, 0], sizes = [1, 255], strides = [1, 1]} : vector<1x256xf32> to vector<1x255xf32>
    %1296 = tpu.concatenate %1294, %1295 in 1 : vector<1x1xf32>, vector<1x255xf32> -> vector<1x256xf32>
    %cst_120 = arith.constant 0.000000e+00 : f32
    %1297 = vector.broadcast %cst_120 : f32 to vector<1x256xf32>
    %1298 = arith.select %19, %1296, %1297 : vector<1x256xi1>, vector<1x256xf32>
    %cst_121 = arith.constant 0.000000e+00 : f32
    %1299 = vector.broadcast %cst_121 : f32 to vector<1x1xf32>
    %1300 = vector.extract_strided_slice %1169 {offsets = [0, 1], sizes = [1, 255], strides = [1, 1]} : vector<1x256xf32> to vector<1x255xf32>
    %1301 = tpu.concatenate %1300, %1299 in 1 : vector<1x255xf32>, vector<1x1xf32> -> vector<1x256xf32>
    %cst_122 = arith.constant 0.000000e+00 : f32
    %1302 = vector.broadcast %cst_122 : f32 to vector<1x256xf32>
    %1303 = arith.select %21, %1301, %1302 : vector<1x256xi1>, vector<1x256xf32>
    %cst_123 = arith.constant 0.000000e+00 : f32
    %1304 = vector.broadcast %cst_123 : f32 to vector<1x1xf32>
    %1305 = vector.extract_strided_slice %1226 {offsets = [0, 0], sizes = [1, 255], strides = [1, 1]} : vector<1x256xf32> to vector<1x255xf32>
    %1306 = tpu.concatenate %1304, %1305 in 1 : vector<1x1xf32>, vector<1x255xf32> -> vector<1x256xf32>
    %cst_124 = arith.constant 0.000000e+00 : f32
    %1307 = vector.broadcast %cst_124 : f32 to vector<1x256xf32>
    %1308 = arith.select %19, %1306, %1307 : vector<1x256xi1>, vector<1x256xf32>
    %cst_125 = arith.constant 0.000000e+00 : f32
    %1309 = vector.broadcast %cst_125 : f32 to vector<1x1xf32>
    %1310 = vector.extract_strided_slice %1226 {offsets = [0, 1], sizes = [1, 255], strides = [1, 1]} : vector<1x256xf32> to vector<1x255xf32>
    %1311 = tpu.concatenate %1310, %1309 in 1 : vector<1x255xf32>, vector<1x1xf32> -> vector<1x256xf32>
    %cst_126 = arith.constant 0.000000e+00 : f32
    %1312 = vector.broadcast %cst_126 : f32 to vector<1x256xf32>
    %1313 = arith.select %21, %1311, %1312 : vector<1x256xi1>, vector<1x256xf32>
    %cst_127 = arith.constant 0.000000e+00 : f32
    %1314 = vector.broadcast %cst_127 : f32 to vector<1x1xf32>
    %1315 = vector.extract_strided_slice %1283 {offsets = [0, 0], sizes = [1, 255], strides = [1, 1]} : vector<1x256xf32> to vector<1x255xf32>
    %1316 = tpu.concatenate %1314, %1315 in 1 : vector<1x1xf32>, vector<1x255xf32> -> vector<1x256xf32>
    %cst_128 = arith.constant 0.000000e+00 : f32
    %1317 = vector.broadcast %cst_128 : f32 to vector<1x256xf32>
    %1318 = arith.select %19, %1316, %1317 : vector<1x256xi1>, vector<1x256xf32>
    %cst_129 = arith.constant 0.000000e+00 : f32
    %1319 = vector.broadcast %cst_129 : f32 to vector<1x1xf32>
    %1320 = vector.extract_strided_slice %1283 {offsets = [0, 1], sizes = [1, 255], strides = [1, 1]} : vector<1x256xf32> to vector<1x255xf32>
    %1321 = tpu.concatenate %1320, %1319 in 1 : vector<1x255xf32>, vector<1x1xf32> -> vector<1x256xf32>
    %cst_130 = arith.constant 0.000000e+00 : f32
    %1322 = vector.broadcast %cst_130 : f32 to vector<1x256xf32>
    %1323 = arith.select %21, %1321, %1322 : vector<1x256xi1>, vector<1x256xf32>
    %cst_131 = arith.constant 0.000000e+00 : f32
    %1324 = vector.broadcast %cst_131 : f32 to vector<1x256xf32>
    %c240 = arith.constant 240 : index
    %1325 = memref.load %arg2[%c240] : memref<384xf32, #tpu.memory_space<smem>>
    %1326 = vector.broadcast %1325 : f32 to vector<1x256xf32>
    %1327 = arith.mulf %1326, %1288 : vector<1x256xf32>
    %1328 = arith.addf %1324, %1327 : vector<1x256xf32>
    %c241 = arith.constant 241 : index
    %1329 = memref.load %arg2[%c241] : memref<384xf32, #tpu.memory_space<smem>>
    %1330 = vector.broadcast %1329 : f32 to vector<1x256xf32>
    %1331 = arith.mulf %1330, %1112 : vector<1x256xf32>
    %1332 = arith.addf %1328, %1331 : vector<1x256xf32>
    %c242 = arith.constant 242 : index
    %1333 = memref.load %arg2[%c242] : memref<384xf32, #tpu.memory_space<smem>>
    %1334 = vector.broadcast %1333 : f32 to vector<1x256xf32>
    %1335 = arith.mulf %1334, %1293 : vector<1x256xf32>
    %1336 = arith.addf %1332, %1335 : vector<1x256xf32>
    %c243 = arith.constant 243 : index
    %1337 = memref.load %arg2[%c243] : memref<384xf32, #tpu.memory_space<smem>>
    %1338 = vector.broadcast %1337 : f32 to vector<1x256xf32>
    %1339 = arith.mulf %1338, %1298 : vector<1x256xf32>
    %1340 = arith.addf %1336, %1339 : vector<1x256xf32>
    %c244 = arith.constant 244 : index
    %1341 = memref.load %arg2[%c244] : memref<384xf32, #tpu.memory_space<smem>>
    %1342 = vector.broadcast %1341 : f32 to vector<1x256xf32>
    %1343 = arith.mulf %1342, %1169 : vector<1x256xf32>
    %1344 = arith.addf %1340, %1343 : vector<1x256xf32>
    %c245 = arith.constant 245 : index
    %1345 = memref.load %arg2[%c245] : memref<384xf32, #tpu.memory_space<smem>>
    %1346 = vector.broadcast %1345 : f32 to vector<1x256xf32>
    %1347 = arith.mulf %1346, %1303 : vector<1x256xf32>
    %1348 = arith.addf %1344, %1347 : vector<1x256xf32>
    %c246 = arith.constant 246 : index
    %1349 = memref.load %arg2[%c246] : memref<384xf32, #tpu.memory_space<smem>>
    %1350 = vector.broadcast %1349 : f32 to vector<1x256xf32>
    %1351 = arith.mulf %1350, %1308 : vector<1x256xf32>
    %1352 = arith.addf %1348, %1351 : vector<1x256xf32>
    %c247 = arith.constant 247 : index
    %1353 = memref.load %arg2[%c247] : memref<384xf32, #tpu.memory_space<smem>>
    %1354 = vector.broadcast %1353 : f32 to vector<1x256xf32>
    %1355 = arith.mulf %1354, %1226 : vector<1x256xf32>
    %1356 = arith.addf %1352, %1355 : vector<1x256xf32>
    %c248 = arith.constant 248 : index
    %1357 = memref.load %arg2[%c248] : memref<384xf32, #tpu.memory_space<smem>>
    %1358 = vector.broadcast %1357 : f32 to vector<1x256xf32>
    %1359 = arith.mulf %1358, %1313 : vector<1x256xf32>
    %1360 = arith.addf %1356, %1359 : vector<1x256xf32>
    %c249 = arith.constant 249 : index
    %1361 = memref.load %arg2[%c249] : memref<384xf32, #tpu.memory_space<smem>>
    %1362 = vector.broadcast %1361 : f32 to vector<1x256xf32>
    %1363 = arith.mulf %1362, %1318 : vector<1x256xf32>
    %1364 = arith.addf %1360, %1363 : vector<1x256xf32>
    %c250 = arith.constant 250 : index
    %1365 = memref.load %arg2[%c250] : memref<384xf32, #tpu.memory_space<smem>>
    %1366 = vector.broadcast %1365 : f32 to vector<1x256xf32>
    %1367 = arith.mulf %1366, %1283 : vector<1x256xf32>
    %1368 = arith.addf %1364, %1367 : vector<1x256xf32>
    %c251 = arith.constant 251 : index
    %1369 = memref.load %arg2[%c251] : memref<384xf32, #tpu.memory_space<smem>>
    %1370 = vector.broadcast %1369 : f32 to vector<1x256xf32>
    %1371 = arith.mulf %1370, %1323 : vector<1x256xf32>
    %1372 = arith.addf %1368, %1371 : vector<1x256xf32>
    %c20_132 = arith.constant 20 : index
    %1373 = memref.load %arg3[%c20_132] : memref<32xf32, #tpu.memory_space<smem>>
    %1374 = vector.broadcast %1373 : f32 to vector<1x256xf32>
    %1375 = arith.addf %1372, %1374 : vector<1x256xf32>
    %cst_133 = arith.constant 0.000000e+00 : f32
    %1376 = vector.broadcast %cst_133 : f32 to vector<1x256xf32>
    %1377 = arith.cmpf oge, %1375, %1376 : vector<1x256xf32>
    %1378 = vector.broadcast %0 : f32 to vector<1x256xf32>
    %1379 = arith.mulf %1378, %1375 : vector<1x256xf32>
    %1380 = arith.select %1377, %1375, %1379 : vector<1x256xi1>, vector<1x256xf32>
    %cst_134 = arith.constant 0.000000e+00 : f32
    %1381 = vector.broadcast %cst_134 : f32 to vector<1x256xf32>
    %c252 = arith.constant 252 : index
    %1382 = memref.load %arg2[%c252] : memref<384xf32, #tpu.memory_space<smem>>
    %1383 = vector.broadcast %1382 : f32 to vector<1x256xf32>
    %1384 = arith.mulf %1383, %1288 : vector<1x256xf32>
    %1385 = arith.addf %1381, %1384 : vector<1x256xf32>
    %c253 = arith.constant 253 : index
    %1386 = memref.load %arg2[%c253] : memref<384xf32, #tpu.memory_space<smem>>
    %1387 = vector.broadcast %1386 : f32 to vector<1x256xf32>
    %1388 = arith.mulf %1387, %1112 : vector<1x256xf32>
    %1389 = arith.addf %1385, %1388 : vector<1x256xf32>
    %c254 = arith.constant 254 : index
    %1390 = memref.load %arg2[%c254] : memref<384xf32, #tpu.memory_space<smem>>
    %1391 = vector.broadcast %1390 : f32 to vector<1x256xf32>
    %1392 = arith.mulf %1391, %1293 : vector<1x256xf32>
    %1393 = arith.addf %1389, %1392 : vector<1x256xf32>
    %c255 = arith.constant 255 : index
    %1394 = memref.load %arg2[%c255] : memref<384xf32, #tpu.memory_space<smem>>
    %1395 = vector.broadcast %1394 : f32 to vector<1x256xf32>
    %1396 = arith.mulf %1395, %1298 : vector<1x256xf32>
    %1397 = arith.addf %1393, %1396 : vector<1x256xf32>
    %c256 = arith.constant 256 : index
    %1398 = memref.load %arg2[%c256] : memref<384xf32, #tpu.memory_space<smem>>
    %1399 = vector.broadcast %1398 : f32 to vector<1x256xf32>
    %1400 = arith.mulf %1399, %1169 : vector<1x256xf32>
    %1401 = arith.addf %1397, %1400 : vector<1x256xf32>
    %c257 = arith.constant 257 : index
    %1402 = memref.load %arg2[%c257] : memref<384xf32, #tpu.memory_space<smem>>
    %1403 = vector.broadcast %1402 : f32 to vector<1x256xf32>
    %1404 = arith.mulf %1403, %1303 : vector<1x256xf32>
    %1405 = arith.addf %1401, %1404 : vector<1x256xf32>
    %c258 = arith.constant 258 : index
    %1406 = memref.load %arg2[%c258] : memref<384xf32, #tpu.memory_space<smem>>
    %1407 = vector.broadcast %1406 : f32 to vector<1x256xf32>
    %1408 = arith.mulf %1407, %1308 : vector<1x256xf32>
    %1409 = arith.addf %1405, %1408 : vector<1x256xf32>
    %c259 = arith.constant 259 : index
    %1410 = memref.load %arg2[%c259] : memref<384xf32, #tpu.memory_space<smem>>
    %1411 = vector.broadcast %1410 : f32 to vector<1x256xf32>
    %1412 = arith.mulf %1411, %1226 : vector<1x256xf32>
    %1413 = arith.addf %1409, %1412 : vector<1x256xf32>
    %c260 = arith.constant 260 : index
    %1414 = memref.load %arg2[%c260] : memref<384xf32, #tpu.memory_space<smem>>
    %1415 = vector.broadcast %1414 : f32 to vector<1x256xf32>
    %1416 = arith.mulf %1415, %1313 : vector<1x256xf32>
    %1417 = arith.addf %1413, %1416 : vector<1x256xf32>
    %c261 = arith.constant 261 : index
    %1418 = memref.load %arg2[%c261] : memref<384xf32, #tpu.memory_space<smem>>
    %1419 = vector.broadcast %1418 : f32 to vector<1x256xf32>
    %1420 = arith.mulf %1419, %1318 : vector<1x256xf32>
    %1421 = arith.addf %1417, %1420 : vector<1x256xf32>
    %c262 = arith.constant 262 : index
    %1422 = memref.load %arg2[%c262] : memref<384xf32, #tpu.memory_space<smem>>
    %1423 = vector.broadcast %1422 : f32 to vector<1x256xf32>
    %1424 = arith.mulf %1423, %1283 : vector<1x256xf32>
    %1425 = arith.addf %1421, %1424 : vector<1x256xf32>
    %c263 = arith.constant 263 : index
    %1426 = memref.load %arg2[%c263] : memref<384xf32, #tpu.memory_space<smem>>
    %1427 = vector.broadcast %1426 : f32 to vector<1x256xf32>
    %1428 = arith.mulf %1427, %1323 : vector<1x256xf32>
    %1429 = arith.addf %1425, %1428 : vector<1x256xf32>
    %c21_135 = arith.constant 21 : index
    %1430 = memref.load %arg3[%c21_135] : memref<32xf32, #tpu.memory_space<smem>>
    %1431 = vector.broadcast %1430 : f32 to vector<1x256xf32>
    %1432 = arith.addf %1429, %1431 : vector<1x256xf32>
    %cst_136 = arith.constant 0.000000e+00 : f32
    %1433 = vector.broadcast %cst_136 : f32 to vector<1x256xf32>
    %1434 = arith.cmpf oge, %1432, %1433 : vector<1x256xf32>
    %1435 = vector.broadcast %0 : f32 to vector<1x256xf32>
    %1436 = arith.mulf %1435, %1432 : vector<1x256xf32>
    %1437 = arith.select %1434, %1432, %1436 : vector<1x256xi1>, vector<1x256xf32>
    %cst_137 = arith.constant 0.000000e+00 : f32
    %1438 = vector.broadcast %cst_137 : f32 to vector<1x256xf32>
    %c264 = arith.constant 264 : index
    %1439 = memref.load %arg2[%c264] : memref<384xf32, #tpu.memory_space<smem>>
    %1440 = vector.broadcast %1439 : f32 to vector<1x256xf32>
    %1441 = arith.mulf %1440, %1288 : vector<1x256xf32>
    %1442 = arith.addf %1438, %1441 : vector<1x256xf32>
    %c265 = arith.constant 265 : index
    %1443 = memref.load %arg2[%c265] : memref<384xf32, #tpu.memory_space<smem>>
    %1444 = vector.broadcast %1443 : f32 to vector<1x256xf32>
    %1445 = arith.mulf %1444, %1112 : vector<1x256xf32>
    %1446 = arith.addf %1442, %1445 : vector<1x256xf32>
    %c266 = arith.constant 266 : index
    %1447 = memref.load %arg2[%c266] : memref<384xf32, #tpu.memory_space<smem>>
    %1448 = vector.broadcast %1447 : f32 to vector<1x256xf32>
    %1449 = arith.mulf %1448, %1293 : vector<1x256xf32>
    %1450 = arith.addf %1446, %1449 : vector<1x256xf32>
    %c267 = arith.constant 267 : index
    %1451 = memref.load %arg2[%c267] : memref<384xf32, #tpu.memory_space<smem>>
    %1452 = vector.broadcast %1451 : f32 to vector<1x256xf32>
    %1453 = arith.mulf %1452, %1298 : vector<1x256xf32>
    %1454 = arith.addf %1450, %1453 : vector<1x256xf32>
    %c268 = arith.constant 268 : index
    %1455 = memref.load %arg2[%c268] : memref<384xf32, #tpu.memory_space<smem>>
    %1456 = vector.broadcast %1455 : f32 to vector<1x256xf32>
    %1457 = arith.mulf %1456, %1169 : vector<1x256xf32>
    %1458 = arith.addf %1454, %1457 : vector<1x256xf32>
    %c269 = arith.constant 269 : index
    %1459 = memref.load %arg2[%c269] : memref<384xf32, #tpu.memory_space<smem>>
    %1460 = vector.broadcast %1459 : f32 to vector<1x256xf32>
    %1461 = arith.mulf %1460, %1303 : vector<1x256xf32>
    %1462 = arith.addf %1458, %1461 : vector<1x256xf32>
    %c270 = arith.constant 270 : index
    %1463 = memref.load %arg2[%c270] : memref<384xf32, #tpu.memory_space<smem>>
    %1464 = vector.broadcast %1463 : f32 to vector<1x256xf32>
    %1465 = arith.mulf %1464, %1308 : vector<1x256xf32>
    %1466 = arith.addf %1462, %1465 : vector<1x256xf32>
    %c271 = arith.constant 271 : index
    %1467 = memref.load %arg2[%c271] : memref<384xf32, #tpu.memory_space<smem>>
    %1468 = vector.broadcast %1467 : f32 to vector<1x256xf32>
    %1469 = arith.mulf %1468, %1226 : vector<1x256xf32>
    %1470 = arith.addf %1466, %1469 : vector<1x256xf32>
    %c272 = arith.constant 272 : index
    %1471 = memref.load %arg2[%c272] : memref<384xf32, #tpu.memory_space<smem>>
    %1472 = vector.broadcast %1471 : f32 to vector<1x256xf32>
    %1473 = arith.mulf %1472, %1313 : vector<1x256xf32>
    %1474 = arith.addf %1470, %1473 : vector<1x256xf32>
    %c273 = arith.constant 273 : index
    %1475 = memref.load %arg2[%c273] : memref<384xf32, #tpu.memory_space<smem>>
    %1476 = vector.broadcast %1475 : f32 to vector<1x256xf32>
    %1477 = arith.mulf %1476, %1318 : vector<1x256xf32>
    %1478 = arith.addf %1474, %1477 : vector<1x256xf32>
    %c274 = arith.constant 274 : index
    %1479 = memref.load %arg2[%c274] : memref<384xf32, #tpu.memory_space<smem>>
    %1480 = vector.broadcast %1479 : f32 to vector<1x256xf32>
    %1481 = arith.mulf %1480, %1283 : vector<1x256xf32>
    %1482 = arith.addf %1478, %1481 : vector<1x256xf32>
    %c275 = arith.constant 275 : index
    %1483 = memref.load %arg2[%c275] : memref<384xf32, #tpu.memory_space<smem>>
    %1484 = vector.broadcast %1483 : f32 to vector<1x256xf32>
    %1485 = arith.mulf %1484, %1323 : vector<1x256xf32>
    %1486 = arith.addf %1482, %1485 : vector<1x256xf32>
    %c22_138 = arith.constant 22 : index
    %1487 = memref.load %arg3[%c22_138] : memref<32xf32, #tpu.memory_space<smem>>
    %1488 = vector.broadcast %1487 : f32 to vector<1x256xf32>
    %1489 = arith.addf %1486, %1488 : vector<1x256xf32>
    %cst_139 = arith.constant 0.000000e+00 : f32
    %1490 = vector.broadcast %cst_139 : f32 to vector<1x256xf32>
    %1491 = arith.cmpf oge, %1489, %1490 : vector<1x256xf32>
    %1492 = vector.broadcast %0 : f32 to vector<1x256xf32>
    %1493 = arith.mulf %1492, %1489 : vector<1x256xf32>
    %1494 = arith.select %1491, %1489, %1493 : vector<1x256xi1>, vector<1x256xf32>
    %cst_140 = arith.constant 0.000000e+00 : f32
    %1495 = vector.broadcast %cst_140 : f32 to vector<1x256xf32>
    %c276 = arith.constant 276 : index
    %1496 = memref.load %arg2[%c276] : memref<384xf32, #tpu.memory_space<smem>>
    %1497 = vector.broadcast %1496 : f32 to vector<1x256xf32>
    %1498 = arith.mulf %1497, %1288 : vector<1x256xf32>
    %1499 = arith.addf %1495, %1498 : vector<1x256xf32>
    %c277 = arith.constant 277 : index
    %1500 = memref.load %arg2[%c277] : memref<384xf32, #tpu.memory_space<smem>>
    %1501 = vector.broadcast %1500 : f32 to vector<1x256xf32>
    %1502 = arith.mulf %1501, %1112 : vector<1x256xf32>
    %1503 = arith.addf %1499, %1502 : vector<1x256xf32>
    %c278 = arith.constant 278 : index
    %1504 = memref.load %arg2[%c278] : memref<384xf32, #tpu.memory_space<smem>>
    %1505 = vector.broadcast %1504 : f32 to vector<1x256xf32>
    %1506 = arith.mulf %1505, %1293 : vector<1x256xf32>
    %1507 = arith.addf %1503, %1506 : vector<1x256xf32>
    %c279 = arith.constant 279 : index
    %1508 = memref.load %arg2[%c279] : memref<384xf32, #tpu.memory_space<smem>>
    %1509 = vector.broadcast %1508 : f32 to vector<1x256xf32>
    %1510 = arith.mulf %1509, %1298 : vector<1x256xf32>
    %1511 = arith.addf %1507, %1510 : vector<1x256xf32>
    %c280 = arith.constant 280 : index
    %1512 = memref.load %arg2[%c280] : memref<384xf32, #tpu.memory_space<smem>>
    %1513 = vector.broadcast %1512 : f32 to vector<1x256xf32>
    %1514 = arith.mulf %1513, %1169 : vector<1x256xf32>
    %1515 = arith.addf %1511, %1514 : vector<1x256xf32>
    %c281 = arith.constant 281 : index
    %1516 = memref.load %arg2[%c281] : memref<384xf32, #tpu.memory_space<smem>>
    %1517 = vector.broadcast %1516 : f32 to vector<1x256xf32>
    %1518 = arith.mulf %1517, %1303 : vector<1x256xf32>
    %1519 = arith.addf %1515, %1518 : vector<1x256xf32>
    %c282 = arith.constant 282 : index
    %1520 = memref.load %arg2[%c282] : memref<384xf32, #tpu.memory_space<smem>>
    %1521 = vector.broadcast %1520 : f32 to vector<1x256xf32>
    %1522 = arith.mulf %1521, %1308 : vector<1x256xf32>
    %1523 = arith.addf %1519, %1522 : vector<1x256xf32>
    %c283 = arith.constant 283 : index
    %1524 = memref.load %arg2[%c283] : memref<384xf32, #tpu.memory_space<smem>>
    %1525 = vector.broadcast %1524 : f32 to vector<1x256xf32>
    %1526 = arith.mulf %1525, %1226 : vector<1x256xf32>
    %1527 = arith.addf %1523, %1526 : vector<1x256xf32>
    %c284 = arith.constant 284 : index
    %1528 = memref.load %arg2[%c284] : memref<384xf32, #tpu.memory_space<smem>>
    %1529 = vector.broadcast %1528 : f32 to vector<1x256xf32>
    %1530 = arith.mulf %1529, %1313 : vector<1x256xf32>
    %1531 = arith.addf %1527, %1530 : vector<1x256xf32>
    %c285 = arith.constant 285 : index
    %1532 = memref.load %arg2[%c285] : memref<384xf32, #tpu.memory_space<smem>>
    %1533 = vector.broadcast %1532 : f32 to vector<1x256xf32>
    %1534 = arith.mulf %1533, %1318 : vector<1x256xf32>
    %1535 = arith.addf %1531, %1534 : vector<1x256xf32>
    %c286 = arith.constant 286 : index
    %1536 = memref.load %arg2[%c286] : memref<384xf32, #tpu.memory_space<smem>>
    %1537 = vector.broadcast %1536 : f32 to vector<1x256xf32>
    %1538 = arith.mulf %1537, %1283 : vector<1x256xf32>
    %1539 = arith.addf %1535, %1538 : vector<1x256xf32>
    %c287 = arith.constant 287 : index
    %1540 = memref.load %arg2[%c287] : memref<384xf32, #tpu.memory_space<smem>>
    %1541 = vector.broadcast %1540 : f32 to vector<1x256xf32>
    %1542 = arith.mulf %1541, %1323 : vector<1x256xf32>
    %1543 = arith.addf %1539, %1542 : vector<1x256xf32>
    %c23_141 = arith.constant 23 : index
    %1544 = memref.load %arg3[%c23_141] : memref<32xf32, #tpu.memory_space<smem>>
    %1545 = vector.broadcast %1544 : f32 to vector<1x256xf32>
    %1546 = arith.addf %1543, %1545 : vector<1x256xf32>
    %cst_142 = arith.constant 0.000000e+00 : f32
    %1547 = vector.broadcast %cst_142 : f32 to vector<1x256xf32>
    %1548 = arith.cmpf oge, %1546, %1547 : vector<1x256xf32>
    %1549 = vector.broadcast %0 : f32 to vector<1x256xf32>
    %1550 = arith.mulf %1549, %1546 : vector<1x256xf32>
    %1551 = arith.select %1548, %1546, %1550 : vector<1x256xi1>, vector<1x256xf32>
    %cst_143 = arith.constant 0.000000e+00 : f32
    %1552 = vector.broadcast %cst_143 : f32 to vector<1x1xf32>
    %1553 = vector.extract_strided_slice %860 {offsets = [0, 0], sizes = [1, 255], strides = [1, 1]} : vector<1x256xf32> to vector<1x255xf32>
    %1554 = tpu.concatenate %1552, %1553 in 1 : vector<1x1xf32>, vector<1x255xf32> -> vector<1x256xf32>
    %cst_144 = arith.constant 0.000000e+00 : f32
    %1555 = vector.broadcast %cst_144 : f32 to vector<1x256xf32>
    %1556 = arith.select %19, %1554, %1555 : vector<1x256xi1>, vector<1x256xf32>
    %cst_145 = arith.constant 0.000000e+00 : f32
    %1557 = vector.broadcast %cst_145 : f32 to vector<1x1xf32>
    %1558 = vector.extract_strided_slice %860 {offsets = [0, 1], sizes = [1, 255], strides = [1, 1]} : vector<1x256xf32> to vector<1x255xf32>
    %1559 = tpu.concatenate %1558, %1557 in 1 : vector<1x255xf32>, vector<1x1xf32> -> vector<1x256xf32>
    %cst_146 = arith.constant 0.000000e+00 : f32
    %1560 = vector.broadcast %cst_146 : f32 to vector<1x256xf32>
    %1561 = arith.select %21, %1559, %1560 : vector<1x256xi1>, vector<1x256xf32>
    %cst_147 = arith.constant 0.000000e+00 : f32
    %1562 = vector.broadcast %cst_147 : f32 to vector<1x1xf32>
    %1563 = vector.extract_strided_slice %917 {offsets = [0, 0], sizes = [1, 255], strides = [1, 1]} : vector<1x256xf32> to vector<1x255xf32>
    %1564 = tpu.concatenate %1562, %1563 in 1 : vector<1x1xf32>, vector<1x255xf32> -> vector<1x256xf32>
    %cst_148 = arith.constant 0.000000e+00 : f32
    %1565 = vector.broadcast %cst_148 : f32 to vector<1x256xf32>
    %1566 = arith.select %19, %1564, %1565 : vector<1x256xi1>, vector<1x256xf32>
    %cst_149 = arith.constant 0.000000e+00 : f32
    %1567 = vector.broadcast %cst_149 : f32 to vector<1x1xf32>
    %1568 = vector.extract_strided_slice %917 {offsets = [0, 1], sizes = [1, 255], strides = [1, 1]} : vector<1x256xf32> to vector<1x255xf32>
    %1569 = tpu.concatenate %1568, %1567 in 1 : vector<1x255xf32>, vector<1x1xf32> -> vector<1x256xf32>
    %cst_150 = arith.constant 0.000000e+00 : f32
    %1570 = vector.broadcast %cst_150 : f32 to vector<1x256xf32>
    %1571 = arith.select %21, %1569, %1570 : vector<1x256xi1>, vector<1x256xf32>
    %cst_151 = arith.constant 0.000000e+00 : f32
    %1572 = vector.broadcast %cst_151 : f32 to vector<1x1xf32>
    %1573 = vector.extract_strided_slice %974 {offsets = [0, 0], sizes = [1, 255], strides = [1, 1]} : vector<1x256xf32> to vector<1x255xf32>
    %1574 = tpu.concatenate %1572, %1573 in 1 : vector<1x1xf32>, vector<1x255xf32> -> vector<1x256xf32>
    %cst_152 = arith.constant 0.000000e+00 : f32
    %1575 = vector.broadcast %cst_152 : f32 to vector<1x256xf32>
    %1576 = arith.select %19, %1574, %1575 : vector<1x256xi1>, vector<1x256xf32>
    %cst_153 = arith.constant 0.000000e+00 : f32
    %1577 = vector.broadcast %cst_153 : f32 to vector<1x1xf32>
    %1578 = vector.extract_strided_slice %974 {offsets = [0, 1], sizes = [1, 255], strides = [1, 1]} : vector<1x256xf32> to vector<1x255xf32>
    %1579 = tpu.concatenate %1578, %1577 in 1 : vector<1x255xf32>, vector<1x1xf32> -> vector<1x256xf32>
    %cst_154 = arith.constant 0.000000e+00 : f32
    %1580 = vector.broadcast %cst_154 : f32 to vector<1x256xf32>
    %1581 = arith.select %21, %1579, %1580 : vector<1x256xi1>, vector<1x256xf32>
    %cst_155 = arith.constant 0.000000e+00 : f32
    %1582 = vector.broadcast %cst_155 : f32 to vector<1x1xf32>
    %1583 = vector.extract_strided_slice %1031 {offsets = [0, 0], sizes = [1, 255], strides = [1, 1]} : vector<1x256xf32> to vector<1x255xf32>
    %1584 = tpu.concatenate %1582, %1583 in 1 : vector<1x1xf32>, vector<1x255xf32> -> vector<1x256xf32>
    %cst_156 = arith.constant 0.000000e+00 : f32
    %1585 = vector.broadcast %cst_156 : f32 to vector<1x256xf32>
    %1586 = arith.select %19, %1584, %1585 : vector<1x256xi1>, vector<1x256xf32>
    %cst_157 = arith.constant 0.000000e+00 : f32
    %1587 = vector.broadcast %cst_157 : f32 to vector<1x1xf32>
    %1588 = vector.extract_strided_slice %1031 {offsets = [0, 1], sizes = [1, 255], strides = [1, 1]} : vector<1x256xf32> to vector<1x255xf32>
    %1589 = tpu.concatenate %1588, %1587 in 1 : vector<1x255xf32>, vector<1x1xf32> -> vector<1x256xf32>
    %cst_158 = arith.constant 0.000000e+00 : f32
    %1590 = vector.broadcast %cst_158 : f32 to vector<1x256xf32>
    %1591 = arith.select %21, %1589, %1590 : vector<1x256xi1>, vector<1x256xf32>
    %cst_159 = arith.constant 0.000000e+00 : f32
    %1592 = vector.broadcast %cst_159 : f32 to vector<1x256xf32>
    %c288 = arith.constant 288 : index
    %1593 = memref.load %arg2[%c288] : memref<384xf32, #tpu.memory_space<smem>>
    %1594 = vector.broadcast %1593 : f32 to vector<1x256xf32>
    %1595 = arith.mulf %1594, %1556 : vector<1x256xf32>
    %1596 = arith.addf %1592, %1595 : vector<1x256xf32>
    %c289 = arith.constant 289 : index
    %1597 = memref.load %arg2[%c289] : memref<384xf32, #tpu.memory_space<smem>>
    %1598 = vector.broadcast %1597 : f32 to vector<1x256xf32>
    %1599 = arith.mulf %1598, %860 : vector<1x256xf32>
    %1600 = arith.addf %1596, %1599 : vector<1x256xf32>
    %c290 = arith.constant 290 : index
    %1601 = memref.load %arg2[%c290] : memref<384xf32, #tpu.memory_space<smem>>
    %1602 = vector.broadcast %1601 : f32 to vector<1x256xf32>
    %1603 = arith.mulf %1602, %1561 : vector<1x256xf32>
    %1604 = arith.addf %1600, %1603 : vector<1x256xf32>
    %c291 = arith.constant 291 : index
    %1605 = memref.load %arg2[%c291] : memref<384xf32, #tpu.memory_space<smem>>
    %1606 = vector.broadcast %1605 : f32 to vector<1x256xf32>
    %1607 = arith.mulf %1606, %1566 : vector<1x256xf32>
    %1608 = arith.addf %1604, %1607 : vector<1x256xf32>
    %c292 = arith.constant 292 : index
    %1609 = memref.load %arg2[%c292] : memref<384xf32, #tpu.memory_space<smem>>
    %1610 = vector.broadcast %1609 : f32 to vector<1x256xf32>
    %1611 = arith.mulf %1610, %917 : vector<1x256xf32>
    %1612 = arith.addf %1608, %1611 : vector<1x256xf32>
    %c293 = arith.constant 293 : index
    %1613 = memref.load %arg2[%c293] : memref<384xf32, #tpu.memory_space<smem>>
    %1614 = vector.broadcast %1613 : f32 to vector<1x256xf32>
    %1615 = arith.mulf %1614, %1571 : vector<1x256xf32>
    %1616 = arith.addf %1612, %1615 : vector<1x256xf32>
    %c294 = arith.constant 294 : index
    %1617 = memref.load %arg2[%c294] : memref<384xf32, #tpu.memory_space<smem>>
    %1618 = vector.broadcast %1617 : f32 to vector<1x256xf32>
    %1619 = arith.mulf %1618, %1576 : vector<1x256xf32>
    %1620 = arith.addf %1616, %1619 : vector<1x256xf32>
    %c295 = arith.constant 295 : index
    %1621 = memref.load %arg2[%c295] : memref<384xf32, #tpu.memory_space<smem>>
    %1622 = vector.broadcast %1621 : f32 to vector<1x256xf32>
    %1623 = arith.mulf %1622, %974 : vector<1x256xf32>
    %1624 = arith.addf %1620, %1623 : vector<1x256xf32>
    %c296 = arith.constant 296 : index
    %1625 = memref.load %arg2[%c296] : memref<384xf32, #tpu.memory_space<smem>>
    %1626 = vector.broadcast %1625 : f32 to vector<1x256xf32>
    %1627 = arith.mulf %1626, %1581 : vector<1x256xf32>
    %1628 = arith.addf %1624, %1627 : vector<1x256xf32>
    %c297 = arith.constant 297 : index
    %1629 = memref.load %arg2[%c297] : memref<384xf32, #tpu.memory_space<smem>>
    %1630 = vector.broadcast %1629 : f32 to vector<1x256xf32>
    %1631 = arith.mulf %1630, %1586 : vector<1x256xf32>
    %1632 = arith.addf %1628, %1631 : vector<1x256xf32>
    %c298 = arith.constant 298 : index
    %1633 = memref.load %arg2[%c298] : memref<384xf32, #tpu.memory_space<smem>>
    %1634 = vector.broadcast %1633 : f32 to vector<1x256xf32>
    %1635 = arith.mulf %1634, %1031 : vector<1x256xf32>
    %1636 = arith.addf %1632, %1635 : vector<1x256xf32>
    %c299 = arith.constant 299 : index
    %1637 = memref.load %arg2[%c299] : memref<384xf32, #tpu.memory_space<smem>>
    %1638 = vector.broadcast %1637 : f32 to vector<1x256xf32>
    %1639 = arith.mulf %1638, %1591 : vector<1x256xf32>
    %1640 = arith.addf %1636, %1639 : vector<1x256xf32>
    %c24_160 = arith.constant 24 : index
    %1641 = memref.load %arg3[%c24_160] : memref<32xf32, #tpu.memory_space<smem>>
    %1642 = vector.broadcast %1641 : f32 to vector<1x256xf32>
    %1643 = arith.addf %1640, %1642 : vector<1x256xf32>
    %cst_161 = arith.constant 0.000000e+00 : f32
    %1644 = vector.broadcast %cst_161 : f32 to vector<1x256xf32>
    %1645 = arith.cmpf oge, %1643, %1644 : vector<1x256xf32>
    %1646 = vector.broadcast %0 : f32 to vector<1x256xf32>
    %1647 = arith.mulf %1646, %1643 : vector<1x256xf32>
    %1648 = arith.select %1645, %1643, %1647 : vector<1x256xi1>, vector<1x256xf32>
    %cst_162 = arith.constant 0.000000e+00 : f32
    %1649 = vector.broadcast %cst_162 : f32 to vector<1x256xf32>
    %c300 = arith.constant 300 : index
    %1650 = memref.load %arg2[%c300] : memref<384xf32, #tpu.memory_space<smem>>
    %1651 = vector.broadcast %1650 : f32 to vector<1x256xf32>
    %1652 = arith.mulf %1651, %1556 : vector<1x256xf32>
    %1653 = arith.addf %1649, %1652 : vector<1x256xf32>
    %c301 = arith.constant 301 : index
    %1654 = memref.load %arg2[%c301] : memref<384xf32, #tpu.memory_space<smem>>
    %1655 = vector.broadcast %1654 : f32 to vector<1x256xf32>
    %1656 = arith.mulf %1655, %860 : vector<1x256xf32>
    %1657 = arith.addf %1653, %1656 : vector<1x256xf32>
    %c302 = arith.constant 302 : index
    %1658 = memref.load %arg2[%c302] : memref<384xf32, #tpu.memory_space<smem>>
    %1659 = vector.broadcast %1658 : f32 to vector<1x256xf32>
    %1660 = arith.mulf %1659, %1561 : vector<1x256xf32>
    %1661 = arith.addf %1657, %1660 : vector<1x256xf32>
    %c303 = arith.constant 303 : index
    %1662 = memref.load %arg2[%c303] : memref<384xf32, #tpu.memory_space<smem>>
    %1663 = vector.broadcast %1662 : f32 to vector<1x256xf32>
    %1664 = arith.mulf %1663, %1566 : vector<1x256xf32>
    %1665 = arith.addf %1661, %1664 : vector<1x256xf32>
    %c304 = arith.constant 304 : index
    %1666 = memref.load %arg2[%c304] : memref<384xf32, #tpu.memory_space<smem>>
    %1667 = vector.broadcast %1666 : f32 to vector<1x256xf32>
    %1668 = arith.mulf %1667, %917 : vector<1x256xf32>
    %1669 = arith.addf %1665, %1668 : vector<1x256xf32>
    %c305 = arith.constant 305 : index
    %1670 = memref.load %arg2[%c305] : memref<384xf32, #tpu.memory_space<smem>>
    %1671 = vector.broadcast %1670 : f32 to vector<1x256xf32>
    %1672 = arith.mulf %1671, %1571 : vector<1x256xf32>
    %1673 = arith.addf %1669, %1672 : vector<1x256xf32>
    %c306 = arith.constant 306 : index
    %1674 = memref.load %arg2[%c306] : memref<384xf32, #tpu.memory_space<smem>>
    %1675 = vector.broadcast %1674 : f32 to vector<1x256xf32>
    %1676 = arith.mulf %1675, %1576 : vector<1x256xf32>
    %1677 = arith.addf %1673, %1676 : vector<1x256xf32>
    %c307 = arith.constant 307 : index
    %1678 = memref.load %arg2[%c307] : memref<384xf32, #tpu.memory_space<smem>>
    %1679 = vector.broadcast %1678 : f32 to vector<1x256xf32>
    %1680 = arith.mulf %1679, %974 : vector<1x256xf32>
    %1681 = arith.addf %1677, %1680 : vector<1x256xf32>
    %c308 = arith.constant 308 : index
    %1682 = memref.load %arg2[%c308] : memref<384xf32, #tpu.memory_space<smem>>
    %1683 = vector.broadcast %1682 : f32 to vector<1x256xf32>
    %1684 = arith.mulf %1683, %1581 : vector<1x256xf32>
    %1685 = arith.addf %1681, %1684 : vector<1x256xf32>
    %c309 = arith.constant 309 : index
    %1686 = memref.load %arg2[%c309] : memref<384xf32, #tpu.memory_space<smem>>
    %1687 = vector.broadcast %1686 : f32 to vector<1x256xf32>
    %1688 = arith.mulf %1687, %1586 : vector<1x256xf32>
    %1689 = arith.addf %1685, %1688 : vector<1x256xf32>
    %c310 = arith.constant 310 : index
    %1690 = memref.load %arg2[%c310] : memref<384xf32, #tpu.memory_space<smem>>
    %1691 = vector.broadcast %1690 : f32 to vector<1x256xf32>
    %1692 = arith.mulf %1691, %1031 : vector<1x256xf32>
    %1693 = arith.addf %1689, %1692 : vector<1x256xf32>
    %c311 = arith.constant 311 : index
    %1694 = memref.load %arg2[%c311] : memref<384xf32, #tpu.memory_space<smem>>
    %1695 = vector.broadcast %1694 : f32 to vector<1x256xf32>
    %1696 = arith.mulf %1695, %1591 : vector<1x256xf32>
    %1697 = arith.addf %1693, %1696 : vector<1x256xf32>
    %c25_163 = arith.constant 25 : index
    %1698 = memref.load %arg3[%c25_163] : memref<32xf32, #tpu.memory_space<smem>>
    %1699 = vector.broadcast %1698 : f32 to vector<1x256xf32>
    %1700 = arith.addf %1697, %1699 : vector<1x256xf32>
    %cst_164 = arith.constant 0.000000e+00 : f32
    %1701 = vector.broadcast %cst_164 : f32 to vector<1x256xf32>
    %1702 = arith.cmpf oge, %1700, %1701 : vector<1x256xf32>
    %1703 = vector.broadcast %0 : f32 to vector<1x256xf32>
    %1704 = arith.mulf %1703, %1700 : vector<1x256xf32>
    %1705 = arith.select %1702, %1700, %1704 : vector<1x256xi1>, vector<1x256xf32>
    %cst_165 = arith.constant 0.000000e+00 : f32
    %1706 = vector.broadcast %cst_165 : f32 to vector<1x256xf32>
    %c312 = arith.constant 312 : index
    %1707 = memref.load %arg2[%c312] : memref<384xf32, #tpu.memory_space<smem>>
    %1708 = vector.broadcast %1707 : f32 to vector<1x256xf32>
    %1709 = arith.mulf %1708, %1556 : vector<1x256xf32>
    %1710 = arith.addf %1706, %1709 : vector<1x256xf32>
    %c313 = arith.constant 313 : index
    %1711 = memref.load %arg2[%c313] : memref<384xf32, #tpu.memory_space<smem>>
    %1712 = vector.broadcast %1711 : f32 to vector<1x256xf32>
    %1713 = arith.mulf %1712, %860 : vector<1x256xf32>
    %1714 = arith.addf %1710, %1713 : vector<1x256xf32>
    %c314 = arith.constant 314 : index
    %1715 = memref.load %arg2[%c314] : memref<384xf32, #tpu.memory_space<smem>>
    %1716 = vector.broadcast %1715 : f32 to vector<1x256xf32>
    %1717 = arith.mulf %1716, %1561 : vector<1x256xf32>
    %1718 = arith.addf %1714, %1717 : vector<1x256xf32>
    %c315 = arith.constant 315 : index
    %1719 = memref.load %arg2[%c315] : memref<384xf32, #tpu.memory_space<smem>>
    %1720 = vector.broadcast %1719 : f32 to vector<1x256xf32>
    %1721 = arith.mulf %1720, %1566 : vector<1x256xf32>
    %1722 = arith.addf %1718, %1721 : vector<1x256xf32>
    %c316 = arith.constant 316 : index
    %1723 = memref.load %arg2[%c316] : memref<384xf32, #tpu.memory_space<smem>>
    %1724 = vector.broadcast %1723 : f32 to vector<1x256xf32>
    %1725 = arith.mulf %1724, %917 : vector<1x256xf32>
    %1726 = arith.addf %1722, %1725 : vector<1x256xf32>
    %c317 = arith.constant 317 : index
    %1727 = memref.load %arg2[%c317] : memref<384xf32, #tpu.memory_space<smem>>
    %1728 = vector.broadcast %1727 : f32 to vector<1x256xf32>
    %1729 = arith.mulf %1728, %1571 : vector<1x256xf32>
    %1730 = arith.addf %1726, %1729 : vector<1x256xf32>
    %c318 = arith.constant 318 : index
    %1731 = memref.load %arg2[%c318] : memref<384xf32, #tpu.memory_space<smem>>
    %1732 = vector.broadcast %1731 : f32 to vector<1x256xf32>
    %1733 = arith.mulf %1732, %1576 : vector<1x256xf32>
    %1734 = arith.addf %1730, %1733 : vector<1x256xf32>
    %c319 = arith.constant 319 : index
    %1735 = memref.load %arg2[%c319] : memref<384xf32, #tpu.memory_space<smem>>
    %1736 = vector.broadcast %1735 : f32 to vector<1x256xf32>
    %1737 = arith.mulf %1736, %974 : vector<1x256xf32>
    %1738 = arith.addf %1734, %1737 : vector<1x256xf32>
    %c320 = arith.constant 320 : index
    %1739 = memref.load %arg2[%c320] : memref<384xf32, #tpu.memory_space<smem>>
    %1740 = vector.broadcast %1739 : f32 to vector<1x256xf32>
    %1741 = arith.mulf %1740, %1581 : vector<1x256xf32>
    %1742 = arith.addf %1738, %1741 : vector<1x256xf32>
    %c321 = arith.constant 321 : index
    %1743 = memref.load %arg2[%c321] : memref<384xf32, #tpu.memory_space<smem>>
    %1744 = vector.broadcast %1743 : f32 to vector<1x256xf32>
    %1745 = arith.mulf %1744, %1586 : vector<1x256xf32>
    %1746 = arith.addf %1742, %1745 : vector<1x256xf32>
    %c322 = arith.constant 322 : index
    %1747 = memref.load %arg2[%c322] : memref<384xf32, #tpu.memory_space<smem>>
    %1748 = vector.broadcast %1747 : f32 to vector<1x256xf32>
    %1749 = arith.mulf %1748, %1031 : vector<1x256xf32>
    %1750 = arith.addf %1746, %1749 : vector<1x256xf32>
    %c323 = arith.constant 323 : index
    %1751 = memref.load %arg2[%c323] : memref<384xf32, #tpu.memory_space<smem>>
    %1752 = vector.broadcast %1751 : f32 to vector<1x256xf32>
    %1753 = arith.mulf %1752, %1591 : vector<1x256xf32>
    %1754 = arith.addf %1750, %1753 : vector<1x256xf32>
    %c26_166 = arith.constant 26 : index
    %1755 = memref.load %arg3[%c26_166] : memref<32xf32, #tpu.memory_space<smem>>
    %1756 = vector.broadcast %1755 : f32 to vector<1x256xf32>
    %1757 = arith.addf %1754, %1756 : vector<1x256xf32>
    %cst_167 = arith.constant 0.000000e+00 : f32
    %1758 = vector.broadcast %cst_167 : f32 to vector<1x256xf32>
    %1759 = arith.cmpf oge, %1757, %1758 : vector<1x256xf32>
    %1760 = vector.broadcast %0 : f32 to vector<1x256xf32>
    %1761 = arith.mulf %1760, %1757 : vector<1x256xf32>
    %1762 = arith.select %1759, %1757, %1761 : vector<1x256xi1>, vector<1x256xf32>
    %cst_168 = arith.constant 0.000000e+00 : f32
    %1763 = vector.broadcast %cst_168 : f32 to vector<1x256xf32>
    %c324 = arith.constant 324 : index
    %1764 = memref.load %arg2[%c324] : memref<384xf32, #tpu.memory_space<smem>>
    %1765 = vector.broadcast %1764 : f32 to vector<1x256xf32>
    %1766 = arith.mulf %1765, %1556 : vector<1x256xf32>
    %1767 = arith.addf %1763, %1766 : vector<1x256xf32>
    %c325 = arith.constant 325 : index
    %1768 = memref.load %arg2[%c325] : memref<384xf32, #tpu.memory_space<smem>>
    %1769 = vector.broadcast %1768 : f32 to vector<1x256xf32>
    %1770 = arith.mulf %1769, %860 : vector<1x256xf32>
    %1771 = arith.addf %1767, %1770 : vector<1x256xf32>
    %c326 = arith.constant 326 : index
    %1772 = memref.load %arg2[%c326] : memref<384xf32, #tpu.memory_space<smem>>
    %1773 = vector.broadcast %1772 : f32 to vector<1x256xf32>
    %1774 = arith.mulf %1773, %1561 : vector<1x256xf32>
    %1775 = arith.addf %1771, %1774 : vector<1x256xf32>
    %c327 = arith.constant 327 : index
    %1776 = memref.load %arg2[%c327] : memref<384xf32, #tpu.memory_space<smem>>
    %1777 = vector.broadcast %1776 : f32 to vector<1x256xf32>
    %1778 = arith.mulf %1777, %1566 : vector<1x256xf32>
    %1779 = arith.addf %1775, %1778 : vector<1x256xf32>
    %c328 = arith.constant 328 : index
    %1780 = memref.load %arg2[%c328] : memref<384xf32, #tpu.memory_space<smem>>
    %1781 = vector.broadcast %1780 : f32 to vector<1x256xf32>
    %1782 = arith.mulf %1781, %917 : vector<1x256xf32>
    %1783 = arith.addf %1779, %1782 : vector<1x256xf32>
    %c329 = arith.constant 329 : index
    %1784 = memref.load %arg2[%c329] : memref<384xf32, #tpu.memory_space<smem>>
    %1785 = vector.broadcast %1784 : f32 to vector<1x256xf32>
    %1786 = arith.mulf %1785, %1571 : vector<1x256xf32>
    %1787 = arith.addf %1783, %1786 : vector<1x256xf32>
    %c330 = arith.constant 330 : index
    %1788 = memref.load %arg2[%c330] : memref<384xf32, #tpu.memory_space<smem>>
    %1789 = vector.broadcast %1788 : f32 to vector<1x256xf32>
    %1790 = arith.mulf %1789, %1576 : vector<1x256xf32>
    %1791 = arith.addf %1787, %1790 : vector<1x256xf32>
    %c331 = arith.constant 331 : index
    %1792 = memref.load %arg2[%c331] : memref<384xf32, #tpu.memory_space<smem>>
    %1793 = vector.broadcast %1792 : f32 to vector<1x256xf32>
    %1794 = arith.mulf %1793, %974 : vector<1x256xf32>
    %1795 = arith.addf %1791, %1794 : vector<1x256xf32>
    %c332 = arith.constant 332 : index
    %1796 = memref.load %arg2[%c332] : memref<384xf32, #tpu.memory_space<smem>>
    %1797 = vector.broadcast %1796 : f32 to vector<1x256xf32>
    %1798 = arith.mulf %1797, %1581 : vector<1x256xf32>
    %1799 = arith.addf %1795, %1798 : vector<1x256xf32>
    %c333 = arith.constant 333 : index
    %1800 = memref.load %arg2[%c333] : memref<384xf32, #tpu.memory_space<smem>>
    %1801 = vector.broadcast %1800 : f32 to vector<1x256xf32>
    %1802 = arith.mulf %1801, %1586 : vector<1x256xf32>
    %1803 = arith.addf %1799, %1802 : vector<1x256xf32>
    %c334 = arith.constant 334 : index
    %1804 = memref.load %arg2[%c334] : memref<384xf32, #tpu.memory_space<smem>>
    %1805 = vector.broadcast %1804 : f32 to vector<1x256xf32>
    %1806 = arith.mulf %1805, %1031 : vector<1x256xf32>
    %1807 = arith.addf %1803, %1806 : vector<1x256xf32>
    %c335 = arith.constant 335 : index
    %1808 = memref.load %arg2[%c335] : memref<384xf32, #tpu.memory_space<smem>>
    %1809 = vector.broadcast %1808 : f32 to vector<1x256xf32>
    %1810 = arith.mulf %1809, %1591 : vector<1x256xf32>
    %1811 = arith.addf %1807, %1810 : vector<1x256xf32>
    %c27_169 = arith.constant 27 : index
    %1812 = memref.load %arg3[%c27_169] : memref<32xf32, #tpu.memory_space<smem>>
    %1813 = vector.broadcast %1812 : f32 to vector<1x256xf32>
    %1814 = arith.addf %1811, %1813 : vector<1x256xf32>
    %cst_170 = arith.constant 0.000000e+00 : f32
    %1815 = vector.broadcast %cst_170 : f32 to vector<1x256xf32>
    %1816 = arith.cmpf oge, %1814, %1815 : vector<1x256xf32>
    %1817 = vector.broadcast %0 : f32 to vector<1x256xf32>
    %1818 = arith.mulf %1817, %1814 : vector<1x256xf32>
    %1819 = arith.select %1816, %1814, %1818 : vector<1x256xi1>, vector<1x256xf32>
    %cst_171 = arith.constant 0.000000e+00 : f32
    %1820 = vector.broadcast %cst_171 : f32 to vector<1x16xf32>
    %1821 = vector.extract_strided_slice %1648 {offsets = [0, 0], sizes = [1, 240], strides = [1, 1]} : vector<1x256xf32> to vector<1x240xf32>
    %1822 = tpu.concatenate %1820, %1821 in 1 : vector<1x16xf32>, vector<1x240xf32> -> vector<1x256xf32>
    %cst_172 = arith.constant 0.000000e+00 : f32
    %1823 = vector.broadcast %cst_172 : f32 to vector<1x16xf32>
    %1824 = vector.extract_strided_slice %1648 {offsets = [0, 16], sizes = [1, 240], strides = [1, 1]} : vector<1x256xf32> to vector<1x240xf32>
    %1825 = tpu.concatenate %1824, %1823 in 1 : vector<1x240xf32>, vector<1x16xf32> -> vector<1x256xf32>
    %cst_173 = arith.constant 0.000000e+00 : f32
    %1826 = vector.broadcast %cst_173 : f32 to vector<1x16xf32>
    %1827 = vector.extract_strided_slice %1705 {offsets = [0, 0], sizes = [1, 240], strides = [1, 1]} : vector<1x256xf32> to vector<1x240xf32>
    %1828 = tpu.concatenate %1826, %1827 in 1 : vector<1x16xf32>, vector<1x240xf32> -> vector<1x256xf32>
    %cst_174 = arith.constant 0.000000e+00 : f32
    %1829 = vector.broadcast %cst_174 : f32 to vector<1x16xf32>
    %1830 = vector.extract_strided_slice %1705 {offsets = [0, 16], sizes = [1, 240], strides = [1, 1]} : vector<1x256xf32> to vector<1x240xf32>
    %1831 = tpu.concatenate %1830, %1829 in 1 : vector<1x240xf32>, vector<1x16xf32> -> vector<1x256xf32>
    %cst_175 = arith.constant 0.000000e+00 : f32
    %1832 = vector.broadcast %cst_175 : f32 to vector<1x16xf32>
    %1833 = vector.extract_strided_slice %1762 {offsets = [0, 0], sizes = [1, 240], strides = [1, 1]} : vector<1x256xf32> to vector<1x240xf32>
    %1834 = tpu.concatenate %1832, %1833 in 1 : vector<1x16xf32>, vector<1x240xf32> -> vector<1x256xf32>
    %cst_176 = arith.constant 0.000000e+00 : f32
    %1835 = vector.broadcast %cst_176 : f32 to vector<1x16xf32>
    %1836 = vector.extract_strided_slice %1762 {offsets = [0, 16], sizes = [1, 240], strides = [1, 1]} : vector<1x256xf32> to vector<1x240xf32>
    %1837 = tpu.concatenate %1836, %1835 in 1 : vector<1x240xf32>, vector<1x16xf32> -> vector<1x256xf32>
    %cst_177 = arith.constant 0.000000e+00 : f32
    %1838 = vector.broadcast %cst_177 : f32 to vector<1x16xf32>
    %1839 = vector.extract_strided_slice %1819 {offsets = [0, 0], sizes = [1, 240], strides = [1, 1]} : vector<1x256xf32> to vector<1x240xf32>
    %1840 = tpu.concatenate %1838, %1839 in 1 : vector<1x16xf32>, vector<1x240xf32> -> vector<1x256xf32>
    %cst_178 = arith.constant 0.000000e+00 : f32
    %1841 = vector.broadcast %cst_178 : f32 to vector<1x16xf32>
    %1842 = vector.extract_strided_slice %1819 {offsets = [0, 16], sizes = [1, 240], strides = [1, 1]} : vector<1x256xf32> to vector<1x240xf32>
    %1843 = tpu.concatenate %1842, %1841 in 1 : vector<1x240xf32>, vector<1x16xf32> -> vector<1x256xf32>
    %cst_179 = arith.constant 0.000000e+00 : f32
    %1844 = vector.broadcast %cst_179 : f32 to vector<1x256xf32>
    %c336 = arith.constant 336 : index
    %1845 = memref.load %arg2[%c336] : memref<384xf32, #tpu.memory_space<smem>>
    %1846 = vector.broadcast %1845 : f32 to vector<1x256xf32>
    %1847 = arith.mulf %1846, %1822 : vector<1x256xf32>
    %1848 = arith.addf %1844, %1847 : vector<1x256xf32>
    %c337 = arith.constant 337 : index
    %1849 = memref.load %arg2[%c337] : memref<384xf32, #tpu.memory_space<smem>>
    %1850 = vector.broadcast %1849 : f32 to vector<1x256xf32>
    %1851 = arith.mulf %1850, %1648 : vector<1x256xf32>
    %1852 = arith.addf %1848, %1851 : vector<1x256xf32>
    %c338 = arith.constant 338 : index
    %1853 = memref.load %arg2[%c338] : memref<384xf32, #tpu.memory_space<smem>>
    %1854 = vector.broadcast %1853 : f32 to vector<1x256xf32>
    %1855 = arith.mulf %1854, %1825 : vector<1x256xf32>
    %1856 = arith.addf %1852, %1855 : vector<1x256xf32>
    %c339 = arith.constant 339 : index
    %1857 = memref.load %arg2[%c339] : memref<384xf32, #tpu.memory_space<smem>>
    %1858 = vector.broadcast %1857 : f32 to vector<1x256xf32>
    %1859 = arith.mulf %1858, %1828 : vector<1x256xf32>
    %1860 = arith.addf %1856, %1859 : vector<1x256xf32>
    %c340 = arith.constant 340 : index
    %1861 = memref.load %arg2[%c340] : memref<384xf32, #tpu.memory_space<smem>>
    %1862 = vector.broadcast %1861 : f32 to vector<1x256xf32>
    %1863 = arith.mulf %1862, %1705 : vector<1x256xf32>
    %1864 = arith.addf %1860, %1863 : vector<1x256xf32>
    %c341 = arith.constant 341 : index
    %1865 = memref.load %arg2[%c341] : memref<384xf32, #tpu.memory_space<smem>>
    %1866 = vector.broadcast %1865 : f32 to vector<1x256xf32>
    %1867 = arith.mulf %1866, %1831 : vector<1x256xf32>
    %1868 = arith.addf %1864, %1867 : vector<1x256xf32>
    %c342 = arith.constant 342 : index
    %1869 = memref.load %arg2[%c342] : memref<384xf32, #tpu.memory_space<smem>>
    %1870 = vector.broadcast %1869 : f32 to vector<1x256xf32>
    %1871 = arith.mulf %1870, %1834 : vector<1x256xf32>
    %1872 = arith.addf %1868, %1871 : vector<1x256xf32>
    %c343 = arith.constant 343 : index
    %1873 = memref.load %arg2[%c343] : memref<384xf32, #tpu.memory_space<smem>>
    %1874 = vector.broadcast %1873 : f32 to vector<1x256xf32>
    %1875 = arith.mulf %1874, %1762 : vector<1x256xf32>
    %1876 = arith.addf %1872, %1875 : vector<1x256xf32>
    %c344 = arith.constant 344 : index
    %1877 = memref.load %arg2[%c344] : memref<384xf32, #tpu.memory_space<smem>>
    %1878 = vector.broadcast %1877 : f32 to vector<1x256xf32>
    %1879 = arith.mulf %1878, %1837 : vector<1x256xf32>
    %1880 = arith.addf %1876, %1879 : vector<1x256xf32>
    %c345 = arith.constant 345 : index
    %1881 = memref.load %arg2[%c345] : memref<384xf32, #tpu.memory_space<smem>>
    %1882 = vector.broadcast %1881 : f32 to vector<1x256xf32>
    %1883 = arith.mulf %1882, %1840 : vector<1x256xf32>
    %1884 = arith.addf %1880, %1883 : vector<1x256xf32>
    %c346 = arith.constant 346 : index
    %1885 = memref.load %arg2[%c346] : memref<384xf32, #tpu.memory_space<smem>>
    %1886 = vector.broadcast %1885 : f32 to vector<1x256xf32>
    %1887 = arith.mulf %1886, %1819 : vector<1x256xf32>
    %1888 = arith.addf %1884, %1887 : vector<1x256xf32>
    %c347 = arith.constant 347 : index
    %1889 = memref.load %arg2[%c347] : memref<384xf32, #tpu.memory_space<smem>>
    %1890 = vector.broadcast %1889 : f32 to vector<1x256xf32>
    %1891 = arith.mulf %1890, %1843 : vector<1x256xf32>
    %1892 = arith.addf %1888, %1891 : vector<1x256xf32>
    %c28_180 = arith.constant 28 : index
    %1893 = memref.load %arg3[%c28_180] : memref<32xf32, #tpu.memory_space<smem>>
    %1894 = vector.broadcast %1893 : f32 to vector<1x256xf32>
    %1895 = arith.addf %1892, %1894 : vector<1x256xf32>
    %cst_181 = arith.constant 0.000000e+00 : f32
    %1896 = vector.broadcast %cst_181 : f32 to vector<1x256xf32>
    %1897 = arith.cmpf oge, %1895, %1896 : vector<1x256xf32>
    %1898 = vector.broadcast %0 : f32 to vector<1x256xf32>
    %1899 = arith.mulf %1898, %1895 : vector<1x256xf32>
    %1900 = arith.select %1897, %1895, %1899 : vector<1x256xi1>, vector<1x256xf32>
    %cst_182 = arith.constant 0.000000e+00 : f32
    %1901 = vector.broadcast %cst_182 : f32 to vector<1x256xf32>
    %c348 = arith.constant 348 : index
    %1902 = memref.load %arg2[%c348] : memref<384xf32, #tpu.memory_space<smem>>
    %1903 = vector.broadcast %1902 : f32 to vector<1x256xf32>
    %1904 = arith.mulf %1903, %1822 : vector<1x256xf32>
    %1905 = arith.addf %1901, %1904 : vector<1x256xf32>
    %c349 = arith.constant 349 : index
    %1906 = memref.load %arg2[%c349] : memref<384xf32, #tpu.memory_space<smem>>
    %1907 = vector.broadcast %1906 : f32 to vector<1x256xf32>
    %1908 = arith.mulf %1907, %1648 : vector<1x256xf32>
    %1909 = arith.addf %1905, %1908 : vector<1x256xf32>
    %c350 = arith.constant 350 : index
    %1910 = memref.load %arg2[%c350] : memref<384xf32, #tpu.memory_space<smem>>
    %1911 = vector.broadcast %1910 : f32 to vector<1x256xf32>
    %1912 = arith.mulf %1911, %1825 : vector<1x256xf32>
    %1913 = arith.addf %1909, %1912 : vector<1x256xf32>
    %c351 = arith.constant 351 : index
    %1914 = memref.load %arg2[%c351] : memref<384xf32, #tpu.memory_space<smem>>
    %1915 = vector.broadcast %1914 : f32 to vector<1x256xf32>
    %1916 = arith.mulf %1915, %1828 : vector<1x256xf32>
    %1917 = arith.addf %1913, %1916 : vector<1x256xf32>
    %c352 = arith.constant 352 : index
    %1918 = memref.load %arg2[%c352] : memref<384xf32, #tpu.memory_space<smem>>
    %1919 = vector.broadcast %1918 : f32 to vector<1x256xf32>
    %1920 = arith.mulf %1919, %1705 : vector<1x256xf32>
    %1921 = arith.addf %1917, %1920 : vector<1x256xf32>
    %c353 = arith.constant 353 : index
    %1922 = memref.load %arg2[%c353] : memref<384xf32, #tpu.memory_space<smem>>
    %1923 = vector.broadcast %1922 : f32 to vector<1x256xf32>
    %1924 = arith.mulf %1923, %1831 : vector<1x256xf32>
    %1925 = arith.addf %1921, %1924 : vector<1x256xf32>
    %c354 = arith.constant 354 : index
    %1926 = memref.load %arg2[%c354] : memref<384xf32, #tpu.memory_space<smem>>
    %1927 = vector.broadcast %1926 : f32 to vector<1x256xf32>
    %1928 = arith.mulf %1927, %1834 : vector<1x256xf32>
    %1929 = arith.addf %1925, %1928 : vector<1x256xf32>
    %c355 = arith.constant 355 : index
    %1930 = memref.load %arg2[%c355] : memref<384xf32, #tpu.memory_space<smem>>
    %1931 = vector.broadcast %1930 : f32 to vector<1x256xf32>
    %1932 = arith.mulf %1931, %1762 : vector<1x256xf32>
    %1933 = arith.addf %1929, %1932 : vector<1x256xf32>
    %c356 = arith.constant 356 : index
    %1934 = memref.load %arg2[%c356] : memref<384xf32, #tpu.memory_space<smem>>
    %1935 = vector.broadcast %1934 : f32 to vector<1x256xf32>
    %1936 = arith.mulf %1935, %1837 : vector<1x256xf32>
    %1937 = arith.addf %1933, %1936 : vector<1x256xf32>
    %c357 = arith.constant 357 : index
    %1938 = memref.load %arg2[%c357] : memref<384xf32, #tpu.memory_space<smem>>
    %1939 = vector.broadcast %1938 : f32 to vector<1x256xf32>
    %1940 = arith.mulf %1939, %1840 : vector<1x256xf32>
    %1941 = arith.addf %1937, %1940 : vector<1x256xf32>
    %c358 = arith.constant 358 : index
    %1942 = memref.load %arg2[%c358] : memref<384xf32, #tpu.memory_space<smem>>
    %1943 = vector.broadcast %1942 : f32 to vector<1x256xf32>
    %1944 = arith.mulf %1943, %1819 : vector<1x256xf32>
    %1945 = arith.addf %1941, %1944 : vector<1x256xf32>
    %c359 = arith.constant 359 : index
    %1946 = memref.load %arg2[%c359] : memref<384xf32, #tpu.memory_space<smem>>
    %1947 = vector.broadcast %1946 : f32 to vector<1x256xf32>
    %1948 = arith.mulf %1947, %1843 : vector<1x256xf32>
    %1949 = arith.addf %1945, %1948 : vector<1x256xf32>
    %c29_183 = arith.constant 29 : index
    %1950 = memref.load %arg3[%c29_183] : memref<32xf32, #tpu.memory_space<smem>>
    %1951 = vector.broadcast %1950 : f32 to vector<1x256xf32>
    %1952 = arith.addf %1949, %1951 : vector<1x256xf32>
    %cst_184 = arith.constant 0.000000e+00 : f32
    %1953 = vector.broadcast %cst_184 : f32 to vector<1x256xf32>
    %1954 = arith.cmpf oge, %1952, %1953 : vector<1x256xf32>
    %1955 = vector.broadcast %0 : f32 to vector<1x256xf32>
    %1956 = arith.mulf %1955, %1952 : vector<1x256xf32>
    %1957 = arith.select %1954, %1952, %1956 : vector<1x256xi1>, vector<1x256xf32>
    %cst_185 = arith.constant 0.000000e+00 : f32
    %1958 = vector.broadcast %cst_185 : f32 to vector<1x256xf32>
    %c360 = arith.constant 360 : index
    %1959 = memref.load %arg2[%c360] : memref<384xf32, #tpu.memory_space<smem>>
    %1960 = vector.broadcast %1959 : f32 to vector<1x256xf32>
    %1961 = arith.mulf %1960, %1822 : vector<1x256xf32>
    %1962 = arith.addf %1958, %1961 : vector<1x256xf32>
    %c361 = arith.constant 361 : index
    %1963 = memref.load %arg2[%c361] : memref<384xf32, #tpu.memory_space<smem>>
    %1964 = vector.broadcast %1963 : f32 to vector<1x256xf32>
    %1965 = arith.mulf %1964, %1648 : vector<1x256xf32>
    %1966 = arith.addf %1962, %1965 : vector<1x256xf32>
    %c362 = arith.constant 362 : index
    %1967 = memref.load %arg2[%c362] : memref<384xf32, #tpu.memory_space<smem>>
    %1968 = vector.broadcast %1967 : f32 to vector<1x256xf32>
    %1969 = arith.mulf %1968, %1825 : vector<1x256xf32>
    %1970 = arith.addf %1966, %1969 : vector<1x256xf32>
    %c363 = arith.constant 363 : index
    %1971 = memref.load %arg2[%c363] : memref<384xf32, #tpu.memory_space<smem>>
    %1972 = vector.broadcast %1971 : f32 to vector<1x256xf32>
    %1973 = arith.mulf %1972, %1828 : vector<1x256xf32>
    %1974 = arith.addf %1970, %1973 : vector<1x256xf32>
    %c364 = arith.constant 364 : index
    %1975 = memref.load %arg2[%c364] : memref<384xf32, #tpu.memory_space<smem>>
    %1976 = vector.broadcast %1975 : f32 to vector<1x256xf32>
    %1977 = arith.mulf %1976, %1705 : vector<1x256xf32>
    %1978 = arith.addf %1974, %1977 : vector<1x256xf32>
    %c365 = arith.constant 365 : index
    %1979 = memref.load %arg2[%c365] : memref<384xf32, #tpu.memory_space<smem>>
    %1980 = vector.broadcast %1979 : f32 to vector<1x256xf32>
    %1981 = arith.mulf %1980, %1831 : vector<1x256xf32>
    %1982 = arith.addf %1978, %1981 : vector<1x256xf32>
    %c366 = arith.constant 366 : index
    %1983 = memref.load %arg2[%c366] : memref<384xf32, #tpu.memory_space<smem>>
    %1984 = vector.broadcast %1983 : f32 to vector<1x256xf32>
    %1985 = arith.mulf %1984, %1834 : vector<1x256xf32>
    %1986 = arith.addf %1982, %1985 : vector<1x256xf32>
    %c367 = arith.constant 367 : index
    %1987 = memref.load %arg2[%c367] : memref<384xf32, #tpu.memory_space<smem>>
    %1988 = vector.broadcast %1987 : f32 to vector<1x256xf32>
    %1989 = arith.mulf %1988, %1762 : vector<1x256xf32>
    %1990 = arith.addf %1986, %1989 : vector<1x256xf32>
    %c368 = arith.constant 368 : index
    %1991 = memref.load %arg2[%c368] : memref<384xf32, #tpu.memory_space<smem>>
    %1992 = vector.broadcast %1991 : f32 to vector<1x256xf32>
    %1993 = arith.mulf %1992, %1837 : vector<1x256xf32>
    %1994 = arith.addf %1990, %1993 : vector<1x256xf32>
    %c369 = arith.constant 369 : index
    %1995 = memref.load %arg2[%c369] : memref<384xf32, #tpu.memory_space<smem>>
    %1996 = vector.broadcast %1995 : f32 to vector<1x256xf32>
    %1997 = arith.mulf %1996, %1840 : vector<1x256xf32>
    %1998 = arith.addf %1994, %1997 : vector<1x256xf32>
    %c370 = arith.constant 370 : index
    %1999 = memref.load %arg2[%c370] : memref<384xf32, #tpu.memory_space<smem>>
    %2000 = vector.broadcast %1999 : f32 to vector<1x256xf32>
    %2001 = arith.mulf %2000, %1819 : vector<1x256xf32>
    %2002 = arith.addf %1998, %2001 : vector<1x256xf32>
    %c371 = arith.constant 371 : index
    %2003 = memref.load %arg2[%c371] : memref<384xf32, #tpu.memory_space<smem>>
    %2004 = vector.broadcast %2003 : f32 to vector<1x256xf32>
    %2005 = arith.mulf %2004, %1843 : vector<1x256xf32>
    %2006 = arith.addf %2002, %2005 : vector<1x256xf32>
    %c30_186 = arith.constant 30 : index
    %2007 = memref.load %arg3[%c30_186] : memref<32xf32, #tpu.memory_space<smem>>
    %2008 = vector.broadcast %2007 : f32 to vector<1x256xf32>
    %2009 = arith.addf %2006, %2008 : vector<1x256xf32>
    %cst_187 = arith.constant 0.000000e+00 : f32
    %2010 = vector.broadcast %cst_187 : f32 to vector<1x256xf32>
    %2011 = arith.cmpf oge, %2009, %2010 : vector<1x256xf32>
    %2012 = vector.broadcast %0 : f32 to vector<1x256xf32>
    %2013 = arith.mulf %2012, %2009 : vector<1x256xf32>
    %2014 = arith.select %2011, %2009, %2013 : vector<1x256xi1>, vector<1x256xf32>
    %cst_188 = arith.constant 0.000000e+00 : f32
    %2015 = vector.broadcast %cst_188 : f32 to vector<1x256xf32>
    %c372 = arith.constant 372 : index
    %2016 = memref.load %arg2[%c372] : memref<384xf32, #tpu.memory_space<smem>>
    %2017 = vector.broadcast %2016 : f32 to vector<1x256xf32>
    %2018 = arith.mulf %2017, %1822 : vector<1x256xf32>
    %2019 = arith.addf %2015, %2018 : vector<1x256xf32>
    %c373 = arith.constant 373 : index
    %2020 = memref.load %arg2[%c373] : memref<384xf32, #tpu.memory_space<smem>>
    %2021 = vector.broadcast %2020 : f32 to vector<1x256xf32>
    %2022 = arith.mulf %2021, %1648 : vector<1x256xf32>
    %2023 = arith.addf %2019, %2022 : vector<1x256xf32>
    %c374 = arith.constant 374 : index
    %2024 = memref.load %arg2[%c374] : memref<384xf32, #tpu.memory_space<smem>>
    %2025 = vector.broadcast %2024 : f32 to vector<1x256xf32>
    %2026 = arith.mulf %2025, %1825 : vector<1x256xf32>
    %2027 = arith.addf %2023, %2026 : vector<1x256xf32>
    %c375 = arith.constant 375 : index
    %2028 = memref.load %arg2[%c375] : memref<384xf32, #tpu.memory_space<smem>>
    %2029 = vector.broadcast %2028 : f32 to vector<1x256xf32>
    %2030 = arith.mulf %2029, %1828 : vector<1x256xf32>
    %2031 = arith.addf %2027, %2030 : vector<1x256xf32>
    %c376 = arith.constant 376 : index
    %2032 = memref.load %arg2[%c376] : memref<384xf32, #tpu.memory_space<smem>>
    %2033 = vector.broadcast %2032 : f32 to vector<1x256xf32>
    %2034 = arith.mulf %2033, %1705 : vector<1x256xf32>
    %2035 = arith.addf %2031, %2034 : vector<1x256xf32>
    %c377 = arith.constant 377 : index
    %2036 = memref.load %arg2[%c377] : memref<384xf32, #tpu.memory_space<smem>>
    %2037 = vector.broadcast %2036 : f32 to vector<1x256xf32>
    %2038 = arith.mulf %2037, %1831 : vector<1x256xf32>
    %2039 = arith.addf %2035, %2038 : vector<1x256xf32>
    %c378 = arith.constant 378 : index
    %2040 = memref.load %arg2[%c378] : memref<384xf32, #tpu.memory_space<smem>>
    %2041 = vector.broadcast %2040 : f32 to vector<1x256xf32>
    %2042 = arith.mulf %2041, %1834 : vector<1x256xf32>
    %2043 = arith.addf %2039, %2042 : vector<1x256xf32>
    %c379 = arith.constant 379 : index
    %2044 = memref.load %arg2[%c379] : memref<384xf32, #tpu.memory_space<smem>>
    %2045 = vector.broadcast %2044 : f32 to vector<1x256xf32>
    %2046 = arith.mulf %2045, %1762 : vector<1x256xf32>
    %2047 = arith.addf %2043, %2046 : vector<1x256xf32>
    %c380 = arith.constant 380 : index
    %2048 = memref.load %arg2[%c380] : memref<384xf32, #tpu.memory_space<smem>>
    %2049 = vector.broadcast %2048 : f32 to vector<1x256xf32>
    %2050 = arith.mulf %2049, %1837 : vector<1x256xf32>
    %2051 = arith.addf %2047, %2050 : vector<1x256xf32>
    %c381 = arith.constant 381 : index
    %2052 = memref.load %arg2[%c381] : memref<384xf32, #tpu.memory_space<smem>>
    %2053 = vector.broadcast %2052 : f32 to vector<1x256xf32>
    %2054 = arith.mulf %2053, %1840 : vector<1x256xf32>
    %2055 = arith.addf %2051, %2054 : vector<1x256xf32>
    %c382 = arith.constant 382 : index
    %2056 = memref.load %arg2[%c382] : memref<384xf32, #tpu.memory_space<smem>>
    %2057 = vector.broadcast %2056 : f32 to vector<1x256xf32>
    %2058 = arith.mulf %2057, %1819 : vector<1x256xf32>
    %2059 = arith.addf %2055, %2058 : vector<1x256xf32>
    %c383 = arith.constant 383 : index
    %2060 = memref.load %arg2[%c383] : memref<384xf32, #tpu.memory_space<smem>>
    %2061 = vector.broadcast %2060 : f32 to vector<1x256xf32>
    %2062 = arith.mulf %2061, %1843 : vector<1x256xf32>
    %2063 = arith.addf %2059, %2062 : vector<1x256xf32>
    %c31_189 = arith.constant 31 : index
    %2064 = memref.load %arg3[%c31_189] : memref<32xf32, #tpu.memory_space<smem>>
    %2065 = vector.broadcast %2064 : f32 to vector<1x256xf32>
    %2066 = arith.addf %2063, %2065 : vector<1x256xf32>
    %cst_190 = arith.constant 0.000000e+00 : f32
    %2067 = vector.broadcast %cst_190 : f32 to vector<1x256xf32>
    %2068 = arith.cmpf oge, %2066, %2067 : vector<1x256xf32>
    %2069 = vector.broadcast %0 : f32 to vector<1x256xf32>
    %2070 = arith.mulf %2069, %2066 : vector<1x256xf32>
    %2071 = arith.select %2068, %2066, %2070 : vector<1x256xi1>, vector<1x256xf32>
    %2072 = arith.addf %24, %1380 : vector<1x256xf32>
    %cst_191 = arith.constant 0.000000e+00 : f32
    %2073 = vector.broadcast %cst_191 : f32 to vector<1x256xf32>
    %2074 = arith.cmpf oge, %2072, %2073 : vector<1x256xf32>
    %2075 = vector.broadcast %0 : f32 to vector<1x256xf32>
    %2076 = arith.mulf %2075, %2072 : vector<1x256xf32>
    %2077 = arith.select %2074, %2072, %2076 : vector<1x256xi1>, vector<1x256xf32>
    %2078 = arith.addf %25, %1437 : vector<1x256xf32>
    %cst_192 = arith.constant 0.000000e+00 : f32
    %2079 = vector.broadcast %cst_192 : f32 to vector<1x256xf32>
    %2080 = arith.cmpf oge, %2078, %2079 : vector<1x256xf32>
    %2081 = vector.broadcast %0 : f32 to vector<1x256xf32>
    %2082 = arith.mulf %2081, %2078 : vector<1x256xf32>
    %2083 = arith.select %2080, %2078, %2082 : vector<1x256xi1>, vector<1x256xf32>
    %2084 = arith.addf %26, %1494 : vector<1x256xf32>
    %cst_193 = arith.constant 0.000000e+00 : f32
    %2085 = vector.broadcast %cst_193 : f32 to vector<1x256xf32>
    %2086 = arith.cmpf oge, %2084, %2085 : vector<1x256xf32>
    %2087 = vector.broadcast %0 : f32 to vector<1x256xf32>
    %2088 = arith.mulf %2087, %2084 : vector<1x256xf32>
    %2089 = arith.select %2086, %2084, %2088 : vector<1x256xi1>, vector<1x256xf32>
    %2090 = arith.addf %27, %1551 : vector<1x256xf32>
    %cst_194 = arith.constant 0.000000e+00 : f32
    %2091 = vector.broadcast %cst_194 : f32 to vector<1x256xf32>
    %2092 = arith.cmpf oge, %2090, %2091 : vector<1x256xf32>
    %2093 = vector.broadcast %0 : f32 to vector<1x256xf32>
    %2094 = arith.mulf %2093, %2090 : vector<1x256xf32>
    %2095 = arith.select %2092, %2090, %2094 : vector<1x256xi1>, vector<1x256xf32>
    %2096 = arith.addf %28, %1900 : vector<1x256xf32>
    %cst_195 = arith.constant 0.000000e+00 : f32
    %2097 = vector.broadcast %cst_195 : f32 to vector<1x256xf32>
    %2098 = arith.cmpf oge, %2096, %2097 : vector<1x256xf32>
    %2099 = vector.broadcast %0 : f32 to vector<1x256xf32>
    %2100 = arith.mulf %2099, %2096 : vector<1x256xf32>
    %2101 = arith.select %2098, %2096, %2100 : vector<1x256xi1>, vector<1x256xf32>
    %2102 = arith.addf %29, %1957 : vector<1x256xf32>
    %cst_196 = arith.constant 0.000000e+00 : f32
    %2103 = vector.broadcast %cst_196 : f32 to vector<1x256xf32>
    %2104 = arith.cmpf oge, %2102, %2103 : vector<1x256xf32>
    %2105 = vector.broadcast %0 : f32 to vector<1x256xf32>
    %2106 = arith.mulf %2105, %2102 : vector<1x256xf32>
    %2107 = arith.select %2104, %2102, %2106 : vector<1x256xi1>, vector<1x256xf32>
    %2108 = arith.addf %30, %2014 : vector<1x256xf32>
    %cst_197 = arith.constant 0.000000e+00 : f32
    %2109 = vector.broadcast %cst_197 : f32 to vector<1x256xf32>
    %2110 = arith.cmpf oge, %2108, %2109 : vector<1x256xf32>
    %2111 = vector.broadcast %0 : f32 to vector<1x256xf32>
    %2112 = arith.mulf %2111, %2108 : vector<1x256xf32>
    %2113 = arith.select %2110, %2108, %2112 : vector<1x256xi1>, vector<1x256xf32>
    %2114 = arith.addf %31, %2071 : vector<1x256xf32>
    %cst_198 = arith.constant 0.000000e+00 : f32
    %2115 = vector.broadcast %cst_198 : f32 to vector<1x256xf32>
    %2116 = arith.cmpf oge, %2114, %2115 : vector<1x256xf32>
    %2117 = vector.broadcast %0 : f32 to vector<1x256xf32>
    %2118 = arith.mulf %2117, %2114 : vector<1x256xf32>
    %2119 = arith.select %2116, %2114, %2118 : vector<1x256xi1>, vector<1x256xf32>
    %2120 = tpu.concatenate %2077, %2089, %2101, %2113, %2083, %2095, %2107, %2119 in 0 : vector<1x256xf32>, vector<1x256xf32>, vector<1x256xf32>, vector<1x256xf32>, vector<1x256xf32>, vector<1x256xf32>, vector<1x256xf32>, vector<1x256xf32> -> vector<8x256xf32>
    %c0_199 = arith.constant 0 : index
    %c0_200 = arith.constant 0 : index
    %c0_201 = arith.constant 0 : index
    %2121 = vector.load %arg5[%c0_199, %c0_200, %c0_201] : memref<1x8x256xf32, #tpu.memory_space<vmem>>, vector<1x8x256xf32>
    %2122 = vector.shape_cast %2121 : vector<1x8x256xf32> to vector<8x256xf32>
    %2123 = vector.shape_cast %2120 : vector<8x256xf32> to vector<1x8x256xf32>
    tpu.vector_store %arg5[%c0_199, %c0_200, %c0_201], %2123 {strides = array<i32>} : memref<1x8x256xf32, #tpu.memory_space<vmem>>, vector<1x8x256xf32>,
    return
  }
  func.func @transform_0(%arg0: i32) -> (i32, i32, i32) {
    %c0_i32 = arith.constant 0 : i32
    %c0_i32_0 = arith.constant 0 : i32
    %c0_i32_1 = arith.constant 0 : i32
    return %arg0, %c0_i32, %c0_i32_0 : i32, i32, i32
  }
  func.func @transform_1(%arg0: i32) -> i32 {
    %c0_i32 = arith.constant 0 : i32
    %c0_i32_0 = arith.constant 0 : i32
    return %c0_i32 : i32
  }
  func.func @transform_2(%arg0: i32) -> i32 {
    %c0_i32 = arith.constant 0 : i32
    %c0_i32_0 = arith.constant 0 : i32
    return %c0_i32 : i32
  }
  func.func @transform_3(%arg0: i32) -> i32 {
    %c0_i32 = arith.constant 0 : i32
    %c0_i32_0 = arith.constant 0 : i32
    return %c0_i32 : i32
  }
  func.func @transform_4(%arg0: i32) -> (i32, i32, i32) {
    %c0_i32 = arith.constant 0 : i32
    %c0_i32_0 = arith.constant 0 : i32
    %c0_i32_1 = arith.constant 0 : i32
    return %arg0, %c0_i32, %c0_i32_0 : i32, i32, i32
  }
}

</mosaic_0001>

<bundles_post_ra>
// kernel: _lambda_.1
= control target key start
LH: loop header
LB: loop body
LE: loop exit
PB: predicated region body
PF: predicated region fallthrough
CT: control target
= control target key end

     0   :  { %s9204_s0 = inlined_call_operand.vmem [shape: f32[2,8,256], index: 0, kind: input, shape index: {}]   ;;  %s9205_s1 = inlined_call_operand.vmem [shape: f32[384], index: 1, kind: input, shape index: {}]   ;;  %s9206_s2 = inlined_call_operand.vmem [shape: f32[32], index: 2, kind: input, shape index: {}]   ;;  %s9207_s3 = inlined_call_operand.<no memory space> [shape: f32[1], index: 3, kind: input, shape index: {}]   ;;  %s9208_s4 = inlined_call_operand.vmem [shape: f32[2,8,256], index: 4, kind: output, shape index: {}]  }
   0x1   :  { %9615 = sst [smem:[#allocation88_spill]] %s9204_s0 }
   0x2   :  { %9616 = sst [smem:[#allocation89_spill]] %s9205_s1 }
   0x3   :  { %9617 = sst [smem:[#allocation90_spill]] %s9206_s2 }
   0x4   :  { %9618 = sst [smem:[#allocation91_spill]] %s9208_s4 }
   0x5   :  { %9 = sst [smem:[#allocation2]] %s9207_s3 }
   0x6   :  { %10 = vsyncpa [#allocation4], 0 }
   0x7   :  { %11 = vsyncpa [#allocation6], 0  ;;  %s4553_s17 = smov 0  }
   0x8 LB: > { %9619 = sst [smem:[#allocation9_spill]] %s4517_s17  ;;  %s4559_s18 = sadd.s32 4294967295, %s4517_s17   ;;  %s4517_s17 = sphi %s4553_s17, %s17_s17  }
   0x9   : > { %p4007_p0 = scmp.ge.s32.totalorder %s4517_s17, 1  ;;  %p137_p1 = scmp.lt.s32.totalorder %s4517_s17, 3 }
   0xa   : > { %s9620_s1 = sld [smem:[#allocation89_spill]]  ;;  %p9209_p3 = scmp.eq.s32.totalorder %s4559_s18, 0 }
   0xb   : > { %p4566_p2 = pnand %p4007_p0, %p137_p1  ;;  %s9622_s2 = sld [smem:[#allocation90_spill]] }
   0xd   : > { %s9621_s21 = scalar_select %p4566_p2, 1, 0 }
   0xe   : > { %p4444_p4 = pneg %p4566_p2 }
  0x10   : > { %s150_s20 = sshll.u32 %s9620_s1, 4  ;;  %p4578_p5 = pnand %p9209_p3, %p4444_p4  ;;  %s151_s20 = int_to_ptr.vmem [resolvable:$true] %s150_s20 }
  0x11   : > { %s161_s24 = sshll.u32 %s9622_s2, 4  ;;  %s4473_s26 = scalar_lea.vmem %s151_s20, 48  ;;  %s162_s24 = int_to_ptr.vmem [resolvable:$true] %s161_s24 }
  0x12   : > { %p4474_p6 = scmp.ne.s32.totalorder %s151_s20, %s4473_s26  ;;  %p4475_p7 = pneg %p4578_p5 }
  0x13   : > { %s4480_s27 = scalar_lea.vmem %s151_s20, 64  ;;  %p4481_p10 = scmp.lt.s32.totalorder %s151_s20, %s151_s20 }
  0x14   : > { %p4476_p8 = pnand %p4475_p7, %p4474_p6  ;;  %p4482_p11 = scmp.lt.s32.totalorder %s4480_s27, %s4473_s26 }
  0x16   : > { %p4477_p9 = pneg %p4476_p8  ;;  %p4483_p12 = por %p4482_p11, %p4481_p10 }
  0x18   : > { %p4484_p13 = pnand %p4483_p12, %p4477_p9 }
  0x1a   : > { %4487 = shalt.err (!%p4484_p13)
}
  0x1b   : > { %s4519_s28 = smov [#allocation3]   ;;  %s4488_s29 = scalar_lea.vmem %s162_s24, 16 }
  0x1c   : > { %4447 = dma.vmem_to_smem (!%p4578_p5), %s151_s20, 48, %s4519_s28, [#allocation4]  }
  0x1d   : > { %p4489_p0 = scmp.ne.s32.totalorder %s162_s24, %s4488_s29  ;;  %p4496_p3 = scmp.lt.s32.totalorder %s162_s24, %s162_s24 }
  0x1e   : > { %p4497_p6 = scmp.lt.s32.totalorder %s4488_s29, %s4488_s29 }
  0x1f   : > { %p4491_p1 = pnand %p4489_p0, %p4475_p7 }
  0x20   : > { %p4498_p8 = por %p4497_p6, %p4496_p3 }
  0x21   : > { %p4492_p4 = pneg %p4491_p1 }
  0x23   : > { %p4499_p2 = pnand %p4498_p8, %p4492_p4 }
  0x25   : > { %4502 = shalt.err (!%p4499_p2)
}
  0x26   : > { %s4520_s30 = smov [#allocation5]   ;;  %p9624_p9 = scmp.ne.s32.totalorder %s9621_s21, 0 }
  0x27   : > { %4450 = dma.vmem_to_smem (!%p4578_p5), %s162_s24, 16, %s4520_s30, [#allocation6]  }
  0x28   : > { %185 = sbr.rel (%p9624_p9) target bundleno = 946 (0x3b2), region = 36 }
  0x2f   : > { %p9625_p10 = scmp.eq.s32.totalorder %s4559_s18, 0 }
  0x31   : > { %4508 = dma.done.wait (%p9625_p10), [#allocation4], 48   ;;  %p9626_p11 = pmov %p9625_p10 }
  0x32   : > { %p9627_p7 = pmov %p9625_p10 }
  0x33   : > { %4510 = vsyncadd (%p9626_p11), [#allocation4], 4294967248 }
  0x34   : > { %4512 = dma.done.wait (%p9627_p7), [#allocation6], 16   ;;  %p9628_p3 = pmov %p9627_p7 }
  0x36   : > { %4514 = vsyncadd (%p9628_p3), [#allocation6], 4294967280 }
  0x37   : > { %195 = sfence }
  0x38   : > { %p216_p2 = scmp.lt.s32.totalorder %s4559_s18, 1  ;;  %s9630_s0 = sld [smem:[#allocation88_spill]]  ;;  %v227_v16 = vlaneseq  ;;  %vm775_vm0 = vcmask 1039360   ;;  %vm266_vm1 = vcmask 130048   ;;  %vm764_vm3 = vcmask 7168  }
  0x39   : > { %s9216_s9 = smov 127   ;;  %s9214_s10 = smov 16   ;;  %vm275_vm6 = vcmask 916480  }
  0x3a   : > { %s10817_s18 = smov (!%p216_p2, %s4559_s18), 1  ;;  %s9218_s11 = smov 1   ;;  %v4666_v17 = vand.u32 127, %v227_v16 }
  0x3b   : > { %9629 = sst [smem:[#allocation10_spill]] %s10817_s18  ;;  %s9211_s5 = sshll.u32 %s10817_s18, 4 }
  0x3c   : > { %s9212_s12 = smov 112   ;;  %s4662_s13 = sld [smem:[#allocation3]]  ;;  %v4685_v18 = vadd.s32 128, %v4666_v17 }
  0x3d   : > { %s4664_s14 = sld [smem:[#allocation3 + $0x1]]  ;;  %s4668_s15 = sld [smem:[#allocation3 + $0xd]] }
  0x3e   : > { %s4614_s8 = scalar_lea.vmem %s9630_s0, %s9211_s5  ;;  %s4670_s16 = sld [smem:[#allocation3 + $0x61]]  ;;  %v9290_v20 = vand.u32 15, %v4685_v18 }
  0x3f   : > { %9631 = sst [smem:[#allocation11_spill]] %s4614_s8  ;;  %v4617_v0 = vld [vmem:[%s4614_s8 + $0x8] sm:$0xff]  ;;  %v4620_v1 = vld [vmem:[%s4614_s8] sm:$0xff]  ;;  %s4672_s19 = sld [smem:[#allocation3 + $0xc]] }
  0x40   : > { %1191 = vrot.lane.b32.xlu1 %v4617_v0, %s9216_s9  ;;  %262 = vrot.lane.b32.xlu0 %v4620_v1, %s9214_s10  ;;  %v1177_v2 = vrot.slane %v4620_v1, 4  ;;  %v1178_v3 = vrot.slane %v4617_v0, 4  ;;  %v281_v4 = vrot.slane %v4617_v0, 1  ;;  %v280_v5 = vrot.slane %v4620_v1, 1  ;;  %s4674_s3 = sld [smem:[#allocation3 + $0x19]]  ;;  %s4676_s20 = sld [smem:[#allocation3 + $0x25]] }
  0x41   : > { %v1200_v6 = vrot.slane %v4617_v0, 5  ;;  %v1199_v7 = vrot.slane %v4620_v1, 5  ;;  %v291_v8 = vrot.slane %v4617_v0, 2  ;;  %v290_v9 = vrot.slane %v4620_v1, 2  ;;  %s4678_s21 = sld [smem:[#allocation3 + $0x6d]]  ;;  %s4680_s22 = sld [smem:[#allocation3 + $0x18]] }
  0x42   : > { %v1212_v10 = vrot.slane %v4617_v0, 6  ;;  %v1211_v11 = vrot.slane %v4620_v1, 6  ;;  %v301_v12 = vrot.slane %v4617_v0, 3  ;;  %v300_v13 = vrot.slane %v4620_v1, 3  ;;  %s4682_s23 = sld [smem:[#allocation3 + $0x79]]  ;;  %s4687_s24 = sld [smem:[#allocation3 + $0x24]] }
  0x43   : > { %v1224_v14 = vrot.slane %v4617_v0, 7  ;;  %v1223_v15 = vrot.slane %v4620_v1, 7  ;;  %s4689_s25 = sld [smem:[#allocation3 + $0x85]]  ;;  %s4691_s26 = sld [smem:[#allocation3 + $0x60]]  ;;  %v317_v19 = vstv %s4664_s14  ;;  %v429_v21 = vstv %s4668_s15 }
  0x44   : > { %264 = vrot.lane.b32.xlu0 %v4617_v0, %s9214_s10  ;;  %1179 = vrot.lane.b32.xlu1 %v1177_v2, %s9218_s11  ;;  %s4693_s27 = sld [smem:[#allocation3 + $0x62]]  ;;  %s4696_s28 = sld [smem:[#allocation3 + $0x6c]]  ;;  %v1242_v23 = vstv %s4670_s16  ;;  %v4710_v25 = vmul.f32 %v317_v19, %v4617_v0  ;;  %v4719_v28 = vmul.f32 %v429_v21, %v4617_v0  ;;  %v4723_v30 = vmul.f32 %v317_v19, %v4620_v1 }
  0x45   : > { %s4698_s29 = sld [smem:[#allocation3 + $0x6e]]  ;;  %s4704_s30 = sld [smem:[#allocation3 + $0x78]]  ;;  %v4732_v33 = vmul.f32 %v429_v21, %v4620_v1  ;;  %v4735_v34 = vmul.f32 %v1242_v23, %v4620_v1  ;;  %v4750_v39 = vmul.f32 %v1242_v23, %v4617_v0  ;;  %vm5108_vm2 = vcmp.le.s32.totalorder %v9290_v20, 14 }
  0x46   : > { %s4706_s6 = sld [smem:[#allocation3 + $0x4]]  ;;  %v541_v27 = vstv %s4674_s3  ;;  %s4714_s7 = sld [smem:[#allocation3 + $0x7a]]  ;;  %v653_v29 = vstv %s4676_s20 }
  0x47   : > { %s4716_s14 = sld [smem:[#allocation3 + $0x84]]  ;;  %v1366_v31 = vstv %s4678_s21  ;;  %s4726_s15 = sld [smem:[#allocation3 + $0x86]]  ;;  %v4743_v36 = vmul.f32 %v541_v27, %v4617_v0  ;;  %v4747_v38 = vmul.f32 %v541_v27, %v4620_v1  ;;  %v4757_v40 = vmul.f32 %v653_v29, %v4617_v0 }
  0x48   : > { %1189 = vrot.lane.b32.xlu0 %v4620_v1, %s9216_s9  ;;  %1181 = vrot.lane.b32.xlu1 %v1178_v3, %s9218_s11  ;;  %s4728_s16 = sld [smem:[#allocation3 + $0x10]]  ;;  %v1490_v35 = vstv %s4682_s23  ;;  %s4738_s3 = sld [smem:[#allocation3 + $0x2]]  ;;  %v4760_v41 = vmul.f32 %v653_v29, %v4620_v1  ;;  %v4763_v42 = vmul.f32 %v1366_v31, %v4620_v1  ;;  %v4773_v46 = vmul.f32 %v1366_v31, %v4617_v0 }
  0x49   : > { %9632 = sst [smem:[#allocation12_spill]] %s4691_s26  ;;  %s4740_s20 = sld [smem:[#allocation3 + $0x1c]]  ;;  %v1614_v43 = vstv %s4689_s25  ;;  %v4776_v47 = vmul.f32 %v1490_v35, %v4620_v1  ;;  %v4786_v51 = vmul.f32 %v1490_v35, %v4617_v0 }
  0x4a   : > { %9633 = sst [smem:[#allocation13_spill]] %s4696_s28  ;;  %s4752_s21 = sld [smem:[#allocation3 + $0x3]]  ;;  %v4795_v54 = vmul.f32 %v1614_v43, %v4620_v1  ;;  %v4806_v59 = vmul.f32 %v1614_v43, %v4617_v0 }
  0x4b   : > { %9634 = sst [smem:[#allocation14_spill]] %s4704_s30  ;;  %s4754_s23 = sld [smem:[#allocation3 + $0xe]] }
  0x4c   : > { %271 = vrot.lane.b32.xlu0 %v4620_v1, %s9212_s12  ;;  %273 = vrot.lane.b32.xlu1 %v4617_v0, %s9212_s12  ;;  %s4766_s5 = sld [smem:[#allocation3 + $0xf]]  ;;  %s4768_s12 = sld [smem:[#allocation3 + $0x28]]  ;;  %v335_v55 = vstv %s4706_s6 }
  0x4d   : > { %9635 = sst [smem:[#allocation15_spill]] %s4716_s14  ;;  %s4780_s9 = sld [smem:[#allocation3 + $0x64]]  ;;  %v4816_v3 = vmul.f32 %v335_v55, %v4620_v1 }
  0x4e   : > { %9636 = sst [smem:[#allocation16_spill]] %s4738_s3  ;;  %s4788_s25 = sld [smem:[#allocation3 + $0x1b]]  ;;  %v447_v63 = vstv %s4728_s16 }
  0x4f   : > { %s4798_s0 = sld [smem:[#allocation3 + $0x70]]  ;;  %s4800_s1 = sld [smem:[#allocation3 + $0x7c]] }
  0x50   : > { %284 = vrot.lane.b32.xlu1 %v281_v4, %s9214_s10  ;;  %282 = vrot.lane.b32.xlu0 %v280_v5, %s9214_s10  ;;  %9637 = sst [smem:[#allocation17_spill]] %s4752_s21  ;;  %s4812_s6 = sld [smem:[#allocation3 + $0x27]]  ;;  %v4819_v4 = vmul.f32 %v335_v55, %v4617_v0  ;;  %v559_v5 = vstv %s4740_s20 }
  0x51   : > { %9638 = sst [smem:[#allocation18_spill]] %s4754_s23  ;;  %s4822_s2 = sld [smem:[#allocation3 + $0x88]]  ;;  %v4849_v16 = vmul.f32 %v559_v5, %v4617_v0 }
  0x52   : > { %9639 = sst [smem:[#allocation19_spill]] %s4766_s5  ;;  %s4828_s16 = sld [smem:[#allocation3 + $0x63]] }
  0x53   : > { %s4830_s17 = sld [smem:[#allocation3 + $0x6f]]  ;;  %s4840_s20 = sld [smem:[#allocation3 + $0x7b]]  ;;  %v1272_v19 = vstv %s4780_s9 }
  0x54   : > { %1203 = vrot.lane.b32.xlu1 %v1200_v6, %s9218_s11  ;;  %1201 = vrot.lane.b32.xlu0 %v1199_v7, %s9218_s11  ;;  %9641 = sst [smem:[#allocation21_spill]] %s4788_s25  ;;  %s4842_s4 = sld [smem:[#allocation3 + $0x7]]  ;;  %v4876_v21 = vmul.f32 %v1272_v19, %v4620_v1 }
  0x55   : > { %s4852_s18 = sld [smem:[#allocation3 + $0x13]]  ;;  %v1396_v43 = vstv %s4798_s0  ;;  %v1520_v55 = vstv %s4800_s1  ;;  %s4866_s8 = sld [smem:[#allocation3 + $0x5]] }
  0x56   : > { %9643 = sst [smem:[#allocation23_spill]] %s4812_s6  ;;  %s4868_s9 = sld [smem:[#allocation3 + $0x1f]]  ;;  %v4899_v29 = vmul.f32 %v1520_v55, %v4620_v1  ;;  %v4910_v27 = vmul.f32 %v1520_v55, %v4617_v0 }
  0x57   : > { %s4878_s25 = sld [smem:[#allocation3 + $0x6]]  ;;  %s4880_s0 = sld [smem:[#allocation3 + $0x11]] }
  0x58   : > { %294 = vrot.lane.b32.xlu1 %v291_v8, %s9214_s10  ;;  %292 = vrot.lane.b32.xlu0 %v290_v9, %s9214_s10  ;;  %9644 = sst [smem:[#allocation24_spill]] %s4828_s16  ;;  %s4888_s1 = sld [smem:[#allocation3 + $0x12]] }
  0x59   : > { %9645 = sst [smem:[#allocation25_spill]] %s4830_s17  ;;  %s4890_s5 = sld [smem:[#allocation3 + $0x1d]] }
  0x5a   : > { %9646 = sst [smem:[#allocation26_spill]] %s4840_s20  ;;  %s4902_s6 = sld [smem:[#allocation3 + $0x1e]]  ;;  %v365_v9 = vstv %s4842_s4 }
  0x5b   : > { %9648 = sst [smem:[#allocation28_spill]] %s4866_s8  ;;  %s4932_s17 = sld [smem:[#allocation3 + $0x2a]]  ;;  %v4944_v56 = vmul.f32 %v365_v9, %v4620_v1  ;;  %v4947_v48 = vmul.f32 %v365_v9, %v4617_v0 }
  0x5c   : > { %1215 = vrot.lane.b32.xlu1 %v1212_v10, %s9218_s11  ;;  %1213 = vrot.lane.b32.xlu0 %v1211_v11, %s9218_s11  ;;  %v4834_v11 = vmul.f32 %v447_v63, %v4620_v1  ;;  %s4904_s21 = sld [smem:[#allocation3 + $0x2b]]  ;;  %s4934_s20 = sld [smem:[#allocation3 + $0x7f]]  ;;  %v589_v7 = vstv %s4868_s9 }
  0x5d   : > { %9649 = sst [smem:[#allocation29_spill]] %s4878_s25  ;;  %s4922_s23 = sld [smem:[#allocation3 + $0x73]]  ;;  %9660 = vst [vmem:[#allocation40_spill] sm:$0xff] %v4947_v48  ;;  %v4977_v8 = vmul.f32 %v589_v7, %v4620_v1  ;;  %v4987_v2 = vmul.f32 %v589_v7, %v4617_v0 }
  0x5e   : > { %9650 = sst [smem:[#allocation30_spill]] %s4880_s0  ;;  %s4940_s4 = sld [smem:[#allocation3 + $0x71]] }
  0x5f   : > { %9651 = sst [smem:[#allocation31_spill]] %s4888_s1  ;;  %s4952_s16 = sld [smem:[#allocation3 + $0x8b]]  ;;  %9668 = vst [vmem:[#allocation48_spill] sm:$0xff] %v4977_v8  ;;  %9671 = vst [vmem:[#allocation51_spill] sm:$0xff] %v4987_v2  ;;  %v9715_v2 = vand.u32 15, %v4666_v17 }
  0x60   : > { %304 = vrot.lane.b32.xlu1 %v301_v12, %s9214_s10  ;;  %302 = vrot.lane.b32.xlu0 %v300_v13, %s9214_s10  ;;  %s4778_s10 = sld [smem:[#allocation3 + $0x1a]]  ;;  %v4837_v12 = vmul.f32 %v447_v63, %v4617_v0  ;;  %v671_v13 = vstv %s4768_s12  ;;  %s4858_s12 = sld [smem:[#allocation3 + $0x87]]  ;;  %v4886_v63 = vmul.f32 %v1272_v19, %v4617_v0 }
  0x61   : > { %v4862_v35 = vmul.f32 %v671_v13, %v4620_v1  ;;  %v4873_v23 = vmul.f32 %v671_v13, %v4617_v0  ;;  %9652 = sst [smem:[#allocation32_spill]] %s4890_s5  ;;  %v4893_v13 = vmul.f32 %v1396_v43, %v4620_v1  ;;  %s4964_s3 = sld [smem:[#allocation3 + $0x68]]  ;;  %vm5233_vm7 = vcmp.le.s32.totalorder %v9715_v2, 14 }
  0x62   : > { %9653 = sst [smem:[#allocation33_spill]] %s4902_s6  ;;  %s4970_s9 = sld [smem:[#allocation3 + $0x66]]  ;;  %v701_v60 = vstv %s4904_s21  ;;  %v1550_v53 = vstv %s4934_s20 }
  0x63   : > { %9658 = sst [smem:[#allocation38_spill]] %s4932_s17  ;;  %s4972_s25 = sld [smem:[#allocation3 + $0x72]]  ;;  %v1426_v58 = vstv %s4922_s23  ;;  %v5004_v9 = vmul.f32 %v701_v60, %v4620_v1  ;;  %v5007_v19 = vmul.f32 %v701_v60, %v4617_v0  ;;  %v5041_v60 = vmul.f32 %v1550_v53, %v4620_v1 }
  0x64   : > { %1227 = vrot.lane.b32.xlu1 %v1224_v14, %s9218_s11  ;;  %1225 = vrot.lane.b32.xlu0 %v1223_v15, %s9218_s11  ;;  %s4790_s11 = sld [smem:[#allocation3 + $0x26]]  ;;  %v4846_v15 = vmul.f32 %v559_v5, %v4620_v1  ;;  %v4896_v5 = vmul.f32 %v1396_v43, %v4617_v0  ;;  %v1644_v14 = vstv %s4822_s2  ;;  %s4920_s2 = sld [smem:[#allocation3 + $0x65]]  ;;  %v477_v43 = vstv %s4852_s18 }
  0x65   : > { %v4926_v55 = vmul.f32 %v1644_v14, %v4620_v1  ;;  %v4929_v31 = vmul.f32 %v1644_v14, %v4617_v0  ;;  %9659 = sst [smem:[#allocation39_spill]] %s4940_s4  ;;  %s4950_s18 = sld [smem:[#allocation3 + $0x7d]]  ;;  %v4957_v6 = vmul.f32 %v477_v43, %v4620_v1  ;;  %v4960_v14 = vmul.f32 %v477_v43, %v4617_v0  ;;  %9674 = vst [vmem:[#allocation54_spill] sm:$0xff] %v5004_v9 }
  0x66   : > { %9640 = sst [smem:[#allocation20_spill]] %s4778_s10  ;;  %s4914_s10 = sld [smem:[#allocation3 + $0x67]]  ;;  %9675 = vst [vmem:[#allocation55_spill] sm:$0xff] %v5007_v19  ;;  %v5029_v44 = vmul.f32 %v1426_v58, %v4620_v1  ;;  %v1674_v61 = vstv %s4952_s16  ;;  %v5037_v7 = vmul.f32 %v1426_v58, %v4617_v0  ;;  %9682 = vst [vmem:[#allocation62_spill] sm:$0xff] %v5041_v60  ;;  %v5051_v50 = vmul.f32 %v1550_v53, %v4617_v0 }
  0x67   : > { %9647 = sst [smem:[#allocation27_spill]] %s4858_s12  ;;  %9656 = vst [vmem:[#allocation36_spill] sm:$0xff] %v4926_v55  ;;  %9657 = vst [vmem:[#allocation37_spill] sm:$0xff] %v4929_v31  ;;  %s4962_s12 = sld [smem:[#allocation3 + $0x89]]  ;;  %v5062_v37 = vmul.f32 %v1674_v61, %v4620_v1  ;;  %v5072_v43 = vmul.f32 %v1674_v61, %v4617_v0  ;;  %v9689_v58 = vmov 0  ;;  %v9701_v31 = vand.u32 15, %v4685_v18 }
  0x68   : > { %9662 = vst [vmem:[#allocation42_spill] sm:$0xff] %v4957_v6  ;;  %9663 = vst [vmem:[#allocation43_spill] sm:$0xff] %v4960_v14  ;;  %9665 = sst [smem:[#allocation45_spill]] %s4964_s3  ;;  %s4980_s8 = sld [smem:[#allocation3 + $0x7e]]  ;;  %v9690_v58 = vsel %vm5108_vm2, 4294967295, %v9689_v58 }
  0x69   : > { %9666 = sst [smem:[#allocation46_spill]] %s4970_s9  ;;  %s4982_s14 = sld [smem:[#allocation3 + $0x8a]]  ;;  %9679 = vst [vmem:[#allocation59_spill] sm:$0xff] %v5029_v44  ;;  %9681 = vst [vmem:[#allocation61_spill] sm:$0xff] %v5037_v7  ;;  %vm5174_vm4 = vcmp.ge.s32.totalorder %v9701_v31, 1 }
  0x6a   : > { %9642 = sst [smem:[#allocation22_spill]] %s4790_s11  ;;  %s4912_s11 = sld [smem:[#allocation3 + $0x29]]  ;;  %9685 = vst [vmem:[#allocation65_spill] sm:$0xff] %v5051_v50  ;;  %9687 = vst [vmem:[#allocation67_spill] sm:$0xff] %v5062_v37 }
  0x6b   : > { %9655 = sst [smem:[#allocation35_spill]] %s4920_s2  ;;  %s4990_s6 = sld [smem:[#allocation3 + $0x8]]  ;;  %9688 = vst [vmem:[#allocation68_spill] sm:$0xff] %v5072_v43  ;;  %9691 = vst [vmem:[#allocation69_spill] sm:$0xff] %v9690_v58 }
  0x6c   : > { %9661 = sst [smem:[#allocation41_spill]] %s4950_s18  ;;  %v1302_v10 = vstv %s4914_s10  ;;  %s4992_s1 = sld [smem:[#allocation3 + $0xb]] }
  0x6d   : > { %9664 = sst [smem:[#allocation44_spill]] %s4962_s12  ;;  %s4998_s21 = sld [smem:[#allocation3 + $0xa]]  ;;  %v5017_v52 = vmul.f32 %v1302_v10, %v4620_v1  ;;  %v5026_v49 = vmul.f32 %v1302_v10, %v4617_v0 }
  0x6e   : > { %9667 = sst [smem:[#allocation47_spill]] %s4972_s25  ;;  %s5000_s5 = sld [smem:[#allocation3 + $0x14]] }
  0x6f   : > { %9669 = sst [smem:[#allocation49_spill]] %s4980_s8  ;;  %s5010_s10 = sld [smem:[#allocation3 + $0x16]]  ;;  %9677 = vst [vmem:[#allocation57_spill] sm:$0xff] %v5017_v52  ;;  %9678 = vst [vmem:[#allocation58_spill] sm:$0xff] %v5026_v49  ;;  %v9714_v49 = vstv %s4680_s22 }
  0x70   : > { %9654 = sst [smem:[#allocation34_spill]] %s4912_s11  ;;  %s5012_s0 = sld [smem:[#allocation3 + $0x17]] }
  0x71   : > { %9670 = sst [smem:[#allocation50_spill]] %s4982_s14  ;;  %s5020_s23 = sld [smem:[#allocation3 + $0x20]] }
  0x72   : > { %9672 = sst [smem:[#allocation52_spill]] %s4992_s1  ;;  %s5022_s17 = sld [smem:[#allocation3 + $0x22]] }
  0x73   : > { %s5032_s20 = sld [smem:[#allocation3 + $0x23]]  ;;  %s5034_s11 = sld [smem:[#allocation3 + $0x2e]]  ;;  %v395_v53 = vstv %s4998_s21 }
  0x74   : > { %9673 = sst [smem:[#allocation53_spill]] %s5000_s5  ;;  %s5044_s4 = sld [smem:[#allocation3 + $0x2c]]  ;;  %v5114_v10 = vmul.f32 %v395_v53, %v4620_v1  ;;  %v5117_v24 = vmul.f32 %v395_v53, %v4617_v0 }
  0x75   : > { %s5046_s2 = sld [smem:[#allocation3 + $0x2f]]  ;;  %s5053_s16 = sld [smem:[#allocation3 + $0x9]]  ;;  %v507_v32 = vstv %s5010_s10 }
  0x76   : > { %9676 = sst [smem:[#allocation56_spill]] %s5012_s0  ;;  %s5055_s30 = sld [smem:[#allocation5]]  ;;  %9692 = vst [vmem:[#allocation70_spill] sm:$0xff] %v5114_v10  ;;  %9693 = vst [vmem:[#allocation71_spill] sm:$0xff] %v5117_v24  ;;  %v5125_v22 = vmul.f32 %v507_v32, %v4620_v1  ;;  %v5128_v20 = vmul.f32 %v507_v32, %v4617_v0  ;;  %v9713_v24 = vstv %s4672_s19 }
  0x77   : > { %s5064_s12 = sld [smem:[#allocation3 + $0x15]]  ;;  %s5066_s18 = sld [smem:[#allocation5 + $0x1]] }
  0x78   : > { %s5074_s3 = sld [smem:[#allocation3 + $0x21]]  ;;  %s5076_s25 = sld [smem:[#allocation5 + $0x2]]  ;;  %v619_v61 = vstv %s5022_s17  ;;  %9694 = vst [vmem:[#allocation72_spill] sm:$0xff] %v5125_v22  ;;  %9695 = vst [vmem:[#allocation73_spill] sm:$0xff] %v5128_v20  ;;  %v9704_v22 = vand.u32 15, %v4666_v17 }
  0x79   : > { %9680 = sst [smem:[#allocation60_spill]] %s5032_s20  ;;  %s5082_s9 = sld [smem:[#allocation3 + $0x2d]]  ;;  %v731_v26 = vstv %s5034_s11  ;;  %v5138_v43 = vmul.f32 %v619_v61, %v4620_v1  ;;  %v5148_v57 = vmul.f32 %v619_v61, %v4617_v0 }
  0x7a   : > { %9683 = sst [smem:[#allocation63_spill]] %s5044_s4  ;;  %s5084_s8 = sld [smem:[#allocation3 + $0x6a]]  ;;  %v5151_v37 = vmul.f32 %v731_v26, %v4620_v1  ;;  %v5154_v53 = vmul.f32 %v731_v26, %v4617_v0  ;;  %vm5190_vm5 = vcmp.ge.s32.totalorder %v9704_v22, 1 }
  0x7b   : > { %9684 = sst [smem:[#allocation64_spill]] %s5046_s2  ;;  %s5090_s28 = sld [smem:[#allocation5 + $0x3]]  ;;  %9696 = vst [vmem:[#allocation74_spill] sm:$0xff] %v5138_v43  ;;  %9697 = vst [vmem:[#allocation75_spill] sm:$0xff] %v5148_v57  ;;  %v9712_v43 = vstv %s4662_s13 }
  0x7c   : > { %9686 = sst [smem:[#allocation66_spill]] %s5055_s30  ;;  %s5092_s26 = sld [smem:[#allocation3 + $0x6b]]  ;;  %9698 = vst [vmem:[#allocation76_spill] sm:$0xff] %v5151_v37  ;;  %9699 = vst [vmem:[#allocation77_spill] sm:$0xff] %v5154_v53 }
  0x7d   : > { %s5102_s21 = sld [smem:[#allocation3 + $0x74]]  ;;  %s5104_s10 = sld [smem:[#allocation3 + $0x77]] }
  0x7e   : > { %s5120_s17 = sld [smem:[#allocation3 + $0x76]]  ;;  %s5122_s14 = sld [smem:[#allocation3 + $0x80]] }
  0x7f   : > { %s5132_s0 = sld [smem:[#allocation3 + $0x83]]  ;;  %s5134_s1 = sld [smem:[#allocation3 + $0x8c]] }
  0x80   : > { %s5142_s11 = sld [smem:[#allocation3 + $0x69]]  ;;  %s5144_s5 = sld [smem:[#allocation5 + $0x8]]  ;;  %v1332_v44 = vstv %s5084_s8 }
  0x81   : > { %s5156_s20 = sld [smem:[#allocation3 + $0x75]]  ;;  %s5162_s2 = sld [smem:[#allocation5 + $0x9]]  ;;  %v5195_v7 = vmul.f32 %v1332_v44, %v4620_v1  ;;  %v5198_v55 = vmul.f32 %v1332_v44, %v4617_v0 }
  0x82   : > { %s5164_s4 = sld [smem:[#allocation3 + $0x82]]  ;;  %s5170_s30 = sld [smem:[#allocation3 + $0x81]] }
  0x83   : > { %9707 = vst [vmem:[#allocation79_spill] sm:$0xff] %v5195_v7  ;;  %9708 = vst [vmem:[#allocation80_spill] sm:$0xff] %v5198_v55  ;;  %v9719_v7 = vstv %s4687_s24  ;;  %v9720_v55 = vstv %s4693_s27  ;;  %s9727_s8 = sld [smem:[#allocation12_spill]] }
  0x84   : > { %v1456_v52 = vstv %s5120_s17  ;;  %s9730_s17 = sld [smem:[#allocation14_spill]] }
  0x85   : > { %v5216_v31 = vmul.f32 %v1456_v52, %v4620_v1  ;;  %v5219_v53 = vmul.f32 %v1456_v52, %v4617_v0  ;;  %v9716_v52 = vmov 0 }
  0x86   : > { %v9717_v52 = vsel %vm5233_vm7, 4294967295, %v9716_v52 }
  0x87   : > { %9700 = sst [smem:[#allocation78_spill]] %s5162_s2  ;;  %9710 = vst [vmem:[#allocation82_spill] sm:$0xff] %v5216_v31  ;;  %9711 = vst [vmem:[#allocation83_spill] sm:$0xff] %v5219_v53  ;;  %v9729_v53 = vstv %s4672_s19  ;;  %s9731_s2 = sld [smem:[#allocation15_spill]] }
  0x88   : > { %9718 = vst [vmem:[#allocation84_spill] sm:$0xff] %v9717_v52  ;;  %s9741_s19 = sld [smem:[#allocation35_spill]] }
  0xb2   : > { %v5094_v45 = vpop.permute.xlu1 %1191  ;;  %v5096_v62 = vpop.permute.xlu0 %262 }
  0xb3   : > { %v1196_v20 = vsel %vm775_vm0, %v5094_v45, 0.0  ;;  %v270_v22 = vsel %vm266_vm1, 0.0, %v5096_v62 }
  0xb4   : > { %v5212_v44 = vsel %vm5108_vm2, %v1196_v20, 0.0  ;;  %v1580_v20 = vstv %s5164_s4  ;;  %v312_v19 = vmul.f32 %v9712_v43, %v270_v22  ;;  %v424_v10 = vmul.f32 %v9713_v24, %v270_v22  ;;  %s9728_s4 = sld [smem:[#allocation13_spill]] }
  0xb5   : > { %9709 = vst [vmem:[#allocation81_spill] sm:$0xff] %v5212_v44  ;;  %v536_v9 = vmul.f32 %v9714_v49, %v270_v22  ;;  %v648_v37 = vmul.f32 %v9719_v7, %v270_v22  ;;  %v1256_v43 = vmul.f32 %v9720_v55, %v5212_v44  ;;  %v9721_v49 = vstv %s4698_s29 }
  0xb6   : > { %v265_v61 = vpop.permute.xlu0 %264  ;;  %v1180_v26 = vpop.permute.xlu1 %1179  ;;  %v1380_v8 = vmul.f32 %v9721_v49, %v5212_v44  ;;  %v5252_v57 = vmul.f32 %v1580_v20, %v4620_v1  ;;  %v9723_v7 = vstv %s4714_s7  ;;  %v9724_v55 = vstv %s4726_s15 }
  0xb7   : > { %v267_v58 = vsel %vm266_vm1, %v5096_v62, %v265_v61  ;;  %v1186_v62 = vsel %vm764_vm3, 0.0, %v1180_v26  ;;  %v1504_v61 = vmul.f32 %v9723_v7, %v5212_v44  ;;  %v5262_v22 = vmul.f32 %v1580_v20, %v4617_v0 }
  0xb8   : > { %9722 = vst [vmem:[#allocation85_spill] sm:$0xff] %v5252_v57  ;;  %v9726_v49 = vstv %s4662_s13  ;;  %v320_v2 = vadd.f32 %v4723_v30, %v312_v19  ;;  %v432_v1 = vadd.f32 %v4732_v33, %v424_v10  ;;  %v425_v7 = vmul.f32 %v9729_v53, %v267_v58  ;;  %s9739_s13 = sld [smem:[#allocation16_spill]] }
  0xb9   : > { %9725 = vst [vmem:[#allocation86_spill] sm:$0xff] %v5262_v22  ;;  %v313_v17 = vmul.f32 %v9726_v49, %v267_v58  ;;  %v5274_v0 = vadd.f32 %v4760_v41, %v648_v37  ;;  %v1260_v20 = vrot.slane %v1256_v43, 4  ;;  %v9732_v19 = vstv %s4680_s22  ;;  %s9744_s22 = sld [smem:[#allocation18_spill]] }
  0xba   : > { %v1190_v18 = vpop.permute.xlu0 %1189  ;;  %v1182_v60 = vpop.permute.xlu1 %1181  ;;  %v537_v49 = vmul.f32 %v9732_v19, %v267_v58  ;;  %v9733_v33 = vstv %s4687_s24  ;;  %v1384_v53 = vrot.slane %v1380_v8, 4  ;;  %v1508_v22 = vrot.slane %v1504_v61, 4  ;;  %s9747_s24 = sld [smem:[#allocation20_spill]] }
  0xbb   : > { %v1183_v24 = vsel %vm764_vm3, %v1180_v26, %v1182_v60  ;;  %v1628_v60 = vmul.f32 %v9724_v55, %v5212_v44  ;;  %v544_v55 = vadd.f32 %v4747_v38, %v536_v9  ;;  %v649_v10 = vmul.f32 %v9733_v33, %v267_v58 }
  0xbc   : > { %v1188_v26 = vsel %vm5174_vm4, %v1183_v24, 0.0  ;;  %v1187_v24 = vsel %vm5190_vm5, %v1186_v62, 0.0  ;;  %v9734_v38 = vstv %s9727_s8  ;;  %v9735_v37 = vstv %s9728_s4  ;;  %s9762_s8 = sld [smem:[#allocation17_spill]]  ;;  %s9765_s4 = sld [smem:[#allocation21_spill]] }
  0xbd   : > { %v1632_v31 = vrot.slane %v1628_v60, 4  ;;  %v1238_v9 = vmul.f32 %v9734_v38, %v1188_v26  ;;  %v1362_v41 = vmul.f32 %v9735_v37, %v1188_v26  ;;  %v321_v43 = vadd.f32 %v4710_v25, %v313_v17 }
  0xbe   : > { %v272_v57 = vpop.permute.xlu0 %271  ;;  %v274_v30 = vpop.permute.xlu1 %273  ;;  %v1193_v14 = vsel %vm775_vm0, %v1190_v18, %v5094_v45  ;;  %v9736_v19 = vstv %s9730_s17  ;;  %v9737_v58 = vstv %s9731_s2  ;;  %v433_v48 = vadd.f32 %v4719_v28, %v425_v7  ;;  %s9759_s2 = sld [smem:[#allocation22_spill]]  ;;  %s9770_s17 = sld [smem:[#allocation23_spill]] }
  0xbf   : > { %v1486_v6 = vmul.f32 %v9736_v19, %v1188_v26  ;;  %v1610_v33 = vmul.f32 %v9737_v58, %v1188_v26  ;;  %v9738_v62 = vmov %v9734_v38  ;;  %v9740_v61 = vmov %v9735_v37 }
  0xc0   : > { %v1237_v8 = vmul.f32 %v9738_v62, %v1187_v24  ;;  %v1361_v60 = vmul.f32 %v9740_v61, %v1187_v24  ;;  %v5299_v38 = vsel %vm275_vm6, %v272_v57, %v274_v30  ;;  %v545_v25 = vadd.f32 %v4743_v36, %v537_v49 }
  0xc1   : > { %v9742_v17 = vmov %v9736_v19  ;;  %v9743_v18 = vmov %v9737_v58  ;;  %v5307_v26 = vsel %vm275_vm6, %v274_v30, 0.0  ;;  %v657_v7 = vadd.f32 %v4757_v40, %v649_v10 }
  0xc2   : > { %v1485_v45 = vmul.f32 %v9742_v17, %v1187_v24  ;;  %v1609_v37 = vmul.f32 %v9743_v18, %v1187_v24  ;;  %v283_v28 = vpop.permute.xlu0 %282  ;;  %v5312_v57 = vsel %vm5233_vm7, %v1193_v14, 0.0  ;;  %v9745_v36 = vrot.slane %v4750_v39, 4  ;;  %v285_v24 = vpop.permute.xlu1 %284 }
  0xc3   : > { %v9746_v19 = vrot.slane %v4773_v46, 4  ;;  %v9748_v30 = vrot.slane %v4786_v51, 4  ;;  %v9749_v61 = vrot.slane %v4806_v59, 4  ;;  %v9750_v40 = vstv %s9739_s13  ;;  %s9779_s13 = sld [smem:[#allocation25_spill]] }
  0xc4   : > { %v1252_v49 = vadd.f32 %v9745_v36, %v1238_v9  ;;  %v324_v10 = vmul.f32 %v9750_v40, %v5299_v38  ;;  %v9751_v14 = vstv %s9741_s19  ;;  %v9753_v39 = vrot.slane %v4735_v34, 4 }
  0xc5   : > { %v1376_v58 = vadd.f32 %v9746_v19, %v1362_v41  ;;  %v1500_v62 = vadd.f32 %v9748_v30, %v1486_v6  ;;  %v1624_v17 = vadd.f32 %v9749_v61, %v1610_v33  ;;  %v5328_v18 = vmul.f32 %v9751_v14, %v5212_v44 }
  0xc6   : > { %v1251_v9 = vadd.f32 %v9753_v39, %v1237_v8  ;;  %v9754_v46 = vrot.slane %v4763_v42, 4  ;;  %v9755_v36 = vmov %v9750_v40  ;;  %v9756_v6 = vstv %s9744_s22  ;;  %s9788_s22 = sld [smem:[#allocation27_spill]] }
  0xc7   : > { %9752 = vst [vmem:[#allocation87_spill] sm:$0xff] %v5328_v18  ;;  %v325_v51 = vmul.f32 %v9755_v36, %v5307_v26  ;;  %v436_v59 = vmul.f32 %v9756_v6, %v5299_v38  ;;  %v9757_v33 = vrot.slane %v4776_v47, 4  ;;  %v9758_v30 = vrot.slane %v4795_v54, 4 }
  0xc8   : > { %v1375_v41 = vadd.f32 %v9754_v46, %v1361_v60  ;;  %v9760_v34 = vmov %v9756_v6  ;;  %v9761_v42 = vstv %s4693_s27  ;;  %v5352_v40 = vadd.f32 %v1260_v20, %v1252_v49  ;;  %s9764_s27 = sld [smem:[#allocation19_spill]]  ;;  %v1202_v20 = vpop.permute.xlu0 %1201 }
  0xc9   : > { %v1499_v19 = vadd.f32 %v9757_v33, %v1485_v45  ;;  %v5344_v61 = vadd.f32 %v9758_v30, %v1609_v37  ;;  %v437_v8 = vmul.f32 %v9760_v34, %v5307_v26  ;;  %v1255_v60 = vmul.f32 %v9761_v42, %v5312_v57 }
  0xca   : > { %v5354_v14 = vadd.f32 %v1384_v53, %v1376_v58  ;;  %v9763_v47 = vstv %s9747_s24  ;;  %v289_v54 = vsel %vm266_vm1, 0.0, %v283_v28  ;;  %v5360_v37 = vadd.f32 %v1508_v22, %v1500_v62  ;;  %v1204_v22 = vpop.permute.xlu1 %1203  ;;  %s9800_s24 = sld [smem:[#allocation30_spill]] }
  0xcb   : > { %v548_v45 = vmul.f32 %v9763_v47, %v5299_v38  ;;  %v5362_v39 = vadd.f32 %v1632_v31, %v1624_v17  ;;  %v326_v46 = vadd.f32 %v324_v10, %v320_v2  ;;  %v286_v36 = vsel %vm266_vm1, %v283_v28, %v285_v24 }
  0xcc   : > { %v327_v53 = vadd.f32 %v325_v51, %v321_v43  ;;  %v438_v49 = vadd.f32 %v436_v59, %v432_v1  ;;  %v9766_v58 = vmov %v9763_v47  ;;  %v9767_v33 = vstv %s9759_s2  ;;  %s9802_s2 = sld [smem:[#allocation32_spill]] }
  0xcd   : > { %v549_v6 = vmul.f32 %v9766_v58, %v5307_v26  ;;  %v660_v30 = vmul.f32 %v9767_v33, %v5299_v38  ;;  %v439_v31 = vadd.f32 %v437_v8, %v433_v48  ;;  %v9768_v2 = vmov %v9767_v33 }
  0xce   : > { %v661_v62 = vmul.f32 %v9768_v2, %v5307_v26  ;;  %v9769_v17 = vstv %s9762_s8  ;;  %v1259_v24 = vrot.slane %v1255_v60, 4  ;;  %v550_v43 = vadd.f32 %v548_v45, %v544_v55  ;;  %s9806_s8 = sld [smem:[#allocation34_spill]] }
  0xcf   : > { %v330_v28 = vmul.f32 %v9769_v17, %v289_v54  ;;  %v9771_v1 = vmov %v9769_v17  ;;  %v9772_v51 = vstv %s4698_s29  ;;  %v1208_v34 = vsel %vm764_vm3, 0.0, %v1202_v20  ;;  %s9778_s29 = sld [smem:[#allocation24_spill]] }
  0xd0   : > { %v331_v10 = vmul.f32 %v9771_v1, %v286_v36  ;;  %v1379_v59 = vmul.f32 %v9772_v51, %v5312_v57  ;;  %v9773_v42 = vstv %s9764_s27  ;;  %v9775_v8 = vstv %s9765_s4  ;;  %s9808_s27 = sld [smem:[#allocation29_spill]]  ;;  %s9813_s4 = sld [smem:[#allocation31_spill]] }
  0xd1   : > { %v442_v47 = vmul.f32 %v9773_v42, %v289_v54  ;;  %v9774_v58 = vmov %v9773_v42  ;;  %v554_v33 = vmul.f32 %v9775_v8, %v289_v54  ;;  %v1205_v2 = vsel %vm764_vm3, %v1202_v20, %v1204_v22 }
  0xd2   : > { %v443_v48 = vmul.f32 %v9774_v58, %v286_v36  ;;  %v551_v17 = vadd.f32 %v549_v6, %v545_v25  ;;  %v662_v60 = vadd.f32 %v660_v30, %v5274_v0  ;;  %v9776_v55 = vmov %v9775_v8 }
  0xd3   : > { %v555_v45 = vmul.f32 %v9776_v55, %v286_v36  ;;  %v9777_v1 = vstv %s4714_s7  ;;  %v332_v52 = vadd.f32 %v330_v28, %v326_v46  ;;  %v9780_v44 = vstv %s9770_s17  ;;  %s9782_s7 = sld [smem:[#allocation26_spill]]  ;;  %s9822_s17 = sld [smem:[#allocation33_spill]] }
  0xd4   : > { %v1503_v51 = vmul.f32 %v9777_v1, %v5312_v57  ;;  %v666_v42 = vmul.f32 %v9780_v44, %v289_v54  ;;  %v9781_v18 = vmov %v9780_v44  ;;  %v1209_v8 = vsel %vm5190_vm5, %v1208_v34, 0.0 }
  0xd5   : > { %v667_v58 = vmul.f32 %v9781_v18, %v286_v36  ;;  %v663_v20 = vadd.f32 %v661_v62, %v657_v7  ;;  %v333_v25 = vadd.f32 %v331_v10, %v327_v53  ;;  %v1383_v6 = vrot.slane %v1379_v59, 4 }
  0xd6   : > { %v1210_v0 = vsel %vm5174_vm4, %v1205_v2, 0.0  ;;  %v444_v30 = vadd.f32 %v442_v47, %v438_v49  ;;  %v445_v22 = vadd.f32 %v443_v48, %v439_v31  ;;  %v556_v55 = vadd.f32 %v554_v33, %v550_v43 }
  0xd7   : > { %v9783_v46 = vstv %s4726_s15  ;;  %v557_v54 = vadd.f32 %v555_v45, %v551_v17  ;;  %v1507_v18 = vrot.slane %v1503_v51, 4  ;;  %v9784_v36 = vstv %s9778_s29  ;;  %s9794_s15 = sld [smem:[#allocation28_spill]] }
  0xd8   : > { %v1627_v44 = vmul.f32 %v9783_v46, %v5312_v57  ;;  %v1267_v28 = vmul.f32 %v9784_v36, %v1209_v8  ;;  %v9785_v34 = vstv %s9779_s13  ;;  %v9786_v7 = vrot.slane %v4816_v3, 1  ;;  %s9825_s29 = sld [smem:[#allocation38_spill]]  ;;  %s9827_s13 = sld [smem:[#allocation53_spill]] }
  0xd9   : > { %v1391_v1 = vmul.f32 %v9785_v34, %v1209_v8  ;;  %v668_v62 = vadd.f32 %v666_v42, %v662_v60  ;;  %v669_v10 = vadd.f32 %v667_v58, %v663_v20  ;;  %v9787_v59 = vmov %v9784_v36 }
  0xda   : > { %v344_v53 = vadd.f32 %v9786_v7, %v332_v52  ;;  %v1268_v2 = vmul.f32 %v9787_v59, %v1210_v0  ;;  %v1263_v49 = vadd.f32 %v1259_v24, %v1251_v9  ;;  %v1387_v31 = vadd.f32 %v1383_v6, %v1375_v41 }
  0xdb   : > { %v9789_v43 = vmov %v9785_v34  ;;  %v9790_v48 = vstv %s9782_s7  ;;  %v9791_v17 = vrot.slane %v4819_v4, 1  ;;  %v9792_v51 = vrot.slane %v4834_v11, 1  ;;  %s9833_s7 = sld [smem:[#allocation52_spill]] }
  0xdc   : > { %v1392_v47 = vmul.f32 %v9789_v43, %v1210_v0  ;;  %v1515_v33 = vmul.f32 %v9790_v48, %v1209_v8  ;;  %v9793_v3 = vrot.slane %v4837_v12, 1  ;;  %v1631_v60 = vrot.slane %v1627_v44, 4 }
  0xdd   : > { %v345_v45 = vadd.f32 %v9791_v17, %v333_v25  ;;  %v456_v46 = vadd.f32 %v9792_v51, %v444_v30  ;;  %v1511_v42 = vadd.f32 %v1507_v18, %v1499_v19  ;;  %v1269_v58 = vadd.f32 %v1267_v28, %v1263_v49 }
  0xde   : > { %v457_v52 = vadd.f32 %v9793_v3, %v445_v22  ;;  %v1393_v9 = vadd.f32 %v1391_v1, %v1387_v31  ;;  %v9795_v41 = vmov %v9790_v48  ;;  %v9796_v20 = vrot.slane %v4846_v15, 1  ;;  %v293_v22 = vpop.permute.xlu0 %292  ;;  %v295_v15 = vpop.permute.xlu1 %294 }
  0xdf   : > { %v1516_v24 = vmul.f32 %v9795_v41, %v1210_v0  ;;  %v9797_v4 = vrot.slane %v4849_v16, 1  ;;  %v1270_v11 = vadd.f32 %v1268_v2, %v5352_v40  ;;  %v9798_v30 = vstv %s9788_s22  ;;  %s9870_s22 = sld [smem:[#allocation41_spill]] }
  0xe0   : > { %v568_v6 = vadd.f32 %v9796_v20, %v556_v55  ;;  %v1639_v12 = vmul.f32 %v9798_v30, %v1209_v8  ;;  %v9799_v44 = vrot.slane %v4862_v35, 1  ;;  %v9801_v18 = vrot.slane %v4873_v23, 1 }
  0xe1   : > { %v569_v25 = vadd.f32 %v9797_v4, %v557_v54  ;;  %v1394_v28 = vadd.f32 %v1392_v47, %v5354_v14  ;;  %v1517_v34 = vadd.f32 %v1515_v33, %v1511_v42  ;;  %v1635_v16 = vadd.f32 %v1631_v60, %v5344_v61 }
  0xe2   : > { %v680_v19 = vadd.f32 %v9799_v44, %v668_v62  ;;  %v681_v36 = vadd.f32 %v9801_v18, %v669_v10  ;;  %v9803_v55 = vmov %v9798_v30  ;;  %v9804_v8 = vstv %s9794_s15  ;;  %s9886_s15 = sld [smem:[#allocation46_spill]] }
  0xe3   : > { %v1640_v40 = vmul.f32 %v9803_v55, %v1210_v0  ;;  %v348_v54 = vmul.f32 %v9804_v8, %v5299_v38  ;;  %v9805_v35 = vmov %v9804_v8  ;;  %v9807_v23 = vrot.slane %v4876_v21, 5  ;;  %v5505_v55 = vpop.permute.xlu1 %1215 }
  0xe4   : > { %v349_v1 = vmul.f32 %v9805_v35, %v5307_v26  ;;  %v9809_v7 = vrot.slane %v4893_v13, 5  ;;  %v1518_v61 = vadd.f32 %v1516_v24, %v5360_v37  ;;  %v299_v0 = vsel %vm266_vm1, 0.0, %v293_v22 }
  0xe5   : > { %v5449_v14 = vadd.f32 %v9807_v23, %v1269_v58  ;;  %v9810_v10 = vrot.slane %v4886_v63, 5  ;;  %v5461_v2 = vadd.f32 %v1639_v12, %v1635_v16  ;;  %v9811_v21 = vstv %s9800_s24  ;;  %s9894_s24 = smov 127  }
  0xe6   : > { %v5453_v62 = vadd.f32 %v9809_v7, %v1393_v9  ;;  %v460_v49 = vmul.f32 %v9811_v21, %v5299_v38  ;;  %v296_v31 = vsel %vm266_vm1, %v293_v22, %v295_v15  ;;  %v9812_v13 = vrot.slane %v4896_v5, 5 }
  0xe7   : > { %v5459_v59 = vadd.f32 %v9810_v10, %v1270_v11  ;;  %v9814_v37 = vrot.slane %v4899_v29, 5  ;;  %v9815_v63 = vmov %v9811_v21  ;;  %v9816_v33 = vstv %s9802_s2  ;;  %s9903_s2 = sld [smem:[#allocation45_spill]] }
  0xe8   : > { %v5469_v43 = vadd.f32 %v9812_v13, %v1394_v28  ;;  %v461_v48 = vmul.f32 %v9815_v63, %v5307_v26  ;;  %v572_v17 = vmul.f32 %v9816_v33, %v5299_v38  ;;  %v352_v51 = vrot.slane %v348_v54, 1 }
  0xe9   : > { %v5473_v47 = vadd.f32 %v9814_v37, %v1517_v34  ;;  %v9817_v3 = vmov %v9816_v33  ;;  %v9818_v5 = vstv %s9806_s8  ;;  %v9819_v58 = vstv %s9808_s27  ;;  %s9905_s8 = sld [smem:[#allocation47_spill]]  ;;  %s5943_s27 = sld [smem:[#allocation3 + $0x3d]] }
  0xea   : > { %v573_v60 = vmul.f32 %v9817_v3, %v5307_v26  ;;  %v684_v42 = vmul.f32 %v9818_v5, %v5299_v38  ;;  %v360_v9 = vmul.f32 %v9819_v58, %v299_v0  ;;  %v9820_v29 = vrot.slane %v4910_v27, 5 }
  0xeb   : > { %v5494_v24 = vadd.f32 %v1640_v40, %v5362_v39  ;;  %v353_v20 = vrot.slane %v349_v1, 1  ;;  %v9821_v4 = vmov %v9819_v58  ;;  %v356_v30 = vadd.f32 %v352_v51, %v344_v53  ;;  %v5507_v40 = vpop.permute.xlu0 %1213 }
  0xec   : > { %v5491_v41 = vadd.f32 %v9820_v29, %v1518_v61  ;;  %v361_v11 = vmul.f32 %v9821_v4, %v296_v31  ;;  %v464_v12 = vrot.slane %v460_v49, 1  ;;  %v9823_v22 = vmov %v9818_v5 }
  0xed   : > { %v685_v44 = vmul.f32 %v9823_v22, %v5307_v26  ;;  %v9824_v18 = vstv %s9813_s4  ;;  %v357_v34 = vadd.f32 %v353_v20, %v345_v45  ;;  %v465_v27 = vrot.slane %v461_v48, 1  ;;  %s5945_s4 = sld [smem:[#allocation3 + $0x49]] }
  0xee   : > { %v472_v28 = vmul.f32 %v9824_v18, %v299_v0  ;;  %v576_v15 = vrot.slane %v572_v17, 1  ;;  %v9826_v16 = vmov %v9824_v18  ;;  %v468_v53 = vadd.f32 %v464_v12, %v456_v46  ;;  %v9839_v12 = vld [vmem:[#allocation42_spill] sm:$0xff] }
  0xef   : > { %v473_v39 = vmul.f32 %v9826_v16, %v296_v31  ;;  %v577_v8 = vrot.slane %v573_v60, 1  ;;  %v688_v54 = vrot.slane %v684_v42, 1  ;;  %v362_v35 = vadd.f32 %v360_v9, %v356_v30  ;;  %v9836_v9 = vld [vmem:[#allocation40_spill] sm:$0xff]  ;;  %v305_v30 = vpop.permute.xlu1 %304 }
  0xf0   : > { %v469_v1 = vadd.f32 %v465_v27, %v457_v52  ;;  %v363_v23 = vadd.f32 %v361_v11, %v357_v34  ;;  %v9828_v7 = vstv %s9822_s17  ;;  %v689_v21 = vrot.slane %v685_v44, 1  ;;  %v9842_v34 = vld [vmem:[#allocation43_spill] sm:$0xff]  ;;  %s5947_s17 = sld [smem:[#allocation3 + $0x55]] }
  0xf1   : > { %v584_v45 = vmul.f32 %v9828_v7, %v299_v0  ;;  %v9829_v61 = vmov %v9828_v7  ;;  %v474_v49 = vadd.f32 %v472_v28, %v468_v53  ;;  %v9830_v13 = vstv %s9825_s29  ;;  %s5949_s29 = sld [smem:[#allocation3 + $0x34]] }
  0xf2   : > { %v585_v10 = vmul.f32 %v9829_v61, %v296_v31  ;;  %v696_v37 = vmul.f32 %v9830_v13, %v299_v0  ;;  %v9831_v63 = vstv %s4990_s6  ;;  %v580_v33 = vadd.f32 %v576_v15, %v568_v6  ;;  %s9854_s6 = sld [smem:[#allocation56_spill]] }
  0xf3   : > { %v378_v48 = vmul.f32 %v9831_v63, %v5299_v38  ;;  %v581_v46 = vadd.f32 %v577_v8, %v569_v25  ;;  %v475_v17 = vadd.f32 %v473_v39, %v469_v1  ;;  %v9832_v51 = vmov %v9831_v63 }
  0xf4   : > { %v379_v52 = vmul.f32 %v9832_v51, %v5307_v26  ;;  %v692_v3 = vadd.f32 %v688_v54, %v680_v19  ;;  %v693_v60 = vadd.f32 %v689_v21, %v681_v36  ;;  %v9834_v5 = vrot.slane %v4944_v56, 2  ;;  %v303_v19 = vpop.permute.xlu0 %302 }
  0xf5   : > { %v9835_v58 = vstv %s9827_s13  ;;  %v9837_v29 = vrot.slane %v9836_v9, 2  ;;  %v586_v6 = vadd.f32 %v584_v45, %v580_v33  ;;  %v587_v25 = vadd.f32 %v585_v10, %v581_v46  ;;  %v9855_v9 = vld [vmem:[#allocation54_spill] sm:$0xff]  ;;  %s5951_s13 = sld [smem:[#allocation3 + $0x40]] }
  0xf6   : > { %v374_v42 = vadd.f32 %v9834_v5, %v362_v35  ;;  %v490_v0 = vmul.f32 %v9835_v58, %v5299_v38  ;;  %v9838_v4 = vmov %v9830_v13  ;;  %v9840_v36 = vrot.slane %v9839_v12, 2 }
  0xf7   : > { %v375_v20 = vadd.f32 %v9837_v29, %v363_v23  ;;  %v697_v11 = vmul.f32 %v9838_v4, %v296_v31  ;;  %v698_v22 = vadd.f32 %v696_v37, %v692_v3  ;;  %v382_v44 = vrot.slane %v378_v48, 2  ;;  %v9849_v37 = vld [vmem:[#allocation48_spill] sm:$0xff] }
  0xf8   : > { %v486_v56 = vadd.f32 %v9840_v36, %v474_v49  ;;  %v9841_v18 = vmov %v9835_v58  ;;  %v9843_v27 = vrot.slane %v9842_v34, 2  ;;  %v383_v16 = vrot.slane %v379_v52, 2  ;;  %v9852_v52 = vld [vmem:[#allocation51_spill] sm:$0xff] }
  0xf9   : > { %v491_v28 = vmul.f32 %v9841_v18, %v5307_v26  ;;  %v9844_v31 = vstv %s9833_s7  ;;  %v386_v54 = vadd.f32 %v382_v44, %v374_v42  ;;  %v494_v35 = vrot.slane %v490_v0, 2  ;;  %v9864_v34 = vld [vmem:[#allocation87_spill] sm:$0xff]  ;;  %s5953_s7 = sld [smem:[#allocation3 + $0x4c]] }
  0xfa   : > { %v487_v15 = vadd.f32 %v9843_v27, %v475_v17  ;;  %v408_v39 = vmul.f32 %v9844_v31, %v5299_v38  ;;  %v9845_v53 = vmov %v9844_v31  ;;  %v5544_v1 = vsel %vm266_vm1, %v303_v19, %v305_v30 }
  0xfb   : > { %v409_v8 = vmul.f32 %v9845_v53, %v5307_v26  ;;  %v5547_v23 = vsel %vm266_vm1, 0.0, %v303_v19  ;;  %v387_v7 = vadd.f32 %v383_v16, %v375_v20  ;;  %v9846_v45 = vstv %s5053_s16  ;;  %v9858_v19 = vld [vmem:[#allocation70_spill] sm:$0xff]  ;;  %s9865_s16 = sld [smem:[#allocation39_spill]] }
  0xfc   : > { %v390_v61 = vmul.f32 %v9846_v45, %v5547_v23  ;;  %v9847_v10 = vmov %v9846_v45  ;;  %v9848_v49 = vstv %s5064_s12  ;;  %v9850_v63 = vrot.slane %v9849_v37, 2  ;;  %s9860_s12 = sld [smem:[#allocation66_spill]] }
  0xfd   : > { %v391_v21 = vmul.f32 %v9847_v10, %v5544_v1  ;;  %v502_v13 = vmul.f32 %v9848_v49, %v5547_v23  ;;  %v699_v33 = vadd.f32 %v697_v11, %v693_v60  ;;  %v495_v46 = vrot.slane %v491_v28, 2 }
  0xfe   : > { %v598_v48 = vadd.f32 %v9850_v63, %v586_v6  ;;  %v9851_v17 = vmov %v9848_v49  ;;  %v9853_v3 = vrot.slane %v9852_v52, 2  ;;  %v498_v42 = vadd.f32 %v494_v35, %v486_v56 }
  0xff   : > { %v503_v51 = vmul.f32 %v9851_v17, %v5544_v1  ;;  %v392_v58 = vadd.f32 %v390_v61, %v386_v54  ;;  %v393_v0 = vadd.f32 %v391_v21, %v387_v7  ;;  %v9856_v29 = vrot.slane %v9855_v9, 2  ;;  %v9874_v17 = vld [vmem:[#allocation72_spill] sm:$0xff] }
 0x100   : > { %v599_v5 = vadd.f32 %v9853_v3, %v587_v25  ;;  %v412_v4 = vrot.slane %v408_v39, 3  ;;  %v499_v6 = vadd.f32 %v495_v46, %v487_v15  ;;  %v9857_v60 = vstv %s5020_s23  ;;  %v9861_v25 = vld [vmem:[#allocation71_spill] sm:$0xff]  ;;  %v9867_v39 = vld [vmem:[#allocation55_spill] sm:$0xff]  ;;  %s9878_s23 = sld [smem:[#allocation63_spill]] }
 0x101   : > { %v5567_v20 = vadd.f32 %v9856_v29, %v698_v22  ;;  %v602_v11 = vmul.f32 %v9857_v60, %v5299_v38  ;;  %v413_v30 = vrot.slane %v409_v8, 3  ;;  %v9859_v12 = vrot.slane %v9858_v19, 3 }
 0x102   : > { %v9862_v56 = vrot.slane %v9861_v25, 3  ;;  %v504_v18 = vadd.f32 %v502_v13, %v498_v42  ;;  %v9863_v28 = vstv %s9741_s19  ;;  %v1290_v27 = vrot.slane %v9864_v34, 5  ;;  %s9885_s19 = smov 1  }
 0x103   : > { %v404_v36 = vadd.f32 %v9859_v12, %v392_v58  ;;  %v1285_v22 = vmul.f32 %v9863_v28, %v5312_v57  ;;  %v9866_v15 = vmov %v9857_v60  ;;  %v505_v31 = vadd.f32 %v503_v51, %v499_v6  ;;  %v9882_v60 = vld [vmem:[#allocation81_spill] sm:$0xff] }
 0x104   : > { %v405_v44 = vadd.f32 %v9862_v56, %v393_v0  ;;  %v603_v16 = vmul.f32 %v9866_v15, %v5307_v26  ;;  %v9868_v53 = vrot.slane %v9867_v39, 2  ;;  %v9869_v54 = vstv %s9854_s6  ;;  %v9879_v0 = vld [vmem:[#allocation73_spill] sm:$0xff]  ;;  %s5955_s6 = sld [smem:[#allocation3 + $0x58]] }
 0x105   : > { %v520_v35 = vmul.f32 %v9869_v54, %v5299_v38  ;;  %v416_v7 = vadd.f32 %v412_v4, %v404_v36  ;;  %v1217_v61 = vsel %vm764_vm3, %v5507_v40, %v5505_v55  ;;  %v1220_v10 = vsel %vm764_vm3, 0.0, %v5507_v40 }
 0x106   : > { %v711_v8 = vadd.f32 %v9868_v53, %v699_v33  ;;  %v417_v45 = vadd.f32 %v413_v30, %v405_v44  ;;  %v9871_v21 = vmov %v9869_v54  ;;  %v606_v13 = vrot.slane %v602_v11, 2 }
 0x107   : > { %v521_v49 = vmul.f32 %v9871_v21, %v5307_v26  ;;  %v9872_v37 = vstv %s9860_s12  ;;  %v9875_v51 = vrot.slane %v9874_v17, 3  ;;  %v9876_v3 = vstv %s5074_s3  ;;  %s9887_s3 = sld [smem:[#allocation60_spill]] }
 0x108   : > { %v5598_v63 = vadd.f32 %v9872_v37, %v416_v7  ;;  %v9873_v33 = vmov %v9872_v37  ;;  %v614_v42 = vmul.f32 %v9876_v3, %v5547_v23  ;;  %v9877_v55 = vstv %s9865_s16  ;;  %s5957_s12 = sld [smem:[#allocation3 + $0x37]]  ;;  %s5959_s16 = sld [smem:[#allocation3 + $0x43]] }
 0x109   : > { %v5602_v46 = vadd.f32 %v9873_v33, %v417_v45  ;;  %v516_v52 = vadd.f32 %v9875_v51, %v504_v18  ;;  %v1409_v40 = vmul.f32 %v9877_v55, %v5312_v57  ;;  %v607_v58 = vrot.slane %v603_v16, 2 }
 0x10a   : > { %v9880_v9 = vrot.slane %v9879_v0, 3  ;;  %v9881_v4 = vmov %v9876_v3  ;;  %v9883_v11 = vmov %v9877_v55  ;;  %v9884_v19 = vstv %s9870_s22  ;;  %760 = vrot.lane.b32.xlu0 %v5598_v63, %s9885_s19  ;;  %s5961_s22 = sld [smem:[#allocation3 + $0x4f]] }
 0x10b   : > { %v615_v6 = vmul.f32 %v9881_v4, %v5544_v1  ;;  %v1410_v30 = vmul.f32 %v9883_v11, %v9882_v60  ;;  %v5623_v12 = vmul.f32 %v9884_v19, %v5312_v57  ;;  %v524_v36 = vrot.slane %v520_v35, 3  ;;  %762 = vrot.lane.b32.xlu1 %v5602_v46, %s9885_s19  ;;  %v9901_v11 = vld [vmem:[#allocation75_spill] sm:$0xff] }
 0x10c   : > { %v517_v29 = vadd.f32 %v9880_v9, %v505_v31  ;;  %v610_v25 = vadd.f32 %v606_v13, %v598_v48  ;;  %v5629_v56 = vsel %vm5190_vm5, %v1220_v10, 0.0  ;;  %v5633_v44 = vsel %vm5174_vm4, %v1217_v61, 0.0 }
 0x10d   : > { %v525_v18 = vrot.slane %v521_v49, 3  ;;  %v611_v28 = vadd.f32 %v607_v58, %v599_v5  ;;  %v1289_v48 = vrot.slane %v1285_v22, 5  ;;  %v9888_v34 = vstv %s9878_s23  ;;  %s5963_s23 = sld [smem:[#allocation3 + $0x5b]] }
 0x10e   : > { %v714_v15 = vmul.f32 %v9888_v34, %v5299_v38  ;;  %v528_v16 = vadd.f32 %v524_v36, %v516_v52  ;;  %v616_v31 = vadd.f32 %v614_v42, %v610_v25  ;;  %v1294_v39 = vadd.f32 %v1290_v27, %v5459_v59  ;;  %771 = vrot.lane.b32.xlu0 %v5598_v63, %s9894_s24  ;;  %v9897_v42 = vld [vmem:[#allocation74_spill] sm:$0xff] }
 0x10f   : > { %v9889_v53 = vmov %v9888_v34  ;;  %v529_v35 = vadd.f32 %v525_v18, %v517_v29  ;;  %v617_v7 = vadd.f32 %v615_v6, %v611_v28  ;;  %v9890_v5 = vmov %v9884_v19  ;;  %773 = vrot.lane.b32.xlu1 %v5602_v46, %s9894_s24  ;;  %v1228_v29 = vpop.permute.xlu1 %1227 }
 0x110   : > { %v715_v54 = vmul.f32 %v9889_v53, %v5307_v26  ;;  %v5647_v45 = vmul.f32 %v9890_v5, %v9882_v60  ;;  %v9891_v22 = vstv %s9886_s15  ;;  %v9893_v49 = vstv %s9887_s3  ;;  %s5965_s15 = sld [smem:[#allocation3 + $0x3a]]  ;;  %s5967_s3 = sld [smem:[#allocation3 + $0x46]] }
 0x111   : > { %v1297_v61 = vmul.f32 %v9891_v22, %v5629_v56  ;;  %v9892_v10 = vmov %v9891_v22  ;;  %v632_v59 = vmul.f32 %v9893_v49, %v5299_v38  ;;  %v1293_v27 = vadd.f32 %v1289_v48, %v5449_v14  ;;  %v1226_v14 = vpop.permute.xlu0 %1225 }
 0x112   : > { %v1298_v21 = vmul.f32 %v9892_v10, %v5633_v44  ;;  %v1413_v13 = vrot.slane %v1409_v40, 5  ;;  %v1414_v37 = vrot.slane %v1410_v30, 5  ;;  %v9895_v33 = vmov %v9893_v49 }
 0x113   : > { %v633_v17 = vmul.f32 %v9895_v33, %v5307_v26  ;;  %v718_v51 = vrot.slane %v714_v15, 2  ;;  %v9896_v52 = vstv %s5066_s18  ;;  %v9898_v55 = vrot.slane %v9897_v42, 3  ;;  %s9906_s18 = sld [smem:[#allocation64_spill]] }
 0x114   : > { %v5668_v3 = vadd.f32 %v9896_v52, %v528_v16  ;;  %v9899_v0 = vstv %s5082_s9  ;;  %v719_v40 = vrot.slane %v715_v54, 2  ;;  %v9900_v4 = vmov %v9896_v52  ;;  %s9913_s9 = sld [smem:[#allocation44_spill]] }
 0x115   : > { %v628_v58 = vadd.f32 %v9898_v55, %v616_v31  ;;  %v726_v9 = vmul.f32 %v9899_v0, %v5547_v23  ;;  %v5677_v6 = vadd.f32 %v9900_v4, %v529_v35  ;;  %v9902_v30 = vrot.slane %v9901_v11, 3 }
 0x116   : > { %v9904_v36 = vmov %v9899_v0  ;;  %v1299_v18 = vadd.f32 %v1297_v61, %v1293_v27  ;;  %v1300_v28 = vadd.f32 %v1298_v21, %v1294_v39  ;;  %v636_v48 = vrot.slane %v632_v59, 3  ;;  %784 = vrot.lane.b32.xlu0 %v5668_v3, %s9885_s19  ;;  %v9909_v61 = vld [vmem:[#allocation57_spill] sm:$0xff] }
 0x117   : > { %v629_v19 = vadd.f32 %v9902_v30, %v617_v7  ;;  %v727_v25 = vmul.f32 %v9904_v36, %v5544_v1  ;;  %v722_v34 = vadd.f32 %v718_v51, %v5567_v20  ;;  %v637_v23 = vrot.slane %v633_v17, 3  ;;  %786 = vrot.lane.b32.xlu1 %v5677_v6, %s9885_s19  ;;  %v9914_v17 = vld [vmem:[#allocation58_spill] sm:$0xff] }
 0x118   : > { %v723_v15 = vadd.f32 %v719_v40, %v711_v8  ;;  %v1229_v16 = vsel %vm764_vm3, %v1226_v14, %v1228_v29  ;;  %v1232_v31 = vsel %vm764_vm3, 0.0, %v1226_v14  ;;  %v1417_v1 = vadd.f32 %v1413_v13, %v5453_v62  ;;  %v9919_v29 = vld [vmem:[#allocation76_spill] sm:$0xff] }
 0x119   : > { %v640_v39 = vadd.f32 %v636_v48, %v628_v58  ;;  %v728_v20 = vadd.f32 %v726_v9, %v722_v34  ;;  %v9907_v53 = vstv %s9903_s2  ;;  %v641_v35 = vadd.f32 %v637_v23, %v629_v19  ;;  %v9923_v19 = vld [vmem:[#allocation77_spill] sm:$0xff]  ;;  %s5969_s2 = sld [smem:[#allocation3 + $0x52]] }
 0x11a   : > { %v1315_v54 = vmul.f32 %v9907_v53, %v5312_v57  ;;  %v729_v7 = vadd.f32 %v727_v25, %v723_v15  ;;  %v9908_v8 = vmov %v9907_v53  ;;  %v5700_v22 = vsel %vm5190_vm5, %v1232_v31, 0.0  ;;  %794 = vrot.lane.b32.xlu0 %v5668_v3, %s9894_s24 }
 0x11b   : > { %v1316_v5 = vmul.f32 %v9908_v8, %v9882_v60  ;;  %v9910_v62 = vrot.slane %v9909_v61, 6  ;;  %v9911_v21 = vstv %s9905_s8  ;;  %v9912_v59 = vstv %s9906_s18  ;;  %796 = vrot.lane.b32.xlu1 %v5677_v6, %s9894_s24  ;;  %s5971_s8 = sld [smem:[#allocation3 + $0x30]]  ;;  %s5973_s18 = sld [smem:[#allocation3 + $0x3c]] }
 0x11c   : > { %v1421_v49 = vmul.f32 %v9911_v21, %v5629_v56  ;;  %v744_v27 = vmul.f32 %v9912_v59, %v5299_v38  ;;  %v5712_v13 = vsel %vm5174_vm4, %v1229_v16, 0.0  ;;  %v1418_v33 = vadd.f32 %v1414_v37, %v5469_v43 }
 0x11d   : > { %v1311_v10 = vadd.f32 %v9910_v62, %v1299_v18  ;;  %v9915_v51 = vrot.slane %v9914_v17, 6  ;;  %v9916_v42 = vmov %v9911_v21  ;;  %v9917_v58 = vmov %v9912_v59  ;;  %v9931_v59 = vld [vmem:[#allocation59_spill] sm:$0xff] }
 0x11e   : > { %v1422_v55 = vmul.f32 %v9916_v42, %v5633_v44  ;;  %v745_v0 = vmul.f32 %v9917_v58, %v5307_v26  ;;  %v9918_v38 = vstv %s5076_s25  ;;  %v9920_v14 = vrot.slane %v9919_v29, 3  ;;  %s9927_s25 = sld [smem:[#allocation49_spill]] }
 0x11f   : > { %v1312_v52 = vadd.f32 %v9915_v51, %v1300_v28  ;;  %v5729_v9 = vadd.f32 %v9918_v38, %v640_v39  ;;  %v1319_v4 = vrot.slane %v1315_v54, 6  ;;  %v9921_v43 = vstv %s5142_s11  ;;  %s9980_s11 = smov 112  }
 0x120   : > { %v740_v40 = vadd.f32 %v9920_v14, %v728_v20  ;;  %v1327_v37 = vmul.f32 %v9921_v43, %v5700_v22  ;;  %v9922_v11 = vmov %v9918_v38  ;;  %v9924_v36 = vrot.slane %v9923_v19, 3 }
 0x121   : > { %v5738_v30 = vadd.f32 %v9922_v11, %v641_v35  ;;  %v1320_v25 = vrot.slane %v1316_v5, 6  ;;  %v9925_v18 = vmov %v9921_v43  ;;  %v9926_v48 = vstv %s9913_s9  ;;  %806 = vrot.lane.b32.xlu0 %v5729_v9, %s9885_s19  ;;  %9987 = sst [smem:[#allocation12_spill]] %s5971_s8  ;;  %s5975_s9 = sld [smem:[#allocation3 + $0x48]] }
 0x122   : > { %v741_v26 = vadd.f32 %v9924_v36, %v729_v7  ;;  %v1328_v28 = vmul.f32 %v9925_v18, %v5712_v13  ;;  %v1657_v34 = vmul.f32 %v9926_v48, %v5312_v57  ;;  %v1423_v23 = vadd.f32 %v1421_v49, %v1417_v1  ;;  %9988 = sst [smem:[#allocation13_spill]] %s5973_s18  ;;  %s6045_s18 = sld [smem:[#allocation3 + $0x5a]] }
 0x123   : > { %v748_v15 = vrot.slane %v744_v27, 3  ;;  %v1323_v16 = vadd.f32 %v1319_v4, %v1311_v10  ;;  %v1537_v31 = vrot.slane %v5623_v12, 5  ;;  %v1424_v39 = vadd.f32 %v1422_v55, %v1418_v33  ;;  %808 = vrot.lane.b32.xlu1 %v5738_v30, %s9885_s19  ;;  %v9935_v55 = vld [vmem:[#allocation61_spill] sm:$0xff]  ;;  %s6053_s8 = sld [smem:[#allocation3 + $0x44]] }
 0x124   : > { %v749_v20 = vrot.slane %v745_v0, 3  ;;  %v1324_v53 = vadd.f32 %v1320_v25, %v1312_v52  ;;  %v9928_v54 = vmov %v9926_v48  ;;  %v9929_v7 = vstv %s5102_s21  ;;  %s9975_s21 = sld [smem:[#allocation78_spill]] }
 0x125   : > { %v1658_v35 = vmul.f32 %v9928_v54, %v9882_v60  ;;  %v752_v1 = vadd.f32 %v748_v15, %v740_v40  ;;  %v1439_v8 = vmul.f32 %v9929_v7, %v5312_v57  ;;  %v1329_v5 = vadd.f32 %v1327_v37, %v1323_v16  ;;  %816 = vrot.lane.b32.xlu0 %v5729_v9, %s9894_s24  ;;  %v9940_v37 = vld [vmem:[#allocation79_spill] sm:$0xff] }
 0x126   : > { %v1538_v12 = vrot.slane %v5647_v45, 5  ;;  %v753_v61 = vadd.f32 %v749_v20, %v741_v26  ;;  %v9930_v62 = vmov %v9929_v7  ;;  %v1330_v21 = vadd.f32 %v1328_v28, %v1324_v53  ;;  %v9944_v28 = vld [vmem:[#allocation80_spill] sm:$0xff]  ;;  %v9949_v7 = vld [vmem:[#allocation37_spill] sm:$0xff] }
 0x127   : > { %v1440_v10 = vmul.f32 %v9930_v62, %v9882_v60  ;;  %v1541_v49 = vadd.f32 %v1537_v31, %v5473_v47  ;;  %v9932_v27 = vrot.slane %v9931_v59, 6  ;;  %v9933_v17 = vstv %s9927_s25  ;;  %818 = vrot.lane.b32.xlu1 %v5738_v30, %s9894_s24  ;;  %v9947_v31 = vld [vmem:[#allocation36_spill] sm:$0xff]  ;;  %9989 = sst [smem:[#allocation14_spill]] %s5975_s9  ;;  %s5977_s25 = sld [smem:[#allocation3 + $0x54]] }
 0x128   : > { %v1545_v51 = vmul.f32 %v9933_v17, %v5629_v56  ;;  %v9934_v52 = vstv %s5092_s26  ;;  %v1542_v45 = vadd.f32 %v1538_v12, %v5491_v41  ;;  %v9936_v58 = vrot.slane %v9935_v55, 6  ;;  %s5806_s26 = sld [smem:[#allocation3 + $0x8d]]  ;;  %s6043_s9 = sld [smem:[#allocation3 + $0x4e]] }
 0x129   : > { %v1435_v33 = vadd.f32 %v9932_v27, %v1423_v23  ;;  %v1345_v42 = vmul.f32 %v9934_v52, %v5312_v57  ;;  %v9937_v47 = vmov %v9933_v17  ;;  %v9938_v29 = vmov %v9934_v52  ;;  %10003 = sst [smem:[#allocation27_spill]] %s6045_s18 }
 0x12a   : > { %v1436_v0 = vadd.f32 %v9936_v58, %v1424_v39  ;;  %v1546_v38 = vmul.f32 %v9937_v47, %v5633_v44  ;;  %v1346_v14 = vmul.f32 %v9938_v29, %v9882_v60  ;;  %v9939_v40 = vstv %s5090_s28  ;;  %s9951_s28 = sld [smem:[#allocation50_spill]]  ;;  %10005 = sst [smem:[#allocation30_spill]] %s6053_s8 }
 0x12b   : > { %v5787_v4 = vadd.f32 %v9939_v40, %v752_v1  ;;  %v1443_v43 = vrot.slane %v1439_v8, 6  ;;  %v9941_v11 = vrot.slane %v9940_v37, 7  ;;  %v9942_v41 = vstv %s5156_s20  ;;  %s5813_s20 = sld [smem:[#allocation3 + $0x8e]]  ;;  %s6149_s8 = sld [smem:[#allocation3 + $0x94]] }
 0x12c   : > { %v1451_v36 = vmul.f32 %v9942_v41, %v5700_v22  ;;  %v9943_v26 = vmov %v9939_v40  ;;  %v1444_v18 = vrot.slane %v1440_v10, 6  ;;  %v9945_v48 = vrot.slane %v9944_v28, 7 }
 0x12d   : > { %v1341_v19 = vadd.f32 %v9941_v11, %v1329_v5  ;;  %v5796_v25 = vadd.f32 %v9943_v26, %v753_v61  ;;  %v9946_v15 = vmov %v9942_v41  ;;  %v9948_v39 = vrot.slane %v9947_v31, 5  ;;  %828 = vrot.lane.b32.xlu0 %v5787_v4, %s9885_s19  ;;  %9990 = sst [smem:[#allocation15_spill]] %s5977_s25  ;;  %s6051_s25 = sld [smem:[#allocation3 + $0x38]] }
 0x12e   : > { %v1342_v23 = vadd.f32 %v9945_v48, %v1330_v21  ;;  %v1452_v16 = vmul.f32 %v9946_v15, %v5712_v13  ;;  %v1547_v53 = vadd.f32 %v1545_v51, %v1541_v49  ;;  %v1349_v54 = vrot.slane %v1345_v42, 7  ;;  %v9954_v42 = vld [vmem:[#allocation62_spill] sm:$0xff]  ;;  %10002 = sst [smem:[#allocation26_spill]] %s6043_s9  ;;  %s6171_s9 = sld [smem:[#allocation3 + $0xb8]] }
 0x12f   : > { %v1653_v20 = vadd.f32 %v9948_v39, %v5461_v2  ;;  %v1447_v1 = vadd.f32 %v1443_v43, %v1435_v33  ;;  %v9950_v8 = vrot.slane %v9949_v7, 5  ;;  %v1548_v12 = vadd.f32 %v1546_v38, %v1542_v45  ;;  %830 = vrot.lane.b32.xlu1 %v5796_v25, %s9885_s19  ;;  %v9958_v38 = vld [vmem:[#allocation65_spill] sm:$0xff]  ;;  %s6000_s19 = sld [smem:[#allocation3 + $0x41]] }
 0x130   : > { %v1350_v61 = vrot.slane %v1346_v14, 7  ;;  %v1448_v62 = vadd.f32 %v1444_v18, %v1436_v0  ;;  %v1661_v2 = vrot.slane %v1657_v34, 5  ;;  %v9952_v10 = vstv %s5122_s14  ;;  %s9970_s14 = smov 16  }
 0x131   : > { %v1654_v5 = vadd.f32 %v9950_v8, %v5494_v24  ;;  %v1563_v21 = vmul.f32 %v9952_v10, %v5312_v57  ;;  %v1353_v49 = vadd.f32 %v1349_v54, %v1341_v19  ;;  %v1453_v59 = vadd.f32 %v1451_v36, %v1447_v1  ;;  %838 = vrot.lane.b32.xlu0 %v5787_v4, %s9894_s24  ;;  %v9963_v36 = vld [vmem:[#allocation82_spill] sm:$0xff] }
 0x132   : > { %v1662_v24 = vrot.slane %v1658_v35, 5  ;;  %v9953_v27 = vmov %v9952_v10  ;;  %v1354_v17 = vadd.f32 %v1350_v61, %v1342_v23  ;;  %v1454_v51 = vadd.f32 %v1452_v16, %v1448_v62  ;;  %v9967_v16 = vld [vmem:[#allocation83_spill] sm:$0xff] }
 0x133   : > { %v1564_v33 = vmul.f32 %v9953_v27, %v9882_v60  ;;  %v1665_v52 = vadd.f32 %v1661_v2, %v1653_v20  ;;  %v9955_v45 = vrot.slane %v9954_v42, 6  ;;  %v9956_v34 = vstv %s9951_s28  ;;  %840 = vrot.lane.b32.xlu1 %v5796_v25, %s9894_s24  ;;  %v9971_v2 = vld [vmem:[#allocation85_spill] sm:$0xff]  ;;  %v9974_v27 = vld [vmem:[#allocation86_spill] sm:$0xff]  ;;  %s5981_s28 = sld [smem:[#allocation3 + $0x3e]]  ;;  %s5998_s24 = sld [smem:[#allocation3 + $0x35]] }
 0x134   : > { %v1669_v58 = vmul.f32 %v9956_v34, %v5629_v56  ;;  %v9957_v0 = vstv %s5104_s10  ;;  %v1666_v35 = vadd.f32 %v1662_v24, %v1654_v5  ;;  %v9959_v29 = vrot.slane %v9958_v38, 6  ;;  %s5874_s10 = sld [smem:[#allocation5 + $0xa]]  ;;  %10004 = sst [smem:[#allocation28_spill]] %s6051_s25 }
 0x135   : > { %v1559_v55 = vadd.f32 %v9955_v45, %v1547_v53  ;;  %v1469_v47 = vmul.f32 %v9957_v0, %v5312_v57  ;;  %v9960_v40 = vmov %v9956_v34  ;;  %v9961_v37 = vmov %v9957_v0  ;;  %v9977_v45 = vld [vmem:[#allocation67_spill] sm:$0xff]  ;;  %9995 = sst [smem:[#allocation22_spill]] %s6000_s19  ;;  %s6093_s19 = sld [smem:[#allocation3 + $0x3b]] }
 0x136   : > { %v1560_v14 = vadd.f32 %v9959_v29, %v1548_v12  ;;  %v1670_v43 = vmul.f32 %v9960_v40, %v5633_v44  ;;  %v1470_v11 = vmul.f32 %v9961_v37, %v9882_v60  ;;  %v1567_v56 = vrot.slane %v1563_v21, 6  ;;  %s6147_s25 = sld [smem:[#allocation3 + $0xb5]] }
 0x137   : > { %v9962_v19 = vstv %s5144_s5  ;;  %v9964_v26 = vrot.slane %v9963_v36, 7  ;;  %v9965_v28 = vstv %s5170_s30  ;;  %v1568_v23 = vrot.slane %v1564_v33, 6  ;;  %s9972_s5 = sld [smem:[#allocation11_spill]]  ;;  %s5871_s30 = sld [smem:[#allocation3 + $0x8f]] }
 0x138   : > { %v5845_v41 = vadd.f32 %v9962_v19, %v1353_v49  ;;  %v1575_v48 = vmul.f32 %v9965_v28, %v5700_v22  ;;  %v9966_v44 = vmov %v9962_v19  ;;  %v9968_v31 = vrot.slane %v9967_v16, 7 }
 0x139   : > { %v1465_v18 = vadd.f32 %v9964_v26, %v1453_v59  ;;  %v5854_v15 = vadd.f32 %v9966_v44, %v1354_v17  ;;  %v9969_v20 = vmov %v9965_v28  ;;  %v1671_v54 = vadd.f32 %v1669_v58, %v1665_v52  ;;  %9994 = sst [smem:[#allocation20_spill]] %s5998_s24  ;;  %s6091_s24 = sld [smem:[#allocation3 + $0x5d]] }
 0x13a   : > { %v1466_v39 = vadd.f32 %v9968_v31, %v1454_v51  ;;  %v1576_v53 = vmul.f32 %v9969_v20, %v5712_v13  ;;  %v1473_v1 = vrot.slane %v1469_v47, 7  ;;  %v1571_v7 = vadd.f32 %v1567_v56, %v1559_v55  ;;  %1733 = vrot.lane.b32.xlu0 %v5845_v41, %s9970_s14  ;;  %v9981_v47 = vld [vmem:[#allocation68_spill] sm:$0xff] }
 0x13b   : > { %v1698_v8 = vstv %s5806_s26  ;;  %v1672_v5 = vadd.f32 %v1670_v43, %v1666_v35  ;;  %v1474_v12 = vrot.slane %v1470_v11, 7  ;;  %v1572_v61 = vadd.f32 %v1568_v23, %v1560_v14  ;;  %1735 = vrot.lane.b32.xlu1 %v5854_v15, %s9970_s14  ;;  %s5979_s26 = sld [smem:[#allocation3 + $0x32]]  ;;  %10009 = sst [smem:[#allocation31_spill]] %s6093_s19 }
 0x13c   : > { %v1704_v62 = vstv %s5813_s20  ;;  %v1585_v10 = vrot.slane %v9971_v2, 7  ;;  %v9973_v21 = vstv %s5134_s1  ;;  %v1477_v59 = vadd.f32 %v1473_v1, %v1465_v18  ;;  %s5941_s1 = sld [smem:[#allocation3 + $0x31]]  ;;  %s5983_s20 = sld [smem:[#allocation3 + $0x4a]] }
 0x13d   : > { %v1687_v49 = vmul.f32 %v9973_v21, %v5312_v57  ;;  %v1577_v24 = vadd.f32 %v1575_v48, %v1571_v7  ;;  %v1586_v33 = vrot.slane %v9974_v27, 7  ;;  %v9976_v17 = vmov %v9973_v21  ;;  %v4469_v40 = vld [vmem:[%s9972_s5] sm:$0xff]  ;;  %v4470_v37 = vld [vmem:[%s9972_s5 + $0x8] sm:$0xff]  ;;  %s5994_s5 = sld [smem:[#allocation3 + $0x57]]  ;;  %s6201_s19 = sld [smem:[#allocation3 + $0xa3]] }
 0x13e   : > { %v1688_v51 = vmul.f32 %v9976_v17, %v9882_v60  ;;  %v1478_v52 = vadd.f32 %v1474_v12, %v1466_v39  ;;  %v1578_v42 = vadd.f32 %v1576_v53, %v1572_v61  ;;  %v9978_v55 = vrot.slane %v9977_v45, 6  ;;  %1741 = vrot.lane.b32.xlu0 %v5845_v41, %s9980_s11 }
 0x13f   : > { %v9979_v58 = vstv %s5132_s0  ;;  %v9982_v35 = vrot.slane %v9981_v47, 6  ;;  %v1705_v43 = vmul.f32 %v4469_v40, %v1704_v62  ;;  %v1706_v11 = vmul.f32 %v4470_v37, %v1704_v62  ;;  %1743 = vrot.lane.b32.xlu1 %v5854_v15, %s9980_s11  ;;  %s4171_s0 = sld [smem:[#allocation5 + $0xb]] }
 0x140   : > { %v1683_v34 = vadd.f32 %v9978_v55, %v1671_v54  ;;  %v1593_v0 = vmul.f32 %v9979_v58, %v5312_v57  ;;  %v9983_v29 = vmov %v9979_v58  ;;  %v1691_v56 = vrot.slane %v1687_v49, 6 }
 0x141   : > { %v1684_v38 = vadd.f32 %v9982_v35, %v1672_v5  ;;  %v1594_v14 = vmul.f32 %v9983_v29, %v9882_v60  ;;  %v9984_v19 = vstv %s9975_s21  ;;  %v1589_v26 = vadd.f32 %v1585_v10, %v1577_v24  ;;  %s5987_s21 = sld [smem:[#allocation3 + $0x33]] }
 0x142   : > { %v5897_v36 = vadd.f32 %v9984_v19, %v1477_v59  ;;  %v1699_v18 = vmul.f32 %v1698_v8, %v5700_v22  ;;  %v1692_v28 = vrot.slane %v1688_v51, 6  ;;  %v9985_v48 = vmov %v9984_v19 }
 0x143   : > { %v5902_v23 = vadd.f32 %v9985_v48, %v1478_v52  ;;  %v1590_v44 = vadd.f32 %v1586_v33, %v1578_v42  ;;  %v1700_v16 = vmul.f32 %v1698_v8, %v5712_v13  ;;  %v1597_v31 = vrot.slane %v1593_v0, 7  ;;  %9993 = sst [smem:[#allocation18_spill]] %s5994_s5  ;;  %s6105_s5 = sld [smem:[#allocation3 + $0x47]] }
 0x144   : > { %v1695_v39 = vadd.f32 %v1691_v56, %v1683_v34  ;;  %1751 = vrot.lane.b32.xlu0 %v5897_v36, %s9970_s14  ;;  %v1598_v20 = vrot.slane %v1594_v14, 7  ;;  %v1696_v53 = vadd.f32 %v1692_v28, %v1684_v38  ;;  %v1709_v54 = vrot.slane %v1705_v43, 7 }
 0x145   : > { %1753 = vrot.lane.b32.xlu1 %v5902_v23, %s9970_s14  ;;  %v1716_v1 = vstv %s5871_s30  ;;  %v1601_v22 = vadd.f32 %v1597_v31, %v1589_v26  ;;  %v1604_v5 = vstv %s5874_s10  ;;  %v1710_v12 = vrot.slane %v1706_v11, 7  ;;  %s5985_s30 = sld [smem:[#allocation3 + $0x56]]  ;;  %s5989_s10 = sld [smem:[#allocation3 + $0x3f]] }
 0x146   : > { %v1701_v7 = vadd.f32 %v1699_v18, %v1695_v39  ;;  %v1602_v61 = vadd.f32 %v1598_v20, %v1590_v44  ;;  %v1702_v62 = vadd.f32 %v1700_v16, %v1696_v53  ;;  %v1717_v13 = vmul.f32 %v1716_v1, %v5312_v57 }
 0x147   : > { %v1718_v8 = vmul.f32 %v1716_v1, %v9882_v60  ;;  %v5917_v2 = vadd.f32 %v1604_v5, %v1601_v22  ;;  %v1728_v27 = vstv %s4171_s0  ;;  %v855_v51 = vstv %s5941_s1  ;;  %s5992_s0 = sld [smem:[#allocation3 + $0x4b]]  ;;  %s6015_s1 = sld [smem:[#allocation3 + $0x5e]] }
 0x148   : > { %1759 = vrot.lane.b32.xlu0 %v5897_v36, %s9980_s11  ;;  %v1713_v10 = vadd.f32 %v1709_v54, %v1701_v7  ;;  %v5919_v21 = vadd.f32 %v1604_v5, %v1602_v61  ;;  %v1714_v49 = vadd.f32 %v1710_v12, %v1702_v62  ;;  %v1721_v59 = vrot.slane %v1717_v13, 7 }
 0x149   : > { %1761 = vrot.lane.b32.xlu1 %v5902_v23, %s9980_s11  ;;  %v1722_v24 = vrot.slane %v1718_v8, 7  ;;  %v938_v52 = vstv %s5943_s27  ;;  %v1020_v42 = vstv %s5945_s4  ;;  %v1102_v45 = vstv %s5947_s17  ;;  %s6017_s27 = sld [smem:[#allocation3 + $0x91]]  ;;  %s6029_s4 = sld [smem:[#allocation3 + $0x36]] }
 0x14a   : > { %v1725_v57 = vadd.f32 %v1721_v59, %v1713_v10  ;;  %v6009_v34 = vmul.f32 %v855_v51, %v5598_v63  ;;  %v6012_v58 = vmul.f32 %v855_v51, %v5602_v46  ;;  %v6020_v47 = vmul.f32 %v938_v52, %v5598_v63  ;;  %s6031_s17 = sld [smem:[#allocation3 + $0x42]]  ;;  %10011 = sst [smem:[#allocation38_spill]] %s6105_s5 }
 0x14b   : > { %v1726_v60 = vadd.f32 %v1722_v24, %v1714_v49  ;;  %9991 = sst [smem:[#allocation16_spill]] %s5989_s10  ;;  %v6023_v35 = vmul.f32 %v938_v52, %v5602_v46  ;;  %v6027_v29 = vmul.f32 %v1020_v42, %v5598_v63  ;;  %v6034_v14 = vmul.f32 %v1020_v42, %v5602_v46  ;;  %s6181_s10 = sld [smem:[#allocation3 + $0x9c]] }
 0x14c   : > { %1769 = vrot.lane.b32.xlu0 %v5917_v2, %s9970_s14  ;;  %v5929_v33 = vadd.f32 %v1728_v27, %v1725_v57  ;;  %v6038_v43 = vmul.f32 %v1102_v45, %v5598_v63  ;;  %v6041_v37 = vmul.f32 %v1102_v45, %v5602_v46  ;;  %v873_v19 = vstv %s5949_s29  ;;  %s6067_s29 = sld [smem:[#allocation3 + $0x39]]  ;;  %s6271_s5 = sld [smem:[#allocation3 + $0x9f]] }
 0x14d   : > { %1771 = vrot.lane.b32.xlu1 %v5919_v21, %s9970_s14  ;;  %v5931_v17 = vadd.f32 %v1728_v27, %v1726_v60  ;;  %9992 = sst [smem:[#allocation35_spill]] %s5992_s0  ;;  %v956_v26 = vstv %s5951_s13  ;;  %v1038_v18 = vstv %s5953_s7  ;;  %v1120_v28 = vstv %s5955_s6  ;;  %s6069_s13 = sld [smem:[#allocation3 + $0x9d]] }
 0x14e   : > { %9986 = vst [vmem:[#allocation40_spill] sm:$0xff] %v5929_v33  ;;  %9998 = sst [smem:[#allocation21_spill]] %s6015_s1  ;;  %v6072_v39 = vmul.f32 %v873_v19, %v5677_v6  ;;  %v6076_v53 = vmul.f32 %v956_v26, %v5677_v6  ;;  %s6079_s7 = sld [smem:[#allocation3 + $0x45]]  ;;  %v6084_v1 = vmul.f32 %v1038_v18, %v5677_v6  ;;  %v6088_v7 = vmul.f32 %v1120_v28, %v5677_v6 }
 0x14f   : > { %9999 = sst [smem:[#allocation23_spill]] %s6017_s27  ;;  %s6059_s27 = sld [smem:[#allocation3 + $0x50]]  ;;  %v6096_v12 = vmul.f32 %v873_v19, %v5668_v3  ;;  %v6099_v61 = vmul.f32 %v956_v26, %v5668_v3  ;;  %v891_v62 = vstv %s5957_s12  ;;  %v974_v13 = vstv %s5959_s16 }
 0x150   : > { %1777 = vrot.lane.b32.xlu0 %v5917_v2, %s9980_s11  ;;  %10000 = sst [smem:[#allocation24_spill]] %s6029_s4  ;;  %s6061_s1 = sld [smem:[#allocation3 + $0x5c]]  ;;  %v6108_v6 = vmul.f32 %v1038_v18, %v5668_v3  ;;  %v6111_v8 = vmul.f32 %v1120_v28, %v5668_v3  ;;  %v1056_v10 = vstv %s5961_s22  ;;  %v1138_v49 = vstv %s5963_s23 }
 0x151   : > { %1779 = vrot.lane.b32.xlu1 %v5919_v21, %s9980_s11  ;;  %10001 = sst [smem:[#allocation25_spill]] %s6031_s17  ;;  %s6081_s6 = sld [smem:[#allocation3 + $0x51]]  ;;  %v6128_v3 = vmul.f32 %v891_v62, %v5738_v30  ;;  %v6132_v51 = vmul.f32 %v974_v13, %v5738_v30  ;;  %v6140_v42 = vmul.f32 %v1056_v10, %v5738_v30  ;;  %v6144_v19 = vmul.f32 %v1138_v49, %v5738_v30 }
 0x152   : > { %s6117_s0 = sld [smem:[#allocation3 + $0x53]]  ;;  %s6123_s12 = sld [smem:[#allocation5 + $0x6]]  ;;  %v6152_v18 = vmul.f32 %v891_v62, %v5729_v9  ;;  %v6155_v28 = vmul.f32 %v974_v13, %v5729_v9  ;;  %v6158_v45 = vmul.f32 %v1056_v10, %v5729_v9  ;;  %v909_v30 = vstv %s5965_s15 }
 0x153   : > { %s6125_s16 = sld [smem:[#allocation3 + $0x5f]]  ;;  %s6137_s23 = sld [smem:[#allocation3 + $0xa9]]  ;;  %v6166_v26 = vmul.f32 %v1138_v49, %v5729_v9  ;;  %v992_v60 = vstv %s5967_s3  ;;  %v1074_v57 = vstv %s5969_s2  ;;  %v6184_v9 = vmul.f32 %v909_v30, %v5796_v25 }
 0x154   : > { %1787 = vrot.lane.b32.xlu0 %v5929_v33, %s9970_s14  ;;  %s6135_s22 = sld [smem:[#allocation5 + $0x7]]  ;;  %s10017_s18 = sld [smem:[#allocation21_spill]]  ;;  %v6194_v27 = vmul.f32 %v992_v60, %v5796_v25  ;;  %v6204_v49 = vmul.f32 %v1074_v57, %v5796_v25  ;;  %v1892_v5 = vstv %s6069_s13  ;;  %v6218_v13 = vmul.f32 %v909_v30, %v5787_v4 }
 0x155   : > { %1789 = vrot.lane.b32.xlu1 %v5931_v17, %s9970_s14  ;;  %s6005_s14 = sld [smem:[#allocation3 + $0x59]]  ;;  %10006 = sst [smem:[#allocation32_spill]] %s6059_s27  ;;  %v6226_v62 = vmul.f32 %v992_v60, %v5787_v4  ;;  %v6229_v59 = vmul.f32 %v1074_v57, %v5787_v4  ;;  %v6245_v60 = vmul.f32 %v1892_v5, %v5845_v41  ;;  %v2056_v57 = vstv %s6147_s25 }
 0x156   : > { %10007 = sst [smem:[#allocation34_spill]] %s6061_s1  ;;  %s6161_s27 = sld [smem:[#allocation3 + $0xa0]]  ;;  %v1828_v20 = vstv %s6149_s8  ;;  %v2074_v48 = vstv %s6171_s9  ;;  %v6281_v56 = vmul.f32 %v2056_v57, %v5854_v15 }
 0x157   : > { %10008 = sst [smem:[#allocation29_spill]] %s6081_s6  ;;  %s6173_s17 = sld [smem:[#allocation3 + $0x97]]  ;;  %v6308_v16 = vmul.f32 %v2074_v48, %v5902_v23  ;;  %v6328_v0 = vmul.f32 %v2074_v48, %v5897_v36 }
 0x158   : > { %1795 = vrot.lane.b32.xlu0 %v5929_v33, %s9980_s11  ;;  %10013 = sst [smem:[#allocation52_spill]] %s6117_s0  ;;  %s10018_s15 = sld [smem:[#allocation23_spill]]  ;;  %10032 = vst [vmem:[#allocation54_spill] sm:$0xff] %v6281_v56  ;;  %v10076_v56 = vstv %s5985_s30 }
 0x159   : > { %1797 = vrot.lane.b32.xlu1 %v5931_v17, %s9980_s11  ;;  %s6003_s11 = sld [smem:[#allocation3 + $0x4d]]  ;;  %10014 = sst [smem:[#allocation56_spill]] %s6123_s12  ;;  %v1974_v54 = vstv %s6137_s23  ;;  %10038 = vst [vmem:[#allocation72_spill] sm:$0xff] %v6308_v16  ;;  %10041 = vst [vmem:[#allocation74_spill] sm:$0xff] %v6328_v0 }
 0x15a   : > { %10015 = sst [smem:[#allocation66_spill]] %s6125_s16  ;;  %s6163_s1 = sld [smem:[#allocation3 + $0xac]]  ;;  %v1156_v52 = vstv %s10017_s18 }
 0x15b   : > { %9997 = sst [smem:[#allocation19_spill]] %s6005_s14  ;;  %s6115_s14 = sld [smem:[#allocation5 + $0x5]]  ;;  %v6214_v22 = vmul.f32 %v1156_v52, %v5796_v25  ;;  %v6232_v25 = vmul.f32 %v1156_v52, %v5787_v4  ;;  %v6248_v4 = vmul.f32 %v1892_v5, %v5854_v15  ;;  %v6256_v52 = vmul.f32 %v1974_v54, %v5845_v41 }
 0x15c   : > { %10016 = sst [smem:[#allocation39_spill]] %s6135_s22  ;;  %s6179_s4 = sld [smem:[#allocation3 + $0x90]]  ;;  %v1910_v31 = vstv %s6161_s27  ;;  %v6289_v5 = vmul.f32 %v1828_v20, %v5902_v23 }
 0x15d   : > { %s6189_s3 = sld [smem:[#allocation3 + $0xa8]]  ;;  %s6191_s6 = sld [smem:[#allocation3 + $0xb4]]  ;;  %10025 = vst [vmem:[#allocation42_spill] sm:$0xff] %v6248_v4  ;;  %10027 = vst [vmem:[#allocation43_spill] sm:$0xff] %v6256_v52  ;;  %v1846_v46 = vstv %s6173_s17  ;;  %v6322_v38 = vmul.f32 %v1910_v31, %v5897_v36 }
 0x15e   : > { %v1810_v24 = vstv %s10018_s15  ;;  %s6199_s2 = sld [smem:[#allocation3 + $0x92]]  ;;  %s6209_s18 = sld [smem:[#allocation3 + $0x9e]]  ;;  %10034 = vst [vmem:[#allocation70_spill] sm:$0xff] %v6289_v5  ;;  %v6336_v11 = vmul.f32 %v1846_v46, %v5919_v21  ;;  %v6363_v16 = vmul.f32 %v1846_v46, %v5917_v2 }
 0x15f   : > { %9996 = sst [smem:[#allocation17_spill]] %s6003_s11  ;;  %s6103_s11 = sld [smem:[#allocation5 + $0x4]]  ;;  %v6235_v30 = vmul.f32 %v1810_v24, %v5845_v41  ;;  %v6242_v10 = vmul.f32 %v1810_v24, %v5854_v15  ;;  %v6259_v24 = vmul.f32 %v1974_v54, %v5854_v15  ;;  %v6278_v54 = vmul.f32 %v2056_v57, %v5845_v41  ;;  %10039 = vst [vmem:[#allocation73_spill] sm:$0xff] %v6322_v38 }
 0x160   : > { %s6221_s15 = sld [smem:[#allocation3 + $0xaa]]  ;;  %s6237_s13 = sld [smem:[#allocation3 + $0xbb]]  ;;  %v1992_v44 = vstv %s6163_s1  ;;  %v6294_v41 = vmul.f32 %v1910_v31, %v5902_v23  ;;  %v6299_v15 = vmul.f32 %v1828_v20, %v5897_v36  ;;  %v1928_v20 = vstv %s6201_s19  ;;  %10042 = vst [vmem:[#allocation75_spill] sm:$0xff] %v6336_v11  ;;  %10047 = vst [vmem:[#allocation59_spill] sm:$0xff] %v6363_v16 }
 0x161   : > { %10012 = sst [smem:[#allocation53_spill]] %s6115_s14  ;;  %s6223_s14 = sld [smem:[#allocation3 + $0xb6]]  ;;  %10028 = vst [vmem:[#allocation48_spill] sm:$0xff] %v6259_v24  ;;  %10031 = vst [vmem:[#allocation51_spill] sm:$0xff] %v6278_v54  ;;  %v6303_v63 = vmul.f32 %v1992_v44, %v5902_v23  ;;  %v6325_v23 = vmul.f32 %v1992_v44, %v5897_v36  ;;  %v6349_v36 = vmul.f32 %v1928_v20, %v5919_v21 }
 0x162   : > { %s6239_s23 = sld [smem:[#allocation3 + $0x9a]]  ;;  %s6251_s22 = sld [smem:[#allocation3 + $0xa6]]  ;;  %10035 = vst [vmem:[#allocation71_spill] sm:$0xff] %v6294_v41  ;;  %10036 = vst [vmem:[#allocation87_spill] sm:$0xff] %v6299_v15  ;;  %v10074_v41 = vstv %s5981_s28 }
 0x163   : > { %10019 = sst [smem:[#allocation41_spill]] %s6189_s3  ;;  %s6253_s12 = sld [smem:[#allocation3 + $0xb2]]  ;;  %10037 = vst [vmem:[#allocation55_spill] sm:$0xff] %v6303_v63  ;;  %10040 = vst [vmem:[#allocation81_spill] sm:$0xff] %v6325_v23 }
 0x164   : > { %10020 = sst [smem:[#allocation63_spill]] %s6191_s6  ;;  %s6261_s16 = sld [smem:[#allocation2]]  ;;  %10044 = vst [vmem:[#allocation58_spill] sm:$0xff] %v6349_v36  ;;  %v6366_v36 = vmul.f32 %v1928_v20, %v5917_v2 }
 0x165   : > { %10010 = sst [smem:[#allocation33_spill]] %s6103_s11  ;;  %s6211_s11 = sld [smem:[#allocation3 + $0xaf]] }
 0x166   : > { %10021 = sst [smem:[#allocation46_spill]] %s6199_s2  ;;  %s6265_s0 = sld [smem:[#allocation3 + $0xbe]]  ;;  %v2092_v40 = vstv %s6237_s13  ;;  %10048 = vst [vmem:[#allocation61_spill] sm:$0xff] %v6366_v36 }
 0x167   : > { %10022 = sst [smem:[#allocation60_spill]] %s6209_s18  ;;  %s6269_s25 = sld [smem:[#allocation3 + $0x93]]  ;;  %v6358_v0 = vmul.f32 %v2092_v40, %v5919_v21 }
 0x168   : > { %10023 = sst [smem:[#allocation45_spill]] %s6221_s15  ;;  %s6283_s8 = sld [smem:[#allocation3 + $0xab]]  ;;  %v1864_v31 = vstv %s6239_s23  ;;  %v1946_v55 = vstv %s6251_s22 }
 0x169   : > { %10024 = sst [smem:[#allocation47_spill]] %s6223_s14  ;;  %s6285_s27 = sld [smem:[#allocation3 + $0xb7]]  ;;  %10046 = vst [vmem:[#allocation77_spill] sm:$0xff] %v6358_v0  ;;  %v6381_v46 = vmul.f32 %v1864_v31, %v5931_v17  ;;  %v6384_v20 = vmul.f32 %v1946_v55, %v5931_v17 }
 0x16a   : > { %10026 = sst [smem:[#allocation64_spill]] %s6253_s12  ;;  %s6291_s9 = sld [smem:[#allocation3 + $0x95]]  ;;  %v6346_v44 = vstv %s6261_s16 }
 0x16b   : > { %s6296_s1 = sld [smem:[#allocation3 + $0xa1]]  ;;  %s6305_s2 = sld [smem:[#allocation3 + $0xad]]  ;;  %v2010_v57 = vstv %s6211_s11  ;;  %10043 = vst [vmem:[#allocation57_spill] sm:$0xff] %v6346_v44  ;;  %10051 = vst [vmem:[#allocation36_spill] sm:$0xff] %v6381_v46  ;;  %v6401_v46 = vmul.f32 %v1946_v55, %v5929_v33 }
 0x16c   : > { %10029 = sst [smem:[#allocation44_spill]] %s6265_s0  ;;  %s6310_s6 = sld [smem:[#allocation3 + $0xb9]]  ;;  %v6352_v48 = vmul.f32 %v2010_v57, %v5919_v21  ;;  %v6374_v21 = vmul.f32 %v2092_v40, %v5917_v2  ;;  %10052 = vst [vmem:[#allocation37_spill] sm:$0xff] %v6384_v20  ;;  %v10055_v40 = vstv %s6265_s0 }
 0x16d   : > { %10030 = sst [smem:[#allocation49_spill]] %s6269_s25  ;;  %s6315_s3 = sld [smem:[#allocation3 + $0x96]]  ;;  %10058 = vst [vmem:[#allocation83_spill] sm:$0xff] %v6401_v46 }
 0x16e   : > { %10033 = sst [smem:[#allocation50_spill]] %s6283_s8  ;;  %s6317_s18 = sld [smem:[#allocation3 + $0xa2]]  ;;  %10045 = vst [vmem:[#allocation76_spill] sm:$0xff] %v6352_v48  ;;  %v6369_v48 = vmul.f32 %v2010_v57, %v5917_v2  ;;  %10050 = vst [vmem:[#allocation80_spill] sm:$0xff] %v6374_v21  ;;  %v10053_v57 = vstv %s6253_s12  ;;  %v6395_v21 = vmul.f32 %v10055_v40, %v5931_v17 }
 0x16f   : > { %s6330_s17 = sld [smem:[#allocation3 + $0xae]]  ;;  %s6332_s14 = sld [smem:[#allocation3 + $0xba]]  ;;  %v6389_v11 = vmul.f32 %v10053_v57, %v5931_v17 }
 0x170   : > { %s6338_s19 = sld [smem:[#allocation3 + $0x98]]  ;;  %s6340_s11 = sld [smem:[#allocation3 + $0xa4]]  ;;  %10049 = vst [vmem:[#allocation79_spill] sm:$0xff] %v6369_v48  ;;  %10056 = vst [vmem:[#allocation65_spill] sm:$0xff] %v6395_v21  ;;  %v6398_v48 = vmul.f32 %v1864_v31, %v5929_v33 }
 0x171   : > { %s6354_s13 = sld [smem:[#allocation3 + $0xb0]]  ;;  %s6360_s22 = sld [smem:[#allocation3 + $0xbc]]  ;;  %10054 = vst [vmem:[#allocation62_spill] sm:$0xff] %v6389_v11 }
 0x172   : > { %s6371_s16 = sld [smem:[#allocation3 + $0x99]]  ;;  %s6376_s23 = sld [smem:[#allocation3 + $0xa5]]  ;;  %10057 = vst [vmem:[#allocation82_spill] sm:$0xff] %v6398_v48 }
 0x173   : > { %s6378_s15 = sld [smem:[#allocation3 + $0xb1]]  ;;  %s10059_s12 = sld [smem:[#allocation12_spill]] }
 0x174   : > { %s10060_s25 = sld [smem:[#allocation13_spill]]  ;;  %s10061_s0 = sld [smem:[#allocation14_spill]] }
 0x175   : > { %s10062_s8 = sld [smem:[#allocation15_spill]]  ;;  %s10083_s28 = sld [smem:[#allocation18_spill]] }
 0x176   : > { %s10093_s30 = sld [smem:[#allocation22_spill]] }
 0x179   : > { %v10063_v46 = vstv %s10059_s12  ;;  %s10094_s12 = sld [smem:[#allocation17_spill]] }
 0x17a   : > { %v10064_v36 = vstv %s10060_s25  ;;  %v10065_v33 = vmov %v10063_v46  ;;  %v10067_v23 = vstv %s10061_s0  ;;  %s10081_s0 = sld [smem:[#allocation16_spill]] }
 0x17b   : > { %v10068_v40 = vstv %s10062_s8  ;;  %v10069_v57 = vmov %v10067_v23  ;;  %s10100_s25 = sld [smem:[#allocation24_spill]]  ;;  %s10101_s8 = sld [smem:[#allocation25_spill]] }
 0x17c   : > { %v761_v2 = vpop.permute.xlu0 %760  ;;  %v10070_v5 = vmov %v10068_v40 }
 0x17d   : > { %v763_v48 = vpop.permute.xlu1 %762  ;;  %v768_v55 = vsel %vm764_vm3, 0.0, %v761_v2 }
 0x17e   : > { %v765_v11 = vsel %vm764_vm3, %v761_v2, %v763_v48  ;;  %v769_v17 = vsel %vm5190_vm5, %v768_v55, 0.0  ;;  %v10066_v48 = vmov %v10064_v36 }
 0x17f   : > { %v770_v31 = vsel %vm5174_vm4, %v765_v11, 0.0  ;;  %v850_v21 = vmul.f32 %v10063_v46, %v769_v17  ;;  %v933_v20 = vmul.f32 %v10064_v36, %v769_v17 }
 0x180   : > { %v851_v0 = vmul.f32 %v10065_v33, %v770_v31  ;;  %v934_v2 = vmul.f32 %v10066_v48, %v770_v31  ;;  %v1016_v38 = vmul.f32 %v10067_v23, %v770_v31  ;;  %v772_v55 = vpop.permute.xlu0 %771  ;;  %v1098_v16 = vmul.f32 %v10068_v40, %v770_v31 }
 0x181   : > { %v774_v63 = vpop.permute.xlu1 %773  ;;  %v858_v36 = vadd.f32 %v6009_v34, %v850_v21  ;;  %v941_v33 = vadd.f32 %v6020_v47, %v933_v20  ;;  %v1015_v48 = vmul.f32 %v10069_v57, %v769_v17  ;;  %v1097_v23 = vmul.f32 %v10070_v5, %v769_v17 }
 0x182   : > { %v859_v40 = vadd.f32 %v6012_v58, %v851_v0  ;;  %v942_v31 = vadd.f32 %v6023_v35, %v934_v2  ;;  %v779_v46 = vsel %vm775_vm0, %v774_v63, 0.0  ;;  %v776_v11 = vsel %vm775_vm0, %v772_v55, %v774_v63 }
 0x183   : > { %v1024_v34 = vadd.f32 %v6034_v14, %v1016_v38  ;;  %v1106_v47 = vadd.f32 %v6041_v37, %v1098_v16  ;;  %v781_v20 = vsel %vm5108_vm2, %v779_v46, 0.0  ;;  %v780_v5 = vsel %vm5233_vm7, %v776_v11, 0.0 }
 0x184   : > { %v10073_v58 = vstv %s5979_s26  ;;  %v946_v35 = vmul.f32 %v10074_v41, %v781_v20  ;;  %v10075_v2 = vstv %s5983_s20  ;;  %v1110_v54 = vmul.f32 %v10076_v56, %v781_v20  ;;  %s10082_s26 = sld [smem:[#allocation35_spill]]  ;;  %s10092_s20 = sld [smem:[#allocation20_spill]] }
 0x185   : > { %v863_v0 = vmul.f32 %v10073_v58, %v781_v20  ;;  %v1028_v15 = vmul.f32 %v10075_v2, %v781_v20  ;;  %v10077_v55 = vmov %v10073_v58  ;;  %v10078_v14 = vmov %v10074_v41 }
 0x186   : > { %v862_v38 = vmul.f32 %v10077_v55, %v780_v5  ;;  %v945_v37 = vmul.f32 %v10078_v14, %v780_v5  ;;  %v10079_v16 = vmov %v10075_v2  ;;  %v10080_v46 = vmov %v10076_v56 }
 0x187   : > { %v1027_v24 = vmul.f32 %v10079_v16, %v780_v5  ;;  %v1109_v52 = vmul.f32 %v10080_v46, %v780_v5  ;;  %v1023_v11 = vadd.f32 %v6027_v29, %v1015_v48  ;;  %v1105_v44 = vadd.f32 %v6038_v43, %v1097_v23 }
 0x188   : > { %v785_v17 = vpop.permute.xlu0 %784  ;;  %v865_v58 = vadd.f32 %v863_v0, %v859_v40  ;;  %v948_v41 = vadd.f32 %v946_v35, %v942_v31  ;;  %v1030_v2 = vadd.f32 %v1028_v15, %v1024_v34  ;;  %v1112_v56 = vadd.f32 %v1110_v54, %v1106_v47 }
 0x189   : > { %v787_v63 = vpop.permute.xlu1 %786  ;;  %v864_v20 = vadd.f32 %v862_v38, %v858_v36  ;;  %v947_v55 = vadd.f32 %v945_v37, %v941_v33  ;;  %v1029_v16 = vadd.f32 %v1027_v24, %v1023_v11  ;;  %v1111_v5 = vadd.f32 %v1109_v52, %v1105_v44 }
 0x18a   : > { %v788_v29 = vsel %vm764_vm3, %v785_v17, %v787_v63  ;;  %v791_v43 = vsel %vm764_vm3, 0.0, %v785_v17  ;;  %v10084_v23 = vstv %s5987_s21  ;;  %v10086_v52 = vstv %s10081_s0  ;;  %s10095_s21 = sld [smem:[#allocation19_spill]]  ;;  %s10104_s0 = sld [smem:[#allocation26_spill]] }
 0x18b   : > { %v792_v15 = vsel %vm5190_vm5, %v791_v43, 0.0  ;;  %v793_v54 = vsel %vm5174_vm4, %v788_v29, 0.0  ;;  %v10085_v24 = vmov %v10084_v23  ;;  %v10087_v34 = vmov %v10086_v52 }
 0x18c   : > { %v795_v14 = vpop.permute.xlu0 %794  ;;  %v868_v40 = vmul.f32 %v10084_v23, %v792_v15  ;;  %v869_v31 = vmul.f32 %v10085_v24, %v793_v54  ;;  %v951_v44 = vmul.f32 %v10086_v52, %v792_v15  ;;  %v952_v47 = vmul.f32 %v10087_v34, %v793_v54 }
 0x18d   : > { %v797_v48 = vpop.permute.xlu1 %796  ;;  %v10088_v17 = vstv %s10082_s26  ;;  %v10090_v38 = vstv %s10083_s28  ;;  %s10107_s26 = sld [smem:[#allocation27_spill]]  ;;  %s10116_s28 = sld [smem:[#allocation28_spill]] }
 0x18e   : > { %v801_v36 = vsel %vm775_vm0, %v797_v48, 0.0  ;;  %v798_v33 = vsel %vm775_vm0, %v795_v14, %v797_v48  ;;  %v1033_v0 = vmul.f32 %v10088_v17, %v792_v15  ;;  %v10089_v35 = vmov %v10088_v17 }
 0x18f   : > { %v1034_v63 = vmul.f32 %v10089_v35, %v793_v54  ;;  %v1115_v37 = vmul.f32 %v10090_v38, %v792_v15  ;;  %v10091_v46 = vmov %v10090_v38  ;;  %v870_v14 = vadd.f32 %v868_v40, %v864_v20 }
 0x190   : > { %v1116_v11 = vmul.f32 %v10091_v46, %v793_v54  ;;  %v871_v43 = vadd.f32 %v869_v31, %v865_v58  ;;  %v953_v48 = vadd.f32 %v951_v44, %v947_v55  ;;  %v954_v23 = vadd.f32 %v952_v47, %v948_v41 }
 0x191   : > { %v1035_v52 = vadd.f32 %v1033_v0, %v1029_v16  ;;  %v1036_v34 = vadd.f32 %v1034_v63, %v1030_v2  ;;  %v1117_v4 = vadd.f32 %v1115_v37, %v1111_v5  ;;  %v803_v35 = vsel %vm5108_vm2, %v801_v36, 0.0 }
 0x192   : > { %v1118_v17 = vadd.f32 %v1116_v11, %v1112_v56  ;;  %v877_v15 = vadd.f32 %v6072_v39, %v871_v43  ;;  %v960_v54 = vadd.f32 %v6076_v53, %v954_v23  ;;  %v876_v38 = vadd.f32 %v6096_v12, %v870_v14 }
 0x193   : > { %v807_v29 = vpop.permute.xlu0 %806  ;;  %v10096_v20 = vstv %s10092_s20  ;;  %v10097_v58 = vstv %s10093_s30  ;;  %v1042_v41 = vadd.f32 %v6084_v1, %v1036_v34  ;;  %v10098_v31 = vstv %s10094_s12  ;;  %s10117_s20 = sld [smem:[#allocation30_spill]]  ;;  %s10118_s30 = sld [smem:[#allocation32_spill]] }
 0x194   : > { %v881_v40 = vmul.f32 %v10096_v20, %v803_v35  ;;  %v964_v55 = vmul.f32 %v10097_v58, %v803_v35  ;;  %v1046_v2 = vmul.f32 %v10098_v31, %v803_v35  ;;  %v1124_v56 = vadd.f32 %v6088_v7, %v1118_v17  ;;  %s10119_s12 = sld [smem:[#allocation34_spill]] }
 0x195   : > { %v809_v24 = vpop.permute.xlu1 %808  ;;  %v10099_v16 = vstv %s10095_s21  ;;  %v959_v39 = vadd.f32 %v6099_v61, %v953_v48  ;;  %v1041_v53 = vadd.f32 %v6108_v6, %v1035_v52  ;;  %v1123_v47 = vadd.f32 %v6111_v8, %v1117_v4  ;;  %s10127_s21 = sld [smem:[#allocation29_spill]] }
 0x196   : > { %v1128_v5 = vmul.f32 %v10099_v16, %v803_v35  ;;  %v883_v12 = vadd.f32 %v881_v40, %v877_v15  ;;  %v966_v36 = vadd.f32 %v964_v55, %v960_v54  ;;  %v1048_v44 = vadd.f32 %v1046_v2, %v1042_v41 }
 0x197   : > { %v817_v0 = vpop.permute.xlu0 %816  ;;  %v802_v7 = vsel %vm5233_vm7, %v798_v33, 0.0  ;;  %v810_v37 = vsel %vm764_vm3, %v807_v29, %v809_v24  ;;  %v813_v61 = vsel %vm764_vm3, 0.0, %v807_v29  ;;  %v10102_v46 = vmov %v10096_v20 }
 0x198   : > { %v1130_v63 = vadd.f32 %v1128_v5, %v1124_v56  ;;  %v880_v6 = vmul.f32 %v10102_v46, %v802_v7  ;;  %v10103_v11 = vmov %v10097_v58  ;;  %v10105_v8 = vmov %v10098_v31 }
 0x199   : > { %v819_v1 = vpop.permute.xlu1 %818  ;;  %v963_v14 = vmul.f32 %v10103_v11, %v802_v7  ;;  %v1045_v4 = vmul.f32 %v10105_v8, %v802_v7  ;;  %v10106_v43 = vmov %v10099_v16  ;;  %v814_v33 = vsel %vm5190_vm5, %v813_v61, 0.0 }
 0x19a   : > { %v1127_v48 = vmul.f32 %v10106_v43, %v802_v7  ;;  %v815_v23 = vsel %vm5174_vm4, %v810_v37, 0.0  ;;  %v823_v29 = vsel %vm775_vm0, %v819_v1, 0.0  ;;  %v820_v24 = vsel %vm775_vm0, %v817_v0, %v819_v1 }
 0x19b   : > { %v882_v52 = vadd.f32 %v880_v6, %v876_v38  ;;  %v965_v34 = vadd.f32 %v963_v14, %v959_v39  ;;  %v1047_v17 = vadd.f32 %v1045_v4, %v1041_v53  ;;  %v10108_v15 = vstv %s10100_s25  ;;  %s6585_s25 = sld [smem:[#allocation3 + $0xbd]] }
 0x19c   : > { %v1129_v35 = vadd.f32 %v1127_v48, %v1123_v47  ;;  %v886_v54 = vmul.f32 %v10108_v15, %v814_v33  ;;  %v10109_v20 = vmov %v10108_v15  ;;  %v10110_v58 = vstv %s10101_s8  ;;  %s10137_s8 = sld [smem:[#allocation31_spill]] }
 0x19d   : > { %v887_v40 = vmul.f32 %v10109_v20, %v815_v23  ;;  %v969_v55 = vmul.f32 %v10110_v58, %v814_v33  ;;  %v10111_v41 = vmov %v10110_v58  ;;  %v10112_v2 = vstv %s10104_s0  ;;  %s10138_s0 = sld [smem:[#allocation38_spill]] }
 0x19e   : > { %v970_v31 = vmul.f32 %v10111_v41, %v815_v23  ;;  %v1051_v56 = vmul.f32 %v10112_v2, %v814_v33  ;;  %v10113_v16 = vmov %v10112_v2  ;;  %v10114_v7 = vstv %s10107_s26  ;;  %s6603_s26 = sld [smem:[#allocation3 + $0x9b]] }
 0x19f   : > { %v1052_v5 = vmul.f32 %v10113_v16, %v815_v23  ;;  %v1133_v37 = vmul.f32 %v10114_v7, %v814_v33  ;;  %v10115_v61 = vmov %v10114_v7  ;;  %v829_v53 = vpop.permute.xlu0 %828  ;;  %v888_v47 = vadd.f32 %v886_v54, %v882_v52 }
 0x1a0   : > { %v1134_v38 = vmul.f32 %v10115_v61, %v815_v23  ;;  %v889_v1 = vadd.f32 %v887_v40, %v883_v12  ;;  %v971_v0 = vadd.f32 %v969_v55, %v965_v34  ;;  %v972_v46 = vadd.f32 %v970_v31, %v966_v36 }
 0x1a1   : > { %v831_v39 = vpop.permute.xlu1 %830  ;;  %v1053_v6 = vadd.f32 %v1051_v56, %v1047_v17  ;;  %v1054_v11 = vadd.f32 %v1052_v5, %v1048_v44  ;;  %v1135_v14 = vadd.f32 %v1133_v37, %v1129_v35  ;;  %v825_v4 = vsel %vm5108_vm2, %v823_v29, 0.0 }
 0x1a2   : > { %v1136_v8 = vadd.f32 %v1134_v38, %v1130_v63  ;;  %v895_v43 = vadd.f32 %v6128_v3, %v889_v1  ;;  %v978_v48 = vadd.f32 %v6132_v51, %v972_v46  ;;  %v894_v33 = vadd.f32 %v6152_v18, %v888_v47 }
 0x1a3   : > { %v10120_v23 = vstv %s10116_s28  ;;  %v10121_v52 = vstv %s10117_s20  ;;  %v1060_v34 = vadd.f32 %v6140_v42, %v1054_v11  ;;  %v10122_v36 = vstv %s10118_s30  ;;  %v839_v40 = vpop.permute.xlu0 %838  ;;  %s10139_s28 = sld [smem:[#allocation52_spill]]  ;;  %s10147_s20 = sld [smem:[#allocation56_spill]] }
 0x1a4   : > { %v899_v15 = vmul.f32 %v10120_v23, %v825_v4  ;;  %v982_v12 = vmul.f32 %v10121_v52, %v825_v4  ;;  %v1064_v44 = vmul.f32 %v10122_v36, %v825_v4  ;;  %v1142_v63 = vadd.f32 %v6144_v19, %v1136_v8  ;;  %s10156_s30 = sld [smem:[#allocation41_spill]] }
 0x1a5   : > { %v10123_v17 = vstv %s10119_s12  ;;  %v977_v3 = vadd.f32 %v6155_v28, %v971_v0  ;;  %v1059_v51 = vadd.f32 %v6158_v45, %v1053_v6  ;;  %v1141_v20 = vadd.f32 %v6166_v26, %v1135_v14  ;;  %v841_v42 = vpop.permute.xlu1 %840  ;;  %s10159_s12 = sld [smem:[#allocation63_spill]] }
 0x1a6   : > { %v1146_v29 = vmul.f32 %v10123_v17, %v825_v4  ;;  %v901_v18 = vadd.f32 %v899_v15, %v895_v43  ;;  %v984_v35 = vadd.f32 %v982_v12, %v978_v48  ;;  %v1066_v54 = vadd.f32 %v1064_v44, %v1060_v34 }
 0x1a7   : > { %v824_v55 = vsel %vm5233_vm7, %v820_v24, 0.0  ;;  %v832_v19 = vsel %vm764_vm3, %v829_v53, %v831_v39  ;;  %v835_v41 = vsel %vm764_vm3, 0.0, %v829_v53  ;;  %v10124_v28 = vmov %v10120_v23 }
 0x1a8   : > { %v1148_v58 = vadd.f32 %v1146_v29, %v1142_v63  ;;  %v898_v45 = vmul.f32 %v10124_v28, %v824_v55  ;;  %v10125_v31 = vmov %v10121_v52  ;;  %v10126_v56 = vmov %v10122_v36 }
 0x1a9   : > { %v981_v2 = vmul.f32 %v10125_v31, %v824_v55  ;;  %v1063_v26 = vmul.f32 %v10126_v56, %v824_v55  ;;  %v10128_v16 = vmov %v10123_v17  ;;  %v836_v24 = vsel %vm5190_vm5, %v835_v41, 0.0 }
 0x1aa   : > { %v1145_v5 = vmul.f32 %v10128_v16, %v824_v55  ;;  %v837_v7 = vsel %vm5174_vm4, %v832_v19, 0.0  ;;  %v845_v37 = vsel %vm775_vm0, %v841_v42, 0.0  ;;  %v842_v61 = vsel %vm775_vm0, %v839_v40, %v841_v42 }
 0x1ab   : > { %v900_v38 = vadd.f32 %v898_v45, %v894_v33  ;;  %v983_v39 = vadd.f32 %v981_v2, %v977_v3  ;;  %v1065_v53 = vadd.f32 %v1063_v26, %v1059_v51  ;;  %v10129_v1 = vstv %s6067_s29  ;;  %s10140_s29 = sld [smem:[#allocation66_spill]] }
 0x1ac   : > { %v1147_v47 = vadd.f32 %v1145_v5, %v1141_v20  ;;  %v904_v0 = vmul.f32 %v10129_v1, %v836_v24  ;;  %v10130_v46 = vmov %v10129_v1  ;;  %v10131_v11 = vstv %s6079_s7  ;;  %v1734_v2 = vpop.permute.xlu0 %1733  ;;  %s10146_s7 = sld [smem:[#allocation53_spill]] }
 0x1ad   : > { %v905_v6 = vmul.f32 %v10130_v46, %v837_v7  ;;  %v987_v14 = vmul.f32 %v10131_v11, %v836_v24  ;;  %v10132_v8 = vmov %v10131_v11  ;;  %v10133_v43 = vstv %s10127_s21  ;;  %v1736_v42 = vpop.permute.xlu1 %1735  ;;  %s10168_s21 = sld [smem:[#allocation45_spill]] }
 0x1ae   : > { %v988_v4 = vmul.f32 %v10132_v8, %v837_v7  ;;  %v1069_v48 = vmul.f32 %v10133_v43, %v836_v24  ;;  %v10134_v23 = vmov %v10133_v43  ;;  %v10135_v52 = vstv %s6091_s24  ;;  %s10143_s24 = sld [smem:[#allocation33_spill]] }
 0x1af   : > { %v1070_v15 = vmul.f32 %v10134_v23, %v837_v7  ;;  %v1151_v12 = vmul.f32 %v10135_v52, %v836_v24  ;;  %v10136_v33 = vmov %v10135_v52  ;;  %v906_v36 = vadd.f32 %v904_v0, %v900_v38 }
 0x1b0   : > { %v1152_v34 = vmul.f32 %v10136_v33, %v837_v7  ;;  %v907_v44 = vadd.f32 %v905_v6, %v901_v18  ;;  %v989_v63 = vadd.f32 %v987_v14, %v983_v39  ;;  %v990_v17 = vadd.f32 %v988_v4, %v984_v35 }
 0x1b1   : > { %v1071_v29 = vadd.f32 %v1069_v48, %v1065_v53  ;;  %v1072_v3 = vadd.f32 %v1070_v15, %v1066_v54  ;;  %v1153_v51 = vadd.f32 %v1151_v12, %v1147_v47  ;;  %v847_v40 = vsel %vm5108_vm2, %v845_v37, 0.0  ;;  %v1744_v47 = vpop.permute.xlu1 %1743 }
 0x1b2   : > { %v1154_v20 = vadd.f32 %v1152_v34, %v1148_v58  ;;  %v913_v55 = vadd.f32 %v6184_v9, %v907_v44  ;;  %v996_v19 = vadd.f32 %v6194_v27, %v990_v17  ;;  %v912_v41 = vadd.f32 %v6218_v13, %v906_v36 }
 0x1b3   : > { %v10141_v28 = vstv %s10137_s8  ;;  %v10142_v45 = vstv %s10138_s0  ;;  %v1078_v54 = vadd.f32 %v6204_v49, %v1072_v3  ;;  %v10144_v31 = vstv %s10139_s28  ;;  %s10170_s8 = sld [smem:[#allocation47_spill]]  ;;  %s10186_s0 = sld [smem:[#allocation49_spill]] }
 0x1b4   : > { %v917_v18 = vmul.f32 %v10141_v28, %v847_v40  ;;  %v1000_v35 = vmul.f32 %v10142_v45, %v847_v40  ;;  %v1082_v58 = vmul.f32 %v10144_v31, %v847_v40  ;;  %v1160_v56 = vadd.f32 %v6214_v22, %v1154_v20  ;;  %s10187_s28 = sld [smem:[#allocation50_spill]] }
 0x1b5   : > { %v10145_v26 = vstv %s10140_s29  ;;  %v995_v27 = vadd.f32 %v6226_v62, %v989_v63  ;;  %v1077_v13 = vadd.f32 %v6229_v59, %v1071_v29  ;;  %v1159_v49 = vadd.f32 %v6232_v25, %v1153_v51  ;;  %s10188_s29 = smov 16  }
 0x1b6   : > { %v1164_v9 = vmul.f32 %v10145_v26, %v847_v40  ;;  %v919_v16 = vadd.f32 %v917_v18, %v913_v55  ;;  %v1002_v5 = vadd.f32 %v1000_v35, %v996_v19  ;;  %v2104_v24 = vstv %s6585_s25  ;;  %v1742_v55 = vpop.permute.xlu0 %1741  ;;  %v10165_v35 = vld [vmem:[#allocation42_spill] sm:$0xff]  ;;  %s6986_s25 = sld [smem:[#allocation3 + $0xc4]] }
 0x1b7   : > { %v1084_v7 = vadd.f32 %v1082_v58, %v1078_v54  ;;  %v846_v22 = vsel %vm5233_vm7, %v842_v61, 0.0  ;;  %v1737_v62 = vsel %vm266_vm1, %v1734_v2, %v1736_v42  ;;  %v1740_v37 = vsel %vm266_vm1, 0.0, %v1734_v2 }
 0x1b8   : > { %v10148_v59 = vstv %s10143_s24  ;;  %v6630_v39 = vadd.f32 %v1164_v9, %v1160_v56  ;;  %v10149_v53 = vmov %v10141_v28  ;;  %v1870_v1 = vstv %s6603_s26  ;;  %s6988_s26 = sld [smem:[#allocation3 + $0xd0]]  ;;  %s6992_s24 = sld [smem:[#allocation3 + $0xdc]] }
 0x1b9   : > { %v923_v38 = vadd.f32 %v10148_v59, %v919_v16  ;;  %v916_v25 = vmul.f32 %v10149_v53, %v846_v22  ;;  %v10150_v0 = vstv %s10146_s7  ;;  %v10151_v6 = vmov %v10142_v45  ;;  %v10173_v16 = vld [vmem:[#allocation57_spill] sm:$0xff]  ;;  %v10176_v53 = vld [vmem:[#allocation51_spill] sm:$0xff]  ;;  %s6994_s7 = sld [smem:[#allocation3 + $0xe8]] }
 0x1ba   : > { %v6637_v46 = vadd.f32 %v10150_v0, %v1002_v5  ;;  %v999_v61 = vmul.f32 %v10151_v6, %v846_v22  ;;  %v10152_v11 = vmov %v10144_v31  ;;  %v10153_v8 = vmov %v10145_v26 }
 0x1bb   : > { %v1081_v14 = vmul.f32 %v10152_v11, %v846_v22  ;;  %v1163_v4 = vmul.f32 %v10153_v8, %v846_v22  ;;  %v918_v43 = vadd.f32 %v916_v25, %v912_v41  ;;  %v10154_v48 = vstv %s6179_s4  ;;  %s10164_s4 = sld [smem:[#allocation46_spill]]  ;;  %v10175_v22 = vld [vmem:[#allocation48_spill] sm:$0xff] }
 0x1bc   : > { %v1805_v23 = vmul.f32 %v10154_v48, %v1740_v37  ;;  %v10155_v15 = vmov %v10154_v48  ;;  %v10157_v12 = vstv %s6181_s10  ;;  %v10158_v34 = vstv %s10147_s20  ;;  %s10166_s10 = sld [smem:[#allocation60_spill]] }
 0x1bd   : > { %v1806_v52 = vmul.f32 %v10155_v15, %v1737_v62  ;;  %v1887_v33 = vmul.f32 %v10157_v12, %v1740_v37  ;;  %v6653_v36 = vadd.f32 %v10158_v34, %v1084_v7  ;;  %v1001_v44 = vadd.f32 %v999_v61, %v995_v27  ;;  %v1754_v27 = vpop.permute.xlu1 %1753  ;;  %s6996_s20 = sld [smem:[#allocation3 + $0xc7]] }
 0x1be   : > { %v1083_v63 = vadd.f32 %v1081_v14, %v1077_v13  ;;  %v10160_v17 = vmov %v10157_v12  ;;  %v10161_v3 = vmov %v10148_v59  ;;  %v6659_v20 = vadd.f32 %v1163_v4, %v1159_v49  ;;  %v10174_v49 = vld [vmem:[#allocation43_spill] sm:$0xff] }
 0x1bf   : > { %v1888_v29 = vmul.f32 %v10160_v17, %v1737_v62  ;;  %v922_v51 = vadd.f32 %v10161_v3, %v918_v43  ;;  %v1813_v42 = vadd.f32 %v6235_v30, %v1805_v23  ;;  %v1814_v40 = vadd.f32 %v6242_v10, %v1806_v52 }
 0x1c0   : > { %v10162_v19 = vmov %v10150_v0  ;;  %v10163_v28 = vmov %v10158_v34  ;;  %v1895_v45 = vadd.f32 %v6245_v60, %v1887_v33  ;;  %v10167_v31 = vstv %s10156_s30  ;;  %s6998_s30 = sld [smem:[#allocation3 + $0xd3]] }
 0x1c1   : > { %v6665_v41 = vadd.f32 %v10162_v19, %v1001_v44  ;;  %v6669_v18 = vadd.f32 %v10163_v28, %v1083_v63  ;;  %v1896_v54 = vadd.f32 %v10165_v35, %v1888_v29  ;;  %v1969_v58 = vmul.f32 %v10167_v31, %v1740_v37  ;;  %v1752_v44 = vpop.permute.xlu0 %1751 }
 0x1c2   : > { %v10169_v2 = vmov %v10167_v31  ;;  %v10171_v10 = vstv %s10159_s12  ;;  %v1748_v60 = vsel %vm275_vm6, %v1744_v47, 0.0  ;;  %v1745_v13 = vsel %vm275_vm6, %v1742_v55, %v1744_v47  ;;  %v1762_v31 = vpop.permute.xlu1 %1761  ;;  %s7000_s12 = sld [smem:[#allocation3 + $0xdf]] }
 0x1c3   : > { %v1970_v30 = vmul.f32 %v10169_v2, %v1737_v62  ;;  %v2051_v56 = vmul.f32 %v10171_v10, %v1740_v37  ;;  %v10172_v26 = vmov %v10171_v10  ;;  %vm925_vm8 = vcmp.ge.f32.partialorder %v923_v38, 0.0  ;;  %v10177_v37 = vld [vmem:[#allocation54_spill] sm:$0xff] }
 0x1c4   : > { %v2052_v9 = vmul.f32 %v10172_v26, %v1737_v62  ;;  %v928_v5 = vmul.f32 %v10173_v16, %v923_v38  ;;  %v1977_v7 = vadd.f32 %v10174_v49, %v1969_v58  ;;  %v10178_v6 = vstv %s10164_s4  ;;  %s7002_s4 = sld [smem:[#allocation3 + $0xeb]] }
 0x1c5   : > { %v1978_v59 = vadd.f32 %v10175_v22, %v1970_v30  ;;  %v2059_v25 = vadd.f32 %v10176_v53, %v2051_v56  ;;  %v1818_v62 = vmul.f32 %v10178_v6, %v1748_v60  ;;  %v10179_v61 = vstv %s10166_s10  ;;  %s7006_s10 = sld [smem:[#allocation3 + $0xca]] }
 0x1c6   : > { %v2060_v0 = vadd.f32 %v10177_v37, %v2052_v9  ;;  %v1900_v11 = vmul.f32 %v10179_v61, %v1748_v60  ;;  %v10180_v14 = vstv %s10168_s21  ;;  %v10181_v4 = vstv %s10170_s8  ;;  %v1760_v37 = vpop.permute.xlu0 %1759  ;;  %s7008_s21 = sld [smem:[#allocation3 + $0xd6]]  ;;  %s7012_s8 = sld [smem:[#allocation3 + $0xe2]] }
 0x1c7   : > { %v1982_v8 = vmul.f32 %v10180_v14, %v1748_v60  ;;  %v2064_v43 = vmul.f32 %v10181_v4, %v1748_v60  ;;  %v10182_v47 = vmov %v10178_v6  ;;  %v10183_v23 = vmov %v10179_v61 }
 0x1c8   : > { %v1817_v48 = vmul.f32 %v10182_v47, %v1745_v13  ;;  %v1899_v15 = vmul.f32 %v10183_v23, %v1745_v13  ;;  %v10184_v52 = vmov %v10180_v14  ;;  %v10185_v33 = vmov %v10181_v4 }
 0x1c9   : > { %v1981_v12 = vmul.f32 %v10184_v52, %v1745_v13  ;;  %v2063_v34 = vmul.f32 %v10185_v33, %v1745_v13  ;;  %v1820_v63 = vadd.f32 %v1818_v62, %v1814_v40  ;;  %v1902_v17 = vadd.f32 %v1900_v11, %v1896_v54 }
 0x1ca   : > { %v1984_v29 = vadd.f32 %v1982_v8, %v1978_v59  ;;  %v2066_v3 = vadd.f32 %v2064_v43, %v2060_v0  ;;  %v1819_v55 = vadd.f32 %v1817_v48, %v1813_v42  ;;  %v1901_v19 = vadd.f32 %v1899_v15, %v1895_v45  ;;  %v10197_v8 = vld [vmem:[#allocation70_spill] sm:$0xff]  ;;  %v10198_v43 = vld [vmem:[#allocation71_spill] sm:$0xff]  ;;  %v1772_v48 = vpop.permute.xlu1 %1771 }
 0x1cb   : > { %v1983_v28 = vadd.f32 %v1981_v12, %v1977_v7  ;;  %v2065_v35 = vadd.f32 %v2063_v34, %v2059_v25  ;;  %v6705_v58 = vsel %vm925_vm8, %v923_v38, %v928_v5  ;;  %vm924_vm9 = vcmp.ge.f32.partialorder %v922_v51, 0.0  ;;  %v10202_v34 = vld [vmem:[#allocation55_spill] sm:$0xff] }
 0x1cc   : > { %v927_v40 = vmul.f32 %v10173_v16, %v922_v51  ;;  %v1755_v54 = vsel %vm266_vm1, %v1752_v44, %v1754_v27  ;;  %2135 = vrot.lane.b32.xlu1 %v6705_v58, %s10188_s29  ;;  %v1758_v42 = vsel %vm266_vm1, 0.0, %v1752_v44  ;;  %v10189_v2 = vstv %s10186_s0  ;;  %s7014_s0 = sld [smem:[#allocation3 + $0xee]] }
 0x1cd   : > { %v1824_v45 = vmul.f32 %v10189_v2, %v1755_v54  ;;  %v10190_v30 = vstv %s6271_s5  ;;  %v10191_v56 = vstv %s10187_s28  ;;  %v10192_v9 = vmov %v10189_v2  ;;  %s10199_s5 = smov 112   ;;  %s7016_s28 = sld [smem:[#allocation3 + $0x121]] }
 0x1ce   : > { %v1906_v10 = vmul.f32 %v10190_v30, %v1755_v54  ;;  %v1988_v26 = vmul.f32 %v10191_v56, %v1755_v54  ;;  %v6718_v38 = vsel %vm924_vm9, %v922_v51, %v927_v40  ;;  %v1823_v60 = vmul.f32 %v10192_v9, %v1758_v42 }
 0x1cf   : > { %v10193_v13 = vmov %v10190_v30  ;;  %v10194_v49 = vmov %v10191_v56  ;;  %2133 = vrot.lane.b32.xlu0 %v6718_v38, %s10188_s29  ;;  %v1826_v7 = vadd.f32 %v1824_v45, %v1820_v63  ;;  %v10195_v53 = vstv %s6285_s27  ;;  %v10208_v45 = vld [vmem:[#allocation81_spill] sm:$0xff]  ;;  %v10209_v56 = vld [vmem:[#allocation74_spill] sm:$0xff]  ;;  %s6903_s27 = sld [smem:[#allocation3 + $0xb3]] }
 0x1d0   : > { %v1905_v5 = vmul.f32 %v10193_v13, %v1758_v42  ;;  %v1987_v27 = vmul.f32 %v10194_v49, %v1758_v42  ;;  %v1908_v22 = vadd.f32 %v1906_v10, %v1902_v17  ;;  %v1990_v59 = vadd.f32 %v1988_v26, %v1984_v29  ;;  %2143 = vrot.lane.b32.xlu1 %v6705_v58, %s10199_s5 }
 0x1d1   : > { %v2069_v25 = vmul.f32 %v10195_v53, %v1758_v42  ;;  %v1825_v51 = vadd.f32 %v1823_v60, %v1819_v55  ;;  %v10196_v62 = vmov %v10195_v53  ;;  %v1766_v14 = vsel %vm275_vm6, %v1762_v31, 0.0  ;;  %v10207_v42 = vld [vmem:[#allocation72_spill] sm:$0xff]  ;;  %v1770_v60 = vpop.permute.xlu0 %1769 }
 0x1d2   : > { %v1907_v0 = vadd.f32 %v1905_v5, %v1901_v19  ;;  %v1989_v6 = vadd.f32 %v1987_v27, %v1983_v28  ;;  %v2070_v61 = vmul.f32 %v10196_v62, %v1755_v54  ;;  %v1832_v4 = vadd.f32 %v10197_v8, %v1826_v7  ;;  %v10205_v19 = vld [vmem:[#allocation87_spill] sm:$0xff]  ;;  %10260 = sst [smem:[#allocation78_spill]] %s7014_s0 }
 0x1d3   : > { %v2071_v11 = vadd.f32 %v2069_v25, %v2065_v35  ;;  %v1914_v47 = vadd.f32 %v10198_v43, %v1908_v22  ;;  %v10200_v15 = vstv %s6291_s9  ;;  %v10201_v12 = vstv %s6296_s1  ;;  %2141 = vrot.lane.b32.xlu0 %v6718_v38, %s10199_s5  ;;  %s6918_s9 = sld [smem:[#allocation5 + $0xe]]  ;;  %s4222_s1 = sld [smem:[#allocation3 + $0xbf]] }
 0x1d4   : > { %v2072_v23 = vadd.f32 %v2070_v61, %v2066_v3  ;;  %v1836_v52 = vmul.f32 %v10200_v15, %v1766_v14  ;;  %v1918_v33 = vmul.f32 %v10201_v12, %v1766_v14  ;;  %v1996_v44 = vadd.f32 %v10202_v34, %v1990_v59  ;;  %v10206_v3 = vld [vmem:[#allocation73_spill] sm:$0xff]  ;;  %10261 = sst [smem:[#allocation21_spill]] %s7016_s28  ;;  %s7131_s28 = sld [smem:[#allocation3 + $0xe1]] }
 0x1d5   : > { %v10203_v63 = vstv %s6305_s2  ;;  %v10204_v29 = vstv %s6310_s6  ;;  %v1831_v28 = vadd.f32 %v10205_v19, %v1825_v51  ;;  %v1913_v35 = vadd.f32 %v10206_v3, %v1907_v0  ;;  %s10244_s6 = sld [smem:[#allocation64_spill]]  ;;  %s10245_s2 = sld [smem:[#allocation44_spill]] }
 0x1d6   : > { %v2000_v17 = vmul.f32 %v10203_v63, %v1766_v14  ;;  %v2082_v55 = vmul.f32 %v10204_v29, %v1766_v14  ;;  %v1838_v40 = vadd.f32 %v1836_v52, %v1832_v4  ;;  %v1920_v54 = vadd.f32 %v1918_v33, %v1914_v47 }
 0x1d7   : > { %v2078_v2 = vadd.f32 %v10207_v42, %v2072_v23  ;;  %v1995_v30 = vadd.f32 %v10208_v45, %v1989_v6  ;;  %v2077_v26 = vadd.f32 %v10209_v56, %v2071_v11  ;;  %v1763_v9 = vsel %vm275_vm6, %v1760_v37, %v1762_v31  ;;  %v1780_v37 = vpop.permute.xlu1 %1779 }
 0x1d8   : > { %v2002_v10 = vadd.f32 %v2000_v17, %v1996_v44  ;;  %vm1008_vm10 = vcmp.ge.f32.partialorder %v6637_v46, 0.0  ;;  %v10210_v5 = vmov %v10200_v15  ;;  %v10211_v27 = vmov %v10201_v12 }
 0x1d9   : > { %v2084_v13 = vadd.f32 %v2082_v55, %v2078_v2  ;;  %v1835_v49 = vmul.f32 %v10210_v5, %v1763_v9  ;;  %v1917_v7 = vmul.f32 %v10211_v27, %v1763_v9  ;;  %v10212_v22 = vmov %v10203_v63  ;;  %v1778_v55 = vpop.permute.xlu0 %1777 }
 0x1da   : > { %v1999_v59 = vmul.f32 %v10212_v22, %v1763_v9  ;;  %v10213_v53 = vmov %v10204_v29  ;;  %v1010_v51 = vmul.f32 %v6637_v46, %v10173_v16  ;;  %vm1007_vm11 = vcmp.ge.f32.partialorder %v6665_v41, 0.0  ;;  %v10225_v22 = vld [vmem:[#allocation58_spill] sm:$0xff]  ;;  %10288 = sst [smem:[#allocation53_spill]] %s7131_s28  ;;  %s7257_s28 = sld [smem:[#allocation3 + $0x146]] }
 0x1db   : > { %v2081_v25 = vmul.f32 %v10213_v53, %v1763_v9  ;;  %v1009_v31 = vmul.f32 %v6665_v41, %v10173_v16  ;;  %v1837_v0 = vadd.f32 %v1835_v49, %v1831_v28  ;;  %v1919_v6 = vadd.f32 %v1917_v7, %v1913_v35  ;;  %v10222_v9 = vld [vmem:[#allocation75_spill] sm:$0xff] }
 0x1dc   : > { %v2001_v62 = vadd.f32 %v1999_v59, %v1995_v30  ;;  %v1773_v61 = vsel %vm266_vm1, %v1770_v60, %v1772_v48  ;;  %v6772_v14 = vsel %vm1008_vm10, %v6637_v46, %v1010_v51  ;;  %v1776_v4 = vsel %vm266_vm1, 0.0, %v1770_v60 }
 0x1dd   : > { %v2083_v11 = vadd.f32 %v2081_v25, %v2077_v26  ;;  %v6775_v8 = vsel %vm1007_vm11, %v6665_v41, %v1009_v31  ;;  %2153 = vrot.lane.b32.xlu1 %v6772_v14, %s10188_s29  ;;  %v10214_v43 = vstv %s6315_s3  ;;  %v10216_v15 = vstv %s6317_s18  ;;  %s6864_s3 = sld [smem:[#allocation3 + $0xa7]]  ;;  %s10246_s18 = sld [smem:[#allocation39_spill]] }
 0x1de   : > { %2151 = vrot.lane.b32.xlu0 %v6775_v8, %s10188_s29  ;;  %v1841_v47 = vmul.f32 %v10214_v43, %v1776_v4  ;;  %v10215_v48 = vmov %v10214_v43  ;;  %v1923_v52 = vmul.f32 %v10216_v15, %v1776_v4  ;;  %v1784_v46 = vsel %vm275_vm6, %v1780_v37, 0.0 }
 0x1df   : > { %v1842_v23 = vmul.f32 %v10215_v48, %v1773_v61  ;;  %v10217_v12 = vmov %v10216_v15  ;;  %v10218_v33 = vstv %s6330_s17  ;;  %v10220_v17 = vstv %s6332_s14  ;;  %s6848_s14 = sld [smem:[#allocation5 + $0xc]]  ;;  %s10258_s17 = smov 1  }
 0x1e0   : > { %v1924_v41 = vmul.f32 %v10217_v12, %v1773_v61  ;;  %v2005_v34 = vmul.f32 %v10218_v33, %v1776_v4  ;;  %v10219_v44 = vmov %v10218_v33  ;;  %v2087_v29 = vmul.f32 %v10220_v17, %v1776_v4 }
 0x1e1   : > { %v2006_v63 = vmul.f32 %v10219_v44, %v1773_v61  ;;  %v1843_v19 = vadd.f32 %v1841_v47, %v1837_v0  ;;  %v1844_v28 = vadd.f32 %v1842_v23, %v1838_v40  ;;  %v1925_v3 = vadd.f32 %v1923_v52, %v1919_v6  ;;  %2161 = vrot.lane.b32.xlu1 %v6772_v14, %s10199_s5  ;;  %v10226_v40 = vld [vmem:[#allocation76_spill] sm:$0xff]  ;;  %v10230_v6 = vld [vmem:[#allocation59_spill] sm:$0xff]  ;;  %v10232_v47 = vld [vmem:[#allocation79_spill] sm:$0xff]  ;;  %v1790_v52 = vpop.permute.xlu1 %1789 }
 0x1e2   : > { %v10221_v35 = vmov %v10220_v17  ;;  %v1926_v2 = vadd.f32 %v1924_v41, %v1920_v54  ;;  %v2007_v45 = vadd.f32 %v2005_v34, %v2001_v62  ;;  %v2089_v56 = vadd.f32 %v2087_v29, %v2083_v11  ;;  %2159 = vrot.lane.b32.xlu0 %v6775_v8, %s10199_s5  ;;  %v10233_v23 = vld [vmem:[#allocation80_spill] sm:$0xff] }
 0x1e3   : > { %v2088_v42 = vmul.f32 %v10221_v35, %v1773_v61  ;;  %v2008_v30 = vadd.f32 %v2006_v63, %v2002_v10  ;;  %v1850_v60 = vadd.f32 %v10222_v9, %v1844_v28  ;;  %v10223_v5 = vstv %s6338_s19  ;;  %v10231_v61 = vld [vmem:[#allocation61_spill] sm:$0xff]  ;;  %s4223_s19 = sld [smem:[#allocation5 + $0xf]] }
 0x1e4   : > { %v1854_v49 = vmul.f32 %v10223_v5, %v1784_v46  ;;  %v10224_v27 = vstv %s6340_s11  ;;  %v1932_v59 = vadd.f32 %v10225_v22, %v1926_v2  ;;  %v10227_v25 = vstv %s6354_s13  ;;  %s10259_s11 = smov 127   ;;  %s6972_s13 = sld [smem:[#allocation3 + $0xc1]] }
 0x1e5   : > { %v2090_v26 = vadd.f32 %v2088_v42, %v2084_v13  ;;  %v1936_v7 = vmul.f32 %v10224_v27, %v1784_v46  ;;  %v2014_v53 = vadd.f32 %v10226_v40, %v2008_v30  ;;  %v2018_v51 = vmul.f32 %v10227_v25, %v1784_v46  ;;  %v10229_v13 = vld [vmem:[#allocation77_spill] sm:$0xff] }
 0x1e6   : > { %v10228_v54 = vstv %s6360_s22  ;;  %v1856_v10 = vadd.f32 %v1854_v49, %v1850_v60  ;;  %v1849_v62 = vadd.f32 %v10230_v6, %v1843_v19  ;;  %v1931_v11 = vadd.f32 %v10231_v61, %v1925_v3  ;;  %s6974_s22 = sld [smem:[#allocation3 + $0xcd]] }
 0x1e7   : > { %v2100_v31 = vmul.f32 %v10228_v54, %v1784_v46  ;;  %v2096_v0 = vadd.f32 %v10229_v13, %v2090_v26  ;;  %v1938_v4 = vadd.f32 %v1936_v7, %v1932_v59  ;;  %v2020_v43 = vadd.f32 %v2018_v51, %v2014_v53  ;;  %v1788_v46 = vpop.permute.xlu0 %1787 }
 0x1e8   : > { %v2013_v48 = vadd.f32 %v10232_v47, %v2007_v45  ;;  %v2095_v15 = vadd.f32 %v10233_v23, %v2089_v56  ;;  %v1781_v41 = vsel %vm275_vm6, %v1778_v55, %v1780_v37  ;;  %vm1090_vm12 = vcmp.ge.f32.partialorder %v6653_v36, 0.0  ;;  %v10248_v23 = vld [vmem:[#allocation37_spill] sm:$0xff] }
 0x1e9   : > { %v2102_v12 = vadd.f32 %v2100_v31, %v2096_v0  ;;  %v1092_v33 = vmul.f32 %v6653_v36, %v10173_v16  ;;  %v10234_v34 = vmov %v10223_v5  ;;  %v10235_v63 = vmov %v10224_v27 }
 0x1ea   : > { %v1853_v44 = vmul.f32 %v10234_v34, %v1781_v41  ;;  %v1935_v17 = vmul.f32 %v10235_v63, %v1781_v41  ;;  %v10236_v29 = vmov %v10227_v25  ;;  %v10237_v28 = vmov %v10228_v54  ;;  %v1798_v25 = vpop.permute.xlu1 %1797  ;;  %v10252_v34 = vld [vmem:[#allocation65_spill] sm:$0xff]  ;;  %v10253_v63 = vld [vmem:[#allocation82_spill] sm:$0xff] }
 0x1eb   : > { %v2017_v19 = vmul.f32 %v10236_v29, %v1781_v41  ;;  %v2099_v3 = vmul.f32 %v10237_v28, %v1781_v41  ;;  %v6832_v35 = vsel %vm1090_vm12, %v6653_v36, %v1092_v33  ;;  %vm1089_vm13 = vcmp.ge.f32.partialorder %v6669_v18, 0.0  ;;  %v1796_v33 = vpop.permute.xlu0 %1795 }
 0x1ec   : > { %v1091_v37 = vmul.f32 %v6669_v18, %v10173_v16  ;;  %v1791_v55 = vsel %vm266_vm1, %v1788_v46, %v1790_v52  ;;  %v1855_v42 = vadd.f32 %v1853_v44, %v1849_v62  ;;  %v1937_v2 = vadd.f32 %v1935_v17, %v1931_v11  ;;  %2171 = vrot.lane.b32.xlu1 %v6832_v35, %s10188_s29  ;;  %v10249_v52 = vld [vmem:[#allocation62_spill] sm:$0xff] }
 0x1ed   : > { %v2019_v45 = vadd.f32 %v2017_v19, %v2013_v48  ;;  %v2101_v30 = vadd.f32 %v2099_v3, %v2095_v15  ;;  %v1794_v56 = vsel %vm266_vm1, 0.0, %v1788_v46  ;;  %v10238_v26 = vstv %s6371_s16  ;;  %v10250_v46 = vld [vmem:[#allocation40_spill] sm:$0xff]  ;;  %s6978_s16 = sld [smem:[#allocation3 + $0xd9]] }
 0x1ee   : > { %v6841_v36 = vsel %vm1089_vm13, %v6669_v18, %v1091_v37  ;;  %v1860_v9 = vmul.f32 %v10238_v26, %v1791_v55  ;;  %v10239_v60 = vstv %s6376_s23  ;;  %v10240_v49 = vmov %v10238_v26  ;;  %s6980_s23 = sld [smem:[#allocation3 + $0xe5]] }
 0x1ef   : > { %v1942_v5 = vmul.f32 %v10239_v60, %v1791_v55  ;;  %2169 = vrot.lane.b32.xlu0 %v6841_v36, %s10188_s29  ;;  %v1859_v27 = vmul.f32 %v10240_v49, %v1794_v56  ;;  %v10241_v7 = vmov %v10239_v60  ;;  %v10242_v59 = vstv %s6378_s15  ;;  %s6901_s15 = sld [smem:[#allocation5 + $0xd]] }
 0x1f0   : > { %v1941_v22 = vmul.f32 %v10241_v7, %v1794_v56  ;;  %v2023_v40 = vmul.f32 %v10242_v59, %v1794_v56  ;;  %v10243_v53 = vmov %v10242_v59  ;;  %v1862_v51 = vadd.f32 %v1860_v9, %v1856_v10  ;;  %2179 = vrot.lane.b32.xlu1 %v6832_v35, %s10199_s5 }
 0x1f1   : > { %v2024_v18 = vmul.f32 %v10243_v53, %v1791_v55  ;;  %v1944_v54 = vadd.f32 %v1942_v5, %v1938_v4  ;;  %v2105_v31 = vmul.f32 %v2104_v24, %v1794_v56  ;;  %v2106_v13 = vmul.f32 %v2104_v24, %v1791_v55  ;;  %v10247_v4 = vld [vmem:[#allocation36_spill] sm:$0xff]  ;;  %v10256_v55 = vld [vmem:[#allocation83_spill] sm:$0xff] }
 0x1f2   : > { %v1861_v0 = vadd.f32 %v1859_v27, %v1855_v42  ;;  %v1943_v6 = vadd.f32 %v1941_v22, %v1937_v2  ;;  %v2025_v62 = vadd.f32 %v2023_v40, %v2019_v45  ;;  %v6869_v10 = vsel %vm275_vm6, %v1798_v25, 0.0 }
 0x1f3   : > { %v2026_v61 = vadd.f32 %v2024_v18, %v2020_v43  ;;  %v2107_v11 = vadd.f32 %v2105_v31, %v2101_v30  ;;  %v2108_v47 = vadd.f32 %v2106_v13, %v2102_v12  ;;  %v1868_v24 = vadd.f32 %v10247_v4, %v1862_v51  ;;  %2177 = vrot.lane.b32.xlu0 %v6841_v36, %s10199_s5 }
 0x1f4   : > { %v1872_v48 = vmul.f32 %v1870_v1, %v6869_v10  ;;  %v1950_v15 = vadd.f32 %v10248_v23, %v1944_v54  ;;  %v10251_v12 = vstv %s10244_s6  ;;  %v1867_v17 = vadd.f32 %v10253_v63, %v1861_v0  ;;  %s7020_s6 = sld [smem:[#allocation3 + $0x139]] }
 0x1f5   : > { %v2032_v43 = vadd.f32 %v10249_v52, %v2026_v61  ;;  %v2029_v41 = vmul.f32 %v10251_v12, %v10250_v46  ;;  %v6883_v44 = vadd.f32 %v10252_v34, %v2108_v47  ;;  %v10254_v29 = vstv %s10245_s2  ;;  %s7024_s2 = sld [smem:[#allocation3 + $0x124]] }
 0x1f6   : > { %v2111_v19 = vmul.f32 %v10254_v29, %v10250_v46  ;;  %v10255_v28 = vstv %s10246_s18  ;;  %v1874_v37 = vadd.f32 %v1872_v48, %v1868_v24  ;;  %v1949_v42 = vadd.f32 %v10256_v55, %v1943_v6  ;;  %s7026_s18 = sld [smem:[#allocation3 + $0x130]] }
 0x1f7   : > { %v1170_v3 = vadd.f32 %v10255_v28, %v6630_v39  ;;  %v2031_v2 = vadd.f32 %v2029_v41, %v2025_v62  ;;  %v10257_v45 = vmov %v10255_v28  ;;  %v1876_v56 = vstv %s6848_s14  ;;  %s7018_s14 = sld [smem:[#allocation3 + $0x12d]] }
 0x1f8   : > { %v1169_v30 = vadd.f32 %v10257_v45, %v6659_v20  ;;  %v2113_v26 = vadd.f32 %v2111_v19, %v2107_v11  ;;  %v1799_v9 = vsel %vm275_vm6, %v1796_v33, %v1798_v25  ;;  %v1952_v5 = vstv %s6864_s3  ;;  %s7022_s3 = sld [smem:[#allocation3 + $0x145]] }
 0x1f9   : > { %v1871_v60 = vmul.f32 %v1870_v1, %v1799_v9  ;;  %v1878_v49 = vadd.f32 %v1876_v56, %v1874_v37  ;;  %vm1172_vm14 = vcmp.ge.f32.partialorder %v1170_v3, 0.0  ;;  %v1174_v27 = vmul.f32 %v1170_v3, %v10173_v16 }
 0x1fa   : > { %vm1171_vm15 = vcmp.ge.f32.partialorder %v1169_v30, 0.0  ;;  %v1173_v20 = vmul.f32 %v1169_v30, %v10173_v16  ;;  %v1954_v7 = vmul.f32 %v1952_v5, %v6869_v10  ;;  %v1953_v1 = vmul.f32 %v1952_v5, %v1799_v9  ;;  %10263 = sst [smem:[#allocation12_spill]] %s7020_s6  ;;  %s7057_s6 = sld [smem:[#allocation3 + $0xc5]] }
 0x1fb   : > { %v1873_v39 = vadd.f32 %v1871_v60, %v1867_v17  ;;  %v6908_v59 = vsel %vm1172_vm14, %v1170_v3, %v1174_v27  ;;  %v1882_v53 = vmul.f32 %v1878_v49, %v10173_v16  ;;  %vm1880_vm8 = vcmp.ge.f32.partialorder %v1878_v49, 0.0  ;;  %10265 = sst [smem:[#allocation14_spill]] %s7024_s2  ;;  %s7051_s2 = sld [smem:[#allocation3 + $0xdb]] }
 0x1fc   : > { %2189 = vrot.lane.b32.xlu1 %v6908_v59, %s10188_s29  ;;  %v6912_v40 = vsel %vm1171_vm15, %v1169_v30, %v1173_v20  ;;  %v1956_v25 = vadd.f32 %v1954_v7, %v1950_v15  ;;  %v1958_v51 = vstv %s6901_s15  ;;  %v2034_v54 = vstv %s6903_s27  ;;  %10266 = sst [smem:[#allocation15_spill]] %s7026_s18  ;;  %s7028_s15 = sld [smem:[#allocation3 + $0xc0]] }
 0x1fd   : > { %v1877_v22 = vadd.f32 %v1876_v56, %v1873_v39  ;;  %2187 = vrot.lane.b32.xlu0 %v6912_v40, %s10188_s29  ;;  %v1955_v31 = vadd.f32 %v1953_v1, %v1949_v42  ;;  %v6926_v13 = vsel %vm1880_vm8, %v1878_v49, %v1882_v53  ;;  %v2036_v62 = vmul.f32 %v2034_v54, %v6869_v10  ;;  %10262 = sst [smem:[#allocation23_spill]] %s7018_s14  ;;  %s7030_s27 = sld [smem:[#allocation3 + $0xcc]] }
 0x1fe   : > { %v1960_v6 = vadd.f32 %v1958_v51, %v1956_v25  ;;  %v2035_v11 = vmul.f32 %v2034_v54, %v1799_v9  ;;  %v2040_v47 = vstv %s6918_s9  ;;  %v2116_v48 = vstv %s4222_s1  ;;  %10264 = sst [smem:[#allocation13_spill]] %s7022_s3  ;;  %s7032_s9 = sld [smem:[#allocation3 + $0xd8]] }
 0x1ff   : > { %v1881_v18 = vmul.f32 %v1877_v22, %v10173_v16  ;;  %vm1879_vm9 = vcmp.ge.f32.partialorder %v1877_v22, 0.0  ;;  %v1959_v61 = vadd.f32 %v1958_v51, %v1955_v31  ;;  %v2038_v4 = vadd.f32 %v2036_v62, %v2032_v43  ;;  %s7034_s1 = sld [smem:[#allocation3 + $0xe4]]  ;;  %s7040_s29 = sld [smem:[#allocation3 + $0xda]] }
 0x200   : > { %2197 = vrot.lane.b32.xlu1 %v6908_v59, %s10199_s5  ;;  %v1964_v24 = vmul.f32 %v1960_v6, %v10173_v16  ;;  %v2037_v23 = vadd.f32 %v2035_v11, %v2031_v2  ;;  %vm1962_vm10 = vcmp.ge.f32.partialorder %v1960_v6, 0.0  ;;  %v2118_v46 = vmul.f32 %v2116_v48, %v6869_v10  ;;  %s7046_s18 = sld [smem:[#allocation3 + $0xcf]]  ;;  %10275 = sst [smem:[#allocation25_spill]] %s7057_s6 }
 0x201   : > { %2195 = vrot.lane.b32.xlu0 %v6912_v40, %s10199_s5  ;;  %v6928_v0 = vsel %vm1879_vm9, %v1877_v22, %v1881_v18  ;;  %v1963_v15 = vmul.f32 %v1959_v61, %v10173_v16  ;;  %vm1961_vm11 = vcmp.ge.f32.partialorder %v1959_v61, 0.0  ;;  %v2042_v52 = vadd.f32 %v2040_v47, %v2038_v4  ;;  %s7038_s5 = sld [smem:[#allocation3 + $0xce]]  ;;  %10273 = sst [smem:[#allocation19_spill]] %s7051_s2 }
 0x202   : > { %v6943_v12 = vsel %vm1962_vm10, %v1960_v6, %v1964_v24  ;;  %v2041_v43 = vadd.f32 %v2040_v47, %v2037_v23  ;;  %v2117_v41 = vmul.f32 %v2116_v48, %v1799_v9  ;;  %v2120_v34 = vadd.f32 %v2118_v46, %v6883_v44  ;;  %10267 = sst [smem:[#allocation16_spill]] %s7028_s15  ;;  %s7060_s14 = sld [smem:[#allocation3 + $0xd1]] }
 0x203   : > { %v6947_v33 = vsel %vm1961_vm11, %v1959_v61, %v1963_v15  ;;  %v2046_v63 = vmul.f32 %v2042_v52, %v10173_v16  ;;  %v2122_v17 = vstv %s4223_s19  ;;  %vm2044_vm12 = vcmp.ge.f32.partialorder %v2042_v52, 0.0  ;;  %10268 = sst [smem:[#allocation35_spill]] %s7030_s27  ;;  %s7053_s3 = sld [smem:[#allocation3 + $0xe7]] }
 0x204   : > { %2951 = vrot.lane.b32.xlu1 %v6926_v13, %s10258_s17  ;;  %v2119_v29 = vadd.f32 %v2117_v41, %v2113_v26  ;;  %v2045_v10 = vmul.f32 %v2041_v43, %v10173_v16  ;;  %vm2043_vm13 = vcmp.ge.f32.partialorder %v2041_v43, 0.0  ;;  %v2124_v19 = vadd.f32 %v2122_v17, %v2120_v34  ;;  %10269 = sst [smem:[#allocation18_spill]] %s7032_s9  ;;  %s7036_s19 = sld [smem:[#allocation3 + $0xc2]] }
 0x205   : > { %2949 = vrot.lane.b32.xlu0 %v6928_v0, %s10258_s17  ;;  %v6958_v28 = vsel %vm2044_vm12, %v2042_v52, %v2046_v63  ;;  %10270 = sst [smem:[#allocation20_spill]] %s7034_s1  ;;  %v2210_v45 = vstv %s6972_s13  ;;  %v2292_v30 = vstv %s6974_s22  ;;  %v2374_v56 = vstv %s6978_s16  ;;  %s7063_s13 = sld [smem:[#allocation3 + $0xdd]] }
 0x206   : > { %v2123_v3 = vadd.f32 %v2122_v17, %v2119_v29  ;;  %v6962_v44 = vsel %vm2043_vm13, %v2041_v43, %v2045_v10  ;;  %v2128_v37 = vmul.f32 %v2124_v19, %v10173_v16  ;;  %vm2126_vm14 = vcmp.ge.f32.partialorder %v2124_v19, 0.0  ;;  %10271 = sst [smem:[#allocation22_spill]] %s7040_s29  ;;  %s7066_s22 = sld [smem:[#allocation3 + $0xe9]] }
 0x207   : > { %v2456_v26 = vstv %s6980_s23  ;;  %v2228_v9 = vstv %s6986_s25  ;;  %v2310_v60 = vstv %s6988_s26  ;;  %v2392_v5 = vstv %s6992_s24  ;;  %s7071_s16 = sld [smem:[#allocation3 + $0xc6]]  ;;  %s7073_s23 = sld [smem:[#allocation3 + $0xd2]] }
 0x208   : > { %2961 = vrot.lane.b32.xlu1 %v6926_v13, %s10259_s11  ;;  %v2127_v55 = vmul.f32 %v2123_v3, %v10173_v16  ;;  %vm2125_vm15 = vcmp.ge.f32.partialorder %v2123_v3, 0.0  ;;  %v6976_v42 = vsel %vm2126_vm14, %v2124_v19, %v2128_v37  ;;  %10276 = sst [smem:[#allocation26_spill]] %s7060_s14  ;;  %v2474_v49 = vstv %s6994_s7  ;;  %s7086_s25 = sld [smem:[#allocation3 + $0xde]] }
 0x209   : > { %2959 = vrot.lane.b32.xlu0 %v6928_v0, %s10259_s11  ;;  %10274 = sst [smem:[#allocation24_spill]] %s7053_s3  ;;  %v2246_v39 = vstv %s6996_s20  ;;  %v2328_v27 = vstv %s6998_s30  ;;  %v2410_v20 = vstv %s7000_s12  ;;  %v7081_v25 = vmul.f32 %v2210_v45, %v6718_v38  ;;  %s7088_s26 = sld [smem:[#allocation3 + $0xea]] }
 0x20a   : > { %v6984_v2 = vsel %vm2125_vm15, %v2123_v3, %v2127_v55  ;;  %v2492_v7 = vstv %s7002_s4  ;;  %v2264_v22 = vstv %s7006_s10  ;;  %v2346_v1 = vstv %s7008_s21  ;;  %s7099_s24 = sld [smem:[#allocation3 + $0xc8]]  ;;  %s7101_s7 = sld [smem:[#allocation3 + $0xd4]] }
 0x20b   : > { %10277 = sst [smem:[#allocation27_spill]] %s7063_s13  ;;  %v2428_v53 = vstv %s7012_s8  ;;  %v7084_v51 = vmul.f32 %v2210_v45, %v6705_v58  ;;  %v2510_v54 = vstv %s7014_s0  ;;  %v7093_v6 = vmul.f32 %v2292_v30, %v6718_v38  ;;  %s7113_s27 = sld [smem:[#allocation3 + $0xe0]] }
 0x20c   : > { %2973 = vrot.lane.b32.xlu1 %v6943_v12, %s10258_s17  ;;  %10278 = sst [smem:[#allocation28_spill]] %s7066_s22  ;;  %v7096_v62 = vmul.f32 %v2292_v30, %v6705_v58  ;;  %v7104_v11 = vmul.f32 %v2374_v56, %v6718_v38  ;;  %v7107_v47 = vmul.f32 %v2374_v56, %v6705_v58  ;;  %v7111_v24 = vmul.f32 %v2456_v26, %v6718_v38  ;;  %s7115_s9 = sld [smem:[#allocation3 + $0xec]] }
 0x20d   : > { %2971 = vrot.lane.b32.xlu0 %v6947_v33, %s10258_s17  ;;  %10279 = sst [smem:[#allocation30_spill]] %s7073_s23  ;;  %v7118_v48 = vmul.f32 %v2456_v26, %v6705_v58  ;;  %s7123_s15 = sld [smem:[#allocation3 + $0xc9]]  ;;  %v7137_v34 = vmul.f32 %v2228_v9, %v6772_v14  ;;  %v7141_v17 = vmul.f32 %v2310_v60, %v6772_v14  ;;  %v7149_v10 = vmul.f32 %v2392_v5, %v6772_v14 }
 0x20e   : > { %10280 = sst [smem:[#allocation32_spill]] %s7086_s25  ;;  %s7125_s1 = sld [smem:[#allocation3 + $0xd5]]  ;;  %v7153_v3 = vmul.f32 %v2474_v49, %v6772_v14  ;;  %v7161_v55 = vmul.f32 %v2228_v9, %v6775_v8  ;;  %v7164_v45 = vmul.f32 %v2310_v60, %v6775_v8  ;;  %v7167_v30 = vmul.f32 %v2392_v5, %v6775_v8 }
 0x20f   : > { %10281 = sst [smem:[#allocation34_spill]] %s7088_s26  ;;  %s7133_s0 = sld [smem:[#allocation3 + $0xed]]  ;;  %v7174_v14 = vmul.f32 %v2474_v49, %v6775_v8  ;;  %v7187_v5 = vmul.f32 %v2246_v39, %v6832_v35  ;;  %v7193_v8 = vmul.f32 %v2328_v27, %v6832_v35  ;;  %v7203_v60 = vmul.f32 %v2410_v20, %v6832_v35 }
 0x210   : > { %2983 = vrot.lane.b32.xlu1 %v6943_v12, %s10259_s11  ;;  %10282 = sst [smem:[#allocation29_spill]] %s7099_s24  ;;  %s7143_s29 = sld [smem:[#allocation3 + $0xcb]]  ;;  %v7209_v37 = vmul.f32 %v2492_v7, %v6832_v35  ;;  %v7219_v49 = vmul.f32 %v2246_v39, %v6841_v36  ;;  %v7224_v9 = vmul.f32 %v2328_v27, %v6841_v36  ;;  %v7229_v35 = vmul.f32 %v2410_v20, %v6841_v36 }
 0x211   : > { %2981 = vrot.lane.b32.xlu0 %v6947_v33, %s10259_s11  ;;  %10283 = sst [smem:[#allocation31_spill]] %s7101_s7  ;;  %s7155_s6 = sld [smem:[#allocation3 + $0xd7]]  ;;  %v7238_v39 = vmul.f32 %v2492_v7, %v6841_v36  ;;  %v7251_v19 = vmul.f32 %v2264_v22, %v6908_v59  ;;  %v7262_v7 = vmul.f32 %v2346_v1, %v6908_v59  ;;  %v7269_v56 = vmul.f32 %v2428_v53, %v6908_v59 }
 0x212   : > { %10284 = sst [smem:[#allocation38_spill]] %s7113_s27  ;;  %s7157_s3 = sld [smem:[#allocation5 + $0x11]]  ;;  %v7280_v26 = vmul.f32 %v2510_v54, %v6908_v59  ;;  %v7292_v58 = vmul.f32 %v2264_v22, %v6912_v40  ;;  %v7302_v59 = vmul.f32 %v2346_v1, %v6912_v40  ;;  %v7307_v29 = vmul.f32 %v2428_v53, %v6912_v40 }
 0x213   : > { %10285 = sst [smem:[#allocation52_spill]] %s7115_s9  ;;  %s7169_s13 = sld [smem:[#allocation3 + $0xe3]]  ;;  %v7318_v22 = vmul.f32 %v2510_v54, %v6912_v40 }
 0x214   : > { %2995 = vrot.lane.b32.xlu1 %v6958_v28, %s10258_s17  ;;  %10286 = sst [smem:[#allocation66_spill]] %s7123_s15  ;;  %s7179_s22 = sld [smem:[#allocation3 + $0xef]] }
 0x215   : > { %2993 = vrot.lane.b32.xlu0 %v6962_v44, %s10258_s17  ;;  %10287 = sst [smem:[#allocation33_spill]] %s7125_s1  ;;  %s7171_s14 = sld [smem:[#allocation5 + $0x12]] }
 0x216   : > { %10289 = sst [smem:[#allocation56_spill]] %s7133_s0  ;;  %s7181_s2 = sld [smem:[#allocation5 + $0x13]] }
 0x217   : > { %10290 = sst [smem:[#allocation41_spill]] %s7143_s29  ;;  %s7195_s25 = sld [smem:[#allocation3 + $0x13c]] }
 0x218   : > { %3005 = vrot.lane.b32.xlu1 %v6958_v28, %s10259_s11  ;;  %10292 = sst [smem:[#allocation46_spill]] %s7155_s6  ;;  %s7213_s26 = sld [smem:[#allocation3 + $0x12c]] }
 0x219   : > { %3003 = vrot.lane.b32.xlu0 %v6962_v44, %s10259_s11  ;;  %10293 = sst [smem:[#allocation60_spill]] %s7157_s3  ;;  %s7197_s23 = sld [smem:[#allocation3 + $0x148]] }
 0x21a   : > { %10294 = sst [smem:[#allocation45_spill]] %s7169_s13  ;;  %s7211_s24 = sld [smem:[#allocation3 + $0x120]] }
 0x21b   : > { %10295 = sst [smem:[#allocation47_spill]] %s7171_s14  ;;  %s7231_s27 = sld [smem:[#allocation3 + $0x138]] }
 0x21c   : > { %3017 = vrot.lane.b32.xlu1 %v6976_v42, %s10258_s17  ;;  %10296 = sst [smem:[#allocation49_spill]] %s7181_s2  ;;  %s7233_s7 = sld [smem:[#allocation3 + $0x144]] }
 0x21d   : > { %3015 = vrot.lane.b32.xlu0 %v6984_v2, %s10258_s17  ;;  %s7044_s17 = sld [smem:[#allocation3 + $0xc3]]  ;;  %s7243_s20 = sld [smem:[#allocation3 + $0x122]]  ;;  %v3224_v23 = vstv %s7195_s25 }
 0x21e   : > { %10297 = sst [smem:[#allocation50_spill]] %s7213_s26  ;;  %s7245_s12 = sld [smem:[#allocation3 + $0x12e]]  ;;  %v7387_v4 = vmul.f32 %v3224_v23, %v6943_v12 }
 0x21f   : > { %s10302_s9 = sld [smem:[#allocation21_spill]]  ;;  %s7255_s4 = sld [smem:[#allocation3 + $0x13a]]  ;;  %v3306_v41 = vstv %s7197_s23 }
 0x220   : > { %3027 = vrot.lane.b32.xlu1 %v6976_v42, %s10259_s11  ;;  %s10303_s1 = sld [smem:[#allocation23_spill]]  ;;  %s10304_s29 = sld [smem:[#allocation12_spill]]  ;;  %10320 = vst [vmem:[#allocation71_spill] sm:$0xff] %v7387_v4  ;;  %v7404_v52 = vmul.f32 %v3306_v41, %v6947_v33 }
 0x221   : > { %3025 = vrot.lane.b32.xlu0 %v6984_v2, %s10259_s11  ;;  %s7042_s11 = sld [smem:[#allocation3 + $0xe6]]  ;;  %10298 = sst [smem:[#allocation64_spill]] %s7231_s27 }
 0x222   : > { %10299 = sst [smem:[#allocation44_spill]] %s7233_s7  ;;  %s7273_s0 = sld [smem:[#allocation3 + $0x12f]]  ;;  %10327 = vst [vmem:[#allocation81_spill] sm:$0xff] %v7404_v52 }
 0x223   : > { %10272 = sst [smem:[#allocation17_spill]] %s7044_s17  ;;  %s10305_s15 = sld [smem:[#allocation13_spill]] }
 0x224   : > { %s7145_s17 = sld [smem:[#allocation5 + $0x10]]  ;;  %10301 = sst [smem:[#allocation39_spill]] %s7245_s12 }
 0x225   : > { %v3042_v20 = vstv %s10302_s9  ;;  %s7283_s3 = sld [smem:[#allocation3 + $0x13b]]  ;;  %s7285_s6 = sld [smem:[#allocation3 + $0x147]] }
 0x226   : > { %v3124_v36 = vstv %s10303_s1  ;;  %s7295_s14 = sld [smem:[#allocation3 + $0x125]]  ;;  %s7297_s13 = sld [smem:[#allocation3 + $0x131]]  ;;  %v3206_v63 = vstv %s10304_s29  ;;  %v7322_v43 = vmul.f32 %v3042_v20, %v6928_v0  ;;  %v7325_v1 = vmul.f32 %v3042_v20, %v6926_v13 }
 0x227   : > { %s7311_s10 = sld [smem:[#allocation3 + $0x13d]]  ;;  %s7313_s9 = sld [smem:[#allocation3 + $0x149]]  ;;  %v7331_v38 = vmul.f32 %v3124_v36, %v6928_v0  ;;  %v7334_v46 = vmul.f32 %v3124_v36, %v6926_v13  ;;  %v7342_v54 = vmul.f32 %v3206_v63, %v6928_v0  ;;  %v7345_v20 = vmul.f32 %v3206_v63, %v6926_v13 }
 0x228   : > { %10306 = vst [vmem:[#allocation85_spill] sm:$0xff] %v7322_v43  ;;  %10307 = vst [vmem:[#allocation86_spill] sm:$0xff] %v7325_v1  ;;  %s7327_s29 = sld [smem:[#allocation3 + $0x127]]  ;;  %s10308_s21 = sld [smem:[#allocation14_spill]]  ;;  %v10350_v1 = vstv %s7042_s11 }
 0x229   : > { %v3288_v27 = vstv %s10305_s15  ;;  %10309 = vst [vmem:[#allocation67_spill] sm:$0xff] %v7331_v38  ;;  %10310 = vst [vmem:[#allocation68_spill] sm:$0xff] %v7334_v46  ;;  %s7337_s8 = sld [smem:[#allocation3 + $0x133]]  ;;  %s10311_s15 = sld [smem:[#allocation15_spill]]  ;;  %v10347_v46 = vstv %s7036_s19 }
 0x22a   : > { %10291 = sst [smem:[#allocation63_spill]] %s7145_s17  ;;  %s7271_s17 = sld [smem:[#allocation3 + $0x123]]  ;;  %10312 = vst [vmem:[#allocation42_spill] sm:$0xff] %v7342_v54  ;;  %10313 = vst [vmem:[#allocation43_spill] sm:$0xff] %v7345_v20  ;;  %v7349_v36 = vmul.f32 %v3288_v27, %v6928_v0  ;;  %v7356_v40 = vmul.f32 %v3288_v27, %v6926_v13  ;;  %v7392_v13 = vmul.f32 %v3306_v41, %v6943_v12  ;;  %v10351_v43 = vmov %v10347_v46 }
 0x22b   : > { %s7339_s1 = sld [smem:[#allocation3 + $0x13f]]  ;;  %s7351_s30 = sld [smem:[#allocation3 + $0x126]] }
 0x22c   : > { %10314 = vst [vmem:[#allocation48_spill] sm:$0xff] %v7349_v36  ;;  %s7353_s2 = sld [smem:[#allocation3 + $0x14b]]  ;;  %10316 = vst [vmem:[#allocation51_spill] sm:$0xff] %v7356_v40  ;;  %s7361_s7 = sld [smem:[#allocation3 + $0x132]] }
 0x22d   : > { %s7363_s27 = sld [smem:[#allocation3 + $0x13e]]  ;;  %s7369_s26 = sld [smem:[#allocation3 + $0x14a]]  ;;  %10323 = vst [vmem:[#allocation55_spill] sm:$0xff] %v7392_v13 }
 0x22e   : > { %v3060_v63 = vstv %s10308_s21  ;;  %s7375_s12 = sld [smem:[#allocation3 + $0x128]]  ;;  %s10321_s23 = sld [smem:[#allocation16_spill]] }
 0x22f   : > { %v3142_v15 = vstv %s10311_s15  ;;  %v7379_v61 = vmul.f32 %v3060_v63, %v6943_v12  ;;  %s10322_s25 = sld [smem:[#allocation35_spill]]  ;;  %v7395_v0 = vmul.f32 %v3060_v63, %v6947_v33  ;;  %s10328_s21 = sld [smem:[#allocation18_spill]] }
 0x230   : > { %v7384_v18 = vmul.f32 %v3142_v15, %v6943_v12  ;;  %v7398_v53 = vmul.f32 %v3142_v15, %v6947_v33  ;;  %s10331_s15 = sld [smem:[#allocation20_spill]]  ;;  %s10356_s11 = sld [smem:[#allocation19_spill]] }
 0x231   : > { %10315 = sst [smem:[#allocation78_spill]] %s7351_s30  ;;  %10318 = vst [vmem:[#allocation54_spill] sm:$0xff] %v7379_v61  ;;  %10324 = vst [vmem:[#allocation87_spill] sm:$0xff] %v7395_v0  ;;  %s10339_s30 = sld [smem:[#allocation22_spill]] }
 0x232   : > { %10319 = vst [vmem:[#allocation70_spill] sm:$0xff] %v7384_v18  ;;  %10325 = vst [vmem:[#allocation73_spill] sm:$0xff] %v7398_v53  ;;  %v7401_v18 = vmul.f32 %v3224_v23, %v6947_v33  ;;  %s10357_s19 = sld [smem:[#allocation24_spill]] }
 0x234   : > { %10317 = sst [smem:[#allocation21_spill]] %s7375_s12  ;;  %10326 = vst [vmem:[#allocation72_spill] sm:$0xff] %v7401_v18  ;;  %v10329_v53 = vstv %s10321_s23  ;;  %v10336_v18 = vstv %s7339_s1  ;;  %s10369_s12 = sld [smem:[#allocation28_spill]] }
 0x235   : > { %v10330_v33 = vstv %s10322_s25  ;;  %v10340_v27 = vstv %s10322_s25  ;;  %s7493_s25 = sld [smem:[#allocation3 + $0x14c]] }
 0x236   : > { %v10345_v40 = vstv %s10331_s15  ;;  %s7503_s15 = sld [smem:[#allocation3 + $0x12a]] }
 0x237   : > { %v10349_v38 = vstv %s10339_s30  ;;  %s7491_s30 = sld [smem:[#allocation3 + $0x140]] }
 0x23e   : > { %v2136_v31 = vpop.permute.xlu1 %2135 }
 0x241   : > { %v2134_v4 = vpop.permute.xlu0 %2133 }
 0x242   : > { %v2137_v0 = vsel %vm266_vm1, %v2134_v4, %v2136_v31  ;;  %v2140_v15 = vsel %vm266_vm1, 0.0, %v2134_v4  ;;  %v2144_v52 = vpop.permute.xlu1 %2143  ;;  %v10332_v31 = vstv %s7327_s29  ;;  %v10334_v4 = vstv %s7337_s8 }
 0x243   : > { %v2206_v13 = vmul.f32 %v10329_v53, %v2137_v0  ;;  %v2288_v41 = vmul.f32 %v10330_v33, %v2137_v0  ;;  %v7423_v61 = vmul.f32 %v10332_v31, %v6958_v28  ;;  %v7428_v23 = vmul.f32 %v10334_v4, %v6958_v28 }
 0x244   : > { %v7433_v53 = vmul.f32 %v10336_v18, %v6958_v28  ;;  %v10338_v33 = vstv %s10321_s23  ;;  %v2287_v63 = vmul.f32 %v10340_v27, %v2140_v15  ;;  %v2451_v36 = vmul.f32 %v10345_v40, %v2140_v15  ;;  %s10355_s23 = sld [smem:[#allocation17_spill]] }
 0x245   : > { %10333 = vst [vmem:[#allocation74_spill] sm:$0xff] %v7423_v61  ;;  %10335 = vst [vmem:[#allocation75_spill] sm:$0xff] %v7428_v23  ;;  %v2205_v12 = vmul.f32 %v10338_v33, %v2140_v15  ;;  %v2142_v16 = vpop.permute.xlu0 %2141  ;;  %v10341_v61 = vstv %s7353_s2  ;;  %v10343_v23 = vstv %s10328_s21  ;;  %v10346_v33 = vmov %v10345_v40  ;;  %s10366_s21 = sld [smem:[#allocation25_spill]] }
 0x246   : > { %10337 = vst [vmem:[#allocation58_spill] sm:$0xff] %v7433_v53  ;;  %v7443_v4 = vmul.f32 %v10341_v61, %v6958_v28  ;;  %v2369_v57 = vmul.f32 %v10343_v23, %v2140_v15  ;;  %v10344_v18 = vmov %v10343_v23  ;;  %v2452_v20 = vmul.f32 %v10346_v33, %v2137_v0 }
 0x247   : > { %v2370_v53 = vmul.f32 %v10344_v18, %v2137_v0  ;;  %v2214_v27 = vadd.f32 %v7084_v51, %v2206_v13  ;;  %v2296_v54 = vadd.f32 %v7096_v62, %v2288_v41  ;;  %v2148_v31 = vsel %vm275_vm6, %v2144_v52, 0.0 }
 0x248   : > { %10342 = vst [vmem:[#allocation76_spill] sm:$0xff] %v7443_v4  ;;  %v2145_v21 = vsel %vm275_vm6, %v2142_v16, %v2144_v52  ;;  %v2218_v28 = vmul.f32 %v10347_v46, %v2148_v31  ;;  %v10348_v61 = vstv %s7038_s5  ;;  %v2382_v23 = vmul.f32 %v10349_v38, %v2148_v31  ;;  %s7479_s5 = sld [smem:[#allocation3 + $0x134]] }
 0x249   : > { %v2300_v4 = vmul.f32 %v10348_v61, %v2148_v31  ;;  %v2464_v18 = vmul.f32 %v10350_v1, %v2148_v31  ;;  %v2217_v40 = vmul.f32 %v10351_v43, %v2145_v21  ;;  %v10352_v15 = vmov %v10348_v61 }
 0x24a   : > { %v2299_v0 = vmul.f32 %v10352_v15, %v2145_v21  ;;  %v10353_v33 = vmov %v10349_v38  ;;  %v10354_v13 = vmov %v10350_v1  ;;  %v2213_v41 = vadd.f32 %v7081_v25, %v2205_v12 }
 0x24b   : > { %v2381_v51 = vmul.f32 %v10353_v33, %v2145_v21  ;;  %v2463_v62 = vmul.f32 %v10354_v13, %v2145_v21  ;;  %v2295_v16 = vadd.f32 %v7093_v6, %v2287_v63  ;;  %v2378_v52 = vadd.f32 %v7107_v47, %v2370_v53 }
 0x24c   : > { %v2460_v46 = vadd.f32 %v7118_v48, %v2452_v20  ;;  %v2377_v38 = vadd.f32 %v7104_v11, %v2369_v57  ;;  %v2459_v43 = vadd.f32 %v7111_v24, %v2451_v36  ;;  %v2220_v1 = vadd.f32 %v2218_v28, %v2214_v27 }
 0x24d   : > { %v2302_v31 = vadd.f32 %v2300_v4, %v2296_v54  ;;  %v2384_v21 = vadd.f32 %v2382_v23, %v2378_v52  ;;  %v2219_v6 = vadd.f32 %v2217_v40, %v2213_v41  ;;  %v2301_v47 = vadd.f32 %v2299_v0, %v2295_v16 }
 0x24e   : > { %v2466_v25 = vadd.f32 %v2464_v18, %v2460_v46  ;;  %v2383_v57 = vadd.f32 %v2381_v51, %v2377_v38  ;;  %v2465_v11 = vadd.f32 %v2463_v62, %v2459_v43  ;;  %v10358_v12 = vstv %s10355_s23  ;;  %s7505_s23 = sld [smem:[#allocation3 + $0x136]] }
 0x24f   : > { %v2154_v48 = vpop.permute.xlu1 %2153  ;;  %v10359_v63 = vmov %v10358_v12  ;;  %v10360_v4 = vstv %s7046_s18  ;;  %v10362_v23 = vstv %s10356_s11  ;;  %v10364_v0 = vstv %s10357_s19  ;;  %s10367_s18 = sld [smem:[#allocation26_spill]]  ;;  %s10368_s11 = sld [smem:[#allocation27_spill]] }
 0x250   : > { %v2152_v20 = vpop.permute.xlu0 %2151  ;;  %v10361_v28 = vmov %v10360_v4  ;;  %v10363_v40 = vmov %v10362_v23  ;;  %v10365_v51 = vmov %v10364_v0  ;;  %s7555_s19 = sld [smem:[#allocation3 + $0x14e]] }
 0x251   : > { %v2155_v24 = vsel %vm266_vm1, %v2152_v20, %v2154_v48  ;;  %v2158_v36 = vsel %vm266_vm1, 0.0, %v2152_v20 }
 0x252   : > { %v2223_v54 = vmul.f32 %v10358_v12, %v2158_v36  ;;  %v2224_v53 = vmul.f32 %v10359_v63, %v2155_v24  ;;  %v2305_v27 = vmul.f32 %v10360_v4, %v2158_v36  ;;  %v2306_v61 = vmul.f32 %v10361_v28, %v2155_v24 }
 0x253   : > { %v2387_v18 = vmul.f32 %v10362_v23, %v2158_v36  ;;  %v2388_v15 = vmul.f32 %v10363_v40, %v2155_v24  ;;  %v2469_v33 = vmul.f32 %v10364_v0, %v2158_v36  ;;  %v2470_v13 = vmul.f32 %v10365_v51, %v2155_v24  ;;  %v2162_v46 = vpop.permute.xlu1 %2161 }
 0x254   : > { %v2225_v62 = vadd.f32 %v2223_v54, %v2219_v6  ;;  %v2226_v41 = vadd.f32 %v2224_v53, %v2220_v1  ;;  %v2307_v16 = vadd.f32 %v2305_v27, %v2301_v47  ;;  %v2308_v52 = vadd.f32 %v2306_v61, %v2302_v31 }
 0x255   : > { %v2389_v38 = vadd.f32 %v2387_v18, %v2383_v57  ;;  %v2390_v43 = vadd.f32 %v2388_v15, %v2384_v21  ;;  %v2471_v48 = vadd.f32 %v2469_v33, %v2465_v11  ;;  %v2472_v20 = vadd.f32 %v2470_v13, %v2466_v25  ;;  %v2160_v57 = vpop.permute.xlu0 %2159 }
 0x256   : > { %v2166_v24 = vsel %vm275_vm6, %v2162_v46, 0.0  ;;  %v2232_v1 = vadd.f32 %v7137_v34, %v2226_v41  ;;  %v2314_v31 = vadd.f32 %v7141_v17, %v2308_v52  ;;  %v2231_v6 = vadd.f32 %v7161_v55, %v2225_v62  ;;  %10384 = sst [smem:[#allocation12_spill]] %s7555_s19 }
 0x257   : > { %v10370_v47 = vstv %s10366_s21  ;;  %v2396_v21 = vadd.f32 %v7149_v10, %v2390_v43  ;;  %v3166_v25 = vstv %s7479_s5  ;;  %v10371_v11 = vstv %s7327_s29  ;;  %s10381_s29 = sld [smem:[#allocation30_spill]]  ;;  %s10385_s21 = sld [smem:[#allocation34_spill]] }
 0x258   : > { %v2236_v36 = vmul.f32 %v10370_v47, %v2166_v24  ;;  %v7518_v12 = vmul.f32 %v10371_v11, %v6962_v44  ;;  %v10372_v34 = vstv %s10367_s18  ;;  %v2478_v55 = vadd.f32 %v7153_v3, %v2472_v20  ;;  %s7577_s18 = sld [smem:[#allocation3 + $0x135]]  ;;  %s10520_s5 = smov 112  }
 0x259   : > { %v2318_v17 = vmul.f32 %v10372_v34, %v2166_v24  ;;  %v2313_v54 = vadd.f32 %v7164_v45, %v2307_v16  ;;  %v2395_v63 = vadd.f32 %v7167_v30, %v2389_v38  ;;  %v10373_v53 = vstv %s10368_s11  ;;  %s10396_s11 = sld [smem:[#allocation38_spill]] }
 0x25a   : > { %v2400_v10 = vmul.f32 %v10373_v53, %v2166_v24  ;;  %v10374_v4 = vstv %s10369_s12  ;;  %v2477_v28 = vadd.f32 %v7174_v14, %v2471_v48  ;;  %v10375_v61 = vstv %s7337_s8  ;;  %s10382_s8 = sld [smem:[#allocation32_spill]]  ;;  %s10394_s12 = sld [smem:[#allocation29_spill]] }
 0x25b   : > { %v2482_v27 = vmul.f32 %v10374_v4, %v2166_v24  ;;  %v7533_v23 = vmul.f32 %v10375_v61, %v6962_v44  ;;  %v2163_v18 = vsel %vm275_vm6, %v2160_v57, %v2162_v46  ;;  %v3248_v40 = vstv %s7491_s30  ;;  %s8051_s30 = sld [smem:[#allocation3 + $0xf1]] }
 0x25c   : > { %v3330_v3 = vstv %s7493_s25  ;;  %v10376_v45 = vstv %s7339_s1  ;;  %v10377_v30 = vmov %v10370_v47  ;;  %v10378_v33 = vmov %v10372_v34  ;;  %s7553_s1 = sld [smem:[#allocation3 + $0x142]]  ;;  %s8053_s25 = sld [smem:[#allocation3 + $0xfd]] }
 0x25d   : > { %v7541_v15 = vmul.f32 %v10376_v45, %v6962_v44  ;;  %v2235_v0 = vmul.f32 %v10377_v30, %v2163_v18  ;;  %v2317_v51 = vmul.f32 %v10378_v33, %v2163_v18  ;;  %v10379_v13 = vmov %v10373_v53 }
 0x25e   : > { %v2399_v62 = vmul.f32 %v10379_v13, %v2163_v18  ;;  %v10380_v41 = vmov %v10374_v4  ;;  %v2172_v16 = vpop.permute.xlu1 %2171  ;;  %v2238_v52 = vadd.f32 %v2236_v36, %v2232_v1  ;;  %v2320_v38 = vadd.f32 %v2318_v17, %v2314_v31 }
 0x25f   : > { %v2481_v14 = vmul.f32 %v10380_v41, %v2163_v18  ;;  %v3096_v46 = vstv %s7503_s15  ;;  %v3178_v43 = vstv %s7505_s23  ;;  %v2402_v48 = vadd.f32 %v2400_v10, %v2396_v21  ;;  %s10395_s15 = sld [smem:[#allocation31_spill]]  ;;  %s7579_s23 = sld [smem:[#allocation3 + $0x141]] }
 0x260   : > { %v2484_v20 = vadd.f32 %v2482_v27, %v2478_v55  ;;  %v2237_v24 = vadd.f32 %v2235_v0, %v2231_v6  ;;  %v2319_v47 = vadd.f32 %v2317_v51, %v2313_v54  ;;  %v2401_v1 = vadd.f32 %v2399_v62, %v2395_v63 }
 0x261   : > { %v2170_v57 = vpop.permute.xlu0 %2169  ;;  %v2483_v36 = vadd.f32 %v2481_v14, %v2477_v28  ;;  %v10386_v34 = vstv %s7071_s16  ;;  %v10388_v61 = vstv %s10381_s29  ;;  %v10390_v21 = vstv %s10382_s8  ;;  %s7575_s16 = sld [smem:[#allocation3 + $0x129]]  ;;  %s10397_s29 = sld [smem:[#allocation52_spill]] }
 0x262   : > { %10383 = sst [smem:[#allocation23_spill]] %s7553_s1  ;;  %v2173_v31 = vsel %vm266_vm1, %v2170_v57, %v2172_v16  ;;  %v2176_v11 = vsel %vm266_vm1, 0.0, %v2170_v57  ;;  %v10387_v53 = vmov %v10386_v34  ;;  %v10389_v45 = vmov %v10388_v61  ;;  %v2180_v0 = vpop.permute.xlu1 %2179  ;;  %s10408_s8 = sld [smem:[#allocation33_spill]] }
 0x263   : > { %v2241_v17 = vmul.f32 %v10386_v34, %v2176_v11  ;;  %v2242_v4 = vmul.f32 %v10387_v53, %v2173_v31  ;;  %v2323_v18 = vmul.f32 %v10388_v61, %v2176_v11  ;;  %v2324_v30 = vmul.f32 %v10389_v45, %v2173_v31 }
 0x264   : > { %v2405_v10 = vmul.f32 %v10390_v21, %v2176_v11  ;;  %v10391_v55 = vmov %v10390_v21  ;;  %v10392_v54 = vstv %s10385_s21  ;;  %v10399_v34 = vstv %s10394_s12  ;;  %s10409_s21 = sld [smem:[#allocation53_spill]]  ;;  %s10410_s12 = sld [smem:[#allocation56_spill]] }
 0x265   : > { %v2406_v6 = vmul.f32 %v10391_v55, %v2173_v31  ;;  %v2487_v27 = vmul.f32 %v10392_v54, %v2176_v11  ;;  %v10393_v63 = vmov %v10392_v54  ;;  %v2243_v33 = vadd.f32 %v2241_v17, %v2237_v24 }
 0x266   : > { %v2488_v28 = vmul.f32 %v10393_v63, %v2173_v31  ;;  %v2244_v51 = vadd.f32 %v2242_v4, %v2238_v52  ;;  %v2325_v13 = vadd.f32 %v2323_v18, %v2319_v47  ;;  %v2326_v62 = vadd.f32 %v2324_v30, %v2320_v38 }
 0x267   : > { %v2407_v41 = vadd.f32 %v2405_v10, %v2401_v1  ;;  %v2408_v14 = vadd.f32 %v2406_v6, %v2402_v48  ;;  %v2489_v16 = vadd.f32 %v2487_v27, %v2483_v36  ;;  %v2184_v24 = vsel %vm275_vm6, %v2180_v0, 0.0 }
 0x268   : > { %v2490_v57 = vadd.f32 %v2488_v28, %v2484_v20  ;;  %v2250_v52 = vadd.f32 %v7187_v5, %v2244_v51  ;;  %v2332_v38 = vadd.f32 %v7193_v8, %v2326_v62  ;;  %v2249_v47 = vadd.f32 %v7219_v49, %v2243_v33  ;;  %v2178_v20 = vpop.permute.xlu0 %2177 }
 0x269   : > { %v2414_v48 = vadd.f32 %v7203_v60, %v2408_v14  ;;  %v10398_v1 = vstv %s7353_s2  ;;  %v9508_v31 = vstv %s7553_s1  ;;  %v9507_v11 = vstv %s7555_s19  ;;  %s10407_s2 = sld [smem:[#allocation66_spill]]  ;;  %s7659_s19 = sld [smem:[#allocation3 + $0x12b]] }
 0x26a   : > { %v7589_v36 = vmul.f32 %v10398_v1, %v6962_v44  ;;  %v2496_v5 = vadd.f32 %v7209_v37, %v2490_v57  ;;  %v2331_v8 = vadd.f32 %v7224_v9, %v2325_v13  ;;  %v2413_v60 = vadd.f32 %v7229_v35, %v2407_v41  ;;  %s10432_s1 = sld [smem:[#allocation50_spill]] }
 0x26b   : > { %v7597_v49 = vmul.f32 %v3096_v46, %v6976_v42  ;;  %v2254_v17 = vmul.f32 %v10399_v34, %v2184_v24  ;;  %v10400_v44 = vstv %s10395_s15  ;;  %v2495_v4 = vadd.f32 %v7238_v39, %v2489_v16  ;;  %s7649_s15 = sld [smem:[#allocation3 + $0x14d]] }
 0x26c   : > { %v2336_v53 = vmul.f32 %v10400_v44, %v2184_v24  ;;  %v7605_v61 = vmul.f32 %v3178_v43, %v6976_v42  ;;  %v10401_v18 = vstv %s10396_s11  ;;  %v10402_v45 = vstv %s10397_s29  ;;  %s10419_s11 = sld [smem:[#allocation41_spill]]  ;;  %s10420_s29 = sld [smem:[#allocation46_spill]] }
 0x26d   : > { %v2418_v37 = vmul.f32 %v10401_v18, %v2184_v24  ;;  %v2500_v9 = vmul.f32 %v10402_v45, %v2184_v24  ;;  %v2181_v35 = vsel %vm275_vm6, %v2178_v20, %v2180_v0  ;;  %v7615_v30 = vmul.f32 %v9508_v31, %v6976_v42 }
 0x26e   : > { %v10403_v21 = vmov %v10399_v34  ;;  %v10404_v55 = vmov %v10400_v44  ;;  %v10405_v39 = vmov %v10401_v18  ;;  %v10406_v27 = vmov %v10402_v45  ;;  %v2190_v41 = vpop.permute.xlu1 %2189 }
 0x26f   : > { %v2253_v10 = vmul.f32 %v10403_v21, %v2181_v35  ;;  %v2335_v6 = vmul.f32 %v10404_v55, %v2181_v35  ;;  %v2417_v54 = vmul.f32 %v10405_v39, %v2181_v35  ;;  %v2499_v63 = vmul.f32 %v10406_v27, %v2181_v35  ;;  %v2188_v20 = vpop.permute.xlu0 %2187 }
 0x270   : > { %v3090_v28 = vstv %s7575_s16  ;;  %v7629_v33 = vmul.f32 %v9507_v11, %v6976_v42  ;;  %v7632_v51 = vmul.f32 %v3096_v46, %v6984_v2  ;;  %v7635_v0 = vmul.f32 %v3178_v43, %v6984_v2  ;;  %s8063_s16 = sld [smem:[#allocation3 + $0xf4]] }
 0x271   : > { %v2256_v13 = vadd.f32 %v2254_v17, %v2250_v52  ;;  %v2338_v62 = vadd.f32 %v2336_v53, %v2332_v38  ;;  %v3172_v14 = vstv %s7577_s18  ;;  %v3254_v16 = vstv %s7579_s23  ;;  %s8065_s18 = sld [smem:[#allocation3 + $0x100]]  ;;  %s8067_s23 = sld [smem:[#allocation3 + $0x10c]] }
 0x272   : > { %v2420_v57 = vadd.f32 %v2418_v37, %v2414_v48  ;;  %v2502_v42 = vadd.f32 %v2500_v9, %v2496_v5  ;;  %v2255_v46 = vadd.f32 %v2253_v10, %v2249_v47  ;;  %v2337_v24 = vadd.f32 %v2335_v6, %v2331_v8  ;;  %v2198_v10 = vpop.permute.xlu1 %2197 }
 0x273   : > { %v2419_v1 = vadd.f32 %v2417_v54, %v2413_v60  ;;  %v2501_v43 = vadd.f32 %v2499_v63, %v2495_v4  ;;  %v2191_v34 = vsel %vm266_vm1, %v2188_v20, %v2190_v41  ;;  %v2194_v52 = vsel %vm266_vm1, 0.0, %v2188_v20  ;;  %v2196_v27 = vpop.permute.xlu0 %2195 }
 0x274   : > { %v10411_v38 = vstv %s10407_s2  ;;  %v10413_v18 = vstv %s10408_s8  ;;  %v10415_v5 = vstv %s10409_s21  ;;  %v10417_v60 = vstv %s10410_s12  ;;  %s10421_s2 = sld [smem:[#allocation45_spill]]  ;;  %s10425_s8 = sld [smem:[#allocation63_spill]] }
 0x275   : > { %v2259_v17 = vmul.f32 %v10411_v38, %v2194_v52  ;;  %v10412_v44 = vmov %v10411_v38  ;;  %v2341_v45 = vmul.f32 %v10413_v18, %v2194_v52  ;;  %v10414_v35 = vmov %v10413_v18  ;;  %s10427_s21 = sld [smem:[#allocation60_spill]]  ;;  %s10428_s12 = sld [smem:[#allocation47_spill]] }
 0x276   : > { %v2260_v53 = vmul.f32 %v10412_v44, %v2191_v34  ;;  %v2342_v48 = vmul.f32 %v10414_v35, %v2191_v34  ;;  %v2423_v47 = vmul.f32 %v10415_v5, %v2194_v52  ;;  %v10416_v8 = vmov %v10415_v5  ;;  %10521 = sst [smem:[#allocation13_spill]] %s8063_s16 }
 0x277   : > { %v2424_v37 = vmul.f32 %v10416_v8, %v2191_v34  ;;  %v2505_v4 = vmul.f32 %v10417_v60, %v2194_v52  ;;  %v10418_v9 = vmov %v10417_v60  ;;  %v2261_v55 = vadd.f32 %v2259_v17, %v2255_v46  ;;  %10522 = sst [smem:[#allocation14_spill]] %s8065_s18 }
 0x278   : > { %v2506_v21 = vmul.f32 %v10418_v9, %v2191_v34  ;;  %v2262_v6 = vadd.f32 %v2260_v53, %v2256_v13  ;;  %v2343_v39 = vadd.f32 %v2341_v45, %v2337_v24  ;;  %v2344_v54 = vadd.f32 %v2342_v48, %v2338_v62  ;;  %v2950_v53 = vpop.permute.xlu0 %2949  ;;  %10523 = sst [smem:[#allocation15_spill]] %s8067_s23 }
 0x279   : > { %v2425_v63 = vadd.f32 %v2423_v47, %v2419_v1  ;;  %v2426_v41 = vadd.f32 %v2424_v37, %v2420_v57  ;;  %v2507_v20 = vadd.f32 %v2505_v4, %v2501_v43  ;;  %v2202_v52 = vsel %vm275_vm6, %v2198_v10, 0.0  ;;  %v2952_v1 = vpop.permute.xlu1 %2951 }
 0x27a   : > { %v2508_v38 = vadd.f32 %v2506_v21, %v2502_v42  ;;  %v2268_v34 = vadd.f32 %v7251_v19, %v2262_v6  ;;  %v2350_v44 = vadd.f32 %v7262_v7, %v2344_v54  ;;  %v2267_v18 = vadd.f32 %v7292_v58, %v2261_v55 }
 0x27b   : > { %v10422_v35 = vstv %s10419_s11  ;;  %v10423_v17 = vstv %s10420_s29  ;;  %v2432_v62 = vadd.f32 %v7269_v56, %v2426_v41  ;;  %v10424_v24 = vstv %s10421_s2  ;;  %s10437_s11 = sld [smem:[#allocation64_spill]]  ;;  %s10444_s29 = sld [smem:[#allocation39_spill]] }
 0x27c   : > { %v2272_v46 = vmul.f32 %v10422_v35, %v2202_v52  ;;  %v2354_v13 = vmul.f32 %v10423_v17, %v2202_v52  ;;  %v2436_v57 = vmul.f32 %v10424_v24, %v2202_v52  ;;  %v2514_v42 = vadd.f32 %v7280_v26, %v2508_v38  ;;  %s8075_s2 = sld [smem:[#allocation3 + $0xf7]] }
 0x27d   : > { %v10426_v43 = vstv %s7179_s22  ;;  %v2349_v7 = vadd.f32 %v7302_v59, %v2343_v39  ;;  %v2431_v58 = vadd.f32 %v7307_v29, %v2425_v63  ;;  %v2513_v5 = vadd.f32 %v7318_v22, %v2507_v20  ;;  %v2962_v21 = vpop.permute.xlu1 %2961  ;;  %s10439_s22 = sld [smem:[#allocation44_spill]] }
 0x27e   : > { %v2518_v19 = vmul.f32 %v10426_v43, %v2202_v52  ;;  %v2274_v45 = vadd.f32 %v2272_v46, %v2268_v34  ;;  %v2356_v56 = vadd.f32 %v2354_v13, %v2350_v44  ;;  %v2438_v48 = vadd.f32 %v2436_v57, %v2432_v62 }
 0x27f   : > { %v2199_v26 = vsel %vm275_vm6, %v2196_v27, %v2198_v10  ;;  %v2953_v47 = vsel %vm764_vm3, %v2950_v53, %v2952_v1  ;;  %v2956_v8 = vsel %vm764_vm3, 0.0, %v2950_v53  ;;  %v3336_v59 = vstv %s7649_s15  ;;  %s8069_s15 = sld [smem:[#allocation3 + $0x118]] }
 0x280   : > { %v10429_v37 = vstv %s10425_s8  ;;  %v7684_v29 = vadd.f32 %v2518_v19, %v2514_v42  ;;  %v10430_v4 = vmov %v10422_v35  ;;  %v3102_v55 = vstv %s7659_s19  ;;  %v2960_v35 = vpop.permute.xlu0 %2959  ;;  %s8061_s19 = sld [smem:[#allocation3 + $0x115]]  ;;  %s8077_s8 = sld [smem:[#allocation3 + $0x103]] }
 0x281   : > { %v2278_v60 = vadd.f32 %v10429_v37, %v2274_v45  ;;  %v2271_v9 = vmul.f32 %v10430_v4, %v2199_v26  ;;  %v10431_v6 = vstv %s10427_s21  ;;  %v10433_v10 = vmov %v10423_v17  ;;  %v10449_v4 = vld [vmem:[#allocation67_spill] sm:$0xff]  ;;  %s8083_s21 = sld [smem:[#allocation3 + $0x10f]] }
 0x282   : > { %v7691_v22 = vadd.f32 %v10431_v6, %v2356_v56  ;;  %v2353_v39 = vmul.f32 %v10433_v10, %v2199_v26  ;;  %v10434_v54 = vmov %v10424_v24  ;;  %v10435_v63 = vmov %v10426_v43  ;;  %10525 = sst [smem:[#allocation35_spill]] %s8075_s2 }
 0x283   : > { %v2435_v27 = vmul.f32 %v10434_v54, %v2199_v26  ;;  %v2517_v41 = vmul.f32 %v10435_v63, %v2199_v26  ;;  %v10436_v20 = vstv %s10428_s12  ;;  %v2273_v52 = vadd.f32 %v2271_v9, %v2267_v18  ;;  %s8085_s12 = sld [smem:[#allocation3 + $0x11b]] }
 0x284   : > { %v7701_v38 = vadd.f32 %v10436_v20, %v2438_v48  ;;  %v2957_v34 = vsel %vm5190_vm5, %v2956_v8, 0.0  ;;  %v2958_v44 = vsel %vm5174_vm4, %v2953_v47, 0.0  ;;  %v2355_v46 = vadd.f32 %v2353_v39, %v2349_v7  ;;  %v10447_v47 = vld [vmem:[#allocation85_spill] sm:$0xff]  ;;  %v10448_v8 = vld [vmem:[#allocation86_spill] sm:$0xff] }
 0x285   : > { %v2437_v17 = vadd.f32 %v2435_v27, %v2431_v58  ;;  %v10438_v13 = vstv %s7211_s24  ;;  %v2966_v24 = vsel %vm775_vm0, %v2962_v21, 0.0  ;;  %v7710_v57 = vadd.f32 %v2517_v41, %v2513_v5  ;;  %v2974_v27 = vpop.permute.xlu1 %2973  ;;  %s10479_s24 = smov 127   ;;  %10524 = sst [smem:[#allocation16_spill]] %s8069_s15 }
 0x286   : > { %v3037_v62 = vmul.f32 %v10438_v13, %v2957_v34  ;;  %v10440_v18 = vmov %v10438_v13  ;;  %v10441_v42 = vstv %s10432_s1  ;;  %v10443_v45 = vmov %v10429_v37  ;;  %s8059_s1 = sld [smem:[#allocation3 + $0x109]] }
 0x287   : > { %v3038_v1 = vmul.f32 %v10440_v18, %v2958_v44  ;;  %v3119_v43 = vmul.f32 %v10441_v42, %v2957_v34  ;;  %v10442_v19 = vmov %v10441_v42  ;;  %v2277_v7 = vadd.f32 %v10443_v45, %v2273_v52  ;;  %10526 = sst [smem:[#allocation18_spill]] %s8077_s8 }
 0x288   : > { %v3120_v53 = vmul.f32 %v10442_v19, %v2958_v44  ;;  %v10445_v58 = vmov %v10431_v6  ;;  %v10446_v48 = vmov %v10436_v20  ;;  %v3045_v5 = vadd.f32 %v10447_v47, %v3037_v62  ;;  %v10450_v6 = vld [vmem:[#allocation68_spill] sm:$0xff]  ;;  %v10456_v62 = vld [vmem:[#allocation42_spill] sm:$0xff]  ;;  %10527 = sst [smem:[#allocation20_spill]] %s8083_s21 }
 0x289   : > { %v7722_v56 = vadd.f32 %v10445_v58, %v2355_v46  ;;  %v7726_v26 = vadd.f32 %v10446_v48, %v2437_v17  ;;  %v3046_v37 = vadd.f32 %v10448_v8, %v3038_v1  ;;  %v3127_v9 = vadd.f32 %v10449_v4, %v3119_v43  ;;  %v2972_v48 = vpop.permute.xlu0 %2971  ;;  %v10460_v47 = vld [vmem:[#allocation43_spill] sm:$0xff]  ;;  %v10461_v8 = vld [vmem:[#allocation48_spill] sm:$0xff]  ;;  %v10462_v4 = vld [vmem:[#allocation51_spill] sm:$0xff]  ;;  %10528 = sst [smem:[#allocation22_spill]] %s8085_s12 }
 0x28a   : > { %v3128_v10 = vadd.f32 %v10450_v6, %v3120_v53  ;;  %v10451_v39 = vstv %s10437_s11  ;;  %v10453_v20 = vstv %s10439_s22  ;;  %v2968_v18 = vsel %vm5108_vm2, %v2966_v24, 0.0  ;;  %s8087_s11 = sld [smem:[#allocation3 + $0xfa]]  ;;  %s8089_s22 = sld [smem:[#allocation3 + $0x106]] }
 0x28b   : > { %v3201_v54 = vmul.f32 %v10451_v39, %v2957_v34  ;;  %v10452_v63 = vmov %v10451_v39  ;;  %v3283_v52 = vmul.f32 %v10453_v20, %v2957_v34  ;;  %v10454_v46 = vmov %v10453_v20 }
 0x28c   : > { %v3202_v41 = vmul.f32 %v10452_v63, %v2958_v44  ;;  %v3284_v13 = vmul.f32 %v10454_v46, %v2958_v44  ;;  %v10457_v1 = vstv %s7243_s20  ;;  %v10458_v43 = vstv %s10444_s29 }
 0x28d   : > { %v3209_v42 = vadd.f32 %v10456_v62, %v3201_v54  ;;  %v3050_v19 = vmul.f32 %v10457_v1, %v2968_v18  ;;  %v3132_v45 = vmul.f32 %v10458_v43, %v2968_v18  ;;  %v10459_v53 = vstv %s7255_s4 }
 0x28e   : > { %v3214_v58 = vmul.f32 %v10459_v53, %v2968_v18  ;;  %v3210_v34 = vadd.f32 %v10460_v47, %v3202_v41  ;;  %v3291_v44 = vadd.f32 %v10461_v8, %v3283_v52  ;;  %v3292_v6 = vadd.f32 %v10462_v4, %v3284_v13  ;;  %v10465_v53 = vld [vmem:[#allocation57_spill] sm:$0xff] }
 0x28f   : > { %v10463_v24 = vstv %s7257_s28  ;;  %v3052_v54 = vadd.f32 %v3050_v19, %v3046_v37  ;;  %v3134_v63 = vadd.f32 %v3132_v45, %v3128_v10  ;;  %v2963_v20 = vsel %vm775_vm0, %v2960_v35, %v2962_v21  ;;  %v2984_v37 = vpop.permute.xlu1 %2983  ;;  %s10470_s28 = smov 1  }
 0x290   : > { %v3296_v39 = vmul.f32 %v10463_v24, %v2968_v18  ;;  %vm2280_vm8 = vcmp.ge.f32.partialorder %v2278_v60, 0.0  ;;  %v3216_v46 = vadd.f32 %v3214_v58, %v3210_v34  ;;  %v2967_v43 = vsel %vm5233_vm7, %v2963_v20, 0.0  ;;  %10529 = sst [smem:[#allocation17_spill]] %s8087_s11 }
 0x291   : > { %v2282_v11 = vmul.f32 %v2278_v60, %v10465_v53  ;;  %v10466_v31 = vstv %s7243_s20  ;;  %v10467_v47 = vstv %s10444_s29  ;;  %v10468_v8 = vstv %s7255_s4  ;;  %s8000_s20 = sld [smem:[#allocation5 + $0x1a]]  ;;  %s4378_s4 = sld [smem:[#allocation3 + $0x14f]] }
 0x292   : > { %v3298_v62 = vadd.f32 %v3296_v39, %v3292_v6  ;;  %v3049_v41 = vmul.f32 %v10466_v31, %v2967_v43  ;;  %v3131_v52 = vmul.f32 %v10467_v47, %v2967_v43  ;;  %v3213_v13 = vmul.f32 %v10468_v8, %v2967_v43  ;;  %10530 = sst [smem:[#allocation19_spill]] %s8089_s22 }
 0x293   : > { %v10469_v4 = vmov %v10463_v24  ;;  %v7766_v10 = vsel %vm2280_vm8, %v2278_v60, %v2282_v11  ;;  %vm2279_vm9 = vcmp.ge.f32.partialorder %v2277_v7, 0.0  ;;  %v2281_v21 = vmul.f32 %v2277_v7, %v10465_v53  ;;  %v2982_v11 = vpop.permute.xlu0 %2981  ;;  %s8091_s29 = sld [smem:[#allocation3 + $0x112]] }
 0x294   : > { %v3295_v18 = vmul.f32 %v10469_v4, %v2967_v43  ;;  %v2975_v35 = vsel %vm764_vm3, %v2972_v48, %v2974_v27  ;;  %v3051_v19 = vadd.f32 %v3049_v41, %v3045_v5  ;;  %v3133_v31 = vadd.f32 %v3131_v52, %v3127_v9  ;;  %2535 = vrot.lane.b32.xlu1 %v7766_v10, %s10470_s28 }
 0x295   : > { %v3215_v45 = vadd.f32 %v3213_v13, %v3209_v42  ;;  %v7772_v60 = vsel %vm2279_vm9, %v2277_v7, %v2281_v21  ;;  %v2978_v34 = vsel %vm764_vm3, 0.0, %v2972_v48  ;;  %v2980_v27 = vsel %vm5174_vm4, %v2975_v35, 0.0 }
 0x296   : > { %v3297_v58 = vadd.f32 %v3295_v18, %v3291_v44  ;;  %v2988_v5 = vsel %vm775_vm0, %v2984_v37, 0.0  ;;  %2533 = vrot.lane.b32.xlu0 %v7772_v60, %s10470_s28  ;;  %v2979_v9 = vsel %vm5190_vm5, %v2978_v34, 0.0  ;;  %v10471_v42 = vstv %s7271_s17  ;;  %s10496_s17 = sld [smem:[#allocation78_spill]] }
 0x297   : > { %v3056_v44 = vmul.f32 %v10471_v42, %v2980_v27  ;;  %v10472_v6 = vstv %s7273_s0  ;;  %v10473_v7 = vstv %s7283_s3  ;;  %v10474_v20 = vmov %v10471_v42  ;;  %s10505_s0 = sld [smem:[#allocation21_spill]]  ;;  %s10513_s3 = sld [smem:[#allocation12_spill]] }
 0x298   : > { %v3138_v24 = vmul.f32 %v10472_v6, %v2980_v27  ;;  %v3220_v39 = vmul.f32 %v10473_v7, %v2980_v27  ;;  %v3055_v43 = vmul.f32 %v10474_v20, %v2979_v9  ;;  %v10475_v48 = vmov %v10472_v6  ;;  %2545 = vrot.lane.b32.xlu1 %v7766_v10, %s10479_s24 }
 0x299   : > { %v3137_v41 = vmul.f32 %v10475_v48, %v2979_v9  ;;  %v10476_v47 = vmov %v10473_v7  ;;  %v10477_v8 = vstv %s7285_s6  ;;  %v3058_v4 = vadd.f32 %v3056_v44, %v3052_v54  ;;  %v2996_v44 = vpop.permute.xlu1 %2995  ;;  %s10512_s6 = sld [smem:[#allocation23_spill]]  ;;  %10531 = sst [smem:[#allocation24_spill]] %s8091_s29 }
 0x29a   : > { %v3219_v52 = vmul.f32 %v10476_v47, %v2979_v9  ;;  %v3301_v13 = vmul.f32 %v10477_v8, %v2979_v9  ;;  %v3140_v18 = vadd.f32 %v3138_v24, %v3134_v63  ;;  %v3222_v21 = vadd.f32 %v3220_v39, %v3216_v46  ;;  %2543 = vrot.lane.b32.xlu0 %v7772_v60, %s10479_s24  ;;  %v10480_v63 = vld [vmem:[#allocation54_spill] sm:$0xff]  ;;  %v10481_v9 = vld [vmem:[#allocation70_spill] sm:$0xff]  ;;  %v2994_v24 = vpop.permute.xlu0 %2993 }
 0x29b   : > { %v10478_v35 = vmov %v10477_v8  ;;  %v3057_v42 = vadd.f32 %v3055_v43, %v3051_v19  ;;  %v3139_v6 = vadd.f32 %v3137_v41, %v3133_v31  ;;  %v2990_v54 = vsel %vm5108_vm2, %v2988_v5, 0.0  ;;  %v10484_v31 = vld [vmem:[#allocation71_spill] sm:$0xff]  ;;  %v10486_v41 = vld [vmem:[#allocation55_spill] sm:$0xff]  ;;  %v10488_v5 = vld [vmem:[#allocation87_spill] sm:$0xff] }
 0x29c   : > { %v3302_v34 = vmul.f32 %v10478_v35, %v2980_v27  ;;  %v3221_v7 = vadd.f32 %v3219_v52, %v3215_v45  ;;  %v3303_v20 = vadd.f32 %v3301_v13, %v3297_v58  ;;  %v3064_v46 = vadd.f32 %v10480_v63, %v3058_v4  ;;  %v10489_v35 = vld [vmem:[#allocation73_spill] sm:$0xff] }
 0x29d   : > { %v3146_v27 = vadd.f32 %v10481_v9, %v3140_v18  ;;  %v10482_v39 = vstv %s7295_s14  ;;  %v10483_v19 = vstv %s7297_s13  ;;  %v3228_v45 = vadd.f32 %v10484_v31, %v3222_v21  ;;  %v10491_v31 = vld [vmem:[#allocation81_spill] sm:$0xff] }
 0x29e   : > { %v3304_v48 = vadd.f32 %v3302_v34, %v3298_v62  ;;  %v3068_v47 = vmul.f32 %v10482_v39, %v2990_v54  ;;  %v3150_v43 = vmul.f32 %v10483_v19, %v2990_v54  ;;  %v10485_v58 = vstv %s7311_s10  ;;  %v10490_v39 = vld [vmem:[#allocation72_spill] sm:$0xff] }
 0x29f   : > { %v3232_v62 = vmul.f32 %v10485_v58, %v2990_v54  ;;  %v10487_v8 = vstv %s7313_s9  ;;  %v3063_v4 = vadd.f32 %v10488_v5, %v3057_v42  ;;  %v3145_v18 = vadd.f32 %v10489_v35, %v3139_v6  ;;  %s4379_s9 = sld [smem:[#allocation5 + $0x1b]] }
 0x2a0   : > { %v3310_v52 = vadd.f32 %v10486_v41, %v3304_v48  ;;  %v3314_v13 = vmul.f32 %v10487_v8, %v2990_v54  ;;  %v3070_v34 = vadd.f32 %v3068_v47, %v3064_v46  ;;  %v3152_v63 = vadd.f32 %v3150_v43, %v3146_v27 }
 0x2a1   : > { %v3234_v9 = vadd.f32 %v3232_v62, %v3228_v45  ;;  %v3227_v19 = vadd.f32 %v10490_v39, %v3221_v7  ;;  %v3309_v58 = vadd.f32 %v10491_v31, %v3303_v20  ;;  %v2985_v48 = vsel %vm775_vm0, %v2982_v11, %v2984_v37  ;;  %v3006_v45 = vpop.permute.xlu1 %3005  ;;  %v3004_v62 = vpop.permute.xlu0 %3003 }
 0x2a2   : > { %v3316_v21 = vadd.f32 %v3314_v13, %v3310_v52  ;;  %vm2362_vm10 = vcmp.ge.f32.partialorder %v7691_v22, 0.0  ;;  %v2989_v54 = vsel %vm5233_vm7, %v2985_v48, 0.0  ;;  %v2364_v42 = vmul.f32 %v7691_v22, %v10465_v53 }
 0x2a3   : > { %vm2361_vm11 = vcmp.ge.f32.partialorder %v7722_v56, 0.0  ;;  %v2363_v6 = vmul.f32 %v7722_v56, %v10465_v53  ;;  %v10492_v46 = vstv %s7295_s14  ;;  %v10493_v27 = vstv %s7297_s13  ;;  %s7932_s14 = sld [smem:[#allocation5 + $0x18]]  ;;  %s7946_s13 = sld [smem:[#allocation3 + $0x137]] }
 0x2a4   : > { %v3067_v7 = vmul.f32 %v10492_v46, %v2989_v54  ;;  %v3149_v47 = vmul.f32 %v10493_v27, %v2989_v54  ;;  %v10494_v20 = vstv %s7311_s10  ;;  %v10495_v37 = vmov %v10487_v8  ;;  %s10519_s10 = smov 16  }
 0x2a5   : > { %v3231_v43 = vmul.f32 %v10494_v20, %v2989_v54  ;;  %v3313_v11 = vmul.f32 %v10495_v37, %v2989_v54  ;;  %v7838_v41 = vsel %vm2362_vm10, %v7691_v22, %v2364_v42  ;;  %v7841_v52 = vsel %vm2361_vm11, %v7722_v56, %v2363_v6 }
 0x2a6   : > { %v2997_v8 = vsel %vm764_vm3, %v2994_v24, %v2996_v44  ;;  %v3000_v13 = vsel %vm764_vm3, 0.0, %v2994_v24  ;;  %v3069_v5 = vadd.f32 %v3067_v7, %v3063_v4  ;;  %v3151_v35 = vadd.f32 %v3149_v47, %v3145_v18  ;;  %2557 = vrot.lane.b32.xlu1 %v7838_v41, %s10470_s28  ;;  %2555 = vrot.lane.b32.xlu0 %v7841_v52, %s10470_s28 }
 0x2a7   : > { %v3233_v39 = vadd.f32 %v3231_v43, %v3227_v19  ;;  %v3315_v31 = vadd.f32 %v3313_v11, %v3309_v58  ;;  %v3001_v22 = vsel %vm5190_vm5, %v3000_v13, 0.0  ;;  %v3002_v56 = vsel %vm5174_vm4, %v2997_v8, 0.0 }
 0x2a8   : > { %v3010_v44 = vsel %vm775_vm0, %v3006_v45, 0.0  ;;  %v3007_v24 = vsel %vm775_vm0, %v3004_v62, %v3006_v45  ;;  %v10497_v4 = vstv %s10496_s17  ;;  %v10499_v48 = vstv %s7361_s7  ;;  %s7984_s7 = sld [smem:[#allocation5 + $0x19]]  ;;  %s8097_s17 = sld [smem:[#allocation3 + $0x15d]] }
 0x2a9   : > { %v3073_v18 = vmul.f32 %v10497_v4, %v3001_v22  ;;  %v10498_v19 = vmov %v10497_v4  ;;  %v3155_v54 = vmul.f32 %v10499_v48, %v3001_v22  ;;  %v10500_v42 = vmov %v10499_v48 }
 0x2aa   : > { %v3074_v58 = vmul.f32 %v10498_v19, %v3002_v56  ;;  %v3156_v6 = vmul.f32 %v10500_v42, %v3002_v56  ;;  %v10501_v46 = vstv %s7363_s27  ;;  %v10503_v20 = vstv %s7369_s26  ;;  %2567 = vrot.lane.b32.xlu1 %v7838_v41, %s10479_s24  ;;  %2565 = vrot.lane.b32.xlu0 %v7841_v52, %s10479_s24  ;;  %s10514_s27 = sld [smem:[#allocation49_spill]]  ;;  %s7979_s26 = sld [smem:[#allocation3 + $0x143]] }
 0x2ab   : > { %v3237_v7 = vmul.f32 %v10501_v46, %v3001_v22  ;;  %v10502_v27 = vmov %v10501_v46  ;;  %v3319_v43 = vmul.f32 %v10503_v20, %v3001_v22  ;;  %v10504_v37 = vmov %v10503_v20  ;;  %v3018_v22 = vpop.permute.xlu1 %3017 }
 0x2ac   : > { %v3238_v47 = vmul.f32 %v10502_v27, %v3002_v56  ;;  %v3320_v11 = vmul.f32 %v10504_v37, %v3002_v56  ;;  %v3075_v8 = vadd.f32 %v3073_v18, %v3069_v5  ;;  %v3076_v45 = vadd.f32 %v3074_v58, %v3070_v34  ;;  %v10506_v56 = vld [vmem:[#allocation74_spill] sm:$0xff]  ;;  %v3016_v37 = vpop.permute.xlu0 %3015 }
 0x2ad   : > { %v3157_v62 = vadd.f32 %v3155_v54, %v3151_v35  ;;  %v3158_v13 = vadd.f32 %v3156_v6, %v3152_v63  ;;  %v3239_v4 = vadd.f32 %v3237_v7, %v3233_v39  ;;  %v3321_v48 = vadd.f32 %v3319_v43, %v3315_v31  ;;  %v10507_v35 = vld [vmem:[#allocation75_spill] sm:$0xff]  ;;  %v10510_v6 = vld [vmem:[#allocation76_spill] sm:$0xff] }
 0x2ae   : > { %v3240_v19 = vadd.f32 %v3238_v47, %v3234_v9  ;;  %v3322_v42 = vadd.f32 %v3320_v11, %v3316_v21  ;;  %v3012_v5 = vsel %vm5108_vm2, %v3010_v44, 0.0  ;;  %v3082_v34 = vadd.f32 %v10506_v56, %v3076_v45  ;;  %v10509_v9 = vld [vmem:[#allocation58_spill] sm:$0xff] }
 0x2af   : > { %v3164_v18 = vadd.f32 %v10507_v35, %v3158_v13  ;;  %v3081_v63 = vadd.f32 %v7518_v12, %v3075_v8  ;;  %v10508_v58 = vstv %s10505_s0  ;;  %v3168_v39 = vmul.f32 %v3166_v25, %v3012_v5  ;;  %s8103_s0 = sld [smem:[#allocation3 + $0x169]] }
 0x2b0   : > { %v3086_v54 = vmul.f32 %v10508_v58, %v3012_v5  ;;  %v3246_v21 = vadd.f32 %v10509_v9, %v3240_v19  ;;  %v3250_v31 = vmul.f32 %v3248_v40, %v3012_v5  ;;  %v3328_v46 = vadd.f32 %v10510_v6, %v3322_v42 }
 0x2b1   : > { %v3332_v44 = vmul.f32 %v3330_v3, %v3012_v5  ;;  %v3163_v7 = vadd.f32 %v7533_v23, %v3157_v62  ;;  %v3245_v12 = vadd.f32 %v7541_v15, %v3239_v4  ;;  %v3170_v47 = vadd.f32 %v3168_v39, %v3164_v18  ;;  %v3028_v4 = vpop.permute.xlu1 %3027 }
 0x2b2   : > { %v3088_v27 = vadd.f32 %v3086_v54, %v3082_v34  ;;  %v3252_v20 = vadd.f32 %v3250_v31, %v3246_v21  ;;  %v3327_v43 = vadd.f32 %v7589_v36, %v3321_v48  ;;  %v3011_v8 = vsel %vm5233_vm7, %v3007_v24, 0.0 }
 0x2b3   : > { %v3334_v11 = vadd.f32 %v3332_v44, %v3328_v46  ;;  %vm2444_vm12 = vcmp.ge.f32.partialorder %v7701_v38, 0.0  ;;  %v2446_v45 = vmul.f32 %v7701_v38, %v10465_v53  ;;  %v10511_v13 = vmov %v10508_v58 }
 0x2b4   : > { %v3085_v19 = vmul.f32 %v10511_v13, %v3011_v8  ;;  %v3167_v23 = vmul.f32 %v3166_v25, %v3011_v8  ;;  %v3249_v15 = vmul.f32 %v3248_v40, %v3011_v8  ;;  %v3331_v62 = vmul.f32 %v3330_v3, %v3011_v8  ;;  %v3026_v8 = vpop.permute.xlu0 %3025 }
 0x2b5   : > { %v7907_v36 = vsel %vm2444_vm12, %v7701_v38, %v2446_v45  ;;  %vm2443_vm13 = vcmp.ge.f32.partialorder %v7726_v26, 0.0  ;;  %v2445_v24 = vmul.f32 %v7726_v26, %v10465_v53  ;;  %v3019_v48 = vsel %vm764_vm3, %v3016_v37, %v3018_v22  ;;  %10533 = sst [smem:[#allocation26_spill]] %s8103_s0 }
 0x2b6   : > { %v3087_v25 = vadd.f32 %v3085_v19, %v3081_v63  ;;  %v3169_v40 = vadd.f32 %v3167_v23, %v3163_v7  ;;  %v3251_v3 = vadd.f32 %v3249_v15, %v3245_v12  ;;  %v3333_v42 = vadd.f32 %v3331_v62, %v3327_v43  ;;  %2579 = vrot.lane.b32.xlu1 %v7907_v36, %s10470_s28 }
 0x2b7   : > { %v7916_v38 = vsel %vm2443_vm13, %v7726_v26, %v2445_v24  ;;  %v3022_v5 = vsel %vm764_vm3, 0.0, %v3016_v37  ;;  %v3024_v22 = vsel %vm5174_vm4, %v3019_v48, 0.0  ;;  %v3032_v56 = vsel %vm775_vm0, %v3028_v4, 0.0 }
 0x2b8   : > { %2577 = vrot.lane.b32.xlu0 %v7916_v38, %s10470_s28  ;;  %v3023_v34 = vsel %vm5190_vm5, %v3022_v5, 0.0  ;;  %v3092_v35 = vmul.f32 %v3090_v28, %v3024_v22  ;;  %v3174_v18 = vmul.f32 %v3172_v14, %v3024_v22  ;;  %v3256_v26 = vmul.f32 %v3254_v16, %v3024_v22 }
 0x2b9   : > { %v3091_v63 = vmul.f32 %v3090_v28, %v3023_v34  ;;  %v3173_v58 = vmul.f32 %v3172_v14, %v3023_v34  ;;  %v3255_v54 = vmul.f32 %v3254_v16, %v3023_v34  ;;  %v3337_v39 = vmul.f32 %v3336_v59, %v3023_v34 }
 0x2ba   : > { %v3094_v9 = vadd.f32 %v3092_v35, %v3088_v27  ;;  %v3176_v21 = vadd.f32 %v3174_v18, %v3170_v47  ;;  %v3258_v31 = vadd.f32 %v3256_v26, %v3252_v20  ;;  %v3338_v6 = vmul.f32 %v3336_v59, %v3024_v22  ;;  %2589 = vrot.lane.b32.xlu1 %v7907_v36, %s10479_s24 }
 0x2bb   : > { %v3093_v28 = vadd.f32 %v3091_v63, %v3087_v25  ;;  %v3175_v14 = vadd.f32 %v3173_v58, %v3169_v40  ;;  %v3257_v46 = vadd.f32 %v3255_v54, %v3251_v3  ;;  %v3339_v16 = vadd.f32 %v3337_v39, %v3333_v42 }
 0x2bc   : > { %v3340_v44 = vadd.f32 %v3338_v6, %v3334_v11  ;;  %2587 = vrot.lane.b32.xlu0 %v7916_v38, %s10479_s24  ;;  %v7952_v7 = vsel %vm5108_vm2, %v3032_v56, 0.0  ;;  %v3100_v59 = vadd.f32 %v7597_v49, %v3094_v9  ;;  %v3182_v12 = vadd.f32 %v7605_v61, %v3176_v21 }
 0x2bd   : > { %v3104_v27 = vmul.f32 %v3102_v55, %v7952_v7  ;;  %v3264_v47 = vadd.f32 %v7615_v30, %v3258_v31  ;;  %v10515_v20 = vstv %s10512_s6  ;;  %v10516_v37 = vstv %s10513_s3  ;;  %s8107_s6 = sld [smem:[#allocation3 + $0x154]]  ;;  %s8109_s3 = sld [smem:[#allocation3 + $0x160]] }
 0x2be   : > { %v3261_v43 = vmul.f32 %v10515_v20, %v6984_v2  ;;  %v3343_v11 = vmul.f32 %v10516_v37, %v6984_v2  ;;  %v10517_v45 = vstv %s10514_s27  ;;  %v7970_v49 = vadd.f32 %v7629_v33, %v3340_v44  ;;  %s8111_s27 = sld [smem:[#allocation3 + $0x16c]] }
 0x2bf   : > { %v2524_v13 = vadd.f32 %v10517_v45, %v7684_v29  ;;  %v3099_v61 = vadd.f32 %v7632_v51, %v3093_v28  ;;  %v3181_v19 = vadd.f32 %v7635_v0, %v3175_v14  ;;  %v10518_v30 = vmov %v10517_v45 }
 0x2c0   : > { %v2523_v23 = vadd.f32 %v10518_v30, %v7710_v57  ;;  %v3106_v15 = vadd.f32 %v3104_v27, %v3100_v59  ;;  %v3263_v62 = vadd.f32 %v3261_v43, %v3257_v46  ;;  %v3108_v24 = vstv %s7932_s14  ;;  %s8105_s14 = sld [smem:[#allocation3 + $0x175]] }
 0x2c1   : > { %v3345_v48 = vadd.f32 %v3343_v11, %v3339_v16  ;;  %v3029_v2 = vsel %vm775_vm0, %v3026_v8, %v3028_v4  ;;  %v3184_v33 = vstv %s7946_s13  ;;  %vm2526_vm14 = vcmp.ge.f32.partialorder %v2524_v13, 0.0  ;;  %s8113_s13 = sld [smem:[#allocation3 + $0x178]] }
 0x2c2   : > { %v3033_v29 = vsel %vm5233_vm7, %v3029_v2, 0.0  ;;  %v3110_v0 = vadd.f32 %v3108_v24, %v3106_v15  ;;  %v2528_v57 = vmul.f32 %v2524_v13, %v10465_v53  ;;  %vm2525_vm15 = vcmp.ge.f32.partialorder %v2523_v23, 0.0 }
 0x2c3   : > { %v3103_v51 = vmul.f32 %v3102_v55, %v3033_v29  ;;  %v2527_v25 = vmul.f32 %v2523_v23, %v10465_v53  ;;  %v3186_v4 = vmul.f32 %v3184_v33, %v7952_v7  ;;  %v3185_v3 = vmul.f32 %v3184_v33, %v3033_v29  ;;  %10535 = sst [smem:[#allocation28_spill]] %s8107_s6 }
 0x2c4   : > { %v7991_v42 = vsel %vm2526_vm14, %v2524_v13, %v2528_v57  ;;  %v3114_v55 = vmul.f32 %v3110_v0, %v10465_v53  ;;  %vm3112_vm8 = vcmp.ge.f32.partialorder %v3110_v0, 0.0  ;;  %v3266_v34 = vstv %s7979_s26  ;;  %10536 = sst [smem:[#allocation30_spill]] %s8109_s3  ;;  %s8115_s26 = sld [smem:[#allocation3 + $0x157]] }
 0x2c5   : > { %v3105_v40 = vadd.f32 %v3103_v51, %v3099_v61  ;;  %v7993_v5 = vsel %vm2525_vm15, %v2523_v23, %v2527_v25  ;;  %2601 = vrot.lane.b32.xlu1 %v7991_v42, %s10470_s28  ;;  %v3188_v35 = vadd.f32 %v3186_v4, %v3182_v12  ;;  %v3187_v18 = vadd.f32 %v3185_v3, %v3181_v19  ;;  %10537 = sst [smem:[#allocation32_spill]] %s8111_s27  ;;  %s8129_s27 = sld [smem:[#allocation3 + $0x114]] }
 0x2c6   : > { %2599 = vrot.lane.b32.xlu0 %v7993_v5, %s10470_s28  ;;  %v3190_v26 = vstv %s7984_s7  ;;  %v8009_v63 = vsel %vm3112_vm8, %v3110_v0, %v3114_v55  ;;  %v3268_v54 = vmul.f32 %v3266_v34, %v7952_v7  ;;  %v3267_v21 = vmul.f32 %v3266_v34, %v3033_v29  ;;  %s8093_s28 = sld [smem:[#allocation3 + $0x11e]]  ;;  %10534 = sst [smem:[#allocation27_spill]] %s8105_s14 }
 0x2c7   : > { %v3109_v22 = vadd.f32 %v3108_v24, %v3105_v40  ;;  %v3192_v39 = vadd.f32 %v3190_v26, %v3188_v35  ;;  %v3191_v9 = vadd.f32 %v3190_v26, %v3187_v18  ;;  %v3272_v31 = vstv %s8000_s20  ;;  %10538 = sst [smem:[#allocation34_spill]] %s8113_s13  ;;  %s8117_s7 = sld [smem:[#allocation3 + $0x163]] }
 0x2c8   : > { %v3270_v6 = vadd.f32 %v3268_v54, %v3264_v47  ;;  %v3348_v28 = vstv %s4378_s4  ;;  %v3269_v14 = vadd.f32 %v3267_v21, %v3263_v62  ;;  %s8119_s20 = sld [smem:[#allocation3 + $0x16f]]  ;;  %s8121_s4 = sld [smem:[#allocation3 + $0x17b]]  ;;  %v2626_v62 = vstv %s8051_s30 }
 0x2c9   : > { %vm3111_vm9 = vcmp.ge.f32.partialorder %v3109_v22, 0.0  ;;  %v3113_v56 = vmul.f32 %v3109_v22, %v10465_v53  ;;  %2611 = vrot.lane.b32.xlu1 %v7991_v42, %s10479_s24  ;;  %v3196_v46 = vmul.f32 %v3192_v39, %v10465_v53  ;;  %v3195_v16 = vmul.f32 %v3191_v9, %v10465_v53  ;;  %s8131_s13 = sld [smem:[#allocation3 + $0xf2]]  ;;  %s8151_s30 = sld [smem:[#allocation3 + $0x10b]] }
 0x2ca   : > { %2609 = vrot.lane.b32.xlu0 %v7993_v5, %s10479_s24  ;;  %vm3194_vm10 = vcmp.ge.f32.partialorder %v3192_v39, 0.0  ;;  %vm3193_vm11 = vcmp.ge.f32.partialorder %v3191_v9, 0.0  ;;  %v3274_v44 = vadd.f32 %v3272_v31, %v3270_v6  ;;  %v3350_v59 = vmul.f32 %v3348_v28, %v7952_v7  ;;  %s8095_s24 = sld [smem:[#allocation3 + $0x151]]  ;;  %10539 = sst [smem:[#allocation29_spill]] %s8115_s26 }
 0x2cb   : > { %v8011_v58 = vsel %vm3111_vm9, %v3109_v22, %v3113_v56  ;;  %v3273_v12 = vadd.f32 %v3272_v31, %v3269_v14  ;;  %v3349_v27 = vmul.f32 %v3348_v28, %v3033_v29  ;;  %v8026_v47 = vsel %vm3194_vm10, %v3192_v39, %v3196_v46  ;;  %10546 = sst [smem:[#allocation56_spill]] %s8129_s27  ;;  %s8235_s27 = sld [smem:[#allocation3 + $0x111]] }
 0x2cc   : > { %v8028_v20 = vsel %vm3193_vm11, %v3191_v9, %v3195_v16  ;;  %v3352_v43 = vadd.f32 %v3350_v59, %v7970_v49  ;;  %v3278_v11 = vmul.f32 %v3274_v44, %v10465_v53  ;;  %v3354_v7 = vstv %s4379_s9  ;;  %10532 = sst [smem:[#allocation25_spill]] %s8093_s28  ;;  %s8125_s9 = sld [smem:[#allocation3 + $0xfc]] }
 0x2cd   : > { %3367 = vrot.lane.b32.xlu1 %v8009_v63, %s10519_s10  ;;  %v3351_v37 = vadd.f32 %v3349_v27, %v3345_v48  ;;  %v3277_v8 = vmul.f32 %v3273_v12, %v10465_v53  ;;  %vm3276_vm12 = vcmp.ge.f32.partialorder %v3274_v44, 0.0  ;;  %vm3275_vm13 = vcmp.ge.f32.partialorder %v3273_v12, 0.0  ;;  %10540 = sst [smem:[#allocation31_spill]] %s8117_s7  ;;  %s8433_s26 = sld [smem:[#allocation3 + $0x15c]] }
 0x2ce   : > { %3365 = vrot.lane.b32.xlu0 %v8011_v58, %s10519_s10  ;;  %v3356_v45 = vadd.f32 %v3354_v7, %v3352_v43  ;;  %v8041_v61 = vsel %vm3276_vm12, %v3274_v44, %v3278_v11  ;;  %10541 = sst [smem:[#allocation38_spill]] %s8119_s20  ;;  %s8133_s7 = sld [smem:[#allocation3 + $0xfe]]  ;;  %v2708_v24 = vstv %s8053_s25  ;;  %v2790_v48 = vstv %s8059_s1 }
 0x2cf   : > { %v3355_v13 = vadd.f32 %v3354_v7, %v3351_v37  ;;  %v8043_v19 = vsel %vm3275_vm13, %v3273_v12, %v3277_v8  ;;  %10542 = sst [smem:[#allocation52_spill]] %s8121_s4  ;;  %v2872_v2 = vstv %s8061_s19  ;;  %v2644_v29 = vstv %s8063_s16  ;;  %s8153_s25 = sld [smem:[#allocation3 + $0x117]] }
 0x2d0   : > { %v3360_v49 = vmul.f32 %v3356_v45, %v10465_v53  ;;  %vm3358_vm14 = vcmp.ge.f32.partialorder %v3356_v45, 0.0  ;;  %10547 = sst [smem:[#allocation41_spill]] %s8131_s13  ;;  %s8145_s13 = sld [smem:[#allocation3 + $0xff]]  ;;  %v2726_v33 = vstv %s8065_s18  ;;  %v2808_v51 = vstv %s8067_s23 }
 0x2d1   : > { %3375 = vrot.lane.b32.xlu1 %v8009_v63, %s10520_s5  ;;  %v3359_v30 = vmul.f32 %v3355_v13, %v10465_v53  ;;  %vm3357_vm15 = vcmp.ge.f32.partialorder %v3355_v13, 0.0  ;;  %v2890_v0 = vstv %s8069_s15  ;;  %10552 = sst [smem:[#allocation47_spill]] %s8151_s30  ;;  %v2662_v57 = vstv %s8075_s2  ;;  %s8159_s1 = sld [smem:[#allocation3 + $0xf5]] }
 0x2d2   : > { %3373 = vrot.lane.b32.xlu0 %v8011_v58, %s10520_s5  ;;  %v8071_v23 = vsel %vm3358_vm14, %v3356_v45, %v3360_v49  ;;  %10544 = sst [smem:[#allocation33_spill]] %s8125_s9  ;;  %s8141_s9 = sld [smem:[#allocation3 + $0x116]]  ;;  %v2744_v25 = vstv %s8077_s8  ;;  %v2826_v40 = vstv %s8083_s21  ;;  %v2908_v4 = vstv %s8085_s12 }
 0x2d3   : > { %v8073_v15 = vsel %vm3357_vm15, %v3355_v13, %v3359_v30  ;;  %s10555_s19 = sld [smem:[#allocation32_spill]]  ;;  %s8161_s18 = sld [smem:[#allocation3 + $0x101]]  ;;  %v2680_v3 = vstv %s8087_s11  ;;  %v2762_v22 = vstv %s8089_s22  ;;  %v2844_v55 = vstv %s8091_s29 }
 0x2d4   : > { %10548 = sst [smem:[#allocation46_spill]] %s8133_s7  ;;  %s10557_s23 = sld [smem:[#allocation34_spill]]  ;;  %v2926_v56 = vstv %s8093_s28  ;;  %v3442_v34 = vstv %s8095_s24  ;;  %v3524_v35 = vstv %s8097_s17  ;;  %v3606_v18 = vstv %s8103_s0 }
 0x2d5   : > { %3385 = vrot.lane.b32.xlu1 %v8026_v47, %s10519_s10  ;;  %10553 = sst [smem:[#allocation50_spill]] %s8153_s25  ;;  %s8167_s16 = sld [smem:[#allocation3 + $0x10d]]  ;;  %v3688_v26 = vstv %s8105_s14  ;;  %v3460_v54 = vstv %s8107_s6  ;;  %v3542_v39 = vstv %s8109_s3  ;;  %v8193_v16 = vmul.f32 %v2626_v62, %v7772_v60 }
 0x2d6   : > { %3383 = vrot.lane.b32.xlu0 %v8028_v20, %s10519_s10  ;;  %10551 = sst [smem:[#allocation60_spill]] %s8145_s13  ;;  %s8169_s8 = sld [smem:[#allocation3 + $0x119]]  ;;  %v8196_v44 = vmul.f32 %v2626_v62, %v7766_v10  ;;  %v8204_v12 = vmul.f32 %v2708_v24, %v7772_v60  ;;  %v8207_v27 = vmul.f32 %v2708_v24, %v7766_v10  ;;  %v8211_v37 = vmul.f32 %v2790_v48, %v7772_v60 }
 0x2d7   : > { %10554 = sst [smem:[#allocation64_spill]] %s8159_s1  ;;  %s8175_s2 = sld [smem:[#allocation3 + $0xf6]]  ;;  %v8218_v11 = vmul.f32 %v2790_v48, %v7766_v10  ;;  %v8222_v7 = vmul.f32 %v2872_v2, %v7772_v60  ;;  %v8225_v45 = vmul.f32 %v2872_v2, %v7766_v10  ;;  %v8250_v2 = vmul.f32 %v2644_v29, %v7838_v41 }
 0x2d8   : > { %10549 = sst [smem:[#allocation45_spill]] %s8141_s9  ;;  %s8177_s11 = sld [smem:[#allocation3 + $0x102]]  ;;  %v8256_v30 = vmul.f32 %v2726_v33, %v7838_v41  ;;  %v8266_v48 = vmul.f32 %v2808_v51, %v7838_v41  ;;  %v8272_v62 = vmul.f32 %v2890_v0, %v7838_v41  ;;  %v8282_v10 = vmul.f32 %v2644_v29, %v7841_v52 }
 0x2d9   : > { %3393 = vrot.lane.b32.xlu1 %v8026_v47, %s10520_s5  ;;  %10556 = sst [smem:[#allocation44_spill]] %s8161_s18  ;;  %v3624_v9 = vstv %s10555_s19  ;;  %s8185_s22 = sld [smem:[#allocation3 + $0x11a]]  ;;  %v8287_v60 = vmul.f32 %v2726_v33, %v7841_v52  ;;  %v8292_v41 = vmul.f32 %v2808_v51, %v7841_v52  ;;  %v8297_v24 = vmul.f32 %v2890_v0, %v7841_v52 }
 0x2da   : > { %3391 = vrot.lane.b32.xlu0 %v8028_v20, %s10520_s5  ;;  %v3706_v21 = vstv %s10557_s23  ;;  %s8183_s29 = sld [smem:[#allocation3 + $0x10e]]  ;;  %s10564_s3 = sld [smem:[#allocation41_spill]]  ;;  %v8310_v51 = vmul.f32 %v2662_v57, %v7907_v36  ;;  %v8316_v0 = vmul.f32 %v2744_v25, %v7907_v36  ;;  %v8322_v49 = vmul.f32 %v2826_v40, %v7907_v36 }
 0x2db   : > { %10559 = sst [smem:[#allocation39_spill]] %s8167_s16  ;;  %s8199_s23 = sld [smem:[#allocation3 + $0xf8]]  ;;  %v8328_v33 = vmul.f32 %v2908_v4, %v7907_v36  ;;  %v8336_v29 = vmul.f32 %v2662_v57, %v7916_v38  ;;  %v8341_v8 = vmul.f32 %v2744_v25, %v7916_v38  ;;  %v8346_v13 = vmul.f32 %v2826_v40, %v7916_v38 }
 0x2dc   : > { %10560 = sst [smem:[#allocation78_spill]] %s8169_s8  ;;  %s8201_s19 = sld [smem:[#allocation3 + $0x104]]  ;;  %v8351_v36 = vmul.f32 %v2908_v4, %v7916_v38  ;;  %v8360_v25 = vmul.f32 %v2680_v3, %v7991_v42  ;;  %v8367_v38 = vmul.f32 %v2762_v22, %v7991_v42  ;;  %v8376_v57 = vmul.f32 %v2844_v55, %v7991_v42 }
 0x2dd   : > { %3403 = vrot.lane.b32.xlu1 %v8041_v61, %s10519_s10  ;;  %s8213_s21 = sld [smem:[#allocation3 + $0x110]]  ;;  %s8215_s12 = sld [smem:[#allocation3 + $0x11c]]  ;;  %v8385_v43 = vmul.f32 %v2926_v56, %v7991_v42  ;;  %v8394_v59 = vmul.f32 %v2680_v3, %v7993_v5  ;;  %v8399_v40 = vmul.f32 %v2762_v22, %v7993_v5  ;;  %v8404_v42 = vmul.f32 %v2844_v55, %v7993_v5 }
 0x2de   : > { %3401 = vrot.lane.b32.xlu0 %v8043_v19, %s10519_s10  ;;  %s8227_s4 = sld [smem:[#allocation3 + $0xf9]]  ;;  %s8229_s15 = sld [smem:[#allocation3 + $0x105]]  ;;  %v8409_v4 = vmul.f32 %v2926_v56, %v7993_v5  ;;  %v8414_v3 = vmul.f32 %v3442_v34, %v8011_v58  ;;  %v8419_v46 = vmul.f32 %v3442_v34, %v8009_v63  ;;  %v8424_v22 = vmul.f32 %v3524_v35, %v8011_v58 }
 0x2df   : > { %s8237_s14 = sld [smem:[#allocation3 + $0x11d]]  ;;  %s8243_s0 = sld [smem:[#allocation3 + $0xfb]]  ;;  %v8429_v55 = vmul.f32 %v3524_v35, %v8009_v63  ;;  %v8438_v5 = vmul.f32 %v3606_v18, %v8011_v58  ;;  %v8443_v56 = vmul.f32 %v3606_v18, %v8009_v63  ;;  %v8448_v34 = vmul.f32 %v3688_v26, %v8011_v58 }
 0x2e0   : > { %s8245_s7 = sld [smem:[#allocation5 + $0x14]]  ;;  %s8259_s25 = sld [smem:[#allocation3 + $0x107]]  ;;  %10591 = vst [vmem:[#allocation77_spill] sm:$0xff] %v8414_v3  ;;  %10592 = vst [vmem:[#allocation59_spill] sm:$0xff] %v8419_v46  ;;  %v8458_v52 = vmul.f32 %v3688_v26, %v8009_v63  ;;  %v8463_v18 = vmul.f32 %v3460_v54, %v8026_v47  ;;  %v8468_v58 = vmul.f32 %v3542_v39, %v8026_v47 }
 0x2e1   : > { %3411 = vrot.lane.b32.xlu1 %v8041_v61, %s10520_s5  ;;  %10565 = sst [smem:[#allocation21_spill]] %s8199_s23  ;;  %s8261_s30 = sld [smem:[#allocation5 + $0x15]]  ;;  %10594 = vst [vmem:[#allocation61_spill] sm:$0xff] %v8424_v22  ;;  %10595 = vst [vmem:[#allocation79_spill] sm:$0xff] %v8429_v55  ;;  %v8473_v14 = vmul.f32 %v3624_v9, %v8026_v47  ;;  %v8478_v63 = vmul.f32 %v3706_v21, %v8026_v47  ;;  %v8483_v26 = vmul.f32 %v3460_v54, %v8028_v20 }
 0x2e2   : > { %3409 = vrot.lane.b32.xlu0 %v8043_v19, %s10520_s5  ;;  %s8275_s18 = sld [smem:[#allocation3 + $0x113]]  ;;  %s8277_s9 = sld [smem:[#allocation5 + $0x16]]  ;;  %10596 = vst [vmem:[#allocation80_spill] sm:$0xff] %v8438_v5  ;;  %10598 = vst [vmem:[#allocation36_spill] sm:$0xff] %v8443_v56  ;;  %v8488_v6 = vmul.f32 %v3542_v39, %v8028_v20  ;;  %v8493_v31 = vmul.f32 %v3624_v9, %v8028_v20  ;;  %v10649_v5 = vstv %s10564_s3 }
 0x2e3   : > { %10566 = sst [smem:[#allocation23_spill]] %s8215_s12  ;;  %s8299_s8 = sld [smem:[#allocation3 + $0x11f]]  ;;  %10600 = vst [vmem:[#allocation37_spill] sm:$0xff] %v8448_v34  ;;  %10603 = vst [vmem:[#allocation62_spill] sm:$0xff] %v8458_v52 }
 0x2e4   : > { %s8301_s28 = sld [smem:[#allocation5 + $0x17]]  ;;  %s8331_s20 = sld [smem:[#allocation3 + $0x15a]]  ;;  %10604 = vst [vmem:[#allocation40_spill] sm:$0xff] %v8463_v18  ;;  %10605 = vst [vmem:[#allocation65_spill] sm:$0xff] %v8468_v58 }
 0x2e5   : > { %3421 = vrot.lane.b32.xlu1 %v8071_v23, %s10519_s10  ;;  %s8369_s16 = sld [smem:[#allocation3 + $0x166]]  ;;  %s8379_s13 = sld [smem:[#allocation3 + $0x172]]  ;;  %10606 = vst [vmem:[#allocation82_spill] sm:$0xff] %v8473_v14  ;;  %10607 = vst [vmem:[#allocation83_spill] sm:$0xff] %v8478_v63  ;;  %v8498_v14 = vmul.f32 %v3706_v21, %v8028_v20 }
 0x2e6   : > { %3419 = vrot.lane.b32.xlu0 %v8073_v15, %s10519_s10  ;;  %s8123_s10 = sld [smem:[#allocation3 + $0xf0]]  ;;  %10571 = sst [smem:[#allocation12_spill]] %s8245_s7  ;;  %10608 = vst [vmem:[#allocation85_spill] sm:$0xff] %v8483_v26  ;;  %10609 = vst [vmem:[#allocation86_spill] sm:$0xff] %v8488_v6 }
 0x2e7   : > { %10572 = sst [smem:[#allocation49_spill]] %s8259_s25  ;;  %s8431_s12 = sld [smem:[#allocation3 + $0x150]]  ;;  %10610 = vst [vmem:[#allocation67_spill] sm:$0xff] %v8493_v31  ;;  %10611 = vst [vmem:[#allocation68_spill] sm:$0xff] %v8498_v14 }
 0x2e8   : > { %10573 = sst [smem:[#allocation41_spill]] %s8261_s30  ;;  %s8389_s30 = sld [smem:[#allocation3 + $0x17e]] }
 0x2e9   : > { %3429 = vrot.lane.b32.xlu1 %v8071_v23, %s10520_s5  ;;  %10576 = sst [smem:[#allocation13_spill]] %s8275_s18  ;;  %s10599_s17 = sld [smem:[#allocation31_spill]] }
 0x2ea   : > { %3427 = vrot.lane.b32.xlu0 %v8073_v15, %s10520_s5  ;;  %s8127_s5 = sld [smem:[#allocation3 + $0x108]]  ;;  %10578 = sst [smem:[#allocation14_spill]] %s8277_s9  ;;  %v3496_v35 = vstv %s8331_s20 }
 0x2eb   : > { %10580 = sst [smem:[#allocation15_spill]] %s8299_s8  ;;  %s10597_s24 = sld [smem:[#allocation29_spill]]  ;;  %v3578_v58 = vstv %s8369_s16 }
 0x2ec   : > { %10543 = sst [smem:[#allocation66_spill]] %s8123_s10  ;;  %s10601_s8 = sld [smem:[#allocation38_spill]] }
 0x2ed   : > { %s8139_s10 = sld [smem:[#allocation3 + $0x10a]]  ;;  %10581 = sst [smem:[#allocation16_spill]] %s8301_s28 }
 0x2ee   : > { %s8451_s28 = sld [smem:[#allocation3 + $0x168]]  ;;  %s8453_s18 = sld [smem:[#allocation3 + $0x174]] }
 0x2ef   : > { %s10602_s25 = sld [smem:[#allocation52_spill]]  ;;  %v10614_v54 = vstv %s10599_s17  ;;  %s10628_s7 = sld [smem:[#allocation66_spill]] }
 0x2f0   : > { %10545 = sst [smem:[#allocation53_spill]] %s8127_s5  ;;  %s8143_s5 = sld [smem:[#allocation3 + $0xf3]]  ;;  %v8508_v26 = vmul.f32 %v10614_v54, %v8041_v61 }
 0x2f1   : > { %v10612_v47 = vstv %s10597_s24  ;;  %s10632_s9 = sld [smem:[#allocation53_spill]]  ;;  %s10641_s20 = sld [smem:[#allocation45_spill]] }
 0x2f2   : > { %v8503_v63 = vmul.f32 %v10612_v47, %v8041_v61  ;;  %10615 = vst [vmem:[#allocation42_spill] sm:$0xff] %v8508_v26  ;;  %v10616_v6 = vstv %s10601_s8  ;;  %v10620_v20 = vmov %v10612_v47  ;;  %v3660_v47 = vstv %s8379_s13  ;;  %s10658_s16 = sld [smem:[#allocation60_spill]]  ;;  %s8625_s13 = sld [smem:[#allocation3 + $0x15e]] }
 0x2f3   : > { %v8514_v18 = vmul.f32 %v10616_v6, %v8041_v61  ;;  %v8524_v21 = vmul.f32 %v10620_v20, %v8043_v19  ;;  %v10622_v26 = vstv %s10599_s17  ;;  %v3742_v6 = vstv %s8389_s30  ;;  %s10634_s30 = sld [smem:[#allocation56_spill]]  ;;  %s10660_s1 = sld [smem:[#allocation50_spill]] }
 0x2f4   : > { %10613 = vst [vmem:[#allocation69_spill] sm:$0xff] %v8503_v63  ;;  %v8532_v14 = vmul.f32 %v10622_v26, %v8043_v19  ;;  %v8549_v26 = vmul.f32 %v3578_v58, %v8071_v23  ;;  %s8629_s6 = sld [smem:[#allocation3 + $0x16a]]  ;;  %s8631_s23 = sld [smem:[#allocation3 + $0x176]] }
 0x2f5   : > { %10617 = vst [vmem:[#allocation43_spill] sm:$0xff] %v8514_v18  ;;  %v10618_v9 = vstv %s10602_s25  ;;  %10621 = vst [vmem:[#allocation51_spill] sm:$0xff] %v8524_v21  ;;  %v10624_v18 = vstv %s10601_s8  ;;  %s10630_s8 = sld [smem:[#allocation33_spill]]  ;;  %s8645_s24 = sld [smem:[#allocation3 + $0x153]] }
 0x2f6   : > { %10550 = sst [smem:[#allocation63_spill]] %s8143_s5  ;;  %v8519_v31 = vmul.f32 %v10618_v9, %v8041_v61  ;;  %10623 = vst [vmem:[#allocation84_spill] sm:$0xff] %v8532_v14  ;;  %v8538_v61 = vmul.f32 %v10624_v18, %v8043_v19  ;;  %v8543_v20 = vmul.f32 %v10618_v9, %v8043_v19  ;;  %10629 = vst [vmem:[#allocation55_spill] sm:$0xff] %v8549_v26  ;;  %s10659_s5 = sld [smem:[#allocation47_spill]] }
 0x2f7   : > { %v8556_v19 = vmul.f32 %v3660_v47, %v8071_v23  ;;  %v8559_v9 = vmul.f32 %v3496_v35, %v8073_v15  ;;  %v8562_v26 = vmul.f32 %v3742_v6, %v8071_v23  ;;  %s10639_s25 = sld [smem:[#allocation46_spill]]  ;;  %v10652_v55 = vstv %s10641_s20  ;;  %s8647_s17 = sld [smem:[#allocation3 + $0x15f]] }
 0x2f8   : > { %10619 = vst [vmem:[#allocation48_spill] sm:$0xff] %v8519_v31  ;;  %10625 = vst [vmem:[#allocation54_spill] sm:$0xff] %v8538_v61  ;;  %v10656_v53 = vmov %v10652_v55  ;;  %s10657_s3 = sld [smem:[#allocation63_spill]]  ;;  %s8665_s20 = sld [smem:[#allocation3 + $0x16d]] }
 0x2f9   : > { %10626 = vst [vmem:[#allocation70_spill] sm:$0xff] %v8543_v20  ;;  %10631 = vst [vmem:[#allocation87_spill] sm:$0xff] %v8556_v19  ;;  %v8571_v19 = vmul.f32 %v3742_v6, %v8073_v15  ;;  %v10646_v6 = vstv %s10634_s30  ;;  %s10670_s30 = sld [smem:[#allocation64_spill]] }
 0x2fa   : > { %10633 = vst [vmem:[#allocation73_spill] sm:$0xff] %v8559_v9  ;;  %10635 = vst [vmem:[#allocation72_spill] sm:$0xff] %v8562_v26 }
 0x2fb   : > { %10638 = vst [vmem:[#allocation75_spill] sm:$0xff] %v8571_v19  ;;  %v10648_v19 = vmov %v10646_v6 }
 0x2fd   : > { %v10650_v52 = vstv %s10639_s25  ;;  %s8663_s25 = sld [smem:[#allocation3 + $0x161]] }
 0x2fe   : > { %10672 = sst [smem:[#allocation20_spill]] %s8665_s20 }
 0x303   : > { %10671 = sst [smem:[#allocation18_spill]] %s8663_s25 }
 0x306   : > { %v2536_v28 = vpop.permute.xlu1 %2535 }
 0x308   : > { %v2534_v39 = vpop.permute.xlu0 %2533 }
 0x309   : > { %v2537_v63 = vsel %vm764_vm3, %v2534_v39, %v2536_v28  ;;  %v2540_v54 = vsel %vm764_vm3, 0.0, %v2534_v39  ;;  %v8546_v28 = vmul.f32 %v3496_v35, %v8071_v23  ;;  %v10640_v23 = vstv %s10628_s7  ;;  %s8657_s7 = sld [smem:[#allocation3 + $0x16b]] }
 0x30a   : > { %v2541_v39 = vsel %vm5190_vm5, %v2540_v54, 0.0  ;;  %v2542_v18 = vsel %vm5174_vm4, %v2537_v63, 0.0  ;;  %v8565_v54 = vmul.f32 %v3578_v58, %v8073_v15  ;;  %v8568_v63 = vmul.f32 %v3660_v47, %v8073_v15 }
 0x30b   : > { %10627 = vst [vmem:[#allocation71_spill] sm:$0xff] %v8546_v28  ;;  %v2546_v28 = vpop.permute.xlu1 %2545  ;;  %v2621_v26 = vmul.f32 %v10640_v23, %v2541_v39  ;;  %v10642_v21 = vmov %v10640_v23  ;;  %v2868_v61 = vmul.f32 %v10646_v6, %v2542_v18  ;;  %v10651_v6 = vstv %s8139_s10  ;;  %s8623_s10 = sld [smem:[#allocation3 + $0x152]] }
 0x30c   : > { %v2544_v20 = vpop.permute.xlu0 %2543  ;;  %10636 = vst [vmem:[#allocation81_spill] sm:$0xff] %v8565_v54  ;;  %10637 = vst [vmem:[#allocation74_spill] sm:$0xff] %v8568_v63  ;;  %v2622_v58 = vmul.f32 %v10642_v21, %v2542_v18  ;;  %v10643_v54 = vstv %s10630_s8  ;;  %v10645_v63 = vstv %s10632_s9  ;;  %v2550_v35 = vsel %vm775_vm0, %v2546_v28, 0.0  ;;  %s8659_s8 = sld [smem:[#allocation3 + $0x177]]  ;;  %s8661_s9 = sld [smem:[#allocation3 + $0x155]] }
 0x30d   : > { %v2703_v31 = vmul.f32 %v10643_v54, %v2541_v39  ;;  %v10644_v34 = vmov %v10643_v54  ;;  %v2786_v15 = vmul.f32 %v10645_v63, %v2542_v18  ;;  %v2547_v14 = vsel %vm775_vm0, %v2544_v20, %v2546_v28 }
 0x30e   : > { %v2704_v47 = vmul.f32 %v10644_v34, %v2542_v18  ;;  %v10647_v9 = vmov %v10645_v63  ;;  %v2867_v21 = vmul.f32 %v10648_v19, %v2541_v39  ;;  %v2552_v54 = vsel %vm5108_vm2, %v2550_v35, 0.0 }
 0x30f   : > { %v2785_v23 = vmul.f32 %v10647_v9, %v2541_v39  ;;  %v2551_v34 = vsel %vm5233_vm7, %v2547_v14, 0.0  ;;  %v2634_v63 = vmul.f32 %v10649_v5, %v2552_v54  ;;  %v2716_v18 = vmul.f32 %v10650_v52, %v2552_v54 }
 0x310   : > { %v2798_v56 = vmul.f32 %v10651_v6, %v2552_v54  ;;  %v2880_v22 = vmul.f32 %v10652_v55, %v2552_v54  ;;  %v2630_v20 = vadd.f32 %v8196_v44, %v2622_v58  ;;  %v2712_v28 = vadd.f32 %v8207_v27, %v2704_v47 }
 0x311   : > { %v10653_v9 = vmov %v10649_v5  ;;  %v10654_v19 = vmov %v10650_v52  ;;  %v2794_v35 = vadd.f32 %v8218_v11, %v2786_v15  ;;  %v2876_v14 = vadd.f32 %v8225_v45, %v2868_v61 }
 0x312   : > { %v2633_v39 = vmul.f32 %v10653_v9, %v2551_v34  ;;  %v2715_v3 = vmul.f32 %v10654_v19, %v2551_v34  ;;  %v10655_v46 = vmov %v10651_v6  ;;  %v2879_v52 = vmul.f32 %v10656_v53, %v2551_v34  ;;  %10669 = sst [smem:[#allocation35_spill]] %s8661_s9 }
 0x313   : > { %v2797_v5 = vmul.f32 %v10655_v46, %v2551_v34  ;;  %v2629_v6 = vadd.f32 %v8193_v16, %v2621_v26  ;;  %v2711_v55 = vadd.f32 %v8204_v12, %v2703_v31  ;;  %v2793_v44 = vadd.f32 %v8211_v37, %v2785_v23 }
 0x314   : > { %v2875_v27 = vadd.f32 %v8222_v7, %v2867_v21  ;;  %v2636_v47 = vadd.f32 %v2634_v63, %v2630_v20  ;;  %v2718_v54 = vadd.f32 %v2716_v18, %v2712_v28  ;;  %v2800_v9 = vadd.f32 %v2798_v56, %v2794_v35 }
 0x315   : > { %v2882_v11 = vadd.f32 %v2880_v22, %v2876_v14  ;;  %v2635_v53 = vadd.f32 %v2633_v39, %v2629_v6  ;;  %v2717_v31 = vadd.f32 %v2715_v3, %v2711_v55  ;;  %v2799_v12 = vadd.f32 %v2797_v5, %v2793_v44 }
 0x316   : > { %v2881_v37 = vadd.f32 %v2879_v52, %v2875_v27  ;;  %v10661_v3 = vstv %s10657_s3  ;;  %v10663_v15 = vstv %s10658_s16  ;;  %v10665_v63 = vstv %s10659_s5  ;;  %s10673_s3 = sld [smem:[#allocation44_spill]]  ;;  %s10674_s16 = sld [smem:[#allocation39_spill]] }
 0x317   : > { %v10662_v61 = vmov %v10661_v3  ;;  %v10664_v21 = vmov %v10663_v15  ;;  %v10666_v20 = vmov %v10665_v63  ;;  %v10667_v39 = vstv %s10660_s1  ;;  %s10675_s5 = sld [smem:[#allocation78_spill]]  ;;  %s8708_s1 = sld [smem:[#allocation3 + $0x179]] }
 0x318   : > { %v2558_v58 = vpop.permute.xlu1 %2557  ;;  %v2556_v45 = vpop.permute.xlu0 %2555  ;;  %v10668_v35 = vmov %v10667_v39 }
 0x319   : > { %v2559_v46 = vsel %vm764_vm3, %v2556_v45, %v2558_v58  ;;  %v2562_v16 = vsel %vm764_vm3, 0.0, %v2556_v45 }
 0x31a   : > { %v2563_v7 = vsel %vm5190_vm5, %v2562_v16, 0.0  ;;  %v2564_v22 = vsel %vm5174_vm4, %v2559_v46, 0.0 }
 0x31b   : > { %v2639_v56 = vmul.f32 %v10661_v3, %v2563_v7  ;;  %v2640_v26 = vmul.f32 %v10662_v61, %v2564_v22  ;;  %v2721_v23 = vmul.f32 %v10663_v15, %v2563_v7  ;;  %v2722_v34 = vmul.f32 %v10664_v21, %v2564_v22 }
 0x31c   : > { %v2803_v18 = vmul.f32 %v10665_v63, %v2563_v7  ;;  %v2804_v28 = vmul.f32 %v10666_v20, %v2564_v22  ;;  %v2885_v19 = vmul.f32 %v10667_v39, %v2563_v7  ;;  %v2886_v14 = vmul.f32 %v10668_v35, %v2564_v22  ;;  %v2568_v5 = vpop.permute.xlu1 %2567 }
 0x31d   : > { %v2641_v52 = vadd.f32 %v2639_v56, %v2635_v53  ;;  %v2642_v6 = vadd.f32 %v2640_v26, %v2636_v47  ;;  %v2723_v55 = vadd.f32 %v2721_v23, %v2717_v31  ;;  %v2724_v44 = vadd.f32 %v2722_v34, %v2718_v54 }
 0x31e   : > { %v2805_v27 = vadd.f32 %v2803_v18, %v2799_v12  ;;  %v2806_v58 = vadd.f32 %v2804_v28, %v2800_v9  ;;  %v2887_v45 = vadd.f32 %v2885_v19, %v2881_v37  ;;  %v2888_v46 = vadd.f32 %v2886_v14, %v2882_v11  ;;  %v2566_v9 = vpop.permute.xlu0 %2565 }
 0x31f   : > { %v2572_v53 = vsel %vm775_vm0, %v2568_v5, 0.0  ;;  %v2648_v47 = vadd.f32 %v8250_v2, %v2642_v6  ;;  %v2730_v54 = vadd.f32 %v8256_v30, %v2724_v44  ;;  %v2647_v31 = vadd.f32 %v8282_v10, %v2641_v52 }
 0x320   : > { %v2574_v11 = vsel %vm5108_vm2, %v2572_v53, 0.0  ;;  %v2812_v16 = vadd.f32 %v8266_v48, %v2806_v58  ;;  %v2894_v12 = vadd.f32 %v8272_v62, %v2888_v46  ;;  %v2729_v37 = vadd.f32 %v8287_v60, %v2723_v55 }
 0x321   : > { %v3448_v2 = vstv %s8623_s10  ;;  %v3530_v30 = vstv %s8625_s13  ;;  %v3612_v7 = vstv %s8629_s6  ;;  %v3694_v10 = vstv %s8631_s23 }
 0x322   : > { %v10676_v22 = vstv %s10670_s30  ;;  %v2811_v56 = vadd.f32 %v8292_v41, %v2805_v27  ;;  %v2893_v48 = vadd.f32 %v8297_v24, %v2887_v45  ;;  %v2569_v62 = vsel %vm775_vm0, %v2566_v9, %v2568_v5  ;;  %s8710_s30 = sld [smem:[#allocation3 + $0x156]] }
 0x323   : > { %v2652_v3 = vmul.f32 %v10676_v22, %v2574_v11  ;;  %v10677_v61 = vstv %s10673_s3  ;;  %v10678_v26 = vstv %s10674_s16  ;;  %v10679_v23 = vstv %s10675_s5  ;;  %s8712_s3 = sld [smem:[#allocation3 + $0x162]]  ;;  %s8716_s16 = sld [smem:[#allocation3 + $0x16e]] }
 0x324   : > { %v2734_v60 = vmul.f32 %v10677_v61, %v2574_v11  ;;  %v2816_v15 = vmul.f32 %v10678_v26, %v2574_v11  ;;  %v2898_v21 = vmul.f32 %v10679_v23, %v2574_v11  ;;  %v3454_v34 = vstv %s8645_s24  ;;  %s8723_s5 = sld [smem:[#allocation3 + $0x17a]] }
 0x325   : > { %v2573_v63 = vsel %vm5233_vm7, %v2569_v62, 0.0  ;;  %v3536_v20 = vstv %s8647_s17  ;;  %v3618_v41 = vstv %s8657_s7  ;;  %v3700_v28 = vstv %s8659_s8  ;;  %s10807_s7 = sld [smem:[#allocation10_spill]] }
 0x326   : > { %v10680_v24 = vmov %v10676_v22  ;;  %v10681_v19 = vmov %v10677_v61  ;;  %v10682_v14 = vmov %v10678_v26  ;;  %v10683_v52 = vmov %v10679_v23 }
 0x327   : > { %v2651_v39 = vmul.f32 %v10680_v24, %v2573_v63  ;;  %v2733_v35 = vmul.f32 %v10681_v19, %v2573_v63  ;;  %v2815_v5 = vmul.f32 %v10682_v14, %v2573_v63  ;;  %v2897_v6 = vmul.f32 %v10683_v52, %v2573_v63 }
 0x328   : > { %v2580_v18 = vpop.permute.xlu1 %2579  ;;  %v2654_v55 = vadd.f32 %v2652_v3, %v2648_v47  ;;  %v3466_v27 = vstv %s8661_s9  ;;  %v3548_v58 = vstv %s8663_s25  ;;  %v3630_v45 = vstv %s8665_s20  ;;  %s8733_s20 = sld [smem:[#allocation3 + $0x158]]  ;;  %s8735_s25 = sld [smem:[#allocation3 + $0x164]] }
 0x329   : > { %v2736_v46 = vadd.f32 %v2734_v60, %v2730_v54  ;;  %v2818_v53 = vadd.f32 %v2816_v15, %v2812_v16  ;;  %v2900_v9 = vadd.f32 %v2898_v21, %v2894_v12  ;;  %v2653_v11 = vadd.f32 %v2651_v39, %v2647_v31  ;;  %s8745_s9 = sld [smem:[#allocation3 + $0x170]] }
 0x32a   : > { %v2578_v44 = vpop.permute.xlu0 %2577  ;;  %v2735_v22 = vadd.f32 %v2733_v35, %v2729_v37  ;;  %v2817_v47 = vadd.f32 %v2815_v5, %v2811_v56  ;;  %v2899_v31 = vadd.f32 %v2897_v6, %v2893_v48  ;;  %10684 = sst [smem:[#allocation22_spill]] %s8723_s5  ;;  %v10685_v56 = vstv %s8175_s2  ;;  %s8747_s2 = sld [smem:[#allocation3 + $0x17c]] }
 0x32b   : > { %v2581_v3 = vsel %vm764_vm3, %v2578_v44, %v2580_v18  ;;  %v2584_v62 = vsel %vm764_vm3, 0.0, %v2578_v44  ;;  %v10686_v60 = vmov %v10685_v56  ;;  %v10687_v15 = vstv %s8177_s11  ;;  %s10697_s11 = sld [smem:[#allocation21_spill]]  ;;  %s10811_s8 = sshll.u32 %s10807_s7, 4 }
 0x32c   : > { %v2590_v54 = vpop.permute.xlu1 %2589  ;;  %v2585_v16 = vsel %vm5190_vm5, %v2584_v62, 0.0  ;;  %v2586_v12 = vsel %vm5174_vm4, %v2581_v3, 0.0  ;;  %v10688_v21 = vmov %v10687_v15  ;;  %v10691_v48 = vstv %s8183_s29  ;;  %s8803_s29 = sld [smem:[#allocation3 + $0x165]] }
 0x32d   : > { %v2594_v37 = vsel %vm775_vm0, %v2590_v54, 0.0  ;;  %v2657_v61 = vmul.f32 %v10685_v56, %v2585_v16  ;;  %v2658_v26 = vmul.f32 %v10686_v60, %v2586_v12  ;;  %v2739_v23 = vmul.f32 %v10687_v15, %v2585_v16 }
 0x32e   : > { %v2740_v63 = vmul.f32 %v10688_v21, %v2586_v12  ;;  %10689 = sst [smem:[#allocation17_spill]] %s8733_s20  ;;  %v2821_v18 = vmul.f32 %v10691_v48, %v2585_v16  ;;  %v10692_v24 = vmov %v10691_v48  ;;  %v10693_v19 = vstv %s8185_s22  ;;  %s10698_s22 = sld [smem:[#allocation23_spill]] }
 0x32f   : > { %10690 = sst [smem:[#allocation19_spill]] %s8735_s25  ;;  %v2822_v39 = vmul.f32 %v10692_v24, %v2586_v12  ;;  %v2903_v35 = vmul.f32 %v10693_v19, %v2585_v16  ;;  %v10694_v14 = vmov %v10693_v19  ;;  %v2659_v52 = vadd.f32 %v2657_v61, %v2653_v11 }
 0x330   : > { %v2904_v5 = vmul.f32 %v10694_v14, %v2586_v12  ;;  %10695 = sst [smem:[#allocation24_spill]] %s8745_s9  ;;  %v2660_v6 = vadd.f32 %v2658_v26, %v2654_v55  ;;  %v2741_v44 = vadd.f32 %v2739_v23, %v2735_v22  ;;  %v2742_v3 = vadd.f32 %v2740_v63, %v2736_v46  ;;  %v2588_v46 = vpop.permute.xlu0 %2587 }
 0x331   : > { %10696 = sst [smem:[#allocation25_spill]] %s8747_s2  ;;  %v2823_v62 = vadd.f32 %v2821_v18, %v2817_v47  ;;  %v2824_v56 = vadd.f32 %v2822_v39, %v2818_v53  ;;  %v2905_v60 = vadd.f32 %v2903_v35, %v2899_v31  ;;  %v2596_v12 = vsel %vm5108_vm2, %v2594_v37, 0.0 }
 0x332   : > { %v2906_v16 = vadd.f32 %v2904_v5, %v2900_v9  ;;  %v2666_v15 = vadd.f32 %v8310_v51, %v2660_v6  ;;  %v2748_v11 = vadd.f32 %v8316_v0, %v2742_v3  ;;  %v2665_v55 = vadd.f32 %v8336_v29, %v2659_v52 }
 0x333   : > { %v2830_v53 = vadd.f32 %v8322_v49, %v2824_v56  ;;  %v3712_v22 = vstv %s8708_s1  ;;  %v3472_v47 = vstv %s8710_s30  ;;  %v3554_v9 = vstv %s8712_s3 }
 0x334   : > { %v2912_v31 = vadd.f32 %v8328_v33, %v2906_v16  ;;  %v2747_v51 = vadd.f32 %v8341_v8, %v2741_v44  ;;  %v2829_v0 = vadd.f32 %v8346_v13, %v2823_v62  ;;  %v3636_v29 = vstv %s8716_s16 }
 0x335   : > { %v10699_v37 = vstv %s10697_s11  ;;  %v10700_v49 = vstv %s8201_s19  ;;  %v2911_v23 = vadd.f32 %v8351_v36, %v2905_v60  ;;  %v3718_v21 = vstv %s8723_s5  ;;  %s8813_s19 = sld [smem:[#allocation3 + $0x171]]  ;;  %s8815_s11 = sld [smem:[#allocation3 + $0x17d]] }
 0x336   : > { %v2670_v61 = vmul.f32 %v10699_v37, %v2596_v12  ;;  %v2752_v26 = vmul.f32 %v10700_v49, %v2596_v12  ;;  %v10701_v63 = vstv %s8213_s21  ;;  %v10702_v18 = vstv %s10698_s22  ;;  %s8793_s21 = sld [smem:[#allocation3 + $0x159]]  ;;  %s8817_s22 = sld [smem:[#allocation3 + $0x15b]] }
 0x337   : > { %v2834_v48 = vmul.f32 %v10701_v63, %v2596_v12  ;;  %v2916_v33 = vmul.f32 %v10702_v18, %v2596_v12  ;;  %v2591_v24 = vsel %vm775_vm0, %v2588_v46, %v2590_v54  ;;  %v3484_v8 = vstv %s8733_s20  ;;  %v2602_v56 = vpop.permute.xlu1 %2601  ;;  %s8847_s20 = sld [smem:[#allocation5 + $0x1c]]  ;;  %s8849_s5 = sld [smem:[#allocation3 + $0x167]] }
 0x338   : > { %v2595_v13 = vsel %vm5233_vm7, %v2591_v24, 0.0  ;;  %v3566_v39 = vstv %s8735_s25  ;;  %v3648_v19 = vstv %s8745_s9  ;;  %v3730_v35 = vstv %s8747_s2  ;;  %v2600_v60 = vpop.permute.xlu0 %2599  ;;  %s10725_s2 = sld [smem:[#allocation41_spill]]  ;;  %s10727_s25 = sld [smem:[#allocation16_spill]] }
 0x339   : > { %v10703_v14 = vmov %v10699_v37  ;;  %v10704_v52 = vmov %v10700_v49  ;;  %v10705_v44 = vmov %v10701_v63  ;;  %v10706_v3 = vmov %v10702_v18  ;;  %s10726_s9 = sld [smem:[#allocation14_spill]] }
 0x33a   : > { %v2669_v5 = vmul.f32 %v10703_v14, %v2595_v13  ;;  %v2751_v6 = vmul.f32 %v10704_v52, %v2595_v13  ;;  %v2833_v36 = vmul.f32 %v10705_v44, %v2595_v13  ;;  %v2915_v62 = vmul.f32 %v10706_v3, %v2595_v13 }
 0x33b   : > { %v2672_v54 = vadd.f32 %v2670_v61, %v2666_v15  ;;  %v2754_v16 = vadd.f32 %v2752_v26, %v2748_v11  ;;  %v2603_v12 = vsel %vm764_vm3, %v2600_v60, %v2602_v56  ;;  %v2606_v46 = vsel %vm764_vm3, 0.0, %v2600_v60  ;;  %v2612_v44 = vpop.permute.xlu1 %2611  ;;  %10715 = sst [smem:[#allocation26_spill]] %s8813_s19 }
 0x33c   : > { %v2836_v37 = vadd.f32 %v2834_v48, %v2830_v53  ;;  %v2918_v49 = vadd.f32 %v2916_v33, %v2912_v31  ;;  %v2671_v63 = vadd.f32 %v2669_v5, %v2665_v55  ;;  %v2753_v18 = vadd.f32 %v2751_v6, %v2747_v51  ;;  %10716 = sst [smem:[#allocation27_spill]] %s8815_s11  ;;  %s8866_s11 = sld [smem:[#allocation5 + $0x1d]] }
 0x33d   : > { %v2835_v24 = vadd.f32 %v2833_v36, %v2829_v0  ;;  %v2917_v13 = vadd.f32 %v2915_v62, %v2911_v23  ;;  %v2607_v14 = vsel %vm5190_vm5, %v2606_v46, 0.0  ;;  %v2608_v15 = vsel %vm5174_vm4, %v2603_v12, 0.0  ;;  %s10783_s17 = sld [smem:[#allocation27_spill]] }
 0x33e   : > { %v10707_v11 = vstv %s8227_s4  ;;  %v10709_v53 = vstv %s8229_s15  ;;  %v10711_v55 = vstv %s8235_s27  ;;  %v10713_v23 = vstv %s8237_s14  ;;  %s10717_s15 = sld [smem:[#allocation49_spill]]  ;;  %s10718_s4 = sld [smem:[#allocation13_spill]] }
 0x33f   : > { %v2675_v61 = vmul.f32 %v10707_v11, %v2607_v14  ;;  %v10708_v26 = vmov %v10707_v11  ;;  %v2757_v48 = vmul.f32 %v10709_v53, %v2607_v14  ;;  %v10710_v31 = vmov %v10709_v53  ;;  %s10719_s27 = sld [smem:[#allocation15_spill]]  ;;  %s10724_s14 = sld [smem:[#allocation12_spill]] }
 0x340   : > { %v2676_v52 = vmul.f32 %v10708_v26, %v2608_v15  ;;  %v2758_v33 = vmul.f32 %v10710_v31, %v2608_v15  ;;  %v2839_v51 = vmul.f32 %v10711_v55, %v2607_v14  ;;  %v10712_v0 = vmov %v10711_v55 }
 0x341   : > { %v2840_v32 = vmul.f32 %v10712_v0, %v2608_v15  ;;  %v2921_v5 = vmul.f32 %v10713_v23, %v2607_v14  ;;  %v10714_v50 = vmov %v10713_v23  ;;  %v2677_v36 = vadd.f32 %v2675_v61, %v2671_v63 }
 0x342   : > { %v2922_v6 = vmul.f32 %v10714_v50, %v2608_v15  ;;  %v2678_v3 = vadd.f32 %v2676_v52, %v2672_v54  ;;  %v2759_v62 = vadd.f32 %v2757_v48, %v2753_v18  ;;  %v2760_v56 = vadd.f32 %v2758_v33, %v2754_v16  ;;  %v2610_v18 = vpop.permute.xlu0 %2609 }
 0x343   : > { %v2841_v60 = vadd.f32 %v2839_v51, %v2835_v24  ;;  %v2842_v12 = vadd.f32 %v2840_v32, %v2836_v37  ;;  %v2923_v46 = vadd.f32 %v2921_v5, %v2917_v13  ;;  %v2616_v14 = vsel %vm775_vm0, %v2612_v44, 0.0 }
 0x344   : > { %v2924_v11 = vadd.f32 %v2922_v6, %v2918_v49  ;;  %v2684_v15 = vadd.f32 %v8360_v25, %v2678_v3  ;;  %v2766_v63 = vadd.f32 %v8367_v38, %v2760_v56  ;;  %v2683_v54 = vadd.f32 %v8394_v59, %v2677_v36 }
 0x345   : > { %v2618_v16 = vsel %vm5108_vm2, %v2616_v14, 0.0  ;;  %v2848_v37 = vadd.f32 %v8376_v57, %v2842_v12  ;;  %v2765_v24 = vadd.f32 %v8399_v40, %v2759_v62  ;;  %v10720_v13 = vstv %s8243_s0  ;;  %v10736_v14 = vld [vmem:[#allocation57_spill] sm:$0xff]  ;;  %s8880_s0 = sld [smem:[#allocation3 + $0x173]] }
 0x346   : > { %v2930_v49 = vadd.f32 %v8385_v43, %v2924_v11  ;;  %v2688_v61 = vmul.f32 %v10720_v13, %v2618_v16  ;;  %v10721_v25 = vstv %s10717_s15  ;;  %v10722_v38 = vstv %s10718_s4  ;;  %s8894_s15 = sld [smem:[#allocation3 + $0x17f]] }
 0x347   : > { %v2770_v26 = vmul.f32 %v10721_v25, %v2618_v16  ;;  %v2852_v52 = vmul.f32 %v10722_v38, %v2618_v16  ;;  %v10723_v59 = vstv %s10719_s27  ;;  %v2847_v17 = vadd.f32 %v8404_v42, %v2841_v60  ;;  %s8898_s4 = sld [smem:[#allocation5 + $0x1f]] }
 0x348   : > { %v2934_v53 = vmul.f32 %v10723_v59, %v2618_v16  ;;  %v8838_v57 = vadd.f32 %v8409_v4, %v2923_v46  ;;  %v2613_v43 = vsel %vm775_vm0, %v2610_v18, %v2612_v44  ;;  %v3490_v40 = vstv %s8793_s21 }
 0x349   : > { %v2690_v48 = vadd.f32 %v2688_v61, %v2684_v15  ;;  %v2772_v31 = vadd.f32 %v2770_v26, %v2766_v63  ;;  %v2854_v33 = vadd.f32 %v2852_v52, %v2848_v37  ;;  %v2617_v51 = vsel %vm5233_vm7, %v2613_v43, 0.0 }
 0x34a   : > { %v2936_v55 = vadd.f32 %v2934_v53, %v2930_v49  ;;  %v3572_v42 = vstv %s8803_s29  ;;  %v3654_v0 = vstv %s8813_s19  ;;  %v10728_v4 = vstv %s10724_s14  ;;  %s10735_s19 = sld [smem:[#allocation11_spill]] }
 0x34b   : > { %v2694_v23 = vadd.f32 %v10728_v4, %v2690_v48  ;;  %v10729_v5 = vstv %s10725_s2  ;;  %v10730_v6 = vstv %s10726_s9  ;;  %v10731_v36 = vstv %s10727_s25  ;;  %s8892_s2 = sld [smem:[#allocation5 + $0x1e]] }
 0x34c   : > { %v2776_v50 = vadd.f32 %v10729_v5, %v2772_v31  ;;  %v2858_v44 = vadd.f32 %v10730_v6, %v2854_v33  ;;  %v2940_v3 = vadd.f32 %v10731_v36, %v2936_v55  ;;  %v10732_v62 = vmov %v10720_v13 }
 0x34d   : > { %v2687_v56 = vmul.f32 %v10732_v62, %v2617_v51  ;;  %v10733_v60 = vmov %v10721_v25  ;;  %v10734_v12 = vmov %v10722_v38  ;;  %vm2696_vm0 = vcmp.ge.f32.partialorder %v2694_v23, 0.0 }
 0x34e   : > { %v2769_v1 = vmul.f32 %v10733_v60, %v2617_v51  ;;  %v2851_v46 = vmul.f32 %v10734_v12, %v2617_v51  ;;  %v2698_v15 = vmul.f32 %v2694_v23, %v10736_v14  ;;  %vm2778_vm2 = vcmp.ge.f32.partialorder %v2776_v50, 0.0 }
 0x34f   : > { %v2780_v63 = vmul.f32 %v2776_v50, %v10736_v14  ;;  %vm2860_vm3 = vcmp.ge.f32.partialorder %v2858_v44, 0.0  ;;  %v2862_v18 = vmul.f32 %v2858_v44, %v10736_v14  ;;  %vm2942_vm4 = vcmp.ge.f32.partialorder %v2940_v3, 0.0 }
 0x350   : > { %v2944_v16 = vmul.f32 %v2940_v3, %v10736_v14  ;;  %vm3905_vm5 = vcmask 1040384   ;;  %v2700_v37 = vsel %vm2696_vm0, %v2694_v23, %v2698_v15  ;;  %v2689_v13 = vadd.f32 %v2687_v56, %v2683_v54  ;;  %v8873_v38 = vld [vmem:[%s10735_s19 + $0x8] sm:$0xff]  ;;  %v3366_v54 = vpop.permute.xlu0 %3365 }
 0x351   : > { %v2782_v49 = vsel %vm2778_vm2, %v2776_v50, %v2780_v63  ;;  %v2771_v61 = vadd.f32 %v2769_v1, %v2765_v24  ;;  %v2864_v25 = vsel %vm2860_vm3, %v2858_v44, %v2862_v18  ;;  %v3764_v52 = vadd.f32 %v8873_v38, %v2700_v37 }
 0x352   : > { %v2946_v26 = vsel %vm2942_vm4, %v2940_v3, %v2944_v16  ;;  %v3774_v59 = vrot.slane %v2782_v49, 7  ;;  %v3788_v53 = vrot.slane %v2864_v25, 6  ;;  %v10737_v48 = vmov %v10728_v4  ;;  %v3368_v4 = vpop.permute.xlu1 %3367 }
 0x353   : > { %v3802_v43 = vrot.slane %v2946_v26, 5  ;;  %v2693_v31 = vadd.f32 %v10737_v48, %v2689_v13  ;;  %v10738_v33 = vmov %v10729_v5  ;;  %v2853_v23 = vadd.f32 %v2851_v46, %v2847_v17 }
 0x354   : > { %v2775_v55 = vadd.f32 %v10738_v33, %v2771_v61  ;;  %v3778_v24 = vadd.f32 %v8873_v38, %v3774_v59  ;;  %v3792_v6 = vadd.f32 %v8873_v38, %v3788_v53  ;;  %v10739_v3 = vstv %s10719_s27  ;;  %v3374_v53 = vpop.permute.xlu0 %3373 }
 0x355   : > { %v3806_v44 = vadd.f32 %v8873_v38, %v3802_v43  ;;  %v2697_v36 = vmul.f32 %v2693_v31, %v10736_v14  ;;  %v2933_v62 = vmul.f32 %v10739_v3, %v2617_v51  ;;  %vm3766_vm7 = vcmp.ge.f32.partialorder %v3764_v52, 0.0 }
 0x356   : > { %vm2695_vm8 = vcmp.ge.f32.partialorder %v2693_v31, 0.0  ;;  %v3369_v56 = vsel %vm266_vm1, %v3366_v54, %v3368_v4  ;;  %v3768_v17 = vmul.f32 %v3764_v52, %v10736_v14  ;;  %vm3794_vm9 = vcmp.ge.f32.partialorder %v3792_v6, 0.0  ;;  %v3376_v59 = vpop.permute.xlu1 %3375 }
 0x357   : > { %v3796_v1 = vmul.f32 %v3792_v6, %v10736_v14  ;;  %vm2777_vm10 = vcmp.ge.f32.partialorder %v2775_v55, 0.0  ;;  %vm3780_vm11 = vcmp.ge.f32.partialorder %v3778_v24, 0.0  ;;  %v3782_v51 = vmul.f32 %v3778_v24, %v10736_v14 }
 0x358   : > { %v2779_v12 = vmul.f32 %v2775_v55, %v10736_v14  ;;  %v10740_v46 = vstv %s10726_s9  ;;  %v3810_v18 = vmul.f32 %v3806_v44, %v10736_v14  ;;  %v2699_v16 = vsel %vm2695_vm8, %v2693_v31, %v2697_v36 }
 0x359   : > { %v2857_v15 = vadd.f32 %v10740_v46, %v2853_v23  ;;  %v3798_v63 = vsel %vm3794_vm9, %v3792_v6, %v3796_v1  ;;  %v2935_v37 = vadd.f32 %v2933_v62, %v8838_v57  ;;  %vm3808_vm12 = vcmp.ge.f32.partialorder %v3806_v44, 0.0 }
 0x35a   : > { %v3872_v49 = vrot.slane %v3798_v63, 1  ;;  %v2781_v13 = vsel %vm2777_vm10, %v2775_v55, %v2779_v12  ;;  %v3770_v61 = vsel %vm3766_vm7, %v3764_v52, %v3768_v17  ;;  %v3372_v26 = vsel %vm266_vm1, 0.0, %v3366_v54  ;;  %v8918_v52 = vld [vmem:[%s10735_s19] sm:$0xff] }
 0x35b   : > { %vm2859_vm13 = vcmp.ge.f32.partialorder %v2857_v15, 0.0  ;;  %v2861_v25 = vmul.f32 %v2857_v15, %v10736_v14  ;;  %v8912_v57 = vsel %vm3780_vm11, %v3778_v24, %v3782_v51  ;;  %v3763_v31 = vadd.f32 %v8918_v52, %v2699_v16 }
 0x35c   : > { %v8915_v48 = vsel %vm3905_vm5, %v3770_v61, %v3872_v49  ;;  %v10741_v33 = vstv %s8431_s12  ;;  %v8923_v4 = vsel %vm3808_vm12, %v3806_v44, %v3810_v18  ;;  %v10742_v23 = vstv %s10727_s25  ;;  %v10746_v49 = vld [vmem:[#allocation59_spill] sm:$0xff] }
 0x35d   : > { %v3438_v55 = vmul.f32 %v10741_v33, %v3369_v56  ;;  %v2863_v54 = vsel %vm2859_vm13, %v2857_v15, %v2861_v25  ;;  %v8927_v6 = vadd.f32 %v10742_v23, %v2935_v37  ;;  %v3773_v36 = vrot.slane %v2781_v13, 7  ;;  %v3386_v23 = vpop.permute.xlu1 %3385  ;;  %v10750_v15 = vld [vmem:[#allocation61_spill] sm:$0xff] }
 0x35e   : > { %v3787_v24 = vrot.slane %v2863_v54, 6  ;;  %v10743_v3 = vmov %v10741_v33  ;;  %v10744_v12 = vstv %s8433_s26  ;;  %v3767_v18 = vmul.f32 %v3763_v31, %v10736_v14 }
 0x35f   : > { %v3437_v62 = vmul.f32 %v10743_v3, %v3372_v26  ;;  %v3519_v46 = vmul.f32 %v10744_v12, %v3372_v26  ;;  %v10745_v63 = vmov %v10744_v12  ;;  %v3446_v13 = vadd.f32 %v10746_v49, %v3438_v55  ;;  %v3384_v3 = vpop.permute.xlu0 %3383 }
 0x360   : > { %v3520_v16 = vmul.f32 %v10745_v63, %v3369_v56  ;;  %v3791_v37 = vadd.f32 %v8918_v52, %v3787_v24  ;;  %v8945_v61 = vmul.f32 %v8927_v6, %v10736_v14  ;;  %vm3765_vm14 = vcmp.ge.f32.partialorder %v3763_v31, 0.0  ;;  %v10748_v24 = vld [vmem:[#allocation77_spill] sm:$0xff] }
 0x361   : > { %v8948_v25 = vadd.f32 %v8918_v52, %v3773_v36  ;;  %v10747_v33 = vstv %s8451_s28  ;;  %v3445_v55 = vadd.f32 %v10748_v24, %v3437_v62  ;;  %v10749_v63 = vstv %s8453_s18  ;;  %v10751_v36 = vld [vmem:[#allocation79_spill] sm:$0xff]  ;;  %v10754_v24 = vld [vmem:[#allocation36_spill] sm:$0xff] }
 0x362   : > { %v3602_v54 = vmul.f32 %v10747_v33, %v3369_v56  ;;  %vm3793_vm15 = vcmp.ge.f32.partialorder %v3791_v37, 0.0  ;;  %v3795_v12 = vmul.f32 %v3791_v37, %v10736_v14  ;;  %v3684_v49 = vmul.f32 %v10749_v63, %v3369_v56  ;;  %v10755_v56 = vld [vmem:[#allocation62_spill] sm:$0xff] }
 0x363   : > { %v3527_v51 = vadd.f32 %v10750_v15, %v3519_v46  ;;  %v3528_v44 = vadd.f32 %v10751_v36, %v3520_v16  ;;  %v10752_v17 = vmov %v10747_v33  ;;  %v10753_v60 = vmov %v10749_v63 }
 0x364   : > { %v3601_v33 = vmul.f32 %v10752_v17, %v3372_v26  ;;  %v3683_v5 = vmul.f32 %v10753_v60, %v3372_v26  ;;  %v3769_v1 = vsel %vm3765_vm14, %v3763_v31, %v3767_v18  ;;  %v3797_v43 = vsel %vm3793_vm15, %v3791_v37, %v3795_v12  ;;  %v3394_v37 = vpop.permute.xlu1 %3393 }
 0x365   : > { %v3380_v50 = vsel %vm275_vm6, %v3376_v59, 0.0  ;;  %v3377_v11 = vsel %vm275_vm6, %v3374_v53, %v3376_v59  ;;  %v3871_v62 = vrot.slane %v3797_v43, 1  ;;  %v3610_v32 = vadd.f32 %v10754_v24, %v3602_v54  ;;  %v10756_v59 = vld [vmem:[#allocation80_spill] sm:$0xff]  ;;  %v10757_v43 = vld [vmem:[#allocation37_spill] sm:$0xff]  ;;  %v3392_v54 = vpop.permute.xlu0 %3391 }
 0x366   : > { %v3692_v63 = vadd.f32 %v10755_v56, %v3684_v49  ;;  %v3450_v46 = vmul.f32 %v3448_v2, %v3380_v50  ;;  %v3532_v16 = vmul.f32 %v3530_v30, %v3380_v50  ;;  %v3614_v17 = vmul.f32 %v3612_v7, %v3380_v50 }
 0x367   : > { %v3696_v60 = vmul.f32 %v3694_v10, %v3380_v50  ;;  %v3449_v26 = vmul.f32 %v3448_v2, %v3377_v11  ;;  %v8977_v31 = vsel %vm3905_vm5, %v3769_v1, %v3871_v62  ;;  %v3609_v53 = vadd.f32 %v10756_v59, %v3601_v33 }
 0x368   : > { %v3691_v15 = vadd.f32 %v10757_v43, %v3683_v5  ;;  %v3531_v18 = vmul.f32 %v3530_v30, %v3377_v11  ;;  %v3452_v12 = vadd.f32 %v3450_v46, %v3446_v13  ;;  %v3534_v49 = vadd.f32 %v3532_v16, %v3528_v44 }
 0x369   : > { %v3616_v50 = vadd.f32 %v3614_v17, %v3610_v32  ;;  %v3698_v2 = vadd.f32 %v3696_v60, %v3692_v63  ;;  %v3451_v1 = vadd.f32 %v3449_v26, %v3445_v55  ;;  %v3613_v33 = vmul.f32 %v3612_v7, %v3377_v11 }
 0x36a   : > { %v3533_v36 = vadd.f32 %v3531_v18, %v3527_v51  ;;  %v3695_v5 = vmul.f32 %v3694_v10, %v3377_v11  ;;  %v3387_v30 = vsel %vm266_vm1, %v3384_v3, %v3386_v23  ;;  %v3390_v62 = vsel %vm266_vm1, 0.0, %v3384_v3  ;;  %v10762_v18 = vld [vmem:[#allocation65_spill] sm:$0xff] }
 0x36b   : > { %v3398_v13 = vsel %vm275_vm6, %v3394_v37, 0.0  ;;  %v3395_v44 = vsel %vm275_vm6, %v3392_v54, %v3394_v37  ;;  %v3615_v32 = vadd.f32 %v3613_v33, %v3609_v53  ;;  %v3455_v56 = vmul.f32 %v3454_v34, %v3390_v62  ;;  %v10763_v54 = vld [vmem:[#allocation82_spill] sm:$0xff]  ;;  %v10765_v33 = vld [vmem:[#allocation85_spill] sm:$0xff] }
 0x36c   : > { %v3697_v24 = vadd.f32 %v3695_v5, %v3691_v15  ;;  %v3456_v51 = vmul.f32 %v3454_v34, %v3387_v30  ;;  %v3537_v7 = vmul.f32 %v3536_v20, %v3390_v62  ;;  %v3538_v10 = vmul.f32 %v3536_v20, %v3387_v30  ;;  %v10761_v20 = vld [vmem:[#allocation40_spill] sm:$0xff]  ;;  %v3402_v15 = vpop.permute.xlu0 %3401 }
 0x36d   : > { %v3619_v11 = vmul.f32 %v3618_v41, %v3390_v62  ;;  %v3620_v23 = vmul.f32 %v3618_v41, %v3387_v30  ;;  %v3457_v3 = vadd.f32 %v3455_v56, %v3451_v1  ;;  %v3701_v63 = vmul.f32 %v3700_v28, %v3390_v62  ;;  %v3404_v41 = vpop.permute.xlu1 %3403  ;;  %v10767_v56 = vld [vmem:[#allocation67_spill] sm:$0xff] }
 0x36e   : > { %v3458_v55 = vadd.f32 %v3456_v51, %v3452_v12  ;;  %v3702_v46 = vmul.f32 %v3700_v28, %v3387_v30  ;;  %v3539_v16 = vadd.f32 %v3537_v7, %v3533_v36  ;;  %v3540_v34 = vadd.f32 %v3538_v10, %v3534_v49  ;;  %v10768_v10 = vld [vmem:[#allocation68_spill] sm:$0xff] }
 0x36f   : > { %v3621_v17 = vadd.f32 %v3619_v11, %v3615_v32  ;;  %v3622_v60 = vadd.f32 %v3620_v23, %v3616_v50  ;;  %v3703_v26 = vadd.f32 %v3701_v63, %v3697_v24  ;;  %v3468_v43 = vmul.f32 %v3466_v27, %v3398_v13  ;;  %v10766_v32 = vld [vmem:[#allocation86_spill] sm:$0xff] }
 0x370   : > { %v3704_v59 = vadd.f32 %v3702_v46, %v3698_v2  ;;  %v3464_v53 = vadd.f32 %v10761_v20, %v3458_v55  ;;  %v3546_v37 = vadd.f32 %v10762_v18, %v3540_v34  ;;  %v3550_v28 = vmul.f32 %v3548_v58, %v3398_v13  ;;  %v10764_v2 = vld [vmem:[#allocation83_spill] sm:$0xff] }
 0x371   : > { %v3628_v12 = vadd.f32 %v10763_v54, %v3622_v60  ;;  %v3632_v49 = vmul.f32 %v3630_v45, %v3398_v13  ;;  %v3714_v36 = vmul.f32 %v3712_v22, %v3398_v13  ;;  %v3463_v5 = vadd.f32 %v10765_v33, %v3457_v3  ;;  %v3412_v60 = vpop.permute.xlu1 %3411  ;;  %v10776_v33 = vld [vmem:[#allocation43_spill] sm:$0xff] }
 0x372   : > { %v3470_v50 = vadd.f32 %v3468_v43, %v3464_v53  ;;  %v3710_v1 = vadd.f32 %v10764_v2, %v3704_v59  ;;  %v3552_v30 = vadd.f32 %v3550_v28, %v3546_v37  ;;  %v3545_v24 = vadd.f32 %v10766_v32, %v3539_v16 }
 0x373   : > { %v3634_v62 = vadd.f32 %v3632_v49, %v3628_v12  ;;  %v3627_v51 = vadd.f32 %v10767_v56, %v3621_v17  ;;  %v3709_v11 = vadd.f32 %v10768_v10, %v3703_v26  ;;  %v3467_v23 = vmul.f32 %v3466_v27, %v3395_v44  ;;  %v10777_v56 = vld [vmem:[#allocation48_spill] sm:$0xff] }
 0x374   : > { %v3716_v7 = vadd.f32 %v3714_v36, %v3710_v1  ;;  %v3549_v55 = vmul.f32 %v3548_v58, %v3395_v44  ;;  %v3631_v13 = vmul.f32 %v3630_v45, %v3395_v44  ;;  %v3713_v3 = vmul.f32 %v3712_v22, %v3395_v44  ;;  %v3410_v58 = vpop.permute.xlu0 %3409  ;;  %v10775_v1 = vld [vmem:[#allocation42_spill] sm:$0xff] }
 0x375   : > { %v3405_v63 = vsel %vm266_vm1, %v3402_v15, %v3404_v41  ;;  %v3408_v46 = vsel %vm266_vm1, 0.0, %v3402_v15  ;;  %v3469_v16 = vadd.f32 %v3467_v23, %v3463_v5  ;;  %v3416_v54 = vsel %vm275_vm6, %v3412_v60, 0.0 }
 0x376   : > { %v3551_v34 = vadd.f32 %v3549_v55, %v3545_v24  ;;  %v3473_v17 = vmul.f32 %v3472_v47, %v3408_v46  ;;  %v3474_v27 = vmul.f32 %v3472_v47, %v3405_v63  ;;  %v3633_v26 = vadd.f32 %v3631_v13, %v3627_v51 }
 0x377   : > { %v3715_v45 = vadd.f32 %v3713_v3, %v3709_v11  ;;  %v3555_v59 = vmul.f32 %v3554_v9, %v3408_v46  ;;  %v3556_v22 = vmul.f32 %v3554_v9, %v3405_v63  ;;  %v3637_v53 = vmul.f32 %v3636_v29, %v3408_v46  ;;  %v10774_v9 = vld [vmem:[#allocation69_spill] sm:$0xff]  ;;  %v10779_v11 = vld [vmem:[#allocation84_spill] sm:$0xff] }
 0x378   : > { %v3475_v44 = vadd.f32 %v3473_v17, %v3469_v16  ;;  %v3476_v20 = vadd.f32 %v3474_v27, %v3470_v50  ;;  %v3638_v43 = vmul.f32 %v3636_v29, %v3405_v63  ;;  %v3719_v15 = vmul.f32 %v3718_v21, %v3408_v46  ;;  %v3420_v32 = vpop.permute.xlu0 %3419  ;;  %v10780_v3 = vld [vmem:[#allocation54_spill] sm:$0xff]  ;;  %v10781_v46 = vld [vmem:[#allocation70_spill] sm:$0xff] }
 0x379   : > { %v3557_v41 = vadd.f32 %v3555_v59, %v3551_v34  ;;  %v3558_v47 = vadd.f32 %v3556_v22, %v3552_v30  ;;  %v3720_v18 = vmul.f32 %v3718_v21, %v3405_v63  ;;  %v3639_v37 = vadd.f32 %v3637_v53, %v3633_v26 }
 0x37a   : > { %v3640_v28 = vadd.f32 %v3638_v43, %v3634_v62  ;;  %v3482_v12 = vadd.f32 %v10774_v9, %v3476_v20  ;;  %v3721_v49 = vadd.f32 %v3719_v15, %v3715_v45  ;;  %v3486_v2 = vmul.f32 %v3484_v8, %v3416_v54  ;;  %v3422_v62 = vpop.permute.xlu1 %3421 }
 0x37b   : > { %v3722_v50 = vadd.f32 %v3720_v18, %v3716_v7  ;;  %v3564_v36 = vadd.f32 %v10775_v1, %v3558_v47  ;;  %v3568_v29 = vmul.f32 %v3566_v39, %v3416_v54  ;;  %v3650_v30 = vmul.f32 %v3648_v19, %v3416_v54  ;;  %v10778_v7 = vld [vmem:[#allocation51_spill] sm:$0xff] }
 0x37c   : > { %v3646_v5 = vadd.f32 %v10776_v33, %v3640_v28  ;;  %v3732_v21 = vmul.f32 %v3730_v35, %v3416_v54  ;;  %v3488_v24 = vadd.f32 %v3486_v2, %v3482_v12  ;;  %v3481_v10 = vadd.f32 %v10778_v7, %v3475_v44  ;;  %v10786_v2 = vld [vmem:[#allocation71_spill] sm:$0xff] }
 0x37d   : > { %v3728_v51 = vadd.f32 %v10777_v56, %v3722_v50  ;;  %v3563_v23 = vadd.f32 %v10779_v11, %v3557_v41  ;;  %v3570_v55 = vadd.f32 %v3568_v29, %v3564_v36  ;;  %v3645_v63 = vadd.f32 %v10780_v3, %v3639_v37  ;;  %v3428_v11 = vpop.permute.xlu0 %3427  ;;  %v10794_v3 = vld [vmem:[#allocation73_spill] sm:$0xff] }
 0x37e   : > { %v3652_v13 = vadd.f32 %v3650_v30, %v3646_v5  ;;  %v3727_v16 = vadd.f32 %v10781_v46, %v3721_v49  ;;  %vm2941_vm0 = vcmp.ge.f32.partialorder %v8927_v6, 0.0  ;;  %v3413_v17 = vsel %vm275_vm6, %v3410_v58, %v3412_v60  ;;  %v10788_v30 = vld [vmem:[#allocation55_spill] sm:$0xff] }
 0x37f   : > { %v3734_v34 = vadd.f32 %v3732_v21, %v3728_v51  ;;  %v3423_v27 = vsel %vm266_vm1, %v3420_v32, %v3422_v62  ;;  %v3426_v26 = vsel %vm266_vm1, 0.0, %v3420_v32  ;;  %v3485_v45 = vmul.f32 %v3484_v8, %v3413_v17  ;;  %v10790_v32 = vld [vmem:[#allocation87_spill] sm:$0xff]  ;;  %v10795_v46 = vld [vmem:[#allocation81_spill] sm:$0xff] }
 0x380   : > { %v3567_v59 = vmul.f32 %v3566_v39, %v3413_v17  ;;  %v3649_v22 = vmul.f32 %v3648_v19, %v3413_v17  ;;  %v3731_v44 = vmul.f32 %v3730_v35, %v3413_v17  ;;  %v3491_v20 = vmul.f32 %v3490_v40, %v3426_v26  ;;  %v3430_v39 = vpop.permute.xlu1 %3429 }
 0x381   : > { %v3492_v60 = vmul.f32 %v3490_v40, %v3423_v27  ;;  %v3573_v58 = vmul.f32 %v3572_v42, %v3426_v26  ;;  %v3574_v53 = vmul.f32 %v3572_v42, %v3423_v27  ;;  %v3487_v43 = vadd.f32 %v3485_v45, %v3481_v10  ;;  %v10797_v45 = vld [vmem:[#allocation75_spill] sm:$0xff] }
 0x382   : > { %v3569_v41 = vadd.f32 %v3567_v59, %v3563_v23  ;;  %v3651_v8 = vadd.f32 %v3649_v22, %v3645_v63  ;;  %v3733_v47 = vadd.f32 %v3731_v44, %v3727_v16  ;;  %v3655_v35 = vmul.f32 %v3654_v0, %v3426_v26 }
 0x383   : > { %v3494_v15 = vadd.f32 %v3492_v60, %v3488_v24  ;;  %v3576_v19 = vadd.f32 %v3574_v53, %v3570_v55  ;;  %v3656_v18 = vmul.f32 %v3654_v0, %v3423_v27  ;;  %v3493_v40 = vadd.f32 %v3491_v20, %v3487_v43  ;;  %v10793_v55 = vld [vmem:[#allocation72_spill] sm:$0xff] }
 0x384   : > { %v3575_v37 = vadd.f32 %v3573_v58, %v3569_v41  ;;  %v10784_v28 = vstv %s10783_s17  ;;  %v3657_v12 = vadd.f32 %v3655_v35, %v3651_v8  ;;  %v3434_v50 = vsel %vm275_vm6, %v3430_v39, 0.0 }
 0x385   : > { %v3737_v54 = vmul.f32 %v10784_v28, %v3426_v26  ;;  %v10785_v42 = vmov %v10784_v28  ;;  %v3658_v49 = vadd.f32 %v3656_v18, %v3652_v13  ;;  %v3500_v1 = vadd.f32 %v10786_v2, %v3494_v15 }
 0x386   : > { %v3738_v9 = vmul.f32 %v10785_v42, %v3423_v27  ;;  %v10787_v33 = vstv %s8817_s22  ;;  %v3582_v0 = vadd.f32 %v10788_v30, %v3576_v19  ;;  %v10789_v21 = vstv %s8849_s5  ;;  %v10796_v27 = vld [vmem:[#allocation74_spill] sm:$0xff] }
 0x387   : > { %v3739_v36 = vadd.f32 %v3737_v54, %v3733_v47  ;;  %v3504_v5 = vmul.f32 %v10787_v33, %v3434_v50  ;;  %v3586_v62 = vmul.f32 %v10789_v21, %v3434_v50  ;;  %v3664_v24 = vadd.f32 %v10790_v32, %v3658_v49 }
 0x388   : > { %v3740_v29 = vadd.f32 %v3738_v9, %v3734_v34  ;;  %v10791_v56 = vstv %s8880_s0  ;;  %v10792_v7 = vstv %s8894_s15  ;;  %v3499_v63 = vadd.f32 %v10794_v3, %v3493_v40 }
 0x389   : > { %v3668_v51 = vmul.f32 %v10791_v56, %v3434_v50  ;;  %v3750_v10 = vmul.f32 %v10792_v7, %v3434_v50  ;;  %v3506_v23 = vadd.f32 %v3504_v5, %v3500_v1  ;;  %v3581_v16 = vadd.f32 %v10795_v46, %v3575_v37 }
 0x38a   : > { %v3746_v13 = vadd.f32 %v10793_v55, %v3740_v29  ;;  %v3588_v34 = vadd.f32 %v3586_v62, %v3582_v0  ;;  %v3663_v26 = vadd.f32 %v10796_v27, %v3657_v12  ;;  %v9111_v59 = vadd.f32 %v10797_v45, %v3739_v36 }
 0x38b   : > { %v3670_v17 = vadd.f32 %v3668_v51, %v3664_v24  ;;  %v2945_v22 = vsel %vm2941_vm0, %v8927_v6, %v8945_v61  ;;  %v10798_v44 = vstv %s8847_s20  ;;  %v3431_v58 = vsel %vm275_vm6, %v3428_v11, %v3430_v39  ;;  %s10812_s20 = sld [smem:[#allocation91_spill]] }
 0x38c   : > { %v3510_v20 = vadd.f32 %v10798_v44, %v3506_v23  ;;  %v3752_v60 = vadd.f32 %v3750_v10, %v3746_v13  ;;  %v10799_v53 = vstv %s8866_s11  ;;  %v10800_v41 = vstv %s8892_s2 }
 0x38d   : > { %v3592_v43 = vadd.f32 %v10799_v53, %v3588_v34  ;;  %v3674_v8 = vadd.f32 %v10800_v41, %v3670_v17  ;;  %v10801_v47 = vmov %v10787_v33  ;;  %v10802_v19 = vmov %v10789_v21 }
 0x38e   : > { %v3503_v15 = vmul.f32 %v10801_v47, %v3431_v58  ;;  %v3585_v35 = vmul.f32 %v10802_v19, %v3431_v58  ;;  %vm3512_vm1 = vcmp.ge.f32.partialorder %v3510_v20, 0.0  ;;  %v3514_v18 = vmul.f32 %v3510_v20, %v10736_v14 }
 0x38f   : > { %v10803_v40 = vstv %s8898_s4  ;;  %v10804_v28 = vmov %v10791_v56  ;;  %vm3908_vm2 = vcmask 1041408   ;;  %vm3594_vm3 = vcmp.ge.f32.partialorder %v3592_v43, 0.0 }
 0x390   : > { %v3756_v37 = vadd.f32 %v10803_v40, %v3752_v60  ;;  %v3667_v6 = vmul.f32 %v10804_v28, %v3431_v58  ;;  %v3596_v61 = vmul.f32 %v3592_v43, %v10736_v14  ;;  %vm3676_vm6 = vcmp.ge.f32.partialorder %v3674_v8, 0.0 }
 0x391   : > { %v3678_v39 = vmul.f32 %v3674_v8, %v10736_v14  ;;  %vm3911_vm4 = vcmask 1042432   ;;  %v3516_v54 = vsel %vm3512_vm1, %v3510_v20, %v3514_v18  ;;  %v3505_v9 = vadd.f32 %v3503_v15, %v3499_v63  ;;  %s9169_s1 = scalar_lea.vmem %s10812_s20, %s10811_s8 }
 0x392   : > { %vm3758_vm5 = vcmp.ge.f32.partialorder %v3756_v37, 0.0  ;;  %v3760_v42 = vmul.f32 %v3756_v37, %v10736_v14  ;;  %vm3914_vm7 = vcmask 1043456   ;;  %v3598_v12 = vsel %vm3594_vm3, %v3592_v43, %v3596_v61 }
 0x393   : > { %v3680_v49 = vsel %vm3676_vm6, %v3674_v8, %v3678_v39  ;;  %v3816_v50 = vrot.slane %v3516_v54, 4  ;;  %v3587_v2 = vadd.f32 %v3585_v35, %v3581_v16  ;;  %vm3917_vm8 = vcmask 1044480  }
 0x394   : > { %v3762_v1 = vsel %vm3758_vm5, %v3756_v37, %v3760_v42  ;;  %v3830_v36 = vrot.slane %v3598_v12, 3  ;;  %v3844_v29 = vrot.slane %v3680_v49, 2  ;;  %v10805_v33 = vmov %v10798_v44 }
 0x395   : > { %v3509_v5 = vadd.f32 %v10805_v33, %v3505_v9  ;;  %v3801_v30 = vrot.slane %v2945_v22, 5  ;;  %vm3920_vm9 = vcmask 1045504   ;;  %v3820_v0 = vadd.f32 %v8873_v38, %v3816_v50 }
 0x396   : > { %v3858_v21 = vrot.slane %v3762_v1, 1  ;;  %v10806_v62 = vmov %v10799_v53  ;;  %vm3923_vm10 = vcmask 1046528   ;;  %v3834_v24 = vadd.f32 %v8873_v38, %v3830_v36 }
 0x397   : > { %v3591_v32 = vadd.f32 %v10806_v62, %v3587_v2  ;;  %v3848_v56 = vadd.f32 %v8873_v38, %v3844_v29  ;;  %vm3511_vm11 = vcmp.ge.f32.partialorder %v3509_v5, 0.0  ;;  %v3513_v51 = vmul.f32 %v3509_v5, %v10736_v14 }
 0x398   : > { %vm3822_vm12 = vcmp.ge.f32.partialorder %v3820_v0, 0.0  ;;  %v3824_v7 = vmul.f32 %v3820_v0, %v10736_v14  ;;  %v3862_v10 = vadd.f32 %v8873_v38, %v3858_v21  ;;  %v3669_v11 = vadd.f32 %v3667_v6, %v3663_v26 }
 0x399   : > { %vm3836_vm13 = vcmp.ge.f32.partialorder %v3834_v24, 0.0  ;;  %v3838_v23 = vmul.f32 %v3834_v24, %v10736_v14  ;;  %vm3850_vm14 = vcmp.ge.f32.partialorder %v3848_v56, 0.0  ;;  %v3852_v55 = vmul.f32 %v3848_v56, %v10736_v14 }
 0x39a   : > { %v3805_v13 = vadd.f32 %v8918_v52, %v3801_v30  ;;  %v3826_v3 = vsel %vm3822_vm12, %v3820_v0, %v3824_v7  ;;  %v3515_v63 = vsel %vm3511_vm11, %v3509_v5, %v3513_v51  ;;  %vm3593_vm15 = vcmp.ge.f32.partialorder %v3591_v32, 0.0 }
 0x39b   : > { %v3854_v46 = vsel %vm3850_vm14, %v3848_v56, %v3852_v55  ;;  %vm3864_vm0 = vcmp.ge.f32.partialorder %v3862_v10, 0.0  ;;  %v3878_v16 = vrot.slane %v3826_v3, 2  ;;  %v3595_v34 = vmul.f32 %v3591_v32, %v10736_v14 }
 0x39c   : > { %v3840_v38 = vsel %vm3836_vm13, %v3834_v24, %v3838_v23  ;;  %v3866_v17 = vmul.f32 %v3862_v10, %v10736_v14  ;;  %v3884_v27 = vrot.slane %v3854_v46, 3  ;;  %v10808_v26 = vmov %v10800_v41 }
 0x39d   : > { %v3673_v45 = vadd.f32 %v10808_v26, %v3669_v11  ;;  %v3910_v22 = vsel %vm3908_vm2, %v8915_v48, %v3878_v16  ;;  %v3597_v44 = vsel %vm3593_vm15, %v3591_v32, %v3595_v34  ;;  %v10809_v20 = vstv %s8894_s15 }
 0x39e   : > { %v3749_v60 = vmul.f32 %v10809_v20, %v3431_v58  ;;  %v3815_v53 = vrot.slane %v3515_v63, 4  ;;  %v3913_v43 = vsel %vm3911_vm4, %v3910_v22, %v3884_v27  ;;  %v3829_v8 = vrot.slane %v3597_v44, 3 }
 0x39f   : > { %vm3675_vm1 = vcmp.ge.f32.partialorder %v3673_v45, 0.0  ;;  %v3677_v41 = vmul.f32 %v3673_v45, %v10736_v14  ;;  %v3902_v47 = vrot.slane %v3840_v38, 7  ;;  %v10810_v15 = vrot.slane %v8912_v57, 5 }
 0x3a0   : > { %v3751_v35 = vadd.f32 %v3749_v60, %v9111_v59  ;;  %v3819_v48 = vadd.f32 %v8918_v52, %v3815_v53  ;;  %v3868_v58 = vsel %vm3864_vm0, %v3862_v10, %v3866_v17  ;;  %v10813_v18 = vrot.slane %v8923_v4, 6 }
 0x3a1   : > { %v3916_v19 = vsel %vm3914_vm7, %v3913_v43, %v10810_v15  ;;  %v3679_v57 = vsel %vm3675_vm1, %v3673_v45, %v3677_v41  ;;  %v3833_v37 = vadd.f32 %v8918_v52, %v3829_v8  ;;  %v10814_v28 = vstv %s8898_s4 }
 0x3a2   : > { %v3919_v40 = vsel %vm3917_vm8, %v3916_v19, %v10813_v18  ;;  %v3755_v6 = vadd.f32 %v10814_v28, %v3751_v35  ;;  %vm3821_vm3 = vcmp.ge.f32.partialorder %v3819_v48, 0.0  ;;  %v3823_v61 = vmul.f32 %v3819_v48, %v10736_v14 }
 0x3a3   : > { %v3922_v59 = vsel %vm3920_vm9, %v3919_v40, %v3902_v47  ;;  %v3843_v54 = vrot.slane %v3679_v57, 2  ;;  %v3781_v42 = vmul.f32 %v8948_v25, %v10736_v14  ;;  %vm3779_vm5 = vcmp.ge.f32.partialorder %v8948_v25, 0.0 }
 0x3a4   : > { %v3925_v39 = vsel %vm3923_vm10, %v3922_v59, %v3868_v58  ;;  %vm3757_vm6 = vcmp.ge.f32.partialorder %v3755_v6, 0.0  ;;  %v3759_v4 = vmul.f32 %v3755_v6, %v10736_v14  ;;  %v3825_v9 = vsel %vm3821_vm3, %v3819_v48, %v3823_v61 }
 0x3a5   : > { %3927 = vst [vmem:[%s9169_s1 + $0x8] sm:$0xff] %v3925_v39  ;;  %v3809_v12 = vmul.f32 %v3805_v13, %v10736_v14  ;;  %v3847_v49 = vadd.f32 %v8918_v52, %v3843_v54  ;;  %v3877_v50 = vrot.slane %v3825_v9, 2  ;;  %vm3807_vm11 = vcmp.ge.f32.partialorder %v3805_v13, 0.0 }
 0x3a6   : > { %v3761_v2 = vsel %vm3757_vm6, %v3755_v6, %v3759_v4  ;;  %vm3835_vm12 = vcmp.ge.f32.partialorder %v3833_v37, 0.0  ;;  %v3837_v1 = vmul.f32 %v3833_v37, %v10736_v14  ;;  %v3783_v5 = vsel %vm3779_vm5, %v8948_v25, %v3781_v42 }
 0x3a7   : > { %vm3849_vm13 = vcmp.ge.f32.partialorder %v3847_v49, 0.0  ;;  %v3851_v36 = vmul.f32 %v3847_v49, %v10736_v14  ;;  %v3857_v29 = vrot.slane %v3761_v2, 1  ;;  %v3909_v33 = vsel %vm3908_vm2, %v8977_v31, %v3877_v50 }
 0x3a8   : > { %v3811_v30 = vsel %vm3807_vm11, %v3805_v13, %v3809_v12  ;;  %v3839_v62 = vsel %vm3835_vm12, %v3833_v37, %v3837_v1  ;;  %v3889_v24 = vrot.slane %v3783_v5, 5 }
 0x3a9   : > { %v3853_v0 = vsel %vm3849_vm13, %v3847_v49, %v3851_v36  ;;  %v3861_v21 = vadd.f32 %v8918_v52, %v3857_v29  ;;  %v3895_v51 = vrot.slane %v3811_v30, 6  ;;  %v3901_v10 = vrot.slane %v3839_v62, 7 }
 0x3aa   : > { %v3883_v32 = vrot.slane %v3853_v0, 3 }
 0x3ab   : > { %v3865_v56 = vmul.f32 %v3861_v21, %v10736_v14  ;;  %vm3863_vm14 = vcmp.ge.f32.partialorder %v3861_v21, 0.0 }
 0x3ac   : > { %v3912_v7 = vsel %vm3911_vm4, %v3909_v33, %v3883_v32 }
 0x3ad   : > { %v3915_v11 = vsel %vm3914_vm7, %v3912_v7, %v3889_v24  ;;  %v3867_v25 = vsel %vm3863_vm14, %v3861_v21, %v3865_v56 }
 0x3ae   : > { %v3918_v31 = vsel %vm3917_vm8, %v3915_v11, %v3895_v51 }
 0x3af   : > { %v3921_v23 = vsel %vm3920_vm9, %v3918_v31, %v3901_v10 }
 0x3b0   : > { %v3924_v55 = vsel %vm3923_vm10, %v3921_v23, %v3867_v25 }
 0x3b1   : > { %3926 = vst [vmem:[%s9169_s1] sm:$0xff] %v3924_v55 }
 0x3b2 PF: > { %s10815_s30 = sld [smem:[#allocation9_spill]] }
 0x3b8   : > { %s17_s17 = sadd.s32 1, %s10815_s30  }
 0x3b9   : > { %p14_p5 = scmp.ge.s32.totalorder %s17_s17, 4  }
 0x3bb   :  { %16 = sbr.rel (!%p14_p5) target bundleno = 8 (0x8), region = 75 }
 0x3c2   :  { %3949 = vsyncpa [#allocation4], 1 }
 0x3c3   :  { %3951 = vsyncpa [#allocation4 + $0x1], 1 }
 0x3c4   :  { %3952 = vsyncpa [#allocation6], 1 }

</bundles_post_ra>
